<compile_context>
chip_gen: v7x
topology: tpu7x:2x2x1
jax: 0.10.0
libtpu: 0.0.40
codegen_flags: <defaults>
</compile_context>

<pallas_src>
import functools

import numpy as np

import jax
import jax.numpy as jnp
from jax.experimental import pallas as pl
from jax.experimental.pallas import tpu as pltpu


_SQRT_HALF = 0.7071067811865476

# column layout of the packed per-channel vector table (one (mid, _NVEC) f32 array)
(_I_BT0S, _I_BT0T, _I_C10B, _I_C0B, _I_B1B, _I_B2B, _I_B3B,
 _I_C4B, _I_C11B, _I_FC1B, _I_DWB) = range(11)
_I_DW0 = 11          # 9 depthwise 3x3 tap-weight columns: 11..19
_I_FC2B = 20
_NVEC = 21


# --------------------------------------------------------------------------
# activation helpers (used inside the kernel and in the pure-JAX reference)
# --------------------------------------------------------------------------
def _apply_act(y, act):
    if act == "relu":
        return jnp.maximum(y, 0.0)
    if act == "gelu":  # exact GELU, matches torch.nn.GELU default
        return 0.5 * y * (1.0 + jax.lax.erf(y * _SQRT_HALF))
    return y


# --------------------------------------------------------------------------
# fused CMAM kernel: one grid step == Bt images laid out (C, Bt*H*W)
# --------------------------------------------------------------------------
def _cmam_kernel(x_ref, vp_ref, m3_ref, m5_ref,
                 w_c10, w_c0, b1w1, b1w2, b2w1, b2w2, b3w1, b3w2,
                 w_c4, w_c11, fc1_w, fc2_w,
                 o_ref, slab_ref, *, W):
    f32 = jnp.float32
    C = x_ref.shape[0]
    MID = fc1_w.shape[0]
    NPIX = x_ref.shape[1]                 # Bt * H * W (lane-dense, multiple of 128 here)

    x = x_ref[...].astype(f32)            # (C, NPIX); storage is bf16, math is f32
    vp = vp_ref[...]                      # (MID, _NVEC) packed per-channel vectors, f32

    def vcol(idx, n):                     # (n, 1) column, lane-broadcast where used
        return vp[:n, idx:idx + 1]

    def conv1x1(v, w_ref, bias=None, act=None):
        y = jnp.dot(w_ref[...].astype(f32), v, preferred_element_type=f32)
        if bias is not None:
            y = y + bias
        return _apply_act(y, act)

    def tap(v, dy, dx, mask_ref, t):
        # value at flat position p becomes v[p + dy*W + dx]; any roll wrap (row seam or
        # image seam of the batch-folded lane axis) is zeroed by the per-tap mask.
        if dy == 0 and dx == 0:
            return v
        s = (-(dy * W + dx)) % NPIX
        return pltpu.roll(v, s, axis=1) * mask_ref[t:t + 1, :]

    def conv_kxk(v, w_ref, mask_ref, K, bias=None, act=None):
        # merged conv: stage all K*K shifted+masked taps into the shared VMEM slab,
        # then ONE (Cout, K*K*Cin) @ (K*K*Cin, NPIX) matmul (contraction dim K*K*Cin).
        cin = v.shape[0]
        p = K // 2
        t = 0
        for ky in range(K):
            for kx in range(K):
                slab_ref[t * cin:(t + 1) * cin, :] = tap(v, ky - p, kx - p, mask_ref, t)
                t += 1
        y = jnp.dot(w_ref[...].astype(f32), slab_ref[0:K * K * cin, :],
                    preferred_element_type=f32)
        if bias is not None:
            y = y + bias
        return _apply_act(y, act)

    def dwconv3x3(v, bias, mask_ref, act=None):
        # depthwise 3x3: per-tap per-channel scalar MAC on the VPU; bias seeds the
        # accumulator exactly once (broadcast fuses into the first add).
        cm = v.shape[0]
        acc = bias                                           # (cm, 1)
        t = 0
        for ky in range(3):
            for kx in range(3):
                acc = acc + vcol(_I_DW0 + t, cm) * tap(v, ky - 1, kx - 1, mask_ref, t)
                t += 1
        return _apply_act(acc, act)

    # ---- bt0 (inference BatchNorm as per-channel affine) ----
    xb = x * vcol(_I_BT0S, C) + vcol(_I_BT0T, C)

    # ---- CMA attention ----
    u = xb
    attn = conv1x1(xb, w_c10, vcol(_I_C10B, C), act="gelu")          # conv1_0 -> GELU
    attn = conv_kxk(attn, w_c0, m5_ref, 5, bias=vcol(_I_C0B, C))     # conv0 (5x5)
    # branches (branch BNs folded into the first conv of each branch)
    a1 = conv1x1(conv1x1(attn, b1w1, vcol(_I_B1B, C), act="relu"), b1w2)
    a2 = conv_kxk(conv_kxk(attn, b2w1, m3_ref, 3, bias=vcol(_I_B2B, C), act="relu"),
                  b2w2, m3_ref, 3)
    a3 = conv_kxk(conv_kxk(attn, b3w1, m5_ref, 5, bias=vcol(_I_B3B, C), act="relu"),
                  b3w2, m5_ref, 5)
    attn = conv1x1(attn + a1 + a2 + a3, w_c4, vcol(_I_C4B, C))       # conv4 (1x1)
    o1 = x + conv1x1(attn * u, w_c11, vcol(_I_C11B, C))              # conv1_1 + residual

    # ---- FFN (bt1 folded into fc1) ----
    y = conv1x1(o1, fc1_w, vcol(_I_FC1B, MID))                       # 1x1 expand
    y = dwconv3x3(y, vcol(_I_DWB, MID), m3_ref, act="gelu")          # dw 3x3 -> GELU
    y = conv1x1(y, fc2_w, vcol(_I_FC2B, C))                          # 1x1 project

    o_ref[...] = (o1 + y).astype(o_ref.dtype)                        # residual (drop_path = id)


# --------------------------------------------------------------------------
# parameter preparation: flatten weights to (Cout, K*K*Cin)/(Cout, Cin) bf16,
# fold branch BNs and bt1 into adjacent convs, pack per-channel vectors, masks.
# --------------------------------------------------------------------------
def _shift_masks(K, H, W, Bt):
    """(K*K, Bt*H*W) 0/1 boundary masks, tiled per image along the folded lane axis."""
    p = K // 2
    pos = np.arange(H * W)
    y, x = pos // W, pos % W
    rows = []
    for ky in range(K):
        for kx in range(K):
            dy, dx = ky - p, kx - p
            m = ((y + dy >= 0) & (y + dy < H) &
                 (x + dx >= 0) & (x + dx < W)).astype(np.float32)
            rows.append(m)
    m = np.stack(rows)                        # (K*K, H*W)
    return jnp.asarray(np.tile(m, (1, Bt)))   # (K*K, Bt*H*W)


def _prepare_kernel_args(p, H, W, Bt):
    cma, ffn = p["cma"], p["ffn"]
    mid = ffn["fc1_b"].shape[0]
    bf16 = jnp.bfloat16

    def w1x1(w):      # (1,1,Cin,Cout) -> (Cout, Cin), bf16
        return jnp.transpose(w[0, 0], (1, 0)).astype(bf16)

    def wkxk(w):      # HWIO (K,K,Cin,Cout) -> (Cout, K*K*Cin), rows tap-major (matches slab)
        K, _, cin, cout = w.shape
        return jnp.transpose(w, (3, 0, 1, 2)).reshape(cout, K * K * cin).astype(bf16)

    # ---- pack every per-channel vector into ONE (mid, _NVEC) f32 table ----
    cols = [None] * _NVEC

    def put(idx, v):
        v = jnp.asarray(v, jnp.float32)
        cols[idx] = jnp.pad(v, (0, mid - v.shape[0]))

    put(_I_BT0S, p["bt0_s"]); put(_I_BT0T, p["bt0_t"])
    put(_I_C10B, cma["conv1_0_b"]); put(_I_C0B, cma["conv0_b"])
    put(_I_B1B, cma["b1_bn_t"]); put(_I_B2B, cma["b2_bn_t"]); put(_I_B3B, cma["b3_bn_t"])
    put(_I_C4B, cma["conv4_b"]); put(_I_C11B, cma["conv1_1_b"])
    # fold bt1 (inference BN) into fc1:  W @ (s*x + t) + b = (W*s) @ x + (W @ t + b)
    wf1 = jnp.transpose(ffn["fc1_w"][0, 0], (1, 0)).astype(jnp.float32)   # (mid, C)
    fc1_w = (wf1 * p["bt1_s"][None, :]).astype(bf16)
    put(_I_FC1B, wf1 @ p["bt1_t"] + ffn["fc1_b"])
    put(_I_DWB, ffn["dw_b"])
    for t in range(9):
        put(_I_DW0 + t, ffn["dw_w"][t // 3, t % 3, 0])      # depthwise tap vectors
    put(_I_FC2B, ffn["fc2_b"])
    vec_pack = jnp.stack(cols, axis=1)                      # (mid, _NVEC) -> one VMEM tile

    def branch_w1(prefix):   # fold the branch BN scale into the first conv (out-channel)
        return cma[prefix + "_w1"] * cma[prefix + "_bn_s"].reshape(1, 1, 1, -1)

    weights = [
        w1x1(cma["conv1_0_w"]), wkxk(cma["conv0_w"]),
        w1x1(branch_w1("b1")), w1x1(cma["b1_w2"]),
        wkxk(branch_w1("b2")), wkxk(cma["b2_w2"]),
        wkxk(branch_w1("b3")), wkxk(cma["b3_w2"]),
        w1x1(cma["conv4_w"]), w1x1(cma["conv1_1_w"]),
        fc1_w, w1x1(ffn["fc2_w"]),
    ]
    return [vec_pack, _shift_masks(3, H, W, Bt), _shift_masks(5, H, W, Bt)] + weights


def _pick_batch_tile(B, C, mid, N, budget_bytes=24 << 20):
    # rough per-image VMEM bill: live (C,N) f32 activations + the (25*C,N) tap slab
    # + masks + double-buffered bf16 I/O; sized against ~24 MiB so the per-step block
    # also fits v7x's 64 MiB physical VMEM (v5e/v6e have 128 MiB) with headroom.
    rows = 14 * C + 25 * C + 3 * mid + 40
    per_image = rows * N * 4
    cap = max(1, budget_bytes // max(per_image, 1))
    bt = 1
    for d in range(1, B + 1):
        if B % d == 0 and d <= cap:
            bt = d
    return bt


# --------------------------------------------------------------------------
# public wrapper: NCHW in / NCHW out, single fused pallas_call, grid over batch tiles
# --------------------------------------------------------------------------
def cmam_forward(params, x_nchw):
    B, C, H, W = x_nchw.shape
    N = H * W                      # lane-dense when H*W is a multiple of 128 (256 here)
    mid = params["ffn"]["fc1_b"].shape[0]
    Bt = _pick_batch_tile(B, C, mid, N)
    BtN = Bt * N
    args = _prepare_kernel_args(params, H, W, Bt)

    # fold batch into the lane axis: (B,C,H,W) -> (C, B*H*W) with images contiguous;
    # activations stored bf16 (all accumulation inside the kernel is f32).
    x_flat = jnp.transpose(x_nchw.reshape(B, C, N), (1, 0, 2)).reshape(C, B * N)
    x_flat = x_flat.astype(jnp.bfloat16)

    def const_spec(a):   # whole-array block with constant index map -> fetched once
        nd = a.ndim
        return pl.BlockSpec(a.shape, lambda b, _nd=nd: (0,) * _nd)

    out = pl.pallas_call(
        functools.partial(_cmam_kernel, W=W),
        out_shape=jax.ShapeDtypeStruct((C, B * N), jnp.float32),
        grid=(B // Bt,),
        in_specs=[pl.BlockSpec((C, BtN), lambda b: (0, b))]
                 + [const_spec(a) for a in args],
        out_specs=pl.BlockSpec((C, BtN), lambda b: (0, b)),
        scratch_shapes=[pltpu.VMEM((25 * C, BtN), jnp.float32)],   # shared tap slab
        compiler_params=pltpu.CompilerParams(
            # NOTE(v7x): if a profile shows one idle TensorCore, switch this axis to
            # pltpu.CORE_PARALLEL (plain "parallel" is a measured near-no-op there).
            dimension_semantics=("parallel",),
            vmem_limit_bytes=48 * 1024 * 1024),
    )(x_flat, *args)

    return jnp.transpose(out.reshape(C, B, N), (1, 0, 2)).reshape(B, C, H, W)


# --------------------------------------------------------------------------
# pure-JAX reference (unfused, unfolded, f32/HIGHEST) for correctness checking
# --------------------------------------------------------------------------
def cmam_reference(params, x_nchw):
    x = jnp.transpose(x_nchw, (0, 2, 3, 1))                 # NCHW -> NHWC
    cma, ffn = params["cma"], params["ffn"]

    def conv(v, w, b=None, act=None, groups=1):
        y = jax.lax.conv_general_dilated(
            v, w, (1, 1), "SAME",
            dimension_numbers=("NHWC", "HWIO", "NHWC"),
            feature_group_count=groups,
            precision=jax.lax.Precision.HIGHEST)
        if b is not None:
            y = y + b.reshape(1, 1, 1, -1)
        return _apply_act(y, act)

    def affine(v, s, t, act=None):
        return _apply_act(v * s.reshape(1, 1, 1, -1) + t.reshape(1, 1, 1, -1), act)

    shortcut = x
    xb = affine(x, params["bt0_s"], params["bt0_t"])
    # CMA
    u = xb
    attn = conv(xb, cma["conv1_0_w"], cma["conv1_0_b"], act="gelu")
    attn = conv(attn, cma["conv0_w"], cma["conv0_b"])

    def branch(prefix):
        y = conv(attn, cma[prefix + "_w1"])
        y = affine(y, cma[prefix + "_bn_s"], cma[prefix + "_bn_t"], act="relu")
        return conv(y, cma[prefix + "_w2"])

    s = attn + branch("b1") + branch("b2") + branch("b3")
    attn = conv(s, cma["conv4_w"], cma["conv4_b"])
    o1 = shortcut + conv(attn * u, cma["conv1_1_w"], cma["conv1_1_b"])
    # FFN
    ob = affine(o1, params["bt1_s"], params["bt1_t"])
    y = conv(ob, ffn["fc1_w"], ffn["fc1_b"])
    y = conv(y, ffn["dw_w"], ffn["dw_b"], act="gelu", groups=y.shape[-1])
    y = conv(y, ffn["fc2_w"], ffn["fc2_b"])
    out = o1 + y
    return jnp.transpose(out, (0, 3, 1, 2))                 # back to NCHW


# --------------------------------------------------------------------------
# deterministic parameter init (conv weights stored HWIO; BN as folded affine)
# --------------------------------------------------------------------------
def _uniform(key, shape, bound):
    return jax.random.uniform(key, shape, jnp.float32, -bound, bound)


def _bn(key, c, eps=1e-5):
    k1, k2, k3, k4 = jax.random.split(key, 4)
    gamma = jax.random.uniform(k1, (c,), jnp.float32, 0.5, 1.5)
    beta = 0.1 * jax.random.normal(k2, (c,), jnp.float32)
    mean = 0.1 * jax.random.normal(k3, (c,), jnp.float32)
    var = jax.random.uniform(k4, (c,), jnp.float32, 0.5, 1.5)
    scale = gamma / jnp.sqrt(var + eps)
    shift = beta - mean * scale
    return scale, shift


def init_params(key, C, mlp_ratio=2):
    mid = C * mlp_ratio
    keys = iter(jax.random.split(key, 64))
    nk = lambda: next(keys)

    def conv(k, cin, cout, bias=True):
        bound = 1.0 / (cin * k * k) ** 0.5
        w = _uniform(nk(), (k, k, cin, cout), bound)
        b = _uniform(nk(), (cout,), bound) if bias else None
        return w, b

    p = {}
    p["bt0_s"], p["bt0_t"] = _bn(nk(), C)
    p["bt1_s"], p["bt1_t"] = _bn(nk(), C)

    cma = {}
    cma["conv1_0_w"], cma["conv1_0_b"] = conv(1, C, C)
    cma["conv0_w"], cma["conv0_b"] = conv(5, C, C)
    for name, k in (("b1", 1), ("b2", 3), ("b3", 5)):
        cma[name + "_w1"], _ = conv(k, C, C, bias=False)
        cma[name + "_bn_s"], cma[name + "_bn_t"] = _bn(nk(), C)
        cma[name + "_w2"], _ = conv(k, C, C, bias=False)
    cma["conv4_w"], cma["conv4_b"] = conv(1, C, C)
    cma["conv1_1_w"], cma["conv1_1_b"] = conv(1, C, C)
    p["cma"] = cma

    ffn = {}
    ffn["fc1_w"], ffn["fc1_b"] = conv(1, C, mid)
    dw_bound = 1.0 / 3.0
    ffn["dw_w"] = _uniform(nk(), (3, 3, 1, mid), dw_bound)   # depthwise (HWIO, I=1)
    ffn["dw_b"] = _uniform(nk(), (mid,), dw_bound)
    ffn["fc2_w"], ffn["fc2_b"] = conv(1, mid, C)
    p["ffn"] = ffn
    return p


# --------------------------------------------------------------------------
if __name__ == "__main__":
    B, C, H, W = 2, 4, 16, 16
    key = jax.random.PRNGKey(0)
    k_x, k_p = jax.random.split(key)
    x = jax.random.normal(k_x, (B, C, H, W), jnp.float32)
    params = init_params(k_p, C, mlp_ratio=2)

    out = jax.block_until_ready(jax.jit(cmam_forward)(params, x))
    ref = jax.block_until_ready(cmam_reference(params, x))

    # kernel stores x/weights in bf16 and uses default MXU precision (single bf16 pass);
    # reference is f32/HIGHEST, hence the 3e-2 inference tolerance.
    np.testing.assert_allclose(np.asarray(out), np.asarray(ref), rtol=3e-2, atol=3e-2)
    print("KERNEL_OK")
</pallas_src>

<mosaic_0001>
module attributes {stable_mosaic.version = 11 : i64} {
  func.func @_cmam_kernel(%arg0: i32, %arg1: memref<4x512xbf16, #tpu.memory_space<vmem>>, %arg2: memref<8x21xf32, #tpu.memory_space<vmem>>, %arg3: memref<9x512xf32, #tpu.memory_space<vmem>>, %arg4: memref<25x512xf32, #tpu.memory_space<vmem>>, %arg5: memref<4x4xbf16, #tpu.memory_space<vmem>>, %arg6: memref<4x100xbf16, #tpu.memory_space<vmem>>, %arg7: memref<4x4xbf16, #tpu.memory_space<vmem>>, %arg8: memref<4x4xbf16, #tpu.memory_space<vmem>>, %arg9: memref<4x36xbf16, #tpu.memory_space<vmem>>, %arg10: memref<4x36xbf16, #tpu.memory_space<vmem>>, %arg11: memref<4x100xbf16, #tpu.memory_space<vmem>>, %arg12: memref<4x100xbf16, #tpu.memory_space<vmem>>, %arg13: memref<4x4xbf16, #tpu.memory_space<vmem>>, %arg14: memref<4x4xbf16, #tpu.memory_space<vmem>>, %arg15: memref<8x4xbf16, #tpu.memory_space<vmem>>, %arg16: memref<4x8xbf16, #tpu.memory_space<vmem>>, %arg17: memref<4x512xf32, #tpu.memory_space<vmem>>, %arg18: memref<100x512xf32, #tpu.memory_space<vmem>>) attributes {dimension_semantics = [#tpu.dimension_semantics<parallel>], iteration_bounds = array<i64: 1>, scalar_prefetch = 0 : i64, scratch_operands = 1 : i64, tpu.core_type = #tpu.core_type<tc>, window_params = [{transform_indices = @transform_0, window_bounds = array<i64: 4, 512>}, {pipeline_mode = #tpu.pipeline_mode<synchronous>, transform_indices = @transform_1, window_bounds = array<i64: 8, 21>}, {pipeline_mode = #tpu.pipeline_mode<synchronous>, transform_indices = @transform_2, window_bounds = array<i64: 9, 512>}, {pipeline_mode = #tpu.pipeline_mode<synchronous>, transform_indices = @transform_3, window_bounds = array<i64: 25, 512>}, {pipeline_mode = #tpu.pipeline_mode<synchronous>, transform_indices = @transform_4, window_bounds = array<i64: 4, 4>}, {pipeline_mode = #tpu.pipeline_mode<synchronous>, transform_indices = @transform_5, window_bounds = array<i64: 4, 100>}, {pipeline_mode = #tpu.pipeline_mode<synchronous>, transform_indices = @transform_6, window_bounds = array<i64: 4, 4>}, {pipeline_mode = #tpu.pipeline_mode<synchronous>, transform_indices = @transform_7, window_bounds = array<i64: 4, 4>}, {pipeline_mode = #tpu.pipeline_mode<synchronous>, transform_indices = @transform_8, window_bounds = array<i64: 4, 36>}, {pipeline_mode = #tpu.pipeline_mode<synchronous>, transform_indices = @transform_9, window_bounds = array<i64: 4, 36>}, {pipeline_mode = #tpu.pipeline_mode<synchronous>, transform_indices = @transform_10, window_bounds = array<i64: 4, 100>}, {pipeline_mode = #tpu.pipeline_mode<synchronous>, transform_indices = @transform_11, window_bounds = array<i64: 4, 100>}, {pipeline_mode = #tpu.pipeline_mode<synchronous>, transform_indices = @transform_12, window_bounds = array<i64: 4, 4>}, {pipeline_mode = #tpu.pipeline_mode<synchronous>, transform_indices = @transform_13, window_bounds = array<i64: 4, 4>}, {pipeline_mode = #tpu.pipeline_mode<synchronous>, transform_indices = @transform_14, window_bounds = array<i64: 8, 4>}, {pipeline_mode = #tpu.pipeline_mode<synchronous>, transform_indices = @transform_15, window_bounds = array<i64: 4, 8>}, {transform_indices = @transform_16, window_bounds = array<i64: 4, 512>}]} {
    %c0 = arith.constant 0 : index
    %c0_0 = arith.constant 0 : index
    %0 = vector.load %arg1[%c0, %c0_0] : memref<4x512xbf16, #tpu.memory_space<vmem>>, vector<4x512xbf16>
    %1 = arith.extf %0 : vector<4x512xbf16> to vector<4x512xf32>
    %c0_1 = arith.constant 0 : index
    %c0_2 = arith.constant 0 : index
    %2 = vector.load %arg2[%c0_1, %c0_2] : memref<8x21xf32, #tpu.memory_space<vmem>>, vector<8x21xf32>
    %3 = vector.extract_strided_slice %2 {offsets = [0, 0], sizes = [4, 1], strides = [1, 1]} : vector<8x21xf32> to vector<4x1xf32>
    %4 = vector.broadcast %3 : vector<4x1xf32> to vector<4x512xf32>
    %5 = arith.mulf %1, %4 : vector<4x512xf32>
    %6 = vector.extract_strided_slice %2 {offsets = [0, 1], sizes = [4, 1], strides = [1, 1]} : vector<8x21xf32> to vector<4x1xf32>
    %7 = vector.broadcast %6 : vector<4x1xf32> to vector<4x512xf32>
    %8 = arith.addf %5, %7 : vector<4x512xf32>
    %9 = vector.extract_strided_slice %2 {offsets = [0, 2], sizes = [4, 1], strides = [1, 1]} : vector<8x21xf32> to vector<4x1xf32>
    %c0_3 = arith.constant 0 : index
    %c0_4 = arith.constant 0 : index
    %10 = vector.load %arg5[%c0_3, %c0_4] : memref<4x4xbf16, #tpu.memory_space<vmem>>, vector<4x4xbf16>
    %11 = arith.extf %10 : vector<4x4xbf16> to vector<4x4xf32>
    %cst = arith.constant dense<0.000000e+00> : vector<4x512xf32>
    %12 = tpu.matmul %11, %8, %cst {dimension_numbers = #tpu.dot_dimension_numbers<[1], [0], [0], [1], [0, 0, 1, 1], [], []>} : vector<4x4xf32>, vector<4x512xf32>, vector<4x512xf32> -> vector<4x512xf32>
    %13 = vector.broadcast %9 : vector<4x1xf32> to vector<4x512xf32>
    %14 = arith.addf %12, %13 : vector<4x512xf32>
    %cst_5 = arith.constant 5.000000e-01 : f32
    %15 = vector.broadcast %cst_5 : f32 to vector<4x512xf32>
    %16 = arith.mulf %15, %14 : vector<4x512xf32>
    %cst_6 = arith.constant 0.707106769 : f32
    %17 = vector.broadcast %cst_6 : f32 to vector<4x512xf32>
    %18 = arith.mulf %14, %17 : vector<4x512xf32>
    %19 = math.erf %18 : vector<4x512xf32>
    %cst_7 = arith.constant 1.000000e+00 : f32
    %20 = vector.broadcast %cst_7 : f32 to vector<4x512xf32>
    %21 = arith.addf %20, %19 : vector<4x512xf32>
    %22 = arith.mulf %16, %21 : vector<4x512xf32>
    %23 = vector.extract_strided_slice %2 {offsets = [0, 3], sizes = [4, 1], strides = [1, 1]} : vector<8x21xf32> to vector<4x1xf32>
    %c34_i32 = arith.constant 34 : i32
    %24 = tpu.dynamic_rotate %22 by %c34_i32 dim 1 : vector<4x512xf32>, i32 -> vector<4x512xf32>
    %c0_8 = arith.constant 0 : index
    %c0_9 = arith.constant 0 : index
    %25 = vector.load %arg4[%c0_8, %c0_9] : memref<25x512xf32, #tpu.memory_space<vmem>>, vector<1x512xf32>
    %26 = vector.broadcast %25 : vector<1x512xf32> to vector<4x512xf32>
    %27 = arith.mulf %24, %26 : vector<4x512xf32>
    %c0_10 = arith.constant 0 : index
    %c0_11 = arith.constant 0 : index
    %28 = vector.load %arg18[%c0_10, %c0_11] : memref<100x512xf32, #tpu.memory_space<vmem>>, vector<4x512xf32>
    tpu.vector_store %arg18[%c0_10, %c0_11], %27 {strides = array<i32>} : memref<100x512xf32, #tpu.memory_space<vmem>>, vector<4x512xf32>,
    %c33_i32 = arith.constant 33 : i32
    %29 = tpu.dynamic_rotate %22 by %c33_i32 dim 1 : vector<4x512xf32>, i32 -> vector<4x512xf32>
    %c1 = arith.constant 1 : index
    %c0_12 = arith.constant 0 : index
    %30 = vector.load %arg4[%c1, %c0_12] : memref<25x512xf32, #tpu.memory_space<vmem>>, vector<1x512xf32>
    %31 = vector.broadcast %30 : vector<1x512xf32> to vector<4x512xf32>
    %32 = arith.mulf %29, %31 : vector<4x512xf32>
    %c4 = arith.constant 4 : index
    %c0_13 = arith.constant 0 : index
    %33 = vector.load %arg18[%c4, %c0_13] : memref<100x512xf32, #tpu.memory_space<vmem>>, vector<4x512xf32>
    tpu.vector_store %arg18[%c4, %c0_13], %32 {strides = array<i32>} : memref<100x512xf32, #tpu.memory_space<vmem>>, vector<4x512xf32>,
    %c32_i32 = arith.constant 32 : i32
    %34 = tpu.dynamic_rotate %22 by %c32_i32 dim 1 : vector<4x512xf32>, i32 -> vector<4x512xf32>
    %c2 = arith.constant 2 : index
    %c0_14 = arith.constant 0 : index
    %35 = vector.load %arg4[%c2, %c0_14] : memref<25x512xf32, #tpu.memory_space<vmem>>, vector<1x512xf32>
    %36 = vector.broadcast %35 : vector<1x512xf32> to vector<4x512xf32>
    %37 = arith.mulf %34, %36 : vector<4x512xf32>
    %c8 = arith.constant 8 : index
    %c0_15 = arith.constant 0 : index
    %38 = vector.load %arg18[%c8, %c0_15] : memref<100x512xf32, #tpu.memory_space<vmem>>, vector<4x512xf32>
    tpu.vector_store %arg18[%c8, %c0_15], %37 {strides = array<i32>} : memref<100x512xf32, #tpu.memory_space<vmem>>, vector<4x512xf32>,
    %c31_i32 = arith.constant 31 : i32
    %39 = tpu.dynamic_rotate %22 by %c31_i32 dim 1 : vector<4x512xf32>, i32 -> vector<4x512xf32>
    %c3 = arith.constant 3 : index
    %c0_16 = arith.constant 0 : index
    %40 = vector.load %arg4[%c3, %c0_16] : memref<25x512xf32, #tpu.memory_space<vmem>>, vector<1x512xf32>
    %41 = vector.broadcast %40 : vector<1x512xf32> to vector<4x512xf32>
    %42 = arith.mulf %39, %41 : vector<4x512xf32>
    %c12 = arith.constant 12 : index
    %c0_17 = arith.constant 0 : index
    %43 = vector.load %arg18[%c12, %c0_17] : memref<100x512xf32, #tpu.memory_space<vmem>>, vector<4x512xf32>
    tpu.vector_store %arg18[%c12, %c0_17], %42 {strides = array<i32>} : memref<100x512xf32, #tpu.memory_space<vmem>>, vector<4x512xf32>,
    %c30_i32 = arith.constant 30 : i32
    %44 = tpu.dynamic_rotate %22 by %c30_i32 dim 1 : vector<4x512xf32>, i32 -> vector<4x512xf32>
    %c4_18 = arith.constant 4 : index
    %c0_19 = arith.constant 0 : index
    %45 = vector.load %arg4[%c4_18, %c0_19] : memref<25x512xf32, #tpu.memory_space<vmem>>, vector<1x512xf32>
    %46 = vector.broadcast %45 : vector<1x512xf32> to vector<4x512xf32>
    %47 = arith.mulf %44, %46 : vector<4x512xf32>
    %c16 = arith.constant 16 : index
    %c0_20 = arith.constant 0 : index
    %48 = vector.load %arg18[%c16, %c0_20] : memref<100x512xf32, #tpu.memory_space<vmem>>, vector<4x512xf32>
    tpu.vector_store %arg18[%c16, %c0_20], %47 {strides = array<i32>} : memref<100x512xf32, #tpu.memory_space<vmem>>, vector<4x512xf32>,
    %c18_i32 = arith.constant 18 : i32
    %49 = tpu.dynamic_rotate %22 by %c18_i32 dim 1 : vector<4x512xf32>, i32 -> vector<4x512xf32>
    %c5 = arith.constant 5 : index
    %c0_21 = arith.constant 0 : index
    %50 = vector.load %arg4[%c5, %c0_21] : memref<25x512xf32, #tpu.memory_space<vmem>>, vector<1x512xf32>
    %51 = vector.broadcast %50 : vector<1x512xf32> to vector<4x512xf32>
    %52 = arith.mulf %49, %51 : vector<4x512xf32>
    %c20 = arith.constant 20 : index
    %c0_22 = arith.constant 0 : index
    %53 = vector.load %arg18[%c20, %c0_22] : memref<100x512xf32, #tpu.memory_space<vmem>>, vector<4x512xf32>
    tpu.vector_store %arg18[%c20, %c0_22], %52 {strides = array<i32>} : memref<100x512xf32, #tpu.memory_space<vmem>>, vector<4x512xf32>,
    %c17_i32 = arith.constant 17 : i32
    %54 = tpu.dynamic_rotate %22 by %c17_i32 dim 1 : vector<4x512xf32>, i32 -> vector<4x512xf32>
    %c6 = arith.constant 6 : index
    %c0_23 = arith.constant 0 : index
    %55 = vector.load %arg4[%c6, %c0_23] : memref<25x512xf32, #tpu.memory_space<vmem>>, vector<1x512xf32>
    %56 = vector.broadcast %55 : vector<1x512xf32> to vector<4x512xf32>
    %57 = arith.mulf %54, %56 : vector<4x512xf32>
    %c24 = arith.constant 24 : index
    %c0_24 = arith.constant 0 : index
    %58 = vector.load %arg18[%c24, %c0_24] : memref<100x512xf32, #tpu.memory_space<vmem>>, vector<4x512xf32>
    tpu.vector_store %arg18[%c24, %c0_24], %57 {strides = array<i32>} : memref<100x512xf32, #tpu.memory_space<vmem>>, vector<4x512xf32>,
    %c16_i32 = arith.constant 16 : i32
    %59 = tpu.dynamic_rotate %22 by %c16_i32 dim 1 : vector<4x512xf32>, i32 -> vector<4x512xf32>
    %c7 = arith.constant 7 : index
    %c0_25 = arith.constant 0 : index
    %60 = vector.load %arg4[%c7, %c0_25] : memref<25x512xf32, #tpu.memory_space<vmem>>, vector<1x512xf32>
    %61 = vector.broadcast %60 : vector<1x512xf32> to vector<4x512xf32>
    %62 = arith.mulf %59, %61 : vector<4x512xf32>
    %c28 = arith.constant 28 : index
    %c0_26 = arith.constant 0 : index
    %63 = vector.load %arg18[%c28, %c0_26] : memref<100x512xf32, #tpu.memory_space<vmem>>, vector<4x512xf32>
    tpu.vector_store %arg18[%c28, %c0_26], %62 {strides = array<i32>} : memref<100x512xf32, #tpu.memory_space<vmem>>, vector<4x512xf32>,
    %c15_i32 = arith.constant 15 : i32
    %64 = tpu.dynamic_rotate %22 by %c15_i32 dim 1 : vector<4x512xf32>, i32 -> vector<4x512xf32>
    %c8_27 = arith.constant 8 : index
    %c0_28 = arith.constant 0 : index
    %65 = vector.load %arg4[%c8_27, %c0_28] : memref<25x512xf32, #tpu.memory_space<vmem>>, vector<1x512xf32>
    %66 = vector.broadcast %65 : vector<1x512xf32> to vector<4x512xf32>
    %67 = arith.mulf %64, %66 : vector<4x512xf32>
    %c32 = arith.constant 32 : index
    %c0_29 = arith.constant 0 : index
    %68 = vector.load %arg18[%c32, %c0_29] : memref<100x512xf32, #tpu.memory_space<vmem>>, vector<4x512xf32>
    tpu.vector_store %arg18[%c32, %c0_29], %67 {strides = array<i32>} : memref<100x512xf32, #tpu.memory_space<vmem>>, vector<4x512xf32>,
    %c14_i32 = arith.constant 14 : i32
    %69 = tpu.dynamic_rotate %22 by %c14_i32 dim 1 : vector<4x512xf32>, i32 -> vector<4x512xf32>
    %c9 = arith.constant 9 : index
    %c0_30 = arith.constant 0 : index
    %70 = vector.load %arg4[%c9, %c0_30] : memref<25x512xf32, #tpu.memory_space<vmem>>, vector<1x512xf32>
    %71 = vector.broadcast %70 : vector<1x512xf32> to vector<4x512xf32>
    %72 = arith.mulf %69, %71 : vector<4x512xf32>
    %c36 = arith.constant 36 : index
    %c0_31 = arith.constant 0 : index
    %73 = vector.load %arg18[%c36, %c0_31] : memref<100x512xf32, #tpu.memory_space<vmem>>, vector<4x512xf32>
    tpu.vector_store %arg18[%c36, %c0_31], %72 {strides = array<i32>} : memref<100x512xf32, #tpu.memory_space<vmem>>, vector<4x512xf32>,
    %c2_i32 = arith.constant 2 : i32
    %74 = tpu.dynamic_rotate %22 by %c2_i32 dim 1 : vector<4x512xf32>, i32 -> vector<4x512xf32>
    %c10 = arith.constant 10 : index
    %c0_32 = arith.constant 0 : index
    %75 = vector.load %arg4[%c10, %c0_32] : memref<25x512xf32, #tpu.memory_space<vmem>>, vector<1x512xf32>
    %76 = vector.broadcast %75 : vector<1x512xf32> to vector<4x512xf32>
    %77 = arith.mulf %74, %76 : vector<4x512xf32>
    %c40 = arith.constant 40 : index
    %c0_33 = arith.constant 0 : index
    %78 = vector.load %arg18[%c40, %c0_33] : memref<100x512xf32, #tpu.memory_space<vmem>>, vector<4x512xf32>
    tpu.vector_store %arg18[%c40, %c0_33], %77 {strides = array<i32>} : memref<100x512xf32, #tpu.memory_space<vmem>>, vector<4x512xf32>,
    %c1_i32 = arith.constant 1 : i32
    %79 = tpu.dynamic_rotate %22 by %c1_i32 dim 1 : vector<4x512xf32>, i32 -> vector<4x512xf32>
    %c11 = arith.constant 11 : index
    %c0_34 = arith.constant 0 : index
    %80 = vector.load %arg4[%c11, %c0_34] : memref<25x512xf32, #tpu.memory_space<vmem>>, vector<1x512xf32>
    %81 = vector.broadcast %80 : vector<1x512xf32> to vector<4x512xf32>
    %82 = arith.mulf %79, %81 : vector<4x512xf32>
    %c44 = arith.constant 44 : index
    %c0_35 = arith.constant 0 : index
    %83 = vector.load %arg18[%c44, %c0_35] : memref<100x512xf32, #tpu.memory_space<vmem>>, vector<4x512xf32>
    tpu.vector_store %arg18[%c44, %c0_35], %82 {strides = array<i32>} : memref<100x512xf32, #tpu.memory_space<vmem>>, vector<4x512xf32>,
    %c48 = arith.constant 48 : index
    %c0_36 = arith.constant 0 : index
    %84 = vector.load %arg18[%c48, %c0_36] : memref<100x512xf32, #tpu.memory_space<vmem>>, vector<4x512xf32>
    tpu.vector_store %arg18[%c48, %c0_36], %22 {strides = array<i32>} : memref<100x512xf32, #tpu.memory_space<vmem>>, vector<4x512xf32>,
    %c511_i32 = arith.constant 511 : i32
    %85 = tpu.dynamic_rotate %22 by %c511_i32 dim 1 : vector<4x512xf32>, i32 -> vector<4x512xf32>
    %c13 = arith.constant 13 : index
    %c0_37 = arith.constant 0 : index
    %86 = vector.load %arg4[%c13, %c0_37] : memref<25x512xf32, #tpu.memory_space<vmem>>, vector<1x512xf32>
    %87 = vector.broadcast %86 : vector<1x512xf32> to vector<4x512xf32>
    %88 = arith.mulf %85, %87 : vector<4x512xf32>
    %c52 = arith.constant 52 : index
    %c0_38 = arith.constant 0 : index
    %89 = vector.load %arg18[%c52, %c0_38] : memref<100x512xf32, #tpu.memory_space<vmem>>, vector<4x512xf32>
    tpu.vector_store %arg18[%c52, %c0_38], %88 {strides = array<i32>} : memref<100x512xf32, #tpu.memory_space<vmem>>, vector<4x512xf32>,
    %c510_i32 = arith.constant 510 : i32
    %90 = tpu.dynamic_rotate %22 by %c510_i32 dim 1 : vector<4x512xf32>, i32 -> vector<4x512xf32>
    %c14 = arith.constant 14 : index
    %c0_39 = arith.constant 0 : index
    %91 = vector.load %arg4[%c14, %c0_39] : memref<25x512xf32, #tpu.memory_space<vmem>>, vector<1x512xf32>
    %92 = vector.broadcast %91 : vector<1x512xf32> to vector<4x512xf32>
    %93 = arith.mulf %90, %92 : vector<4x512xf32>
    %c56 = arith.constant 56 : index
    %c0_40 = arith.constant 0 : index
    %94 = vector.load %arg18[%c56, %c0_40] : memref<100x512xf32, #tpu.memory_space<vmem>>, vector<4x512xf32>
    tpu.vector_store %arg18[%c56, %c0_40], %93 {strides = array<i32>} : memref<100x512xf32, #tpu.memory_space<vmem>>, vector<4x512xf32>,
    %c498_i32 = arith.constant 498 : i32
    %95 = tpu.dynamic_rotate %22 by %c498_i32 dim 1 : vector<4x512xf32>, i32 -> vector<4x512xf32>
    %c15 = arith.constant 15 : index
    %c0_41 = arith.constant 0 : index
    %96 = vector.load %arg4[%c15, %c0_41] : memref<25x512xf32, #tpu.memory_space<vmem>>, vector<1x512xf32>
    %97 = vector.broadcast %96 : vector<1x512xf32> to vector<4x512xf32>
    %98 = arith.mulf %95, %97 : vector<4x512xf32>
    %c60 = arith.constant 60 : index
    %c0_42 = arith.constant 0 : index
    %99 = vector.load %arg18[%c60, %c0_42] : memref<100x512xf32, #tpu.memory_space<vmem>>, vector<4x512xf32>
    tpu.vector_store %arg18[%c60, %c0_42], %98 {strides = array<i32>} : memref<100x512xf32, #tpu.memory_space<vmem>>, vector<4x512xf32>,
    %c497_i32 = arith.constant 497 : i32
    %100 = tpu.dynamic_rotate %22 by %c497_i32 dim 1 : vector<4x512xf32>, i32 -> vector<4x512xf32>
    %c16_43 = arith.constant 16 : index
    %c0_44 = arith.constant 0 : index
    %101 = vector.load %arg4[%c16_43, %c0_44] : memref<25x512xf32, #tpu.memory_space<vmem>>, vector<1x512xf32>
    %102 = vector.broadcast %101 : vector<1x512xf32> to vector<4x512xf32>
    %103 = arith.mulf %100, %102 : vector<4x512xf32>
    %c64 = arith.constant 64 : index
    %c0_45 = arith.constant 0 : index
    %104 = vector.load %arg18[%c64, %c0_45] : memref<100x512xf32, #tpu.memory_space<vmem>>, vector<4x512xf32>
    tpu.vector_store %arg18[%c64, %c0_45], %103 {strides = array<i32>} : memref<100x512xf32, #tpu.memory_space<vmem>>, vector<4x512xf32>,
    %c496_i32 = arith.constant 496 : i32
    %105 = tpu.dynamic_rotate %22 by %c496_i32 dim 1 : vector<4x512xf32>, i32 -> vector<4x512xf32>
    %c17 = arith.constant 17 : index
    %c0_46 = arith.constant 0 : index
    %106 = vector.load %arg4[%c17, %c0_46] : memref<25x512xf32, #tpu.memory_space<vmem>>, vector<1x512xf32>
    %107 = vector.broadcast %106 : vector<1x512xf32> to vector<4x512xf32>
    %108 = arith.mulf %105, %107 : vector<4x512xf32>
    %c68 = arith.constant 68 : index
    %c0_47 = arith.constant 0 : index
    %109 = vector.load %arg18[%c68, %c0_47] : memref<100x512xf32, #tpu.memory_space<vmem>>, vector<4x512xf32>
    tpu.vector_store %arg18[%c68, %c0_47], %108 {strides = array<i32>} : memref<100x512xf32, #tpu.memory_space<vmem>>, vector<4x512xf32>,
    %c495_i32 = arith.constant 495 : i32
    %110 = tpu.dynamic_rotate %22 by %c495_i32 dim 1 : vector<4x512xf32>, i32 -> vector<4x512xf32>
    %c18 = arith.constant 18 : index
    %c0_48 = arith.constant 0 : index
    %111 = vector.load %arg4[%c18, %c0_48] : memref<25x512xf32, #tpu.memory_space<vmem>>, vector<1x512xf32>
    %112 = vector.broadcast %111 : vector<1x512xf32> to vector<4x512xf32>
    %113 = arith.mulf %110, %112 : vector<4x512xf32>
    %c72 = arith.constant 72 : index
    %c0_49 = arith.constant 0 : index
    %114 = vector.load %arg18[%c72, %c0_49] : memref<100x512xf32, #tpu.memory_space<vmem>>, vector<4x512xf32>
    tpu.vector_store %arg18[%c72, %c0_49], %113 {strides = array<i32>} : memref<100x512xf32, #tpu.memory_space<vmem>>, vector<4x512xf32>,
    %c494_i32 = arith.constant 494 : i32
    %115 = tpu.dynamic_rotate %22 by %c494_i32 dim 1 : vector<4x512xf32>, i32 -> vector<4x512xf32>
    %c19 = arith.constant 19 : index
    %c0_50 = arith.constant 0 : index
    %116 = vector.load %arg4[%c19, %c0_50] : memref<25x512xf32, #tpu.memory_space<vmem>>, vector<1x512xf32>
    %117 = vector.broadcast %116 : vector<1x512xf32> to vector<4x512xf32>
    %118 = arith.mulf %115, %117 : vector<4x512xf32>
    %c76 = arith.constant 76 : index
    %c0_51 = arith.constant 0 : index
    %119 = vector.load %arg18[%c76, %c0_51] : memref<100x512xf32, #tpu.memory_space<vmem>>, vector<4x512xf32>
    tpu.vector_store %arg18[%c76, %c0_51], %118 {strides = array<i32>} : memref<100x512xf32, #tpu.memory_space<vmem>>, vector<4x512xf32>,
    %c482_i32 = arith.constant 482 : i32
    %120 = tpu.dynamic_rotate %22 by %c482_i32 dim 1 : vector<4x512xf32>, i32 -> vector<4x512xf32>
    %c20_52 = arith.constant 20 : index
    %c0_53 = arith.constant 0 : index
    %121 = vector.load %arg4[%c20_52, %c0_53] : memref<25x512xf32, #tpu.memory_space<vmem>>, vector<1x512xf32>
    %122 = vector.broadcast %121 : vector<1x512xf32> to vector<4x512xf32>
    %123 = arith.mulf %120, %122 : vector<4x512xf32>
    %c80 = arith.constant 80 : index
    %c0_54 = arith.constant 0 : index
    %124 = vector.load %arg18[%c80, %c0_54] : memref<100x512xf32, #tpu.memory_space<vmem>>, vector<4x512xf32>
    tpu.vector_store %arg18[%c80, %c0_54], %123 {strides = array<i32>} : memref<100x512xf32, #tpu.memory_space<vmem>>, vector<4x512xf32>,
    %c481_i32 = arith.constant 481 : i32
    %125 = tpu.dynamic_rotate %22 by %c481_i32 dim 1 : vector<4x512xf32>, i32 -> vector<4x512xf32>
    %c21 = arith.constant 21 : index
    %c0_55 = arith.constant 0 : index
    %126 = vector.load %arg4[%c21, %c0_55] : memref<25x512xf32, #tpu.memory_space<vmem>>, vector<1x512xf32>
    %127 = vector.broadcast %126 : vector<1x512xf32> to vector<4x512xf32>
    %128 = arith.mulf %125, %127 : vector<4x512xf32>
    %c84 = arith.constant 84 : index
    %c0_56 = arith.constant 0 : index
    %129 = vector.load %arg18[%c84, %c0_56] : memref<100x512xf32, #tpu.memory_space<vmem>>, vector<4x512xf32>
    tpu.vector_store %arg18[%c84, %c0_56], %128 {strides = array<i32>} : memref<100x512xf32, #tpu.memory_space<vmem>>, vector<4x512xf32>,
    %c480_i32 = arith.constant 480 : i32
    %130 = tpu.dynamic_rotate %22 by %c480_i32 dim 1 : vector<4x512xf32>, i32 -> vector<4x512xf32>
    %c22 = arith.constant 22 : index
    %c0_57 = arith.constant 0 : index
    %131 = vector.load %arg4[%c22, %c0_57] : memref<25x512xf32, #tpu.memory_space<vmem>>, vector<1x512xf32>
    %132 = vector.broadcast %131 : vector<1x512xf32> to vector<4x512xf32>
    %133 = arith.mulf %130, %132 : vector<4x512xf32>
    %c88 = arith.constant 88 : index
    %c0_58 = arith.constant 0 : index
    %134 = vector.load %arg18[%c88, %c0_58] : memref<100x512xf32, #tpu.memory_space<vmem>>, vector<4x512xf32>
    tpu.vector_store %arg18[%c88, %c0_58], %133 {strides = array<i32>} : memref<100x512xf32, #tpu.memory_space<vmem>>, vector<4x512xf32>,
    %c479_i32 = arith.constant 479 : i32
    %135 = tpu.dynamic_rotate %22 by %c479_i32 dim 1 : vector<4x512xf32>, i32 -> vector<4x512xf32>
    %c23 = arith.constant 23 : index
    %c0_59 = arith.constant 0 : index
    %136 = vector.load %arg4[%c23, %c0_59] : memref<25x512xf32, #tpu.memory_space<vmem>>, vector<1x512xf32>
    %137 = vector.broadcast %136 : vector<1x512xf32> to vector<4x512xf32>
    %138 = arith.mulf %135, %137 : vector<4x512xf32>
    %c92 = arith.constant 92 : index
    %c0_60 = arith.constant 0 : index
    %139 = vector.load %arg18[%c92, %c0_60] : memref<100x512xf32, #tpu.memory_space<vmem>>, vector<4x512xf32>
    tpu.vector_store %arg18[%c92, %c0_60], %138 {strides = array<i32>} : memref<100x512xf32, #tpu.memory_space<vmem>>, vector<4x512xf32>,
    %c478_i32 = arith.constant 478 : i32
    %140 = tpu.dynamic_rotate %22 by %c478_i32 dim 1 : vector<4x512xf32>, i32 -> vector<4x512xf32>
    %c24_61 = arith.constant 24 : index
    %c0_62 = arith.constant 0 : index
    %141 = vector.load %arg4[%c24_61, %c0_62] : memref<25x512xf32, #tpu.memory_space<vmem>>, vector<1x512xf32>
    %142 = vector.broadcast %141 : vector<1x512xf32> to vector<4x512xf32>
    %143 = arith.mulf %140, %142 : vector<4x512xf32>
    %c96 = arith.constant 96 : index
    %c0_63 = arith.constant 0 : index
    %144 = vector.load %arg18[%c96, %c0_63] : memref<100x512xf32, #tpu.memory_space<vmem>>, vector<4x512xf32>
    tpu.vector_store %arg18[%c96, %c0_63], %143 {strides = array<i32>} : memref<100x512xf32, #tpu.memory_space<vmem>>, vector<4x512xf32>,
    %c0_64 = arith.constant 0 : index
    %c0_65 = arith.constant 0 : index
    %145 = vector.load %arg6[%c0_64, %c0_65] : memref<4x100xbf16, #tpu.memory_space<vmem>>, vector<4x100xbf16>
    %146 = arith.extf %145 : vector<4x100xbf16> to vector<4x100xf32>
    %c0_66 = arith.constant 0 : index
    %c0_67 = arith.constant 0 : index
    %147 = vector.load %arg18[%c0_66, %c0_67] : memref<100x512xf32, #tpu.memory_space<vmem>>, vector<100x512xf32>
    %cst_68 = arith.constant dense<0.000000e+00> : vector<4x512xf32>
    %148 = tpu.matmul %146, %147, %cst_68 {dimension_numbers = #tpu.dot_dimension_numbers<[1], [0], [0], [1], [0, 0, 1, 1], [], []>} : vector<4x100xf32>, vector<100x512xf32>, vector<4x512xf32> -> vector<4x512xf32>
    %149 = vector.broadcast %23 : vector<4x1xf32> to vector<4x512xf32>
    %150 = arith.addf %148, %149 : vector<4x512xf32>
    %151 = vector.extract_strided_slice %2 {offsets = [0, 4], sizes = [4, 1], strides = [1, 1]} : vector<8x21xf32> to vector<4x1xf32>
    %c0_69 = arith.constant 0 : index
    %c0_70 = arith.constant 0 : index
    %152 = vector.load %arg7[%c0_69, %c0_70] : memref<4x4xbf16, #tpu.memory_space<vmem>>, vector<4x4xbf16>
    %153 = arith.extf %152 : vector<4x4xbf16> to vector<4x4xf32>
    %cst_71 = arith.constant dense<0.000000e+00> : vector<4x512xf32>
    %154 = tpu.matmul %153, %150, %cst_71 {dimension_numbers = #tpu.dot_dimension_numbers<[1], [0], [0], [1], [0, 0, 1, 1], [], []>} : vector<4x4xf32>, vector<4x512xf32>, vector<4x512xf32> -> vector<4x512xf32>
    %155 = vector.broadcast %151 : vector<4x1xf32> to vector<4x512xf32>
    %156 = arith.addf %154, %155 : vector<4x512xf32>
    %cst_72 = arith.constant 0.000000e+00 : f32
    %157 = vector.broadcast %cst_72 : f32 to vector<4x512xf32>
    %158 = arith.maximumf %156, %157 : vector<4x512xf32>
    %c0_73 = arith.constant 0 : index
    %c0_74 = arith.constant 0 : index
    %159 = vector.load %arg8[%c0_73, %c0_74] : memref<4x4xbf16, #tpu.memory_space<vmem>>, vector<4x4xbf16>
    %160 = arith.extf %159 : vector<4x4xbf16> to vector<4x4xf32>
    %cst_75 = arith.constant dense<0.000000e+00> : vector<4x512xf32>
    %161 = tpu.matmul %160, %158, %cst_75 {dimension_numbers = #tpu.dot_dimension_numbers<[1], [0], [0], [1], [0, 0, 1, 1], [], []>} : vector<4x4xf32>, vector<4x512xf32>, vector<4x512xf32> -> vector<4x512xf32>
    %162 = vector.extract_strided_slice %2 {offsets = [0, 5], sizes = [4, 1], strides = [1, 1]} : vector<8x21xf32> to vector<4x1xf32>
    %c17_i32_76 = arith.constant 17 : i32
    %163 = tpu.dynamic_rotate %150 by %c17_i32_76 dim 1 : vector<4x512xf32>, i32 -> vector<4x512xf32>
    %c0_77 = arith.constant 0 : index
    %c0_78 = arith.constant 0 : index
    %164 = vector.load %arg3[%c0_77, %c0_78] : memref<9x512xf32, #tpu.memory_space<vmem>>, vector<1x512xf32>
    %165 = vector.broadcast %164 : vector<1x512xf32> to vector<4x512xf32>
    %166 = arith.mulf %163, %165 : vector<4x512xf32>
    %c0_79 = arith.constant 0 : index
    %c0_80 = arith.constant 0 : index
    %167 = vector.load %arg18[%c0_79, %c0_80] : memref<100x512xf32, #tpu.memory_space<vmem>>, vector<4x512xf32>
    tpu.vector_store %arg18[%c0_79, %c0_80], %166 {strides = array<i32>} : memref<100x512xf32, #tpu.memory_space<vmem>>, vector<4x512xf32>,
    %c16_i32_81 = arith.constant 16 : i32
    %168 = tpu.dynamic_rotate %150 by %c16_i32_81 dim 1 : vector<4x512xf32>, i32 -> vector<4x512xf32>
    %c1_82 = arith.constant 1 : index
    %c0_83 = arith.constant 0 : index
    %169 = vector.load %arg3[%c1_82, %c0_83] : memref<9x512xf32, #tpu.memory_space<vmem>>, vector<1x512xf32>
    %170 = vector.broadcast %169 : vector<1x512xf32> to vector<4x512xf32>
    %171 = arith.mulf %168, %170 : vector<4x512xf32>
    %c4_84 = arith.constant 4 : index
    %c0_85 = arith.constant 0 : index
    %172 = vector.load %arg18[%c4_84, %c0_85] : memref<100x512xf32, #tpu.memory_space<vmem>>, vector<4x512xf32>
    tpu.vector_store %arg18[%c4_84, %c0_85], %171 {strides = array<i32>} : memref<100x512xf32, #tpu.memory_space<vmem>>, vector<4x512xf32>,
    %c15_i32_86 = arith.constant 15 : i32
    %173 = tpu.dynamic_rotate %150 by %c15_i32_86 dim 1 : vector<4x512xf32>, i32 -> vector<4x512xf32>
    %c2_87 = arith.constant 2 : index
    %c0_88 = arith.constant 0 : index
    %174 = vector.load %arg3[%c2_87, %c0_88] : memref<9x512xf32, #tpu.memory_space<vmem>>, vector<1x512xf32>
    %175 = vector.broadcast %174 : vector<1x512xf32> to vector<4x512xf32>
    %176 = arith.mulf %173, %175 : vector<4x512xf32>
    %c8_89 = arith.constant 8 : index
    %c0_90 = arith.constant 0 : index
    %177 = vector.load %arg18[%c8_89, %c0_90] : memref<100x512xf32, #tpu.memory_space<vmem>>, vector<4x512xf32>
    tpu.vector_store %arg18[%c8_89, %c0_90], %176 {strides = array<i32>} : memref<100x512xf32, #tpu.memory_space<vmem>>, vector<4x512xf32>,
    %c1_i32_91 = arith.constant 1 : i32
    %178 = tpu.dynamic_rotate %150 by %c1_i32_91 dim 1 : vector<4x512xf32>, i32 -> vector<4x512xf32>
    %c3_92 = arith.constant 3 : index
    %c0_93 = arith.constant 0 : index
    %179 = vector.load %arg3[%c3_92, %c0_93] : memref<9x512xf32, #tpu.memory_space<vmem>>, vector<1x512xf32>
    %180 = vector.broadcast %179 : vector<1x512xf32> to vector<4x512xf32>
    %181 = arith.mulf %178, %180 : vector<4x512xf32>
    %c12_94 = arith.constant 12 : index
    %c0_95 = arith.constant 0 : index
    %182 = vector.load %arg18[%c12_94, %c0_95] : memref<100x512xf32, #tpu.memory_space<vmem>>, vector<4x512xf32>
    tpu.vector_store %arg18[%c12_94, %c0_95], %181 {strides = array<i32>} : memref<100x512xf32, #tpu.memory_space<vmem>>, vector<4x512xf32>,
    %c16_96 = arith.constant 16 : index
    %c0_97 = arith.constant 0 : index
    %183 = vector.load %arg18[%c16_96, %c0_97] : memref<100x512xf32, #tpu.memory_space<vmem>>, vector<4x512xf32>
    tpu.vector_store %arg18[%c16_96, %c0_97], %150 {strides = array<i32>} : memref<100x512xf32, #tpu.memory_space<vmem>>, vector<4x512xf32>,
    %c511_i32_98 = arith.constant 511 : i32
    %184 = tpu.dynamic_rotate %150 by %c511_i32_98 dim 1 : vector<4x512xf32>, i32 -> vector<4x512xf32>
    %c5_99 = arith.constant 5 : index
    %c0_100 = arith.constant 0 : index
    %185 = vector.load %arg3[%c5_99, %c0_100] : memref<9x512xf32, #tpu.memory_space<vmem>>, vector<1x512xf32>
    %186 = vector.broadcast %185 : vector<1x512xf32> to vector<4x512xf32>
    %187 = arith.mulf %184, %186 : vector<4x512xf32>
    %c20_101 = arith.constant 20 : index
    %c0_102 = arith.constant 0 : index
    %188 = vector.load %arg18[%c20_101, %c0_102] : memref<100x512xf32, #tpu.memory_space<vmem>>, vector<4x512xf32>
    tpu.vector_store %arg18[%c20_101, %c0_102], %187 {strides = array<i32>} : memref<100x512xf32, #tpu.memory_space<vmem>>, vector<4x512xf32>,
    %c497_i32_103 = arith.constant 497 : i32
    %189 = tpu.dynamic_rotate %150 by %c497_i32_103 dim 1 : vector<4x512xf32>, i32 -> vector<4x512xf32>
    %c6_104 = arith.constant 6 : index
    %c0_105 = arith.constant 0 : index
    %190 = vector.load %arg3[%c6_104, %c0_105] : memref<9x512xf32, #tpu.memory_space<vmem>>, vector<1x512xf32>
    %191 = vector.broadcast %190 : vector<1x512xf32> to vector<4x512xf32>
    %192 = arith.mulf %189, %191 : vector<4x512xf32>
    %c24_106 = arith.constant 24 : index
    %c0_107 = arith.constant 0 : index
    %193 = vector.load %arg18[%c24_106, %c0_107] : memref<100x512xf32, #tpu.memory_space<vmem>>, vector<4x512xf32>
    tpu.vector_store %arg18[%c24_106, %c0_107], %192 {strides = array<i32>} : memref<100x512xf32, #tpu.memory_space<vmem>>, vector<4x512xf32>,
    %c496_i32_108 = arith.constant 496 : i32
    %194 = tpu.dynamic_rotate %150 by %c496_i32_108 dim 1 : vector<4x512xf32>, i32 -> vector<4x512xf32>
    %c7_109 = arith.constant 7 : index
    %c0_110 = arith.constant 0 : index
    %195 = vector.load %arg3[%c7_109, %c0_110] : memref<9x512xf32, #tpu.memory_space<vmem>>, vector<1x512xf32>
    %196 = vector.broadcast %195 : vector<1x512xf32> to vector<4x512xf32>
    %197 = arith.mulf %194, %196 : vector<4x512xf32>
    %c28_111 = arith.constant 28 : index
    %c0_112 = arith.constant 0 : index
    %198 = vector.load %arg18[%c28_111, %c0_112] : memref<100x512xf32, #tpu.memory_space<vmem>>, vector<4x512xf32>
    tpu.vector_store %arg18[%c28_111, %c0_112], %197 {strides = array<i32>} : memref<100x512xf32, #tpu.memory_space<vmem>>, vector<4x512xf32>,
    %c495_i32_113 = arith.constant 495 : i32
    %199 = tpu.dynamic_rotate %150 by %c495_i32_113 dim 1 : vector<4x512xf32>, i32 -> vector<4x512xf32>
    %c8_114 = arith.constant 8 : index
    %c0_115 = arith.constant 0 : index
    %200 = vector.load %arg3[%c8_114, %c0_115] : memref<9x512xf32, #tpu.memory_space<vmem>>, vector<1x512xf32>
    %201 = vector.broadcast %200 : vector<1x512xf32> to vector<4x512xf32>
    %202 = arith.mulf %199, %201 : vector<4x512xf32>
    %c32_116 = arith.constant 32 : index
    %c0_117 = arith.constant 0 : index
    %203 = vector.load %arg18[%c32_116, %c0_117] : memref<100x512xf32, #tpu.memory_space<vmem>>, vector<4x512xf32>
    tpu.vector_store %arg18[%c32_116, %c0_117], %202 {strides = array<i32>} : memref<100x512xf32, #tpu.memory_space<vmem>>, vector<4x512xf32>,
    %c0_118 = arith.constant 0 : index
    %c0_119 = arith.constant 0 : index
    %204 = vector.load %arg9[%c0_118, %c0_119] : memref<4x36xbf16, #tpu.memory_space<vmem>>, vector<4x36xbf16>
    %205 = arith.extf %204 : vector<4x36xbf16> to vector<4x36xf32>
    %c0_120 = arith.constant 0 : index
    %c0_121 = arith.constant 0 : index
    %206 = vector.load %arg18[%c0_120, %c0_121] : memref<100x512xf32, #tpu.memory_space<vmem>>, vector<36x512xf32>
    %cst_122 = arith.constant dense<0.000000e+00> : vector<4x512xf32>
    %207 = tpu.matmul %205, %206, %cst_122 {dimension_numbers = #tpu.dot_dimension_numbers<[1], [0], [0], [1], [0, 0, 1, 1], [], []>} : vector<4x36xf32>, vector<36x512xf32>, vector<4x512xf32> -> vector<4x512xf32>
    %208 = vector.broadcast %162 : vector<4x1xf32> to vector<4x512xf32>
    %209 = arith.addf %207, %208 : vector<4x512xf32>
    %cst_123 = arith.constant 0.000000e+00 : f32
    %210 = vector.broadcast %cst_123 : f32 to vector<4x512xf32>
    %211 = arith.maximumf %209, %210 : vector<4x512xf32>
    %c17_i32_124 = arith.constant 17 : i32
    %212 = tpu.dynamic_rotate %211 by %c17_i32_124 dim 1 : vector<4x512xf32>, i32 -> vector<4x512xf32>
    %c0_125 = arith.constant 0 : index
    %c0_126 = arith.constant 0 : index
    %213 = vector.load %arg3[%c0_125, %c0_126] : memref<9x512xf32, #tpu.memory_space<vmem>>, vector<1x512xf32>
    %214 = vector.broadcast %213 : vector<1x512xf32> to vector<4x512xf32>
    %215 = arith.mulf %212, %214 : vector<4x512xf32>
    %c0_127 = arith.constant 0 : index
    %c0_128 = arith.constant 0 : index
    %216 = vector.load %arg18[%c0_127, %c0_128] : memref<100x512xf32, #tpu.memory_space<vmem>>, vector<4x512xf32>
    tpu.vector_store %arg18[%c0_127, %c0_128], %215 {strides = array<i32>} : memref<100x512xf32, #tpu.memory_space<vmem>>, vector<4x512xf32>,
    %c16_i32_129 = arith.constant 16 : i32
    %217 = tpu.dynamic_rotate %211 by %c16_i32_129 dim 1 : vector<4x512xf32>, i32 -> vector<4x512xf32>
    %c1_130 = arith.constant 1 : index
    %c0_131 = arith.constant 0 : index
    %218 = vector.load %arg3[%c1_130, %c0_131] : memref<9x512xf32, #tpu.memory_space<vmem>>, vector<1x512xf32>
    %219 = vector.broadcast %218 : vector<1x512xf32> to vector<4x512xf32>
    %220 = arith.mulf %217, %219 : vector<4x512xf32>
    %c4_132 = arith.constant 4 : index
    %c0_133 = arith.constant 0 : index
    %221 = vector.load %arg18[%c4_132, %c0_133] : memref<100x512xf32, #tpu.memory_space<vmem>>, vector<4x512xf32>
    tpu.vector_store %arg18[%c4_132, %c0_133], %220 {strides = array<i32>} : memref<100x512xf32, #tpu.memory_space<vmem>>, vector<4x512xf32>,
    %c15_i32_134 = arith.constant 15 : i32
    %222 = tpu.dynamic_rotate %211 by %c15_i32_134 dim 1 : vector<4x512xf32>, i32 -> vector<4x512xf32>
    %c2_135 = arith.constant 2 : index
    %c0_136 = arith.constant 0 : index
    %223 = vector.load %arg3[%c2_135, %c0_136] : memref<9x512xf32, #tpu.memory_space<vmem>>, vector<1x512xf32>
    %224 = vector.broadcast %223 : vector<1x512xf32> to vector<4x512xf32>
    %225 = arith.mulf %222, %224 : vector<4x512xf32>
    %c8_137 = arith.constant 8 : index
    %c0_138 = arith.constant 0 : index
    %226 = vector.load %arg18[%c8_137, %c0_138] : memref<100x512xf32, #tpu.memory_space<vmem>>, vector<4x512xf32>
    tpu.vector_store %arg18[%c8_137, %c0_138], %225 {strides = array<i32>} : memref<100x512xf32, #tpu.memory_space<vmem>>, vector<4x512xf32>,
    %c1_i32_139 = arith.constant 1 : i32
    %227 = tpu.dynamic_rotate %211 by %c1_i32_139 dim 1 : vector<4x512xf32>, i32 -> vector<4x512xf32>
    %c3_140 = arith.constant 3 : index
    %c0_141 = arith.constant 0 : index
    %228 = vector.load %arg3[%c3_140, %c0_141] : memref<9x512xf32, #tpu.memory_space<vmem>>, vector<1x512xf32>
    %229 = vector.broadcast %228 : vector<1x512xf32> to vector<4x512xf32>
    %230 = arith.mulf %227, %229 : vector<4x512xf32>
    %c12_142 = arith.constant 12 : index
    %c0_143 = arith.constant 0 : index
    %231 = vector.load %arg18[%c12_142, %c0_143] : memref<100x512xf32, #tpu.memory_space<vmem>>, vector<4x512xf32>
    tpu.vector_store %arg18[%c12_142, %c0_143], %230 {strides = array<i32>} : memref<100x512xf32, #tpu.memory_space<vmem>>, vector<4x512xf32>,
    %c16_144 = arith.constant 16 : index
    %c0_145 = arith.constant 0 : index
    %232 = vector.load %arg18[%c16_144, %c0_145] : memref<100x512xf32, #tpu.memory_space<vmem>>, vector<4x512xf32>
    tpu.vector_store %arg18[%c16_144, %c0_145], %211 {strides = array<i32>} : memref<100x512xf32, #tpu.memory_space<vmem>>, vector<4x512xf32>,
    %c511_i32_146 = arith.constant 511 : i32
    %233 = tpu.dynamic_rotate %211 by %c511_i32_146 dim 1 : vector<4x512xf32>, i32 -> vector<4x512xf32>
    %c5_147 = arith.constant 5 : index
    %c0_148 = arith.constant 0 : index
    %234 = vector.load %arg3[%c5_147, %c0_148] : memref<9x512xf32, #tpu.memory_space<vmem>>, vector<1x512xf32>
    %235 = vector.broadcast %234 : vector<1x512xf32> to vector<4x512xf32>
    %236 = arith.mulf %233, %235 : vector<4x512xf32>
    %c20_149 = arith.constant 20 : index
    %c0_150 = arith.constant 0 : index
    %237 = vector.load %arg18[%c20_149, %c0_150] : memref<100x512xf32, #tpu.memory_space<vmem>>, vector<4x512xf32>
    tpu.vector_store %arg18[%c20_149, %c0_150], %236 {strides = array<i32>} : memref<100x512xf32, #tpu.memory_space<vmem>>, vector<4x512xf32>,
    %c497_i32_151 = arith.constant 497 : i32
    %238 = tpu.dynamic_rotate %211 by %c497_i32_151 dim 1 : vector<4x512xf32>, i32 -> vector<4x512xf32>
    %c6_152 = arith.constant 6 : index
    %c0_153 = arith.constant 0 : index
    %239 = vector.load %arg3[%c6_152, %c0_153] : memref<9x512xf32, #tpu.memory_space<vmem>>, vector<1x512xf32>
    %240 = vector.broadcast %239 : vector<1x512xf32> to vector<4x512xf32>
    %241 = arith.mulf %238, %240 : vector<4x512xf32>
    %c24_154 = arith.constant 24 : index
    %c0_155 = arith.constant 0 : index
    %242 = vector.load %arg18[%c24_154, %c0_155] : memref<100x512xf32, #tpu.memory_space<vmem>>, vector<4x512xf32>
    tpu.vector_store %arg18[%c24_154, %c0_155], %241 {strides = array<i32>} : memref<100x512xf32, #tpu.memory_space<vmem>>, vector<4x512xf32>,
    %c496_i32_156 = arith.constant 496 : i32
    %243 = tpu.dynamic_rotate %211 by %c496_i32_156 dim 1 : vector<4x512xf32>, i32 -> vector<4x512xf32>
    %c7_157 = arith.constant 7 : index
    %c0_158 = arith.constant 0 : index
    %244 = vector.load %arg3[%c7_157, %c0_158] : memref<9x512xf32, #tpu.memory_space<vmem>>, vector<1x512xf32>
    %245 = vector.broadcast %244 : vector<1x512xf32> to vector<4x512xf32>
    %246 = arith.mulf %243, %245 : vector<4x512xf32>
    %c28_159 = arith.constant 28 : index
    %c0_160 = arith.constant 0 : index
    %247 = vector.load %arg18[%c28_159, %c0_160] : memref<100x512xf32, #tpu.memory_space<vmem>>, vector<4x512xf32>
    tpu.vector_store %arg18[%c28_159, %c0_160], %246 {strides = array<i32>} : memref<100x512xf32, #tpu.memory_space<vmem>>, vector<4x512xf32>,
    %c495_i32_161 = arith.constant 495 : i32
    %248 = tpu.dynamic_rotate %211 by %c495_i32_161 dim 1 : vector<4x512xf32>, i32 -> vector<4x512xf32>
    %c8_162 = arith.constant 8 : index
    %c0_163 = arith.constant 0 : index
    %249 = vector.load %arg3[%c8_162, %c0_163] : memref<9x512xf32, #tpu.memory_space<vmem>>, vector<1x512xf32>
    %250 = vector.broadcast %249 : vector<1x512xf32> to vector<4x512xf32>
    %251 = arith.mulf %248, %250 : vector<4x512xf32>
    %c32_164 = arith.constant 32 : index
    %c0_165 = arith.constant 0 : index
    %252 = vector.load %arg18[%c32_164, %c0_165] : memref<100x512xf32, #tpu.memory_space<vmem>>, vector<4x512xf32>
    tpu.vector_store %arg18[%c32_164, %c0_165], %251 {strides = array<i32>} : memref<100x512xf32, #tpu.memory_space<vmem>>, vector<4x512xf32>,
    %c0_166 = arith.constant 0 : index
    %c0_167 = arith.constant 0 : index
    %253 = vector.load %arg10[%c0_166, %c0_167] : memref<4x36xbf16, #tpu.memory_space<vmem>>, vector<4x36xbf16>
    %254 = arith.extf %253 : vector<4x36xbf16> to vector<4x36xf32>
    %c0_168 = arith.constant 0 : index
    %c0_169 = arith.constant 0 : index
    %255 = vector.load %arg18[%c0_168, %c0_169] : memref<100x512xf32, #tpu.memory_space<vmem>>, vector<36x512xf32>
    %cst_170 = arith.constant dense<0.000000e+00> : vector<4x512xf32>
    %256 = tpu.matmul %254, %255, %cst_170 {dimension_numbers = #tpu.dot_dimension_numbers<[1], [0], [0], [1], [0, 0, 1, 1], [], []>} : vector<4x36xf32>, vector<36x512xf32>, vector<4x512xf32> -> vector<4x512xf32>
    %257 = vector.extract_strided_slice %2 {offsets = [0, 6], sizes = [4, 1], strides = [1, 1]} : vector<8x21xf32> to vector<4x1xf32>
    %c34_i32_171 = arith.constant 34 : i32
    %258 = tpu.dynamic_rotate %150 by %c34_i32_171 dim 1 : vector<4x512xf32>, i32 -> vector<4x512xf32>
    %c0_172 = arith.constant 0 : index
    %c0_173 = arith.constant 0 : index
    %259 = vector.load %arg4[%c0_172, %c0_173] : memref<25x512xf32, #tpu.memory_space<vmem>>, vector<1x512xf32>
    %260 = vector.broadcast %259 : vector<1x512xf32> to vector<4x512xf32>
    %261 = arith.mulf %258, %260 : vector<4x512xf32>
    %c0_174 = arith.constant 0 : index
    %c0_175 = arith.constant 0 : index
    %262 = vector.load %arg18[%c0_174, %c0_175] : memref<100x512xf32, #tpu.memory_space<vmem>>, vector<4x512xf32>
    tpu.vector_store %arg18[%c0_174, %c0_175], %261 {strides = array<i32>} : memref<100x512xf32, #tpu.memory_space<vmem>>, vector<4x512xf32>,
    %c33_i32_176 = arith.constant 33 : i32
    %263 = tpu.dynamic_rotate %150 by %c33_i32_176 dim 1 : vector<4x512xf32>, i32 -> vector<4x512xf32>
    %c1_177 = arith.constant 1 : index
    %c0_178 = arith.constant 0 : index
    %264 = vector.load %arg4[%c1_177, %c0_178] : memref<25x512xf32, #tpu.memory_space<vmem>>, vector<1x512xf32>
    %265 = vector.broadcast %264 : vector<1x512xf32> to vector<4x512xf32>
    %266 = arith.mulf %263, %265 : vector<4x512xf32>
    %c4_179 = arith.constant 4 : index
    %c0_180 = arith.constant 0 : index
    %267 = vector.load %arg18[%c4_179, %c0_180] : memref<100x512xf32, #tpu.memory_space<vmem>>, vector<4x512xf32>
    tpu.vector_store %arg18[%c4_179, %c0_180], %266 {strides = array<i32>} : memref<100x512xf32, #tpu.memory_space<vmem>>, vector<4x512xf32>,
    %c32_i32_181 = arith.constant 32 : i32
    %268 = tpu.dynamic_rotate %150 by %c32_i32_181 dim 1 : vector<4x512xf32>, i32 -> vector<4x512xf32>
    %c2_182 = arith.constant 2 : index
    %c0_183 = arith.constant 0 : index
    %269 = vector.load %arg4[%c2_182, %c0_183] : memref<25x512xf32, #tpu.memory_space<vmem>>, vector<1x512xf32>
    %270 = vector.broadcast %269 : vector<1x512xf32> to vector<4x512xf32>
    %271 = arith.mulf %268, %270 : vector<4x512xf32>
    %c8_184 = arith.constant 8 : index
    %c0_185 = arith.constant 0 : index
    %272 = vector.load %arg18[%c8_184, %c0_185] : memref<100x512xf32, #tpu.memory_space<vmem>>, vector<4x512xf32>
    tpu.vector_store %arg18[%c8_184, %c0_185], %271 {strides = array<i32>} : memref<100x512xf32, #tpu.memory_space<vmem>>, vector<4x512xf32>,
    %c31_i32_186 = arith.constant 31 : i32
    %273 = tpu.dynamic_rotate %150 by %c31_i32_186 dim 1 : vector<4x512xf32>, i32 -> vector<4x512xf32>
    %c3_187 = arith.constant 3 : index
    %c0_188 = arith.constant 0 : index
    %274 = vector.load %arg4[%c3_187, %c0_188] : memref<25x512xf32, #tpu.memory_space<vmem>>, vector<1x512xf32>
    %275 = vector.broadcast %274 : vector<1x512xf32> to vector<4x512xf32>
    %276 = arith.mulf %273, %275 : vector<4x512xf32>
    %c12_189 = arith.constant 12 : index
    %c0_190 = arith.constant 0 : index
    %277 = vector.load %arg18[%c12_189, %c0_190] : memref<100x512xf32, #tpu.memory_space<vmem>>, vector<4x512xf32>
    tpu.vector_store %arg18[%c12_189, %c0_190], %276 {strides = array<i32>} : memref<100x512xf32, #tpu.memory_space<vmem>>, vector<4x512xf32>,
    %c30_i32_191 = arith.constant 30 : i32
    %278 = tpu.dynamic_rotate %150 by %c30_i32_191 dim 1 : vector<4x512xf32>, i32 -> vector<4x512xf32>
    %c4_192 = arith.constant 4 : index
    %c0_193 = arith.constant 0 : index
    %279 = vector.load %arg4[%c4_192, %c0_193] : memref<25x512xf32, #tpu.memory_space<vmem>>, vector<1x512xf32>
    %280 = vector.broadcast %279 : vector<1x512xf32> to vector<4x512xf32>
    %281 = arith.mulf %278, %280 : vector<4x512xf32>
    %c16_194 = arith.constant 16 : index
    %c0_195 = arith.constant 0 : index
    %282 = vector.load %arg18[%c16_194, %c0_195] : memref<100x512xf32, #tpu.memory_space<vmem>>, vector<4x512xf32>
    tpu.vector_store %arg18[%c16_194, %c0_195], %281 {strides = array<i32>} : memref<100x512xf32, #tpu.memory_space<vmem>>, vector<4x512xf32>,
    %c18_i32_196 = arith.constant 18 : i32
    %283 = tpu.dynamic_rotate %150 by %c18_i32_196 dim 1 : vector<4x512xf32>, i32 -> vector<4x512xf32>
    %c5_197 = arith.constant 5 : index
    %c0_198 = arith.constant 0 : index
    %284 = vector.load %arg4[%c5_197, %c0_198] : memref<25x512xf32, #tpu.memory_space<vmem>>, vector<1x512xf32>
    %285 = vector.broadcast %284 : vector<1x512xf32> to vector<4x512xf32>
    %286 = arith.mulf %283, %285 : vector<4x512xf32>
    %c20_199 = arith.constant 20 : index
    %c0_200 = arith.constant 0 : index
    %287 = vector.load %arg18[%c20_199, %c0_200] : memref<100x512xf32, #tpu.memory_space<vmem>>, vector<4x512xf32>
    tpu.vector_store %arg18[%c20_199, %c0_200], %286 {strides = array<i32>} : memref<100x512xf32, #tpu.memory_space<vmem>>, vector<4x512xf32>,
    %c17_i32_201 = arith.constant 17 : i32
    %288 = tpu.dynamic_rotate %150 by %c17_i32_201 dim 1 : vector<4x512xf32>, i32 -> vector<4x512xf32>
    %c6_202 = arith.constant 6 : index
    %c0_203 = arith.constant 0 : index
    %289 = vector.load %arg4[%c6_202, %c0_203] : memref<25x512xf32, #tpu.memory_space<vmem>>, vector<1x512xf32>
    %290 = vector.broadcast %289 : vector<1x512xf32> to vector<4x512xf32>
    %291 = arith.mulf %288, %290 : vector<4x512xf32>
    %c24_204 = arith.constant 24 : index
    %c0_205 = arith.constant 0 : index
    %292 = vector.load %arg18[%c24_204, %c0_205] : memref<100x512xf32, #tpu.memory_space<vmem>>, vector<4x512xf32>
    tpu.vector_store %arg18[%c24_204, %c0_205], %291 {strides = array<i32>} : memref<100x512xf32, #tpu.memory_space<vmem>>, vector<4x512xf32>,
    %c16_i32_206 = arith.constant 16 : i32
    %293 = tpu.dynamic_rotate %150 by %c16_i32_206 dim 1 : vector<4x512xf32>, i32 -> vector<4x512xf32>
    %c7_207 = arith.constant 7 : index
    %c0_208 = arith.constant 0 : index
    %294 = vector.load %arg4[%c7_207, %c0_208] : memref<25x512xf32, #tpu.memory_space<vmem>>, vector<1x512xf32>
    %295 = vector.broadcast %294 : vector<1x512xf32> to vector<4x512xf32>
    %296 = arith.mulf %293, %295 : vector<4x512xf32>
    %c28_209 = arith.constant 28 : index
    %c0_210 = arith.constant 0 : index
    %297 = vector.load %arg18[%c28_209, %c0_210] : memref<100x512xf32, #tpu.memory_space<vmem>>, vector<4x512xf32>
    tpu.vector_store %arg18[%c28_209, %c0_210], %296 {strides = array<i32>} : memref<100x512xf32, #tpu.memory_space<vmem>>, vector<4x512xf32>,
    %c15_i32_211 = arith.constant 15 : i32
    %298 = tpu.dynamic_rotate %150 by %c15_i32_211 dim 1 : vector<4x512xf32>, i32 -> vector<4x512xf32>
    %c8_212 = arith.constant 8 : index
    %c0_213 = arith.constant 0 : index
    %299 = vector.load %arg4[%c8_212, %c0_213] : memref<25x512xf32, #tpu.memory_space<vmem>>, vector<1x512xf32>
    %300 = vector.broadcast %299 : vector<1x512xf32> to vector<4x512xf32>
    %301 = arith.mulf %298, %300 : vector<4x512xf32>
    %c32_214 = arith.constant 32 : index
    %c0_215 = arith.constant 0 : index
    %302 = vector.load %arg18[%c32_214, %c0_215] : memref<100x512xf32, #tpu.memory_space<vmem>>, vector<4x512xf32>
    tpu.vector_store %arg18[%c32_214, %c0_215], %301 {strides = array<i32>} : memref<100x512xf32, #tpu.memory_space<vmem>>, vector<4x512xf32>,
    %c14_i32_216 = arith.constant 14 : i32
    %303 = tpu.dynamic_rotate %150 by %c14_i32_216 dim 1 : vector<4x512xf32>, i32 -> vector<4x512xf32>
    %c9_217 = arith.constant 9 : index
    %c0_218 = arith.constant 0 : index
    %304 = vector.load %arg4[%c9_217, %c0_218] : memref<25x512xf32, #tpu.memory_space<vmem>>, vector<1x512xf32>
    %305 = vector.broadcast %304 : vector<1x512xf32> to vector<4x512xf32>
    %306 = arith.mulf %303, %305 : vector<4x512xf32>
    %c36_219 = arith.constant 36 : index
    %c0_220 = arith.constant 0 : index
    %307 = vector.load %arg18[%c36_219, %c0_220] : memref<100x512xf32, #tpu.memory_space<vmem>>, vector<4x512xf32>
    tpu.vector_store %arg18[%c36_219, %c0_220], %306 {strides = array<i32>} : memref<100x512xf32, #tpu.memory_space<vmem>>, vector<4x512xf32>,
    %c2_i32_221 = arith.constant 2 : i32
    %308 = tpu.dynamic_rotate %150 by %c2_i32_221 dim 1 : vector<4x512xf32>, i32 -> vector<4x512xf32>
    %c10_222 = arith.constant 10 : index
    %c0_223 = arith.constant 0 : index
    %309 = vector.load %arg4[%c10_222, %c0_223] : memref<25x512xf32, #tpu.memory_space<vmem>>, vector<1x512xf32>
    %310 = vector.broadcast %309 : vector<1x512xf32> to vector<4x512xf32>
    %311 = arith.mulf %308, %310 : vector<4x512xf32>
    %c40_224 = arith.constant 40 : index
    %c0_225 = arith.constant 0 : index
    %312 = vector.load %arg18[%c40_224, %c0_225] : memref<100x512xf32, #tpu.memory_space<vmem>>, vector<4x512xf32>
    tpu.vector_store %arg18[%c40_224, %c0_225], %311 {strides = array<i32>} : memref<100x512xf32, #tpu.memory_space<vmem>>, vector<4x512xf32>,
    %c1_i32_226 = arith.constant 1 : i32
    %313 = tpu.dynamic_rotate %150 by %c1_i32_226 dim 1 : vector<4x512xf32>, i32 -> vector<4x512xf32>
    %c11_227 = arith.constant 11 : index
    %c0_228 = arith.constant 0 : index
    %314 = vector.load %arg4[%c11_227, %c0_228] : memref<25x512xf32, #tpu.memory_space<vmem>>, vector<1x512xf32>
    %315 = vector.broadcast %314 : vector<1x512xf32> to vector<4x512xf32>
    %316 = arith.mulf %313, %315 : vector<4x512xf32>
    %c44_229 = arith.constant 44 : index
    %c0_230 = arith.constant 0 : index
    %317 = vector.load %arg18[%c44_229, %c0_230] : memref<100x512xf32, #tpu.memory_space<vmem>>, vector<4x512xf32>
    tpu.vector_store %arg18[%c44_229, %c0_230], %316 {strides = array<i32>} : memref<100x512xf32, #tpu.memory_space<vmem>>, vector<4x512xf32>,
    %c48_231 = arith.constant 48 : index
    %c0_232 = arith.constant 0 : index
    %318 = vector.load %arg18[%c48_231, %c0_232] : memref<100x512xf32, #tpu.memory_space<vmem>>, vector<4x512xf32>
    tpu.vector_store %arg18[%c48_231, %c0_232], %150 {strides = array<i32>} : memref<100x512xf32, #tpu.memory_space<vmem>>, vector<4x512xf32>,
    %c511_i32_233 = arith.constant 511 : i32
    %319 = tpu.dynamic_rotate %150 by %c511_i32_233 dim 1 : vector<4x512xf32>, i32 -> vector<4x512xf32>
    %c13_234 = arith.constant 13 : index
    %c0_235 = arith.constant 0 : index
    %320 = vector.load %arg4[%c13_234, %c0_235] : memref<25x512xf32, #tpu.memory_space<vmem>>, vector<1x512xf32>
    %321 = vector.broadcast %320 : vector<1x512xf32> to vector<4x512xf32>
    %322 = arith.mulf %319, %321 : vector<4x512xf32>
    %c52_236 = arith.constant 52 : index
    %c0_237 = arith.constant 0 : index
    %323 = vector.load %arg18[%c52_236, %c0_237] : memref<100x512xf32, #tpu.memory_space<vmem>>, vector<4x512xf32>
    tpu.vector_store %arg18[%c52_236, %c0_237], %322 {strides = array<i32>} : memref<100x512xf32, #tpu.memory_space<vmem>>, vector<4x512xf32>,
    %c510_i32_238 = arith.constant 510 : i32
    %324 = tpu.dynamic_rotate %150 by %c510_i32_238 dim 1 : vector<4x512xf32>, i32 -> vector<4x512xf32>
    %c14_239 = arith.constant 14 : index
    %c0_240 = arith.constant 0 : index
    %325 = vector.load %arg4[%c14_239, %c0_240] : memref<25x512xf32, #tpu.memory_space<vmem>>, vector<1x512xf32>
    %326 = vector.broadcast %325 : vector<1x512xf32> to vector<4x512xf32>
    %327 = arith.mulf %324, %326 : vector<4x512xf32>
    %c56_241 = arith.constant 56 : index
    %c0_242 = arith.constant 0 : index
    %328 = vector.load %arg18[%c56_241, %c0_242] : memref<100x512xf32, #tpu.memory_space<vmem>>, vector<4x512xf32>
    tpu.vector_store %arg18[%c56_241, %c0_242], %327 {strides = array<i32>} : memref<100x512xf32, #tpu.memory_space<vmem>>, vector<4x512xf32>,
    %c498_i32_243 = arith.constant 498 : i32
    %329 = tpu.dynamic_rotate %150 by %c498_i32_243 dim 1 : vector<4x512xf32>, i32 -> vector<4x512xf32>
    %c15_244 = arith.constant 15 : index
    %c0_245 = arith.constant 0 : index
    %330 = vector.load %arg4[%c15_244, %c0_245] : memref<25x512xf32, #tpu.memory_space<vmem>>, vector<1x512xf32>
    %331 = vector.broadcast %330 : vector<1x512xf32> to vector<4x512xf32>
    %332 = arith.mulf %329, %331 : vector<4x512xf32>
    %c60_246 = arith.constant 60 : index
    %c0_247 = arith.constant 0 : index
    %333 = vector.load %arg18[%c60_246, %c0_247] : memref<100x512xf32, #tpu.memory_space<vmem>>, vector<4x512xf32>
    tpu.vector_store %arg18[%c60_246, %c0_247], %332 {strides = array<i32>} : memref<100x512xf32, #tpu.memory_space<vmem>>, vector<4x512xf32>,
    %c497_i32_248 = arith.constant 497 : i32
    %334 = tpu.dynamic_rotate %150 by %c497_i32_248 dim 1 : vector<4x512xf32>, i32 -> vector<4x512xf32>
    %c16_249 = arith.constant 16 : index
    %c0_250 = arith.constant 0 : index
    %335 = vector.load %arg4[%c16_249, %c0_250] : memref<25x512xf32, #tpu.memory_space<vmem>>, vector<1x512xf32>
    %336 = vector.broadcast %335 : vector<1x512xf32> to vector<4x512xf32>
    %337 = arith.mulf %334, %336 : vector<4x512xf32>
    %c64_251 = arith.constant 64 : index
    %c0_252 = arith.constant 0 : index
    %338 = vector.load %arg18[%c64_251, %c0_252] : memref<100x512xf32, #tpu.memory_space<vmem>>, vector<4x512xf32>
    tpu.vector_store %arg18[%c64_251, %c0_252], %337 {strides = array<i32>} : memref<100x512xf32, #tpu.memory_space<vmem>>, vector<4x512xf32>,
    %c496_i32_253 = arith.constant 496 : i32
    %339 = tpu.dynamic_rotate %150 by %c496_i32_253 dim 1 : vector<4x512xf32>, i32 -> vector<4x512xf32>
    %c17_254 = arith.constant 17 : index
    %c0_255 = arith.constant 0 : index
    %340 = vector.load %arg4[%c17_254, %c0_255] : memref<25x512xf32, #tpu.memory_space<vmem>>, vector<1x512xf32>
    %341 = vector.broadcast %340 : vector<1x512xf32> to vector<4x512xf32>
    %342 = arith.mulf %339, %341 : vector<4x512xf32>
    %c68_256 = arith.constant 68 : index
    %c0_257 = arith.constant 0 : index
    %343 = vector.load %arg18[%c68_256, %c0_257] : memref<100x512xf32, #tpu.memory_space<vmem>>, vector<4x512xf32>
    tpu.vector_store %arg18[%c68_256, %c0_257], %342 {strides = array<i32>} : memref<100x512xf32, #tpu.memory_space<vmem>>, vector<4x512xf32>,
    %c495_i32_258 = arith.constant 495 : i32
    %344 = tpu.dynamic_rotate %150 by %c495_i32_258 dim 1 : vector<4x512xf32>, i32 -> vector<4x512xf32>
    %c18_259 = arith.constant 18 : index
    %c0_260 = arith.constant 0 : index
    %345 = vector.load %arg4[%c18_259, %c0_260] : memref<25x512xf32, #tpu.memory_space<vmem>>, vector<1x512xf32>
    %346 = vector.broadcast %345 : vector<1x512xf32> to vector<4x512xf32>
    %347 = arith.mulf %344, %346 : vector<4x512xf32>
    %c72_261 = arith.constant 72 : index
    %c0_262 = arith.constant 0 : index
    %348 = vector.load %arg18[%c72_261, %c0_262] : memref<100x512xf32, #tpu.memory_space<vmem>>, vector<4x512xf32>
    tpu.vector_store %arg18[%c72_261, %c0_262], %347 {strides = array<i32>} : memref<100x512xf32, #tpu.memory_space<vmem>>, vector<4x512xf32>,
    %c494_i32_263 = arith.constant 494 : i32
    %349 = tpu.dynamic_rotate %150 by %c494_i32_263 dim 1 : vector<4x512xf32>, i32 -> vector<4x512xf32>
    %c19_264 = arith.constant 19 : index
    %c0_265 = arith.constant 0 : index
    %350 = vector.load %arg4[%c19_264, %c0_265] : memref<25x512xf32, #tpu.memory_space<vmem>>, vector<1x512xf32>
    %351 = vector.broadcast %350 : vector<1x512xf32> to vector<4x512xf32>
    %352 = arith.mulf %349, %351 : vector<4x512xf32>
    %c76_266 = arith.constant 76 : index
    %c0_267 = arith.constant 0 : index
    %353 = vector.load %arg18[%c76_266, %c0_267] : memref<100x512xf32, #tpu.memory_space<vmem>>, vector<4x512xf32>
    tpu.vector_store %arg18[%c76_266, %c0_267], %352 {strides = array<i32>} : memref<100x512xf32, #tpu.memory_space<vmem>>, vector<4x512xf32>,
    %c482_i32_268 = arith.constant 482 : i32
    %354 = tpu.dynamic_rotate %150 by %c482_i32_268 dim 1 : vector<4x512xf32>, i32 -> vector<4x512xf32>
    %c20_269 = arith.constant 20 : index
    %c0_270 = arith.constant 0 : index
    %355 = vector.load %arg4[%c20_269, %c0_270] : memref<25x512xf32, #tpu.memory_space<vmem>>, vector<1x512xf32>
    %356 = vector.broadcast %355 : vector<1x512xf32> to vector<4x512xf32>
    %357 = arith.mulf %354, %356 : vector<4x512xf32>
    %c80_271 = arith.constant 80 : index
    %c0_272 = arith.constant 0 : index
    %358 = vector.load %arg18[%c80_271, %c0_272] : memref<100x512xf32, #tpu.memory_space<vmem>>, vector<4x512xf32>
    tpu.vector_store %arg18[%c80_271, %c0_272], %357 {strides = array<i32>} : memref<100x512xf32, #tpu.memory_space<vmem>>, vector<4x512xf32>,
    %c481_i32_273 = arith.constant 481 : i32
    %359 = tpu.dynamic_rotate %150 by %c481_i32_273 dim 1 : vector<4x512xf32>, i32 -> vector<4x512xf32>
    %c21_274 = arith.constant 21 : index
    %c0_275 = arith.constant 0 : index
    %360 = vector.load %arg4[%c21_274, %c0_275] : memref<25x512xf32, #tpu.memory_space<vmem>>, vector<1x512xf32>
    %361 = vector.broadcast %360 : vector<1x512xf32> to vector<4x512xf32>
    %362 = arith.mulf %359, %361 : vector<4x512xf32>
    %c84_276 = arith.constant 84 : index
    %c0_277 = arith.constant 0 : index
    %363 = vector.load %arg18[%c84_276, %c0_277] : memref<100x512xf32, #tpu.memory_space<vmem>>, vector<4x512xf32>
    tpu.vector_store %arg18[%c84_276, %c0_277], %362 {strides = array<i32>} : memref<100x512xf32, #tpu.memory_space<vmem>>, vector<4x512xf32>,
    %c480_i32_278 = arith.constant 480 : i32
    %364 = tpu.dynamic_rotate %150 by %c480_i32_278 dim 1 : vector<4x512xf32>, i32 -> vector<4x512xf32>
    %c22_279 = arith.constant 22 : index
    %c0_280 = arith.constant 0 : index
    %365 = vector.load %arg4[%c22_279, %c0_280] : memref<25x512xf32, #tpu.memory_space<vmem>>, vector<1x512xf32>
    %366 = vector.broadcast %365 : vector<1x512xf32> to vector<4x512xf32>
    %367 = arith.mulf %364, %366 : vector<4x512xf32>
    %c88_281 = arith.constant 88 : index
    %c0_282 = arith.constant 0 : index
    %368 = vector.load %arg18[%c88_281, %c0_282] : memref<100x512xf32, #tpu.memory_space<vmem>>, vector<4x512xf32>
    tpu.vector_store %arg18[%c88_281, %c0_282], %367 {strides = array<i32>} : memref<100x512xf32, #tpu.memory_space<vmem>>, vector<4x512xf32>,
    %c479_i32_283 = arith.constant 479 : i32
    %369 = tpu.dynamic_rotate %150 by %c479_i32_283 dim 1 : vector<4x512xf32>, i32 -> vector<4x512xf32>
    %c23_284 = arith.constant 23 : index
    %c0_285 = arith.constant 0 : index
    %370 = vector.load %arg4[%c23_284, %c0_285] : memref<25x512xf32, #tpu.memory_space<vmem>>, vector<1x512xf32>
    %371 = vector.broadcast %370 : vector<1x512xf32> to vector<4x512xf32>
    %372 = arith.mulf %369, %371 : vector<4x512xf32>
    %c92_286 = arith.constant 92 : index
    %c0_287 = arith.constant 0 : index
    %373 = vector.load %arg18[%c92_286, %c0_287] : memref<100x512xf32, #tpu.memory_space<vmem>>, vector<4x512xf32>
    tpu.vector_store %arg18[%c92_286, %c0_287], %372 {strides = array<i32>} : memref<100x512xf32, #tpu.memory_space<vmem>>, vector<4x512xf32>,
    %c478_i32_288 = arith.constant 478 : i32
    %374 = tpu.dynamic_rotate %150 by %c478_i32_288 dim 1 : vector<4x512xf32>, i32 -> vector<4x512xf32>
    %c24_289 = arith.constant 24 : index
    %c0_290 = arith.constant 0 : index
    %375 = vector.load %arg4[%c24_289, %c0_290] : memref<25x512xf32, #tpu.memory_space<vmem>>, vector<1x512xf32>
    %376 = vector.broadcast %375 : vector<1x512xf32> to vector<4x512xf32>
    %377 = arith.mulf %374, %376 : vector<4x512xf32>
    %c96_291 = arith.constant 96 : index
    %c0_292 = arith.constant 0 : index
    %378 = vector.load %arg18[%c96_291, %c0_292] : memref<100x512xf32, #tpu.memory_space<vmem>>, vector<4x512xf32>
    tpu.vector_store %arg18[%c96_291, %c0_292], %377 {strides = array<i32>} : memref<100x512xf32, #tpu.memory_space<vmem>>, vector<4x512xf32>,
    %c0_293 = arith.constant 0 : index
    %c0_294 = arith.constant 0 : index
    %379 = vector.load %arg11[%c0_293, %c0_294] : memref<4x100xbf16, #tpu.memory_space<vmem>>, vector<4x100xbf16>
    %380 = arith.extf %379 : vector<4x100xbf16> to vector<4x100xf32>
    %c0_295 = arith.constant 0 : index
    %c0_296 = arith.constant 0 : index
    %381 = vector.load %arg18[%c0_295, %c0_296] : memref<100x512xf32, #tpu.memory_space<vmem>>, vector<100x512xf32>
    %cst_297 = arith.constant dense<0.000000e+00> : vector<4x512xf32>
    %382 = tpu.matmul %380, %381, %cst_297 {dimension_numbers = #tpu.dot_dimension_numbers<[1], [0], [0], [1], [0, 0, 1, 1], [], []>} : vector<4x100xf32>, vector<100x512xf32>, vector<4x512xf32> -> vector<4x512xf32>
    %383 = vector.broadcast %257 : vector<4x1xf32> to vector<4x512xf32>
    %384 = arith.addf %382, %383 : vector<4x512xf32>
    %cst_298 = arith.constant 0.000000e+00 : f32
    %385 = vector.broadcast %cst_298 : f32 to vector<4x512xf32>
    %386 = arith.maximumf %384, %385 : vector<4x512xf32>
    %c34_i32_299 = arith.constant 34 : i32
    %387 = tpu.dynamic_rotate %386 by %c34_i32_299 dim 1 : vector<4x512xf32>, i32 -> vector<4x512xf32>
    %c0_300 = arith.constant 0 : index
    %c0_301 = arith.constant 0 : index
    %388 = vector.load %arg4[%c0_300, %c0_301] : memref<25x512xf32, #tpu.memory_space<vmem>>, vector<1x512xf32>
    %389 = vector.broadcast %388 : vector<1x512xf32> to vector<4x512xf32>
    %390 = arith.mulf %387, %389 : vector<4x512xf32>
    %c0_302 = arith.constant 0 : index
    %c0_303 = arith.constant 0 : index
    %391 = vector.load %arg18[%c0_302, %c0_303] : memref<100x512xf32, #tpu.memory_space<vmem>>, vector<4x512xf32>
    tpu.vector_store %arg18[%c0_302, %c0_303], %390 {strides = array<i32>} : memref<100x512xf32, #tpu.memory_space<vmem>>, vector<4x512xf32>,
    %c33_i32_304 = arith.constant 33 : i32
    %392 = tpu.dynamic_rotate %386 by %c33_i32_304 dim 1 : vector<4x512xf32>, i32 -> vector<4x512xf32>
    %c1_305 = arith.constant 1 : index
    %c0_306 = arith.constant 0 : index
    %393 = vector.load %arg4[%c1_305, %c0_306] : memref<25x512xf32, #tpu.memory_space<vmem>>, vector<1x512xf32>
    %394 = vector.broadcast %393 : vector<1x512xf32> to vector<4x512xf32>
    %395 = arith.mulf %392, %394 : vector<4x512xf32>
    %c4_307 = arith.constant 4 : index
    %c0_308 = arith.constant 0 : index
    %396 = vector.load %arg18[%c4_307, %c0_308] : memref<100x512xf32, #tpu.memory_space<vmem>>, vector<4x512xf32>
    tpu.vector_store %arg18[%c4_307, %c0_308], %395 {strides = array<i32>} : memref<100x512xf32, #tpu.memory_space<vmem>>, vector<4x512xf32>,
    %c32_i32_309 = arith.constant 32 : i32
    %397 = tpu.dynamic_rotate %386 by %c32_i32_309 dim 1 : vector<4x512xf32>, i32 -> vector<4x512xf32>
    %c2_310 = arith.constant 2 : index
    %c0_311 = arith.constant 0 : index
    %398 = vector.load %arg4[%c2_310, %c0_311] : memref<25x512xf32, #tpu.memory_space<vmem>>, vector<1x512xf32>
    %399 = vector.broadcast %398 : vector<1x512xf32> to vector<4x512xf32>
    %400 = arith.mulf %397, %399 : vector<4x512xf32>
    %c8_312 = arith.constant 8 : index
    %c0_313 = arith.constant 0 : index
    %401 = vector.load %arg18[%c8_312, %c0_313] : memref<100x512xf32, #tpu.memory_space<vmem>>, vector<4x512xf32>
    tpu.vector_store %arg18[%c8_312, %c0_313], %400 {strides = array<i32>} : memref<100x512xf32, #tpu.memory_space<vmem>>, vector<4x512xf32>,
    %c31_i32_314 = arith.constant 31 : i32
    %402 = tpu.dynamic_rotate %386 by %c31_i32_314 dim 1 : vector<4x512xf32>, i32 -> vector<4x512xf32>
    %c3_315 = arith.constant 3 : index
    %c0_316 = arith.constant 0 : index
    %403 = vector.load %arg4[%c3_315, %c0_316] : memref<25x512xf32, #tpu.memory_space<vmem>>, vector<1x512xf32>
    %404 = vector.broadcast %403 : vector<1x512xf32> to vector<4x512xf32>
    %405 = arith.mulf %402, %404 : vector<4x512xf32>
    %c12_317 = arith.constant 12 : index
    %c0_318 = arith.constant 0 : index
    %406 = vector.load %arg18[%c12_317, %c0_318] : memref<100x512xf32, #tpu.memory_space<vmem>>, vector<4x512xf32>
    tpu.vector_store %arg18[%c12_317, %c0_318], %405 {strides = array<i32>} : memref<100x512xf32, #tpu.memory_space<vmem>>, vector<4x512xf32>,
    %c30_i32_319 = arith.constant 30 : i32
    %407 = tpu.dynamic_rotate %386 by %c30_i32_319 dim 1 : vector<4x512xf32>, i32 -> vector<4x512xf32>
    %c4_320 = arith.constant 4 : index
    %c0_321 = arith.constant 0 : index
    %408 = vector.load %arg4[%c4_320, %c0_321] : memref<25x512xf32, #tpu.memory_space<vmem>>, vector<1x512xf32>
    %409 = vector.broadcast %408 : vector<1x512xf32> to vector<4x512xf32>
    %410 = arith.mulf %407, %409 : vector<4x512xf32>
    %c16_322 = arith.constant 16 : index
    %c0_323 = arith.constant 0 : index
    %411 = vector.load %arg18[%c16_322, %c0_323] : memref<100x512xf32, #tpu.memory_space<vmem>>, vector<4x512xf32>
    tpu.vector_store %arg18[%c16_322, %c0_323], %410 {strides = array<i32>} : memref<100x512xf32, #tpu.memory_space<vmem>>, vector<4x512xf32>,
    %c18_i32_324 = arith.constant 18 : i32
    %412 = tpu.dynamic_rotate %386 by %c18_i32_324 dim 1 : vector<4x512xf32>, i32 -> vector<4x512xf32>
    %c5_325 = arith.constant 5 : index
    %c0_326 = arith.constant 0 : index
    %413 = vector.load %arg4[%c5_325, %c0_326] : memref<25x512xf32, #tpu.memory_space<vmem>>, vector<1x512xf32>
    %414 = vector.broadcast %413 : vector<1x512xf32> to vector<4x512xf32>
    %415 = arith.mulf %412, %414 : vector<4x512xf32>
    %c20_327 = arith.constant 20 : index
    %c0_328 = arith.constant 0 : index
    %416 = vector.load %arg18[%c20_327, %c0_328] : memref<100x512xf32, #tpu.memory_space<vmem>>, vector<4x512xf32>
    tpu.vector_store %arg18[%c20_327, %c0_328], %415 {strides = array<i32>} : memref<100x512xf32, #tpu.memory_space<vmem>>, vector<4x512xf32>,
    %c17_i32_329 = arith.constant 17 : i32
    %417 = tpu.dynamic_rotate %386 by %c17_i32_329 dim 1 : vector<4x512xf32>, i32 -> vector<4x512xf32>
    %c6_330 = arith.constant 6 : index
    %c0_331 = arith.constant 0 : index
    %418 = vector.load %arg4[%c6_330, %c0_331] : memref<25x512xf32, #tpu.memory_space<vmem>>, vector<1x512xf32>
    %419 = vector.broadcast %418 : vector<1x512xf32> to vector<4x512xf32>
    %420 = arith.mulf %417, %419 : vector<4x512xf32>
    %c24_332 = arith.constant 24 : index
    %c0_333 = arith.constant 0 : index
    %421 = vector.load %arg18[%c24_332, %c0_333] : memref<100x512xf32, #tpu.memory_space<vmem>>, vector<4x512xf32>
    tpu.vector_store %arg18[%c24_332, %c0_333], %420 {strides = array<i32>} : memref<100x512xf32, #tpu.memory_space<vmem>>, vector<4x512xf32>,
    %c16_i32_334 = arith.constant 16 : i32
    %422 = tpu.dynamic_rotate %386 by %c16_i32_334 dim 1 : vector<4x512xf32>, i32 -> vector<4x512xf32>
    %c7_335 = arith.constant 7 : index
    %c0_336 = arith.constant 0 : index
    %423 = vector.load %arg4[%c7_335, %c0_336] : memref<25x512xf32, #tpu.memory_space<vmem>>, vector<1x512xf32>
    %424 = vector.broadcast %423 : vector<1x512xf32> to vector<4x512xf32>
    %425 = arith.mulf %422, %424 : vector<4x512xf32>
    %c28_337 = arith.constant 28 : index
    %c0_338 = arith.constant 0 : index
    %426 = vector.load %arg18[%c28_337, %c0_338] : memref<100x512xf32, #tpu.memory_space<vmem>>, vector<4x512xf32>
    tpu.vector_store %arg18[%c28_337, %c0_338], %425 {strides = array<i32>} : memref<100x512xf32, #tpu.memory_space<vmem>>, vector<4x512xf32>,
    %c15_i32_339 = arith.constant 15 : i32
    %427 = tpu.dynamic_rotate %386 by %c15_i32_339 dim 1 : vector<4x512xf32>, i32 -> vector<4x512xf32>
    %c8_340 = arith.constant 8 : index
    %c0_341 = arith.constant 0 : index
    %428 = vector.load %arg4[%c8_340, %c0_341] : memref<25x512xf32, #tpu.memory_space<vmem>>, vector<1x512xf32>
    %429 = vector.broadcast %428 : vector<1x512xf32> to vector<4x512xf32>
    %430 = arith.mulf %427, %429 : vector<4x512xf32>
    %c32_342 = arith.constant 32 : index
    %c0_343 = arith.constant 0 : index
    %431 = vector.load %arg18[%c32_342, %c0_343] : memref<100x512xf32, #tpu.memory_space<vmem>>, vector<4x512xf32>
    tpu.vector_store %arg18[%c32_342, %c0_343], %430 {strides = array<i32>} : memref<100x512xf32, #tpu.memory_space<vmem>>, vector<4x512xf32>,
    %c14_i32_344 = arith.constant 14 : i32
    %432 = tpu.dynamic_rotate %386 by %c14_i32_344 dim 1 : vector<4x512xf32>, i32 -> vector<4x512xf32>
    %c9_345 = arith.constant 9 : index
    %c0_346 = arith.constant 0 : index
    %433 = vector.load %arg4[%c9_345, %c0_346] : memref<25x512xf32, #tpu.memory_space<vmem>>, vector<1x512xf32>
    %434 = vector.broadcast %433 : vector<1x512xf32> to vector<4x512xf32>
    %435 = arith.mulf %432, %434 : vector<4x512xf32>
    %c36_347 = arith.constant 36 : index
    %c0_348 = arith.constant 0 : index
    %436 = vector.load %arg18[%c36_347, %c0_348] : memref<100x512xf32, #tpu.memory_space<vmem>>, vector<4x512xf32>
    tpu.vector_store %arg18[%c36_347, %c0_348], %435 {strides = array<i32>} : memref<100x512xf32, #tpu.memory_space<vmem>>, vector<4x512xf32>,
    %c2_i32_349 = arith.constant 2 : i32
    %437 = tpu.dynamic_rotate %386 by %c2_i32_349 dim 1 : vector<4x512xf32>, i32 -> vector<4x512xf32>
    %c10_350 = arith.constant 10 : index
    %c0_351 = arith.constant 0 : index
    %438 = vector.load %arg4[%c10_350, %c0_351] : memref<25x512xf32, #tpu.memory_space<vmem>>, vector<1x512xf32>
    %439 = vector.broadcast %438 : vector<1x512xf32> to vector<4x512xf32>
    %440 = arith.mulf %437, %439 : vector<4x512xf32>
    %c40_352 = arith.constant 40 : index
    %c0_353 = arith.constant 0 : index
    %441 = vector.load %arg18[%c40_352, %c0_353] : memref<100x512xf32, #tpu.memory_space<vmem>>, vector<4x512xf32>
    tpu.vector_store %arg18[%c40_352, %c0_353], %440 {strides = array<i32>} : memref<100x512xf32, #tpu.memory_space<vmem>>, vector<4x512xf32>,
    %c1_i32_354 = arith.constant 1 : i32
    %442 = tpu.dynamic_rotate %386 by %c1_i32_354 dim 1 : vector<4x512xf32>, i32 -> vector<4x512xf32>
    %c11_355 = arith.constant 11 : index
    %c0_356 = arith.constant 0 : index
    %443 = vector.load %arg4[%c11_355, %c0_356] : memref<25x512xf32, #tpu.memory_space<vmem>>, vector<1x512xf32>
    %444 = vector.broadcast %443 : vector<1x512xf32> to vector<4x512xf32>
    %445 = arith.mulf %442, %444 : vector<4x512xf32>
    %c44_357 = arith.constant 44 : index
    %c0_358 = arith.constant 0 : index
    %446 = vector.load %arg18[%c44_357, %c0_358] : memref<100x512xf32, #tpu.memory_space<vmem>>, vector<4x512xf32>
    tpu.vector_store %arg18[%c44_357, %c0_358], %445 {strides = array<i32>} : memref<100x512xf32, #tpu.memory_space<vmem>>, vector<4x512xf32>,
    %c48_359 = arith.constant 48 : index
    %c0_360 = arith.constant 0 : index
    %447 = vector.load %arg18[%c48_359, %c0_360] : memref<100x512xf32, #tpu.memory_space<vmem>>, vector<4x512xf32>
    tpu.vector_store %arg18[%c48_359, %c0_360], %386 {strides = array<i32>} : memref<100x512xf32, #tpu.memory_space<vmem>>, vector<4x512xf32>,
    %c511_i32_361 = arith.constant 511 : i32
    %448 = tpu.dynamic_rotate %386 by %c511_i32_361 dim 1 : vector<4x512xf32>, i32 -> vector<4x512xf32>
    %c13_362 = arith.constant 13 : index
    %c0_363 = arith.constant 0 : index
    %449 = vector.load %arg4[%c13_362, %c0_363] : memref<25x512xf32, #tpu.memory_space<vmem>>, vector<1x512xf32>
    %450 = vector.broadcast %449 : vector<1x512xf32> to vector<4x512xf32>
    %451 = arith.mulf %448, %450 : vector<4x512xf32>
    %c52_364 = arith.constant 52 : index
    %c0_365 = arith.constant 0 : index
    %452 = vector.load %arg18[%c52_364, %c0_365] : memref<100x512xf32, #tpu.memory_space<vmem>>, vector<4x512xf32>
    tpu.vector_store %arg18[%c52_364, %c0_365], %451 {strides = array<i32>} : memref<100x512xf32, #tpu.memory_space<vmem>>, vector<4x512xf32>,
    %c510_i32_366 = arith.constant 510 : i32
    %453 = tpu.dynamic_rotate %386 by %c510_i32_366 dim 1 : vector<4x512xf32>, i32 -> vector<4x512xf32>
    %c14_367 = arith.constant 14 : index
    %c0_368 = arith.constant 0 : index
    %454 = vector.load %arg4[%c14_367, %c0_368] : memref<25x512xf32, #tpu.memory_space<vmem>>, vector<1x512xf32>
    %455 = vector.broadcast %454 : vector<1x512xf32> to vector<4x512xf32>
    %456 = arith.mulf %453, %455 : vector<4x512xf32>
    %c56_369 = arith.constant 56 : index
    %c0_370 = arith.constant 0 : index
    %457 = vector.load %arg18[%c56_369, %c0_370] : memref<100x512xf32, #tpu.memory_space<vmem>>, vector<4x512xf32>
    tpu.vector_store %arg18[%c56_369, %c0_370], %456 {strides = array<i32>} : memref<100x512xf32, #tpu.memory_space<vmem>>, vector<4x512xf32>,
    %c498_i32_371 = arith.constant 498 : i32
    %458 = tpu.dynamic_rotate %386 by %c498_i32_371 dim 1 : vector<4x512xf32>, i32 -> vector<4x512xf32>
    %c15_372 = arith.constant 15 : index
    %c0_373 = arith.constant 0 : index
    %459 = vector.load %arg4[%c15_372, %c0_373] : memref<25x512xf32, #tpu.memory_space<vmem>>, vector<1x512xf32>
    %460 = vector.broadcast %459 : vector<1x512xf32> to vector<4x512xf32>
    %461 = arith.mulf %458, %460 : vector<4x512xf32>
    %c60_374 = arith.constant 60 : index
    %c0_375 = arith.constant 0 : index
    %462 = vector.load %arg18[%c60_374, %c0_375] : memref<100x512xf32, #tpu.memory_space<vmem>>, vector<4x512xf32>
    tpu.vector_store %arg18[%c60_374, %c0_375], %461 {strides = array<i32>} : memref<100x512xf32, #tpu.memory_space<vmem>>, vector<4x512xf32>,
    %c497_i32_376 = arith.constant 497 : i32
    %463 = tpu.dynamic_rotate %386 by %c497_i32_376 dim 1 : vector<4x512xf32>, i32 -> vector<4x512xf32>
    %c16_377 = arith.constant 16 : index
    %c0_378 = arith.constant 0 : index
    %464 = vector.load %arg4[%c16_377, %c0_378] : memref<25x512xf32, #tpu.memory_space<vmem>>, vector<1x512xf32>
    %465 = vector.broadcast %464 : vector<1x512xf32> to vector<4x512xf32>
    %466 = arith.mulf %463, %465 : vector<4x512xf32>
    %c64_379 = arith.constant 64 : index
    %c0_380 = arith.constant 0 : index
    %467 = vector.load %arg18[%c64_379, %c0_380] : memref<100x512xf32, #tpu.memory_space<vmem>>, vector<4x512xf32>
    tpu.vector_store %arg18[%c64_379, %c0_380], %466 {strides = array<i32>} : memref<100x512xf32, #tpu.memory_space<vmem>>, vector<4x512xf32>,
    %c496_i32_381 = arith.constant 496 : i32
    %468 = tpu.dynamic_rotate %386 by %c496_i32_381 dim 1 : vector<4x512xf32>, i32 -> vector<4x512xf32>
    %c17_382 = arith.constant 17 : index
    %c0_383 = arith.constant 0 : index
    %469 = vector.load %arg4[%c17_382, %c0_383] : memref<25x512xf32, #tpu.memory_space<vmem>>, vector<1x512xf32>
    %470 = vector.broadcast %469 : vector<1x512xf32> to vector<4x512xf32>
    %471 = arith.mulf %468, %470 : vector<4x512xf32>
    %c68_384 = arith.constant 68 : index
    %c0_385 = arith.constant 0 : index
    %472 = vector.load %arg18[%c68_384, %c0_385] : memref<100x512xf32, #tpu.memory_space<vmem>>, vector<4x512xf32>
    tpu.vector_store %arg18[%c68_384, %c0_385], %471 {strides = array<i32>} : memref<100x512xf32, #tpu.memory_space<vmem>>, vector<4x512xf32>,
    %c495_i32_386 = arith.constant 495 : i32
    %473 = tpu.dynamic_rotate %386 by %c495_i32_386 dim 1 : vector<4x512xf32>, i32 -> vector<4x512xf32>
    %c18_387 = arith.constant 18 : index
    %c0_388 = arith.constant 0 : index
    %474 = vector.load %arg4[%c18_387, %c0_388] : memref<25x512xf32, #tpu.memory_space<vmem>>, vector<1x512xf32>
    %475 = vector.broadcast %474 : vector<1x512xf32> to vector<4x512xf32>
    %476 = arith.mulf %473, %475 : vector<4x512xf32>
    %c72_389 = arith.constant 72 : index
    %c0_390 = arith.constant 0 : index
    %477 = vector.load %arg18[%c72_389, %c0_390] : memref<100x512xf32, #tpu.memory_space<vmem>>, vector<4x512xf32>
    tpu.vector_store %arg18[%c72_389, %c0_390], %476 {strides = array<i32>} : memref<100x512xf32, #tpu.memory_space<vmem>>, vector<4x512xf32>,
    %c494_i32_391 = arith.constant 494 : i32
    %478 = tpu.dynamic_rotate %386 by %c494_i32_391 dim 1 : vector<4x512xf32>, i32 -> vector<4x512xf32>
    %c19_392 = arith.constant 19 : index
    %c0_393 = arith.constant 0 : index
    %479 = vector.load %arg4[%c19_392, %c0_393] : memref<25x512xf32, #tpu.memory_space<vmem>>, vector<1x512xf32>
    %480 = vector.broadcast %479 : vector<1x512xf32> to vector<4x512xf32>
    %481 = arith.mulf %478, %480 : vector<4x512xf32>
    %c76_394 = arith.constant 76 : index
    %c0_395 = arith.constant 0 : index
    %482 = vector.load %arg18[%c76_394, %c0_395] : memref<100x512xf32, #tpu.memory_space<vmem>>, vector<4x512xf32>
    tpu.vector_store %arg18[%c76_394, %c0_395], %481 {strides = array<i32>} : memref<100x512xf32, #tpu.memory_space<vmem>>, vector<4x512xf32>,
    %c482_i32_396 = arith.constant 482 : i32
    %483 = tpu.dynamic_rotate %386 by %c482_i32_396 dim 1 : vector<4x512xf32>, i32 -> vector<4x512xf32>
    %c20_397 = arith.constant 20 : index
    %c0_398 = arith.constant 0 : index
    %484 = vector.load %arg4[%c20_397, %c0_398] : memref<25x512xf32, #tpu.memory_space<vmem>>, vector<1x512xf32>
    %485 = vector.broadcast %484 : vector<1x512xf32> to vector<4x512xf32>
    %486 = arith.mulf %483, %485 : vector<4x512xf32>
    %c80_399 = arith.constant 80 : index
    %c0_400 = arith.constant 0 : index
    %487 = vector.load %arg18[%c80_399, %c0_400] : memref<100x512xf32, #tpu.memory_space<vmem>>, vector<4x512xf32>
    tpu.vector_store %arg18[%c80_399, %c0_400], %486 {strides = array<i32>} : memref<100x512xf32, #tpu.memory_space<vmem>>, vector<4x512xf32>,
    %c481_i32_401 = arith.constant 481 : i32
    %488 = tpu.dynamic_rotate %386 by %c481_i32_401 dim 1 : vector<4x512xf32>, i32 -> vector<4x512xf32>
    %c21_402 = arith.constant 21 : index
    %c0_403 = arith.constant 0 : index
    %489 = vector.load %arg4[%c21_402, %c0_403] : memref<25x512xf32, #tpu.memory_space<vmem>>, vector<1x512xf32>
    %490 = vector.broadcast %489 : vector<1x512xf32> to vector<4x512xf32>
    %491 = arith.mulf %488, %490 : vector<4x512xf32>
    %c84_404 = arith.constant 84 : index
    %c0_405 = arith.constant 0 : index
    %492 = vector.load %arg18[%c84_404, %c0_405] : memref<100x512xf32, #tpu.memory_space<vmem>>, vector<4x512xf32>
    tpu.vector_store %arg18[%c84_404, %c0_405], %491 {strides = array<i32>} : memref<100x512xf32, #tpu.memory_space<vmem>>, vector<4x512xf32>,
    %c480_i32_406 = arith.constant 480 : i32
    %493 = tpu.dynamic_rotate %386 by %c480_i32_406 dim 1 : vector<4x512xf32>, i32 -> vector<4x512xf32>
    %c22_407 = arith.constant 22 : index
    %c0_408 = arith.constant 0 : index
    %494 = vector.load %arg4[%c22_407, %c0_408] : memref<25x512xf32, #tpu.memory_space<vmem>>, vector<1x512xf32>
    %495 = vector.broadcast %494 : vector<1x512xf32> to vector<4x512xf32>
    %496 = arith.mulf %493, %495 : vector<4x512xf32>
    %c88_409 = arith.constant 88 : index
    %c0_410 = arith.constant 0 : index
    %497 = vector.load %arg18[%c88_409, %c0_410] : memref<100x512xf32, #tpu.memory_space<vmem>>, vector<4x512xf32>
    tpu.vector_store %arg18[%c88_409, %c0_410], %496 {strides = array<i32>} : memref<100x512xf32, #tpu.memory_space<vmem>>, vector<4x512xf32>,
    %c479_i32_411 = arith.constant 479 : i32
    %498 = tpu.dynamic_rotate %386 by %c479_i32_411 dim 1 : vector<4x512xf32>, i32 -> vector<4x512xf32>
    %c23_412 = arith.constant 23 : index
    %c0_413 = arith.constant 0 : index
    %499 = vector.load %arg4[%c23_412, %c0_413] : memref<25x512xf32, #tpu.memory_space<vmem>>, vector<1x512xf32>
    %500 = vector.broadcast %499 : vector<1x512xf32> to vector<4x512xf32>
    %501 = arith.mulf %498, %500 : vector<4x512xf32>
    %c92_414 = arith.constant 92 : index
    %c0_415 = arith.constant 0 : index
    %502 = vector.load %arg18[%c92_414, %c0_415] : memref<100x512xf32, #tpu.memory_space<vmem>>, vector<4x512xf32>
    tpu.vector_store %arg18[%c92_414, %c0_415], %501 {strides = array<i32>} : memref<100x512xf32, #tpu.memory_space<vmem>>, vector<4x512xf32>,
    %c478_i32_416 = arith.constant 478 : i32
    %503 = tpu.dynamic_rotate %386 by %c478_i32_416 dim 1 : vector<4x512xf32>, i32 -> vector<4x512xf32>
    %c24_417 = arith.constant 24 : index
    %c0_418 = arith.constant 0 : index
    %504 = vector.load %arg4[%c24_417, %c0_418] : memref<25x512xf32, #tpu.memory_space<vmem>>, vector<1x512xf32>
    %505 = vector.broadcast %504 : vector<1x512xf32> to vector<4x512xf32>
    %506 = arith.mulf %503, %505 : vector<4x512xf32>
    %c96_419 = arith.constant 96 : index
    %c0_420 = arith.constant 0 : index
    %507 = vector.load %arg18[%c96_419, %c0_420] : memref<100x512xf32, #tpu.memory_space<vmem>>, vector<4x512xf32>
    tpu.vector_store %arg18[%c96_419, %c0_420], %506 {strides = array<i32>} : memref<100x512xf32, #tpu.memory_space<vmem>>, vector<4x512xf32>,
    %c0_421 = arith.constant 0 : index
    %c0_422 = arith.constant 0 : index
    %508 = vector.load %arg12[%c0_421, %c0_422] : memref<4x100xbf16, #tpu.memory_space<vmem>>, vector<4x100xbf16>
    %509 = arith.extf %508 : vector<4x100xbf16> to vector<4x100xf32>
    %c0_423 = arith.constant 0 : index
    %c0_424 = arith.constant 0 : index
    %510 = vector.load %arg18[%c0_423, %c0_424] : memref<100x512xf32, #tpu.memory_space<vmem>>, vector<100x512xf32>
    %cst_425 = arith.constant dense<0.000000e+00> : vector<4x512xf32>
    %511 = tpu.matmul %509, %510, %cst_425 {dimension_numbers = #tpu.dot_dimension_numbers<[1], [0], [0], [1], [0, 0, 1, 1], [], []>} : vector<4x100xf32>, vector<100x512xf32>, vector<4x512xf32> -> vector<4x512xf32>
    %512 = arith.addf %150, %161 : vector<4x512xf32>
    %513 = arith.addf %512, %256 : vector<4x512xf32>
    %514 = arith.addf %513, %511 : vector<4x512xf32>
    %515 = vector.extract_strided_slice %2 {offsets = [0, 7], sizes = [4, 1], strides = [1, 1]} : vector<8x21xf32> to vector<4x1xf32>
    %c0_426 = arith.constant 0 : index
    %c0_427 = arith.constant 0 : index
    %516 = vector.load %arg13[%c0_426, %c0_427] : memref<4x4xbf16, #tpu.memory_space<vmem>>, vector<4x4xbf16>
    %517 = arith.extf %516 : vector<4x4xbf16> to vector<4x4xf32>
    %cst_428 = arith.constant dense<0.000000e+00> : vector<4x512xf32>
    %518 = tpu.matmul %517, %514, %cst_428 {dimension_numbers = #tpu.dot_dimension_numbers<[1], [0], [0], [1], [0, 0, 1, 1], [], []>} : vector<4x4xf32>, vector<4x512xf32>, vector<4x512xf32> -> vector<4x512xf32>
    %519 = vector.broadcast %515 : vector<4x1xf32> to vector<4x512xf32>
    %520 = arith.addf %518, %519 : vector<4x512xf32>
    %521 = arith.mulf %520, %8 : vector<4x512xf32>
    %522 = vector.extract_strided_slice %2 {offsets = [0, 8], sizes = [4, 1], strides = [1, 1]} : vector<8x21xf32> to vector<4x1xf32>
    %c0_429 = arith.constant 0 : index
    %c0_430 = arith.constant 0 : index
    %523 = vector.load %arg14[%c0_429, %c0_430] : memref<4x4xbf16, #tpu.memory_space<vmem>>, vector<4x4xbf16>
    %524 = arith.extf %523 : vector<4x4xbf16> to vector<4x4xf32>
    %cst_431 = arith.constant dense<0.000000e+00> : vector<4x512xf32>
    %525 = tpu.matmul %524, %521, %cst_431 {dimension_numbers = #tpu.dot_dimension_numbers<[1], [0], [0], [1], [0, 0, 1, 1], [], []>} : vector<4x4xf32>, vector<4x512xf32>, vector<4x512xf32> -> vector<4x512xf32>
    %526 = vector.broadcast %522 : vector<4x1xf32> to vector<4x512xf32>
    %527 = arith.addf %525, %526 : vector<4x512xf32>
    %528 = arith.addf %1, %527 : vector<4x512xf32>
    %529 = vector.extract_strided_slice %2 {offsets = [0, 9], sizes = [8, 1], strides = [1, 1]} : vector<8x21xf32> to vector<8x1xf32>
    %c0_432 = arith.constant 0 : index
    %c0_433 = arith.constant 0 : index
    %530 = vector.load %arg15[%c0_432, %c0_433] : memref<8x4xbf16, #tpu.memory_space<vmem>>, vector<8x4xbf16>
    %531 = arith.extf %530 : vector<8x4xbf16> to vector<8x4xf32>
    %cst_434 = arith.constant dense<0.000000e+00> : vector<8x512xf32>
    %532 = tpu.matmul %531, %528, %cst_434 {dimension_numbers = #tpu.dot_dimension_numbers<[1], [0], [0], [1], [0, 0, 1, 1], [], []>} : vector<8x4xf32>, vector<4x512xf32>, vector<8x512xf32> -> vector<8x512xf32>
    %533 = vector.broadcast %529 : vector<8x1xf32> to vector<8x512xf32>
    %534 = arith.addf %532, %533 : vector<8x512xf32>
    %535 = vector.extract_strided_slice %2 {offsets = [0, 10], sizes = [8, 1], strides = [1, 1]} : vector<8x21xf32> to vector<8x1xf32>
    %536 = vector.extract_strided_slice %2 {offsets = [0, 11], sizes = [8, 1], strides = [1, 1]} : vector<8x21xf32> to vector<8x1xf32>
    %c17_i32_435 = arith.constant 17 : i32
    %537 = tpu.dynamic_rotate %534 by %c17_i32_435 dim 1 : vector<8x512xf32>, i32 -> vector<8x512xf32>
    %c0_436 = arith.constant 0 : index
    %c0_437 = arith.constant 0 : index
    %538 = vector.load %arg3[%c0_436, %c0_437] : memref<9x512xf32, #tpu.memory_space<vmem>>, vector<1x512xf32>
    %539 = vector.broadcast %538 : vector<1x512xf32> to vector<8x512xf32>
    %540 = arith.mulf %537, %539 : vector<8x512xf32>
    %541 = vector.broadcast %536 : vector<8x1xf32> to vector<8x512xf32>
    %542 = arith.mulf %541, %540 : vector<8x512xf32>
    %543 = vector.broadcast %535 : vector<8x1xf32> to vector<8x512xf32>
    %544 = arith.addf %543, %542 : vector<8x512xf32>
    %545 = vector.extract_strided_slice %2 {offsets = [0, 12], sizes = [8, 1], strides = [1, 1]} : vector<8x21xf32> to vector<8x1xf32>
    %c16_i32_438 = arith.constant 16 : i32
    %546 = tpu.dynamic_rotate %534 by %c16_i32_438 dim 1 : vector<8x512xf32>, i32 -> vector<8x512xf32>
    %c1_439 = arith.constant 1 : index
    %c0_440 = arith.constant 0 : index
    %547 = vector.load %arg3[%c1_439, %c0_440] : memref<9x512xf32, #tpu.memory_space<vmem>>, vector<1x512xf32>
    %548 = vector.broadcast %547 : vector<1x512xf32> to vector<8x512xf32>
    %549 = arith.mulf %546, %548 : vector<8x512xf32>
    %550 = vector.broadcast %545 : vector<8x1xf32> to vector<8x512xf32>
    %551 = arith.mulf %550, %549 : vector<8x512xf32>
    %552 = arith.addf %544, %551 : vector<8x512xf32>
    %553 = vector.extract_strided_slice %2 {offsets = [0, 13], sizes = [8, 1], strides = [1, 1]} : vector<8x21xf32> to vector<8x1xf32>
    %c15_i32_441 = arith.constant 15 : i32
    %554 = tpu.dynamic_rotate %534 by %c15_i32_441 dim 1 : vector<8x512xf32>, i32 -> vector<8x512xf32>
    %c2_442 = arith.constant 2 : index
    %c0_443 = arith.constant 0 : index
    %555 = vector.load %arg3[%c2_442, %c0_443] : memref<9x512xf32, #tpu.memory_space<vmem>>, vector<1x512xf32>
    %556 = vector.broadcast %555 : vector<1x512xf32> to vector<8x512xf32>
    %557 = arith.mulf %554, %556 : vector<8x512xf32>
    %558 = vector.broadcast %553 : vector<8x1xf32> to vector<8x512xf32>
    %559 = arith.mulf %558, %557 : vector<8x512xf32>
    %560 = arith.addf %552, %559 : vector<8x512xf32>
    %561 = vector.extract_strided_slice %2 {offsets = [0, 14], sizes = [8, 1], strides = [1, 1]} : vector<8x21xf32> to vector<8x1xf32>
    %c1_i32_444 = arith.constant 1 : i32
    %562 = tpu.dynamic_rotate %534 by %c1_i32_444 dim 1 : vector<8x512xf32>, i32 -> vector<8x512xf32>
    %c3_445 = arith.constant 3 : index
    %c0_446 = arith.constant 0 : index
    %563 = vector.load %arg3[%c3_445, %c0_446] : memref<9x512xf32, #tpu.memory_space<vmem>>, vector<1x512xf32>
    %564 = vector.broadcast %563 : vector<1x512xf32> to vector<8x512xf32>
    %565 = arith.mulf %562, %564 : vector<8x512xf32>
    %566 = vector.broadcast %561 : vector<8x1xf32> to vector<8x512xf32>
    %567 = arith.mulf %566, %565 : vector<8x512xf32>
    %568 = arith.addf %560, %567 : vector<8x512xf32>
    %569 = vector.extract_strided_slice %2 {offsets = [0, 15], sizes = [8, 1], strides = [1, 1]} : vector<8x21xf32> to vector<8x1xf32>
    %570 = vector.broadcast %569 : vector<8x1xf32> to vector<8x512xf32>
    %571 = arith.mulf %570, %534 : vector<8x512xf32>
    %572 = arith.addf %568, %571 : vector<8x512xf32>
    %573 = vector.extract_strided_slice %2 {offsets = [0, 16], sizes = [8, 1], strides = [1, 1]} : vector<8x21xf32> to vector<8x1xf32>
    %c511_i32_447 = arith.constant 511 : i32
    %574 = tpu.dynamic_rotate %534 by %c511_i32_447 dim 1 : vector<8x512xf32>, i32 -> vector<8x512xf32>
    %c5_448 = arith.constant 5 : index
    %c0_449 = arith.constant 0 : index
    %575 = vector.load %arg3[%c5_448, %c0_449] : memref<9x512xf32, #tpu.memory_space<vmem>>, vector<1x512xf32>
    %576 = vector.broadcast %575 : vector<1x512xf32> to vector<8x512xf32>
    %577 = arith.mulf %574, %576 : vector<8x512xf32>
    %578 = vector.broadcast %573 : vector<8x1xf32> to vector<8x512xf32>
    %579 = arith.mulf %578, %577 : vector<8x512xf32>
    %580 = arith.addf %572, %579 : vector<8x512xf32>
    %581 = vector.extract_strided_slice %2 {offsets = [0, 17], sizes = [8, 1], strides = [1, 1]} : vector<8x21xf32> to vector<8x1xf32>
    %c497_i32_450 = arith.constant 497 : i32
    %582 = tpu.dynamic_rotate %534 by %c497_i32_450 dim 1 : vector<8x512xf32>, i32 -> vector<8x512xf32>
    %c6_451 = arith.constant 6 : index
    %c0_452 = arith.constant 0 : index
    %583 = vector.load %arg3[%c6_451, %c0_452] : memref<9x512xf32, #tpu.memory_space<vmem>>, vector<1x512xf32>
    %584 = vector.broadcast %583 : vector<1x512xf32> to vector<8x512xf32>
    %585 = arith.mulf %582, %584 : vector<8x512xf32>
    %586 = vector.broadcast %581 : vector<8x1xf32> to vector<8x512xf32>
    %587 = arith.mulf %586, %585 : vector<8x512xf32>
    %588 = arith.addf %580, %587 : vector<8x512xf32>
    %589 = vector.extract_strided_slice %2 {offsets = [0, 18], sizes = [8, 1], strides = [1, 1]} : vector<8x21xf32> to vector<8x1xf32>
    %c496_i32_453 = arith.constant 496 : i32
    %590 = tpu.dynamic_rotate %534 by %c496_i32_453 dim 1 : vector<8x512xf32>, i32 -> vector<8x512xf32>
    %c7_454 = arith.constant 7 : index
    %c0_455 = arith.constant 0 : index
    %591 = vector.load %arg3[%c7_454, %c0_455] : memref<9x512xf32, #tpu.memory_space<vmem>>, vector<1x512xf32>
    %592 = vector.broadcast %591 : vector<1x512xf32> to vector<8x512xf32>
    %593 = arith.mulf %590, %592 : vector<8x512xf32>
    %594 = vector.broadcast %589 : vector<8x1xf32> to vector<8x512xf32>
    %595 = arith.mulf %594, %593 : vector<8x512xf32>
    %596 = arith.addf %588, %595 : vector<8x512xf32>
    %597 = vector.extract_strided_slice %2 {offsets = [0, 19], sizes = [8, 1], strides = [1, 1]} : vector<8x21xf32> to vector<8x1xf32>
    %c495_i32_456 = arith.constant 495 : i32
    %598 = tpu.dynamic_rotate %534 by %c495_i32_456 dim 1 : vector<8x512xf32>, i32 -> vector<8x512xf32>
    %c8_457 = arith.constant 8 : index
    %c0_458 = arith.constant 0 : index
    %599 = vector.load %arg3[%c8_457, %c0_458] : memref<9x512xf32, #tpu.memory_space<vmem>>, vector<1x512xf32>
    %600 = vector.broadcast %599 : vector<1x512xf32> to vector<8x512xf32>
    %601 = arith.mulf %598, %600 : vector<8x512xf32>
    %602 = vector.broadcast %597 : vector<8x1xf32> to vector<8x512xf32>
    %603 = arith.mulf %602, %601 : vector<8x512xf32>
    %604 = arith.addf %596, %603 : vector<8x512xf32>
    %cst_459 = arith.constant 5.000000e-01 : f32
    %605 = vector.broadcast %cst_459 : f32 to vector<8x512xf32>
    %606 = arith.mulf %605, %604 : vector<8x512xf32>
    %cst_460 = arith.constant 0.707106769 : f32
    %607 = vector.broadcast %cst_460 : f32 to vector<8x512xf32>
    %608 = arith.mulf %604, %607 : vector<8x512xf32>
    %609 = math.erf %608 : vector<8x512xf32>
    %cst_461 = arith.constant 1.000000e+00 : f32
    %610 = vector.broadcast %cst_461 : f32 to vector<8x512xf32>
    %611 = arith.addf %610, %609 : vector<8x512xf32>
    %612 = arith.mulf %606, %611 : vector<8x512xf32>
    %613 = vector.extract_strided_slice %2 {offsets = [0, 20], sizes = [4, 1], strides = [1, 1]} : vector<8x21xf32> to vector<4x1xf32>
    %c0_462 = arith.constant 0 : index
    %c0_463 = arith.constant 0 : index
    %614 = vector.load %arg16[%c0_462, %c0_463] : memref<4x8xbf16, #tpu.memory_space<vmem>>, vector<4x8xbf16>
    %615 = arith.extf %614 : vector<4x8xbf16> to vector<4x8xf32>
    %cst_464 = arith.constant dense<0.000000e+00> : vector<4x512xf32>
    %616 = tpu.matmul %615, %612, %cst_464 {dimension_numbers = #tpu.dot_dimension_numbers<[1], [0], [0], [1], [0, 0, 1, 1], [], []>} : vector<4x8xf32>, vector<8x512xf32>, vector<4x512xf32> -> vector<4x512xf32>
    %617 = vector.broadcast %613 : vector<4x1xf32> to vector<4x512xf32>
    %618 = arith.addf %616, %617 : vector<4x512xf32>
    %619 = arith.addf %528, %618 : vector<4x512xf32>
    %c0_465 = arith.constant 0 : index
    %c0_466 = arith.constant 0 : index
    %620 = vector.load %arg17[%c0_465, %c0_466] : memref<4x512xf32, #tpu.memory_space<vmem>>, vector<4x512xf32>
    tpu.vector_store %arg17[%c0_465, %c0_466], %619 {strides = array<i32>} : memref<4x512xf32, #tpu.memory_space<vmem>>, vector<4x512xf32>,
    return
  }
  func.func @transform_0(%arg0: i32) -> (i32, i32) {
    %c0_i32 = arith.constant 0 : i32
    %c0_i32_0 = arith.constant 0 : i32
    return %c0_i32, %arg0 : i32, i32
  }
  func.func @transform_1(%arg0: i32) -> (i32, i32) {
    %c0_i32 = arith.constant 0 : i32
    %c0_i32_0 = arith.constant 0 : i32
    %c0_i32_1 = arith.constant 0 : i32
    return %c0_i32, %c0_i32_0 : i32, i32
  }
  func.func @transform_2(%arg0: i32) -> (i32, i32) {
    %c0_i32 = arith.constant 0 : i32
    %c0_i32_0 = arith.constant 0 : i32
    %c0_i32_1 = arith.constant 0 : i32
    return %c0_i32, %c0_i32_0 : i32, i32
  }
  func.func @transform_3(%arg0: i32) -> (i32, i32) {
    %c0_i32 = arith.constant 0 : i32
    %c0_i32_0 = arith.constant 0 : i32
    %c0_i32_1 = arith.constant 0 : i32
    return %c0_i32, %c0_i32_0 : i32, i32
  }
  func.func @transform_4(%arg0: i32) -> (i32, i32) {
    %c0_i32 = arith.constant 0 : i32
    %c0_i32_0 = arith.constant 0 : i32
    %c0_i32_1 = arith.constant 0 : i32
    return %c0_i32, %c0_i32_0 : i32, i32
  }
  func.func @transform_5(%arg0: i32) -> (i32, i32) {
    %c0_i32 = arith.constant 0 : i32
    %c0_i32_0 = arith.constant 0 : i32
    %c0_i32_1 = arith.constant 0 : i32
    return %c0_i32, %c0_i32_0 : i32, i32
  }
  func.func @transform_6(%arg0: i32) -> (i32, i32) {
    %c0_i32 = arith.constant 0 : i32
    %c0_i32_0 = arith.constant 0 : i32
    %c0_i32_1 = arith.constant 0 : i32
    return %c0_i32, %c0_i32_0 : i32, i32
  }
  func.func @transform_7(%arg0: i32) -> (i32, i32) {
    %c0_i32 = arith.constant 0 : i32
    %c0_i32_0 = arith.constant 0 : i32
    %c0_i32_1 = arith.constant 0 : i32
    return %c0_i32, %c0_i32_0 : i32, i32
  }
  func.func @transform_8(%arg0: i32) -> (i32, i32) {
    %c0_i32 = arith.constant 0 : i32
    %c0_i32_0 = arith.constant 0 : i32
    %c0_i32_1 = arith.constant 0 : i32
    return %c0_i32, %c0_i32_0 : i32, i32
  }
  func.func @transform_9(%arg0: i32) -> (i32, i32) {
    %c0_i32 = arith.constant 0 : i32
    %c0_i32_0 = arith.constant 0 : i32
    %c0_i32_1 = arith.constant 0 : i32
    return %c0_i32, %c0_i32_0 : i32, i32
  }
  func.func @transform_10(%arg0: i32) -> (i32, i32) {
    %c0_i32 = arith.constant 0 : i32
    %c0_i32_0 = arith.constant 0 : i32
    %c0_i32_1 = arith.constant 0 : i32
    return %c0_i32, %c0_i32_0 : i32, i32
  }
  func.func @transform_11(%arg0: i32) -> (i32, i32) {
    %c0_i32 = arith.constant 0 : i32
    %c0_i32_0 = arith.constant 0 : i32
    %c0_i32_1 = arith.constant 0 : i32
    return %c0_i32, %c0_i32_0 : i32, i32
  }
  func.func @transform_12(%arg0: i32) -> (i32, i32) {
    %c0_i32 = arith.constant 0 : i32
    %c0_i32_0 = arith.constant 0 : i32
    %c0_i32_1 = arith.constant 0 : i32
    return %c0_i32, %c0_i32_0 : i32, i32
  }
  func.func @transform_13(%arg0: i32) -> (i32, i32) {
    %c0_i32 = arith.constant 0 : i32
    %c0_i32_0 = arith.constant 0 : i32
    %c0_i32_1 = arith.constant 0 : i32
    return %c0_i32, %c0_i32_0 : i32, i32
  }
  func.func @transform_14(%arg0: i32) -> (i32, i32) {
    %c0_i32 = arith.constant 0 : i32
    %c0_i32_0 = arith.constant 0 : i32
    %c0_i32_1 = arith.constant 0 : i32
    return %c0_i32, %c0_i32_0 : i32, i32
  }
  func.func @transform_15(%arg0: i32) -> (i32, i32) {
    %c0_i32 = arith.constant 0 : i32
    %c0_i32_0 = arith.constant 0 : i32
    %c0_i32_1 = arith.constant 0 : i32
    return %c0_i32, %c0_i32_0 : i32, i32
  }
  func.func @transform_16(%arg0: i32) -> (i32, i32) {
    %c0_i32 = arith.constant 0 : i32
    %c0_i32_0 = arith.constant 0 : i32
    return %c0_i32, %arg0 : i32, i32
  }
}

</mosaic_0001>

<bundles_post_ra>
// kernel: cmam_forward.1
= control target key start
LH: loop header
LB: loop body
LE: loop exit
PB: predicated region body
PF: predicated region fallthrough
CT: control target
= control target key end

     0   :  { %v7366_v0 = vmov 0   ;;  %v7367_v2 = vmov 1   ;;  %v10565_v3 = vmov 0.0   ;;  %v7369_v4 = vmov 2   ;;  %s10547_s28 = smov 34   ;;  %s10545_s29 = smov 32   ;;  %s10496_s1 = inlined_call_operand.vmem [shape: f32[8,21], index: 1, kind: input, shape index: {}]   ;;  %s10497_s0 = inlined_call_operand.vmem [shape: bf16[4,512], index: 0, kind: input, shape index: {}]   ;;  %s10498_s4 = inlined_call_operand.vmem [shape: bf16[4,4], index: 4, kind: input, shape index: {}]   ;;  %s10499_s3 = inlined_call_operand.vmem [shape: f32[25,512], index: 3, kind: input, shape index: {}]   ;;  %s10500_s5 = inlined_call_operand.vmem [shape: bf16[4,100], index: 5, kind: input, shape index: {}]   ;;  %s10501_s6 = inlined_call_operand.vmem [shape: bf16[4,4], index: 6, kind: input, shape index: {}]   ;;  %s10502_s2 = inlined_call_operand.vmem [shape: f32[9,512], index: 2, kind: input, shape index: {}]   ;;  %s10503_s7 = inlined_call_operand.vmem [shape: bf16[4,4], index: 7, kind: input, shape index: {}]   ;;  %s10504_s8 = inlined_call_operand.vmem [shape: bf16[4,36], index: 8, kind: input, shape index: {}]   ;;  %s10505_s9 = inlined_call_operand.vmem [shape: bf16[4,36], index: 9, kind: input, shape index: {}]   ;;  %s10506_s10 = inlined_call_operand.vmem [shape: bf16[4,100], index: 10, kind: input, shape index: {}]   ;;  %s10507_s11 = inlined_call_operand.vmem [shape: bf16[4,100], index: 11, kind: input, shape index: {}]   ;;  %s10508_s12 = inlined_call_operand.vmem [shape: bf16[4,4], index: 12, kind: input, shape index: {}]   ;;  %s10509_s13 = inlined_call_operand.vmem [shape: bf16[4,4], index: 13, kind: input, shape index: {}]   ;;  %s10510_s14 = inlined_call_operand.vmem [shape: bf16[8,4], index: 14, kind: input, shape index: {}]   ;;  %s10511_s15 = inlined_call_operand.vmem [shape: bf16[4,8], index: 15, kind: input, shape index: {}]   ;;  %s10512_s16 = inlined_call_operand.vmem [shape: f32[4,512], index: 16, kind: output, shape index: {}]  }
   0x1   :  { %10605 = sst [smem:[#allocation19_spill]] %s10496_s1  ;;  %7326 = vset.pattern.permute.xlu0 %v7366_v0  ;;  %171 = vmatprep.mubr.f32.mxu0 %v10565_v3  ;;  %v7370_v5 = vmov 839922192   ;;  %v64_v7 = vlaneseq  ;;  %v7515_v11 = vld [vmem:[%s10497_s0] sm:$0xff]  ;;  %vm98_vm0 = vcmask 1043456   ;;  %vm10577_vm1 = vcmask 31744  }
   0x2   :  { %10606 = sst [smem:[#allocation20_spill]] %s10512_s16  ;;  %s10607_s23 = sld [smem:[#allocation19_spill]]  ;;  %242 = vmatprep.mubr.f32.mxu1 %v10565_v3  ;;  %7328 = vset.pattern.permute.xlu1 %v7369_v4  ;;  %v62_v6 = vunpack.c.l.s4 %v7370_v5  ;;  %10608 = vst [vmem:[#allocation3_spill] sm:$0xff] %v7515_v11  ;;  %v10564_v13 = vunpack.c.l.bf16 %v7515_v11  ;;  %v10563_v14 = vunpack.c.h.bf16 %v7515_v11  ;;  %v84_v20 = vld [vmem:[%s10498_s4] sm:$0x3] }
   0x3   :  { %v7509_v9 = vshrl.u32 %v64_v7, 7  ;;  %v85_v25 = vunpack.c.l.bf16 %v84_v20  ;;  %s10551_s0 = smov 33   ;;  %s10549_s4 = smov 31   ;;  %v7675_v55 = vand.u32 127, %v64_v7 }
   0x4   :  { %v63_v8 = vunpack.c.0.s8 %v62_v6  ;;  %s10526_s30 = smov 18   ;;  %s10588_s1 = smov 16   ;;  %v6939_v58 = vld [vmem:[%s10499_s3 + $0x1] ss:$8 sm:$0xf] }
   0x5   :  { %s10524_s17 = smov 30   ;;  %s10586_s18 = smov 17   ;;  %v7678_v56 = vsub.s32 1, %v7509_v9  ;;  %v7681_v57 = vsub.s32 2, %v7509_v9  ;;  %v7691_v60 = vsub.s32 0, %v7509_v9  ;;  %v7694_v62 = vsub.s32 3, %v7509_v9 }
   0x6   :  { %v66_v10 = vsub.s32 %v63_v8, %v7509_v9  ;;  %s10520_s19 = smov 14   ;;  %s10584_s20 = smov 1   ;;  %vm10539_vm2 = vcmp.lt.s32.totalorder %v7675_v55, 33  ;;  %vm10537_vm3 = vcmp.lt.s32.totalorder %v7675_v55, 31  ;;  %vm10538_vm4 = vcmp.lt.s32.totalorder %v7675_v55, 34 }
   0x7   :  { %s10582_s21 = smov 15   ;;  %s10514_s22 = smov 2   ;;  %v337_v63 = vrot.slane %v6939_v58, %v7678_v56  ;;  %v341_v0 = vrot.slane %v6939_v58, %v7681_v57  ;;  %v333_v9 = vrot.slane %v6939_v58, %v7691_v60  ;;  %vm10536_vm5 = vcmp.lt.s32.totalorder %v7675_v55, 32 }
   0x8   :  { %v7501_v1 = vld [vmem:[%s10607_s23] sm:$0xff]  ;;  %s10580_s24 = smov 127   ;;  %s10516_s25 = smov 114   ;;  %vm10535_vm6 = vcmp.lt.s32.totalorder %v7675_v55, 18  ;;  %vm622_vm7 = vcmp.lt.s32.totalorder %v7675_v55, 16  ;;  %vm10534_vm8 = vcmp.lt.s32.totalorder %v7675_v55, 30 }
   0x9   :  { %59 = vperm.xlu0 %7326, %v7501_v1   ;;  %87 = vperm.xlu1 %7328, %v7501_v1   ;;  %s10518_s26 = smov 126   ;;  %vm578_vm9 = vcmp.lt.s32.totalorder %v7675_v55, 17  ;;  %vm722_vm10 = vcmp.lt.s32.totalorder %v7675_v55, 14  ;;  %vm822_vm11 = vcmp.lt.s32.totalorder %v7675_v55, 1  ;;  %vm678_vm12 = vcmp.lt.s32.totalorder %v7675_v55, 15  ;;  %s10622_s27 = smov 126  }
   0xa   :  { %vm10600_vm13 = vcmp.lt.s32.totalorder %v7675_v55, 2  ;;  %vm882_vm14 = vcmp.lt.s32.totalorder %v7675_v55, 127  ;;  %vm10578_vm15 = vcmp.lt.s32.totalorder %v7675_v55, 114  ;;  %s10713_s16 = smov 32  }
   0xd   :  { %7327 = vset.pattern.permute.xlu0 %v7367_v2 }
   0xe   :  { %72 = vperm.xlu0 %7327, %v7501_v1  }
  0x88   :  { %v60_v12 = vpop.permute.xlu0 %59  ;;  %v88_v26 = vpop.permute.xlu1 %87 }
  0x89   :  { %v67_v15 = vrot.slane %v60_v12, %v66_v10  ;;  %v6941_v12 = vld [vmem:[%s10499_s3 + $0x3] ss:$8 sm:$0xf] }
  0x8b   :  { %v69_v17 = vmul.f32 %v67_v15, %v10564_v13  ;;  %v70_v18 = vmul.f32 %v67_v15, %v10563_v14 }
  0x8d   :  { %v73_v16 = vpop.permute.xlu0 %72 }
  0x8e   :  { %v80_v19 = vrot.slane %v73_v16, %v66_v10  ;;  %v345_v10 = vrot.slane %v6939_v58, %v7694_v62 }
  0x90   :  { %v7526_v21 = vadd.f32 %v80_v19, %v69_v17  ;;  %v7528_v22 = vadd.f32 %v80_v19, %v70_v18 }
  0x92   :  { %10609 = vst [vmem:[#allocation4_spill] sm:$0xff] %v7526_v21  ;;  %10610 = vst [vmem:[#allocation5_spill] sm:$0xff] %v7528_v22  ;;  %v7532_v23 = vcombine.high %v7526_v21, %v7526_v21  ;;  %v7536_v24 = vcombine.high %v7528_v22, %v7528_v22 }
  0x94   :  { %10611 = vst [vmem:[#allocation6_spill] sm:$0xff] %v7532_v23  ;;  %10612 = vst [vmem:[#allocation7_spill] sm:$0xff] %v7536_v24  ;;  %6933 = vmatprep.subr.msk.mxu0 %vm98_vm0, %v7532_v23  ;;  %6936 = vmatprep.subr.msk.mxu1 %vm98_vm0, %v7536_v24 }
  0x95   :  { %6934 = vmatpush1.msk.msra.mxu0 %vm98_vm0, %v7526_v21  ;;  %6937 = vmatpush1.msk.msra.mxu1 %vm98_vm0, %v7528_v22 }
  0x96   :  { %6935 = vmatmul.mubr.msk.f32.vlgmr.msra.gmra.mrb[0].mxu0 %vm10577_vm1, %v85_v25  ;;  %6938 = vmatmul.mubr.msk.f32.vlgmr.msra.gmra.mrb[0].mxu1 %vm10577_vm1, %v85_v25 }
  0x97   :  { %1612 = vmatprep.mubr.f32.mxu0 %v10565_v3  ;;  %1683 = vmatprep.mubr.f32.mxu1 %v10565_v3 }
 0x169   :  { %v173_v27 = vpop.f32.mrb[0].mxu0  ;;  %v244_v28 = vpop.f32.mrb[0].mxu1 }
 0x16a   :  { %v174_v29 = vadd.f32 %v173_v27, %v88_v26  ;;  %v245_v30 = vadd.f32 %v244_v28, %v88_v26  ;;  %v175_v31 = vpop.f32.mrb[1].mxu0  ;;  %v246_v32 = vpop.f32.mrb[1].mxu1  ;;  %v437_v27 = vrot.slane %v6941_v12, %v7678_v56  ;;  %v441_v28 = vrot.slane %v6941_v12, %v7681_v57 }
 0x16b   :  { %v176_v33 = vadd.f32 %v175_v31, %v88_v26  ;;  %v247_v34 = vadd.f32 %v246_v32, %v88_v26 }
 0x16c   :  { %v253_v35 = vmul.f32 0.70710677, %v174_v29  ;;  %v255_v36 = vmul.f32 0.70710677, %v245_v30  ;;  %v249_v41 = vmul.f32 0.5, %v174_v29  ;;  %v251_v44 = vmul.f32 0.5, %v245_v30 }
 0x16d   :  { %v254_v37 = vmul.f32 0.70710677, %v176_v33  ;;  %v256_v38 = vmul.f32 0.70710677, %v247_v34  ;;  %v250_v48 = vmul.f32 0.5, %v176_v33  ;;  %v252_v51 = vmul.f32 0.5, %v247_v34 }
 0x16e   :  { %7347 = verf.f32 %v253_v35 }
 0x16f   :  { %7349 = verf.f32 %v255_v36 }
 0x170   :  { %7351 = verf.f32 %v254_v37  ;;  %v433_v37 = vrot.slane %v6941_v12, %v7691_v60 }
 0x171   :  { %7353 = verf.f32 %v256_v38  ;;  %v445_v38 = vrot.slane %v6941_v12, %v7694_v62 }
 0x178   :  { %v7348_v39 = vpop.eup %7347 }
 0x179   :  { %v7350_v40 = vpop.eup %7349  ;;  %v261_v42 = vadd.f32 1.0, %v7348_v39  ;;  %v284_v39 = vld [vmem:[%s10499_s3] ss:$8 sm:$0xf] }
 0x17a   :  { %v7352_v43 = vpop.eup %7351  ;;  %v263_v45 = vadd.f32 1.0, %v7350_v40 }
 0x17b   :  { %v7354_v46 = vpop.eup %7353  ;;  %v7550_v47 = vmul.f32 %v261_v42, %v249_v41  ;;  %v262_v49 = vadd.f32 1.0, %v7352_v43 }
 0x17c   :  { %v7552_v50 = vmul.f32 %v263_v45, %v251_v44  ;;  %v264_v52 = vadd.f32 1.0, %v7354_v46 }
 0x17d   :  { %870 = vst [vmem:[#allocation2 + $0xc0] sm:$0xf] %v7550_v47  ;;  %v7555_v53 = vmul.f32 %v262_v49, %v250_v48  ;;  %314 = vrot.lane.b32.xlu1 %v7550_v47, %s10551_s0  ;;  %v293_v49 = vrot.slane %v284_v39, %v7678_v56 }
 0x17e   :  { %872 = vst [vmem:[#allocation2 + $0xd0] sm:$0xf] %v7552_v50  ;;  %v7560_v54 = vmul.f32 %v264_v52, %v252_v51  ;;  %318 = vrot.lane.b32.xlu0 %v7552_v50, %s10551_s0  ;;  %v297_v51 = vrot.slane %v284_v39, %v7681_v57 }
 0x17f   :  { %871 = vst [vmem:[#allocation2 + $0xc8] sm:$0xf] %v7555_v53 }
 0x180   :  { %873 = vst [vmem:[#allocation2 + $0xd8] sm:$0xf] %v7560_v54 }
 0x181   :  { %316 = vrot.lane.b32.xlu1 %v7555_v53, %s10551_s0 }
 0x182   :  { %414 = vrot.lane.b32.xlu0 %v7550_v47, %s10549_s4 }
 0x185   :  { %320 = vrot.lane.b32.xlu1 %v7560_v54, %s10551_s0 }
 0x186   :  { %418 = vrot.lane.b32.xlu0 %v7552_v50, %s10549_s4 }
 0x189   :  { %416 = vrot.lane.b32.xlu1 %v7555_v53, %s10549_s4 }
 0x18a   :  { %269 = vrot.lane.b32.xlu0 %v7550_v47, %s10547_s28 }
 0x18d   :  { %420 = vrot.lane.b32.xlu1 %v7560_v54, %s10549_s4 }
 0x18e   :  { %273 = vrot.lane.b32.xlu0 %v7552_v50, %s10547_s28 }
 0x191   :  { %271 = vrot.lane.b32.xlu1 %v7555_v53, %s10547_s28 }
 0x192   :  { %370 = vrot.lane.b32.xlu0 %v7550_v47, %s10545_s29 }
 0x195   :  { %275 = vrot.lane.b32.xlu1 %v7560_v54, %s10547_s28 }
 0x196   :  { %374 = vrot.lane.b32.xlu0 %v7552_v50, %s10545_s29 }
 0x199   :  { %372 = vrot.lane.b32.xlu1 %v7555_v53, %s10545_s29 }
 0x19a   :  { %514 = vrot.lane.b32.xlu0 %v7550_v47, %s10526_s30 }
 0x19d   :  { %376 = vrot.lane.b32.xlu1 %v7560_v54, %s10545_s29 }
 0x19e   :  { %518 = vrot.lane.b32.xlu0 %v7552_v50, %s10526_s30 }
 0x1a1   :  { %516 = vrot.lane.b32.xlu1 %v7555_v53, %s10526_s30 }
 0x1a2   :  { %614 = vrot.lane.b32.xlu0 %v7550_v47, %s10588_s1 }
 0x1a5   :  { %520 = vrot.lane.b32.xlu1 %v7560_v54, %s10526_s30  ;;  %s10532_s30 = smov 98  }
 0x1a6   :  { %618 = vrot.lane.b32.xlu0 %v7552_v50, %s10588_s1 }
 0x1a9   :  { %616 = vrot.lane.b32.xlu1 %v7555_v53, %s10588_s1 }
 0x1aa   :  { %470 = vrot.lane.b32.xlu0 %v7550_v47, %s10524_s17 }
 0x1ad   :  { %620 = vrot.lane.b32.xlu1 %v7560_v54, %s10588_s1 }
 0x1ae   :  { %474 = vrot.lane.b32.xlu0 %v7552_v50, %s10524_s17 }
 0x1b1   :  { %472 = vrot.lane.b32.xlu1 %v7555_v53, %s10524_s17 }
 0x1b2   :  { %570 = vrot.lane.b32.xlu0 %v7550_v47, %s10586_s18 }
 0x1b5   :  { %476 = vrot.lane.b32.xlu1 %v7560_v54, %s10524_s17  ;;  %s10530_s17 = smov 95  }
 0x1b6   :  { %574 = vrot.lane.b32.xlu0 %v7552_v50, %s10586_s18 }
 0x1b9   :  { %572 = vrot.lane.b32.xlu1 %v7555_v53, %s10586_s18 }
 0x1ba   :  { %714 = vrot.lane.b32.xlu0 %v7550_v47, %s10520_s19 }
 0x1bd   :  { %576 = vrot.lane.b32.xlu1 %v7560_v54, %s10586_s18 }
 0x1be   :  { %718 = vrot.lane.b32.xlu0 %v7552_v50, %s10520_s19 }
 0x1c1   :  { %716 = vrot.lane.b32.xlu1 %v7555_v53, %s10520_s19 }
 0x1c2   :  { %814 = vrot.lane.b32.xlu0 %v7550_v47, %s10584_s20 }
 0x1c5   :  { %720 = vrot.lane.b32.xlu1 %v7560_v54, %s10520_s19  ;;  %s10557_s19 = smov 111  }
 0x1c6   :  { %818 = vrot.lane.b32.xlu0 %v7552_v50, %s10584_s20 }
 0x1c9   :  { %816 = vrot.lane.b32.xlu1 %v7555_v53, %s10584_s20 }
 0x1ca   :  { %670 = vrot.lane.b32.xlu0 %v7550_v47, %s10582_s21 }
 0x1cd   :  { %820 = vrot.lane.b32.xlu1 %v7560_v54, %s10584_s20 }
 0x1ce   :  { %674 = vrot.lane.b32.xlu0 %v7552_v50, %s10582_s21 }
 0x1d1   :  { %672 = vrot.lane.b32.xlu1 %v7555_v53, %s10582_s21 }
 0x1d2   :  { %770 = vrot.lane.b32.xlu0 %v7550_v47, %s10514_s22 }
 0x1d5   :  { %676 = vrot.lane.b32.xlu1 %v7560_v54, %s10582_s21 }
 0x1d6   :  { %774 = vrot.lane.b32.xlu0 %v7552_v50, %s10514_s22 }
 0x1d9   :  { %772 = vrot.lane.b32.xlu1 %v7555_v53, %s10514_s22 }
 0x1da   :  { %874 = vrot.lane.b32.xlu0 %v7550_v47, %s10580_s24 }
 0x1dd   :  { %776 = vrot.lane.b32.xlu1 %v7560_v54, %s10514_s22  ;;  %s10522_s22 = smov 110  }
 0x1de   :  { %878 = vrot.lane.b32.xlu0 %v7552_v50, %s10580_s24 }
 0x1e1   :  { %876 = vrot.lane.b32.xlu1 %v7555_v53, %s10580_s24 }
 0x1e2   :  { %974 = vrot.lane.b32.xlu0 %v7550_v47, %s10516_s25 }
 0x1e5   :  { %880 = vrot.lane.b32.xlu1 %v7560_v54, %s10580_s24 }
 0x1e6   :  { %978 = vrot.lane.b32.xlu0 %v7552_v50, %s10516_s25 }
 0x1e9   :  { %976 = vrot.lane.b32.xlu1 %v7555_v53, %s10516_s25 }
 0x1ea   :  { %930 = vrot.lane.b32.xlu0 %v7550_v47, %s10518_s26 }
 0x1ed   :  { %980 = vrot.lane.b32.xlu1 %v7560_v54, %s10516_s25  ;;  %s10561_s25 = smov 112  }
 0x1ee   :  { %934 = vrot.lane.b32.xlu0 %v7552_v50, %s10518_s26 }
 0x1ef   :  { %v315_v59 = vpop.permute.xlu1 %314 }
 0x1f0   :  { %v319_v61 = vpop.permute.xlu0 %318 }
 0x1f1   :  { %932 = vrot.lane.b32.xlu1 %v7555_v53, %s10518_s26 }
 0x1f2   :  { %1074 = vrot.lane.b32.xlu0 %v7550_v47, %s10561_s25 }
 0x1f3   :  { %v317_v2 = vpop.permute.xlu1 %316 }
 0x1f4   :  { %v415_v4 = vpop.permute.xlu0 %414  ;;  %v324_v5 = vsel %vm10539_vm2, %v317_v2, %v319_v61  ;;  %v325_v6 = vsel %vm10539_vm2, %v315_v59, %v317_v2 }
 0x1f5   :  { %v351_v7 = vmul.f32 %v337_v63, %v325_v6  ;;  %v352_v8 = vmul.f32 %v341_v0, %v324_v5  ;;  %936 = vrot.lane.b32.xlu1 %v7560_v54, %s10518_s26  ;;  %s10559_s26 = smov 113   ;;  %v289_v5 = vrot.slane %v284_v39, %v7691_v60  ;;  %v301_v6 = vrot.slane %v284_v39, %v7694_v62 }
 0x1f6   :  { %1078 = vrot.lane.b32.xlu0 %v7552_v50, %s10561_s25 }
 0x1f7   :  { %v359_v15 = vrot.slane %v351_v7, 4  ;;  %v360_v16 = vrot.slane %v352_v8, 4  ;;  %v321_v17 = vpop.permute.xlu1 %320  ;;  %v6940_v7 = vld [vmem:[%s10499_s3 + $0x2] ss:$8 sm:$0xf] }
 0x1f8   :  { %v419_v18 = vpop.permute.xlu0 %418  ;;  %v323_v19 = vsel %vm10539_vm2, %v319_v61, %v321_v17  ;;  %v326_v20 = vsel %vm10539_vm2, %v321_v17, %v315_v59  ;;  %v393_v17 = vrot.slane %v6940_v7, %v7678_v56  ;;  %vm10541_vm2 = vcmp.lt.s32.totalorder %v7675_v55, 97 }
 0x1f9   :  { %367 = vst [vmem:[#allocation2 + $0x8] sm:$0xf0] %v359_v15  ;;  %368 = vst [vmem:[#allocation2 + $0x10] sm:$0xf0] %v360_v16  ;;  %v350_v25 = vmul.f32 %v333_v9, %v326_v20  ;;  %v353_v26 = vmul.f32 %v345_v10, %v323_v19  ;;  %1076 = vrot.lane.b32.xlu1 %v7555_v53, %s10561_s25 }
 0x1fa   :  { %1174 = vrot.lane.b32.xlu0 %v7550_v47, %s10522_s22 }
 0x1fb   :  { %v358_v29 = vrot.slane %v350_v25, 4  ;;  %v361_v30 = vrot.slane %v353_v26, 4  ;;  %v417_v31 = vpop.permute.xlu1 %416 }
 0x1fc   :  { %v270_v32 = vpop.permute.xlu0 %269  ;;  %v424_v33 = vsel %vm10537_vm3, %v417_v31, %v419_v18  ;;  %v425_v34 = vsel %vm10537_vm3, %v415_v4, %v417_v31  ;;  %v6943_v31 = vld [vmem:[%s10499_s3 + $0x5] ss:$8 sm:$0xf] }
 0x1fd   :  { %366 = vst [vmem:[#allocation2] sm:$0xf0] %v358_v29  ;;  %369 = vst [vmem:[#allocation2 + $0x18] sm:$0xf0] %v361_v30  ;;  %v451_v35 = vmul.f32 %v437_v27, %v425_v34  ;;  %v452_v36 = vmul.f32 %v441_v28, %v424_v33  ;;  %1080 = vrot.lane.b32.xlu1 %v7560_v54, %s10561_s25  ;;  %v389_v29 = vrot.slane %v6940_v7, %v7691_v60 }
 0x1fe   :  { %1178 = vrot.lane.b32.xlu0 %v7552_v50, %s10522_s22  ;;  %v401_v30 = vrot.slane %v6940_v7, %v7694_v62  ;;  %v541_v39 = vrot.slane %v6943_v31, %v7681_v57 }
 0x1ff   :  { %v459_v40 = vrot.slane %v451_v35, 4  ;;  %v460_v41 = vrot.slane %v452_v36, 4  ;;  %v421_v42 = vpop.permute.xlu1 %420 }
 0x200   :  { %v274_v43 = vpop.permute.xlu0 %273  ;;  %v423_v44 = vsel %vm10537_vm3, %v419_v18, %v421_v42  ;;  %v426_v45 = vsel %vm10537_vm3, %v421_v42, %v415_v4  ;;  %v397_v18 = vrot.slane %v6940_v7, %v7681_v57  ;;  %vm1038_vm3 = vcmp.lt.s32.totalorder %v7675_v55, 113 }
 0x201   :  { %467 = vst [vmem:[#allocation2 + $0x28] sm:$0xf0] %v459_v40  ;;  %468 = vst [vmem:[#allocation2 + $0x30] sm:$0xf0] %v460_v41  ;;  %v450_v46 = vmul.f32 %v433_v37, %v426_v45  ;;  %v453_v48 = vmul.f32 %v445_v38, %v423_v44  ;;  %1176 = vrot.lane.b32.xlu1 %v7555_v53, %s10522_s22  ;;  %v537_v38 = vrot.slane %v6943_v31, %v7678_v56 }
 0x202   :  { %1030 = vrot.lane.b32.xlu0 %v7550_v47, %s10559_s26 }
 0x203   :  { %v458_v52 = vrot.slane %v450_v46, 4  ;;  %v461_v58 = vrot.slane %v453_v48, 4  ;;  %v272_v59 = vpop.permute.xlu1 %271  ;;  %v533_v46 = vrot.slane %v6943_v31, %v7691_v60  ;;  %v545_v48 = vrot.slane %v6943_v31, %v7694_v62 }
 0x204   :  { %v371_v61 = vpop.permute.xlu0 %370  ;;  %v281_v63 = vsel %vm10538_vm4, %v272_v59, %v274_v43  ;;  %v282_v0 = vsel %vm10538_vm4, %v270_v32, %v272_v59 }
 0x205   :  { %466 = vst [vmem:[#allocation2 + $0x20] sm:$0xf0] %v458_v52  ;;  %469 = vst [vmem:[#allocation2 + $0x38] sm:$0xf0] %v461_v58  ;;  %v307_v2 = vmul.f32 %v293_v49, %v282_v0  ;;  %v308_v4 = vmul.f32 %v297_v51, %v281_v63  ;;  %1180 = vrot.lane.b32.xlu1 %v7560_v54, %s10522_s22  ;;  %s10528_s22 = smov 97  }
 0x206   :  { %1034 = vrot.lane.b32.xlu0 %v7552_v50, %s10559_s26  ;;  %v6945_v49 = vld [vmem:[%s10499_s3 + $0x7] ss:$8 sm:$0xf] }
 0x207   :  { %311 = vst [vmem:[#allocation2 + $0x8] sm:$0xf] %v307_v2  ;;  %312 = vst [vmem:[#allocation2 + $0x10] sm:$0xf] %v308_v4  ;;  %v276_v8 = vpop.permute.xlu1 %275  ;;  %v645_v31 = vrot.slane %v6945_v49, %v7694_v62 }
 0x208   :  { %v375_v9 = vpop.permute.xlu0 %374  ;;  %v280_v10 = vsel %vm10538_vm4, %v274_v43, %v276_v8  ;;  %v283_v12 = vsel %vm10538_vm4, %v276_v8, %v270_v32  ;;  %v641_v8 = vrot.slane %v6945_v49, %v7681_v57  ;;  %vm1138_vm4 = vcmp.lt.s32.totalorder %v7675_v55, 111 }
 0x209   :  { %v306_v15 = vmul.f32 %v289_v5, %v283_v12  ;;  %v309_v16 = vmul.f32 %v301_v6, %v280_v10  ;;  %1032 = vrot.lane.b32.xlu1 %v7555_v53, %s10559_s26  ;;  %v637_v5 = vrot.slane %v6945_v49, %v7678_v56 }
 0x20a   :  { %1130 = vrot.lane.b32.xlu0 %v7550_v47, %s10557_s19 }
 0x20b   :  { %310 = vst [vmem:[#allocation2] sm:$0xf] %v306_v15  ;;  %313 = vst [vmem:[#allocation2 + $0x18] sm:$0xf] %v309_v16  ;;  %v373_v19 = vpop.permute.xlu1 %372 }
 0x20c   :  { %v515_v20 = vpop.permute.xlu0 %514  ;;  %v380_v25 = vsel %vm10536_vm5, %v373_v19, %v375_v9  ;;  %v381_v26 = vsel %vm10536_vm5, %v371_v61, %v373_v19 }
 0x20d   :  { %v407_v27 = vmul.f32 %v393_v17, %v381_v26  ;;  %v408_v28 = vmul.f32 %v397_v18, %v380_v25  ;;  %1036 = vrot.lane.b32.xlu1 %v7560_v54, %s10559_s26 }
 0x20e   :  { %1134 = vrot.lane.b32.xlu0 %v7552_v50, %s10557_s19  ;;  %v1477_v51 = vld [vmem:[#allocation2 + $0x8] sm:$0xff] }
 0x20f   :  { %411 = vst [vmem:[#allocation2 + $0x28] sm:$0xf] %v407_v27  ;;  %412 = vst [vmem:[#allocation2 + $0x30] sm:$0xf] %v408_v28  ;;  %v377_v32 = vpop.permute.xlu1 %376 }
 0x210   :  { %v519_v33 = vpop.permute.xlu0 %518  ;;  %v379_v34 = vsel %vm10536_vm5, %v375_v9, %v377_v32  ;;  %v382_v35 = vsel %vm10536_vm5, %v377_v32, %v371_v61  ;;  %vm10540_vm5 = vcmp.lt.s32.totalorder %v7675_v55, 110 }
 0x211   :  { %v406_v36 = vmul.f32 %v389_v29, %v382_v35  ;;  %v409_v37 = vmul.f32 %v401_v30, %v379_v34  ;;  %1132 = vrot.lane.b32.xlu1 %v7555_v53, %s10557_s19  ;;  %v1478_v29 = vld [vmem:[#allocation2 + $0x10] sm:$0xff]  ;;  %v633_v30 = vrot.slane %v6945_v49, %v7691_v60 }
 0x212   :  { %1274 = vrot.lane.b32.xlu0 %v7550_v47, %s10528_s22  ;;  %v1476_v9 = vld [vmem:[#allocation2] sm:$0xff]  ;;  %v1479_v10 = vld [vmem:[#allocation2 + $0x18] sm:$0xff] }
 0x213   :  { %410 = vst [vmem:[#allocation2 + $0x20] sm:$0xf] %v406_v36  ;;  %413 = vst [vmem:[#allocation2 + $0x38] sm:$0xf] %v409_v37  ;;  %v517_v40 = vpop.permute.xlu1 %516 }
 0x214   :  { %v7799_v41 = vpop.permute.xlu0 %614  ;;  %v524_v42 = vsel %vm10535_vm6, %v517_v40, %v519_v33  ;;  %v525_v43 = vsel %vm10535_vm6, %v515_v20, %v517_v40  ;;  %v6942_v35 = vld [vmem:[%s10499_s3 + $0x4] ss:$8 sm:$0xf] }
 0x215   :  { %v551_v44 = vmul.f32 %v537_v38, %v525_v43  ;;  %v552_v45 = vmul.f32 %v541_v39, %v524_v42  ;;  %1136 = vrot.lane.b32.xlu1 %v7560_v54, %s10557_s19 }
 0x216   :  { %1278 = vrot.lane.b32.xlu0 %v7552_v50, %s10528_s22  ;;  %v1481_v52 = vld [vmem:[#allocation2 + $0x28] sm:$0xff]  ;;  %v1482_v16 = vld [vmem:[#allocation2 + $0x30] sm:$0xff] }
 0x217   :  { %v559_v58 = vrot.slane %v551_v44, 4  ;;  %v560_v59 = vrot.slane %v552_v45, 4  ;;  %v521_v61 = vpop.permute.xlu1 %520  ;;  %v7091_v63 = vpack.c.bf16 %v1481_v52, %v1477_v51  ;;  %v7117_v34 = vpack.c.bf16 %v1482_v16, %v1478_v29 }
 0x218   :  { %v619_v0 = vpop.permute.xlu0 %618  ;;  %v523_v2 = vsel %vm10535_vm6, %v519_v33, %v521_v61  ;;  %v526_v4 = vsel %vm10535_vm6, %v521_v61, %v515_v20  ;;  %v493_v45 = vrot.slane %v6942_v35, %v7678_v56  ;;  %vm1082_vm6 = vcmp.lt.s32.totalorder %v7675_v55, 112 }
 0x219   :  { %567 = vst [vmem:[#allocation2 + $0x48] sm:$0xf0] %v559_v58  ;;  %568 = vst [vmem:[#allocation2 + $0x50] sm:$0xf0] %v560_v59  ;;  %v550_v6 = vmul.f32 %v533_v46, %v526_v4  ;;  %v553_v7 = vmul.f32 %v545_v48, %v523_v2  ;;  %1276 = vrot.lane.b32.xlu1 %v7555_v53, %s10528_s22  ;;  %7092 = vmatprep.subr.bf16.mxu0 %v7091_v63 }
 0x21a   :  { %1374 = vrot.lane.b32.xlu0 %v7550_v47, %s10530_s17  ;;  %v1480_v12 = vld [vmem:[#allocation2 + $0x20] sm:$0xff]  ;;  %v1483_v15 = vld [vmem:[#allocation2 + $0x38] sm:$0xff]  ;;  %v497_v46 = vrot.slane %v6942_v35, %v7681_v57  ;;  %v489_v63 = vrot.slane %v6942_v35, %v7691_v60 }
 0x21b   :  { %v558_v17 = vrot.slane %v550_v6, 4  ;;  %v561_v18 = vrot.slane %v553_v7, 4  ;;  %v617_v19 = vpop.permute.xlu1 %616  ;;  %v7093_v20 = vpack.c.bf16 %v1480_v12, %v1476_v9  ;;  %v7115_v25 = vpack.c.bf16 %v1483_v15, %v1479_v10  ;;  %v6944_v2 = vld [vmem:[%s10499_s3 + $0x6] ss:$8 sm:$0xf] }
 0x21c   :  { %v471_v26 = vpop.permute.xlu0 %470  ;;  %v624_v27 = vsel %vm622_vm7, %v617_v19, %v619_v0  ;;  %v625_v28 = vsel %vm622_vm7, %v7799_v41, %v617_v19  ;;  %v593_v10 = vrot.slane %v6944_v2, %v7678_v56  ;;  %v597_v12 = vrot.slane %v6944_v2, %v7681_v57 }
 0x21d   :  { %566 = vst [vmem:[#allocation2 + $0x40] sm:$0xf0] %v558_v17  ;;  %569 = vst [vmem:[#allocation2 + $0x58] sm:$0xf0] %v561_v18  ;;  %v651_v32 = vmul.f32 %v637_v5, %v625_v28  ;;  %v652_v33 = vmul.f32 %v641_v8, %v624_v27  ;;  %1280 = vrot.lane.b32.xlu1 %v7560_v54, %s10528_s22  ;;  %7094 = vmatpush1.bf16.msra.mxu0 %v7093_v20  ;;  %s10555_s22 = smov 96  }
 0x21e   :  { %1378 = vrot.lane.b32.xlu0 %v7552_v50, %s10530_s17  ;;  %7116 = vmatprep.subr.bf16.mxu1 %v7115_v25  ;;  %v589_v25 = vrot.slane %v6944_v2, %v7691_v60  ;;  %v6947_v27 = vld [vmem:[%s10499_s3 + $0x21] ss:$8 sm:$0xf] }
 0x21f   :  { %v659_v36 = vrot.slane %v651_v32, 4  ;;  %v660_v37 = vrot.slane %v652_v33, 4  ;;  %7118 = vmatpush1.bf16.msra.mxu1 %v7117_v34  ;;  %v621_v38 = vpop.permute.xlu1 %620  ;;  %v737_v34 = vrot.slane %v6947_v27, %v7678_v56 }
 0x220   :  { %v475_v39 = vpop.permute.xlu0 %474  ;;  %v623_v40 = vsel %vm622_vm7, %v619_v0, %v621_v38  ;;  %v626_v42 = vsel %vm622_vm7, %v621_v38, %v7799_v41  ;;  %v501_v0 = vrot.slane %v6942_v35, %v7694_v62  ;;  %v741_v35 = vrot.slane %v6947_v27, %v7681_v57 }
 0x221   :  { %667 = vst [vmem:[#allocation2 + $0x68] sm:$0xf0] %v659_v36  ;;  %668 = vst [vmem:[#allocation2 + $0x70] sm:$0xf0] %v660_v37  ;;  %v650_v43 = vmul.f32 %v633_v30, %v626_v42  ;;  %v653_v44 = vmul.f32 %v645_v31, %v623_v40  ;;  %1376 = vrot.lane.b32.xlu1 %v7555_v53, %s10530_s17 }
 0x222   :  { %1230 = vrot.lane.b32.xlu0 %v7550_v47, %s10532_s30 }
 0x223   :  { %v658_v48 = vrot.slane %v650_v43, 4  ;;  %v661_v49 = vrot.slane %v653_v44, 4  ;;  %v473_v41 = vpop.permute.xlu1 %472  ;;  %v733_v43 = vrot.slane %v6947_v27, %v7691_v60  ;;  %v6949_v44 = vld [vmem:[%s10499_s3 + $0x23] ss:$8 sm:$0xf] }
 0x224   :  { %v571_v51 = vpop.permute.xlu0 %570  ;;  %v480_v52 = vsel %vm10534_vm8, %v473_v41, %v475_v39  ;;  %v481_v58 = vsel %vm10534_vm8, %v471_v26, %v473_v41 }
 0x225   :  { %666 = vst [vmem:[#allocation2 + $0x60] sm:$0xf0] %v658_v48  ;;  %669 = vst [vmem:[#allocation2 + $0x78] sm:$0xf0] %v661_v49  ;;  %v507_v59 = vmul.f32 %v493_v45, %v481_v58  ;;  %v508_v61 = vmul.f32 %v497_v46, %v480_v52  ;;  %1380 = vrot.lane.b32.xlu1 %v7560_v54, %s10530_s17  ;;  %s10553_s17 = smov 94  }
 0x226   :  { %1234 = vrot.lane.b32.xlu0 %v7552_v50, %s10532_s30 }
 0x227   :  { %511 = vst [vmem:[#allocation2 + $0x48] sm:$0xf] %v507_v59  ;;  %512 = vst [vmem:[#allocation2 + $0x50] sm:$0xf] %v508_v61  ;;  %v477_v4 = vpop.permute.xlu1 %476  ;;  %v837_v61 = vrot.slane %v6949_v44, %v7678_v56 }
 0x228   :  { %v575_v5 = vpop.permute.xlu0 %574  ;;  %v479_v6 = vsel %vm10534_vm8, %v475_v39, %v477_v4  ;;  %v482_v7 = vsel %vm10534_vm8, %v477_v4, %v471_v26  ;;  %v601_v26 = vrot.slane %v6944_v2, %v7694_v62  ;;  %vm10579_vm8 = vcmp.lt.s32.totalorder %v7675_v55, 126 }
 0x229   :  { %v506_v8 = vmul.f32 %v489_v63, %v482_v7  ;;  %v509_v9 = vmul.f32 %v501_v0, %v479_v6  ;;  %1232 = vrot.lane.b32.xlu1 %v7555_v53, %s10532_s30 }
 0x22a   :  { %1330 = vrot.lane.b32.xlu0 %v7550_v47, %s10555_s22 }
 0x22b   :  { %510 = vst [vmem:[#allocation2 + $0x40] sm:$0xf] %v506_v8  ;;  %513 = vst [vmem:[#allocation2 + $0x58] sm:$0xf] %v509_v9  ;;  %v573_v15 = vpop.permute.xlu1 %572 }
 0x22c   :  { %v715_v16 = vpop.permute.xlu0 %714  ;;  %v580_v17 = vsel %vm578_vm9, %v573_v15, %v575_v5  ;;  %v581_v18 = vsel %vm578_vm9, %v571_v51, %v573_v15 }
 0x22d   :  { %v607_v19 = vmul.f32 %v593_v10, %v581_v18  ;;  %v608_v20 = vmul.f32 %v597_v12, %v580_v17  ;;  %1236 = vrot.lane.b32.xlu1 %v7560_v54, %s10532_s30  ;;  %s10618_s30 = smov 30  }
 0x22e   :  { %1334 = vrot.lane.b32.xlu0 %v7552_v50, %s10555_s22  ;;  %v1485_v45 = vld [vmem:[#allocation2 + $0x48] sm:$0xff]  ;;  %v1486_v18 = vld [vmem:[#allocation2 + $0x50] sm:$0xff] }
 0x22f   :  { %611 = vst [vmem:[#allocation2 + $0x68] sm:$0xf] %v607_v19  ;;  %612 = vst [vmem:[#allocation2 + $0x70] sm:$0xf] %v608_v20  ;;  %v577_v28 = vpop.permute.xlu1 %576  ;;  %v833_v19 = vrot.slane %v6949_v44, %v7691_v60  ;;  %v845_v20 = vrot.slane %v6949_v44, %v7694_v62 }
 0x230   :  { %v719_v29 = vpop.permute.xlu0 %718  ;;  %v579_v30 = vsel %vm578_vm9, %v575_v5, %v577_v28  ;;  %v582_v31 = vsel %vm578_vm9, %v577_v28, %v571_v51  ;;  %v6946_v28 = vld [vmem:[%s10499_s3 + $0x20] ss:$8 sm:$0xf] }
 0x231   :  { %v606_v32 = vmul.f32 %v589_v25, %v582_v31  ;;  %v609_v33 = vmul.f32 %v601_v26, %v579_v30  ;;  %1332 = vrot.lane.b32.xlu1 %v7555_v53, %s10555_s22 }
 0x232   :  { %1430 = vrot.lane.b32.xlu0 %v7550_v47, %s10553_s17  ;;  %v745_v47 = vrot.slane %v6947_v27, %v7694_v62  ;;  %v1484_v2 = vld [vmem:[#allocation2 + $0x40] sm:$0xff]  ;;  %v1487_v4 = vld [vmem:[#allocation2 + $0x58] sm:$0xff] }
 0x233   :  { %610 = vst [vmem:[#allocation2 + $0x60] sm:$0xf] %v606_v32  ;;  %613 = vst [vmem:[#allocation2 + $0x78] sm:$0xf] %v609_v33  ;;  %v717_v36 = vpop.permute.xlu1 %716 }
 0x234   :  { %v7899_v37 = vpop.permute.xlu0 %814  ;;  %v724_v38 = vsel %vm722_vm10, %v717_v36, %v719_v29  ;;  %v725_v39 = vsel %vm722_vm10, %v715_v16, %v717_v36 }
 0x235   :  { %v751_v40 = vmul.f32 %v737_v34, %v725_v39  ;;  %v752_v42 = vmul.f32 %v741_v35, %v724_v38  ;;  %1336 = vrot.lane.b32.xlu1 %v7560_v54, %s10555_s22  ;;  %v693_v38 = vrot.slane %v6946_v28, %v7678_v56  ;;  %v697_v39 = vrot.slane %v6946_v28, %v7681_v57  ;;  %s10647_s22 = smov 94  }
 0x236   :  { %1434 = vrot.lane.b32.xlu0 %v7552_v50, %s10553_s17  ;;  %v1489_v46 = vld [vmem:[#allocation2 + $0x68] sm:$0xff]  ;;  %v841_v50 = vrot.slane %v6949_v44, %v7681_v57  ;;  %v1490_v7 = vld [vmem:[#allocation2 + $0x70] sm:$0xff] }
 0x237   :  { %v759_v48 = vrot.slane %v751_v40, 4  ;;  %v760_v49 = vrot.slane %v752_v42, 4  ;;  %v721_v41 = vpop.permute.xlu1 %720  ;;  %v7095_v51 = vpack.c.bf16 %v1489_v46, %v1485_v45  ;;  %v7121_v27 = vpack.c.bf16 %v1490_v7, %v1486_v18 }
 0x238   :  { %v819_v52 = vpop.permute.xlu0 %818  ;;  %v723_v58 = vsel %vm722_vm10, %v719_v29, %v721_v41  ;;  %v726_v59 = vsel %vm722_vm10, %v721_v41, %v715_v16  ;;  %v7395_v29 = vmov 3   ;;  %v701_v41 = vrot.slane %v6946_v28, %v7694_v62 }
 0x239   :  { %767 = vst [vmem:[#allocation2 + $0x88] sm:$0xf0] %v759_v48  ;;  %768 = vst [vmem:[#allocation2 + $0x90] sm:$0xf0] %v760_v49  ;;  %v750_v63 = vmul.f32 %v733_v43, %v726_v59  ;;  %v753_v0 = vmul.f32 %v745_v47, %v723_v58  ;;  %1432 = vrot.lane.b32.xlu1 %v7555_v53, %s10553_s17  ;;  %7096 = vmatprep.subr.bf16.mxu0 %v7095_v51  ;;  %v7396_v47 = vmov 4  }
 0x23a   :  { %v1488_v5 = vld [vmem:[#allocation2 + $0x60] sm:$0xff]  ;;  %v1491_v6 = vld [vmem:[#allocation2 + $0x78] sm:$0xff]  ;;  %7329 = vset.pattern.permute.xlu0 %v7395_v29  ;;  %v689_v49 = vrot.slane %v6946_v28, %v7691_v60 }
 0x23b   :  { %v758_v8 = vrot.slane %v750_v63, 4  ;;  %v761_v9 = vrot.slane %v753_v0, 4  ;;  %v817_v10 = vpop.permute.xlu1 %816  ;;  %v7097_v12 = vpack.c.bf16 %v1488_v5, %v1484_v2  ;;  %v7119_v15 = vpack.c.bf16 %v1491_v6, %v1487_v4  ;;  %1529 = vperm.xlu0 %7329, %v7501_v1   ;;  %v6948_v51 = vld [vmem:[%s10499_s3 + $0x22] ss:$8 sm:$0xf] }
 0x23c   :  { %v671_v16 = vpop.permute.xlu0 %670  ;;  %v824_v17 = vsel %vm822_vm11, %v817_v10, %v819_v52  ;;  %v825_v53 = vsel %vm822_vm11, %v7899_v37, %v817_v10  ;;  %v793_v0 = vrot.slane %v6948_v51, %v7678_v56  ;;  %v801_v10 = vrot.slane %v6948_v51, %v7694_v62 }
 0x23d   :  { %766 = vst [vmem:[#allocation2 + $0x80] sm:$0xf0] %v758_v8  ;;  %769 = vst [vmem:[#allocation2 + $0x98] sm:$0xf0] %v761_v9  ;;  %v851_v25 = vmul.f32 %v837_v61, %v825_v53  ;;  %v852_v26 = vmul.f32 %v841_v50, %v824_v17  ;;  %1436 = vrot.lane.b32.xlu1 %v7560_v54, %s10553_s17  ;;  %7098 = vmatpush1.bf16.msra.mxu0 %v7097_v12  ;;  %s10630_s17 = smov 95  }
 0x23e   :  { %7120 = vmatprep.subr.bf16.mxu1 %v7119_v15  ;;  %v797_v50 = vrot.slane %v6948_v51, %v7681_v57  ;;  %v789_v9 = vrot.slane %v6948_v51, %v7691_v60  ;;  %v6950_v12 = vld [vmem:[%s10499_s3 + $0x25] ss:$8 sm:$0xf] }
 0x23f   :  { %v859_v30 = vrot.slane %v851_v25, 4  ;;  %v860_v31 = vrot.slane %v852_v26, 4  ;;  %7122 = vmatpush1.bf16.msra.mxu1 %v7121_v27  ;;  %v821_v32 = vpop.permute.xlu1 %820  ;;  %7330 = vset.pattern.permute.xlu0 %v7396_v47  ;;  %v897_v25 = vrot.slane %v6950_v12, %v7678_v56 }
 0x240   :  { %v675_v33 = vpop.permute.xlu0 %674  ;;  %v823_v34 = vsel %vm822_vm11, %v819_v52, %v821_v32  ;;  %v826_v54 = vsel %vm822_vm11, %v821_v32, %v7899_v37  ;;  %1693 = vperm.xlu0 %7330, %v7501_v1   ;;  %v901_v32 = vrot.slane %v6950_v12, %v7681_v57 }
 0x241   :  { %867 = vst [vmem:[#allocation2 + $0xa8] sm:$0xf0] %v859_v30  ;;  %868 = vst [vmem:[#allocation2 + $0xb0] sm:$0xf0] %v860_v31  ;;  %v850_v35 = vmul.f32 %v833_v19, %v826_v54  ;;  %v853_v36 = vmul.f32 %v845_v20, %v823_v34  ;;  %v893_v20 = vrot.slane %v6950_v12, %v7691_v60 }
 0x243   :  { %v858_v40 = vrot.slane %v850_v35, 4  ;;  %v861_v42 = vrot.slane %v853_v36, 4  ;;  %v673_v43 = vpop.permute.xlu1 %672  ;;  %v6952_v35 = vld [vmem:[%s10499_s3 + $0x27] ss:$8 sm:$0xf] }
 0x244   :  { %v771_v44 = vpop.permute.xlu0 %770  ;;  %v680_v45 = vsel %vm678_vm12, %v673_v43, %v675_v33  ;;  %v681_v37 = vsel %vm678_vm12, %v671_v16, %v673_v43 }
 0x245   :  { %866 = vst [vmem:[#allocation2 + $0xa0] sm:$0xf0] %v858_v40  ;;  %869 = vst [vmem:[#allocation2 + $0xb8] sm:$0xf0] %v861_v42  ;;  %v707_v46 = vmul.f32 %v693_v38, %v681_v37  ;;  %v708_v48 = vmul.f32 %v697_v39, %v680_v45  ;;  %v993_v37 = vrot.slane %v6952_v35, %v7691_v60 }
 0x247   :  { %711 = vst [vmem:[#allocation2 + $0x88] sm:$0xf] %v707_v46  ;;  %712 = vst [vmem:[#allocation2 + $0x90] sm:$0xf] %v708_v48  ;;  %v677_v52 = vpop.permute.xlu1 %676  ;;  %v997_v46 = vrot.slane %v6952_v35, %v7678_v56 }
 0x248   :  { %v775_v58 = vpop.permute.xlu0 %774  ;;  %v679_v59 = vsel %vm678_vm12, %v675_v33, %v677_v52  ;;  %v682_v1 = vsel %vm678_vm12, %v677_v52, %v671_v16  ;;  %v905_v33 = vrot.slane %v6950_v12, %v7694_v62 }
 0x249   :  { %v706_v61 = vmul.f32 %v689_v49, %v682_v1  ;;  %v709_v63 = vmul.f32 %v701_v41, %v679_v59 }
 0x24b   :  { %710 = vst [vmem:[#allocation2 + $0x80] sm:$0xf] %v706_v61  ;;  %713 = vst [vmem:[#allocation2 + $0x98] sm:$0xf] %v709_v63  ;;  %v773_v2 = vpop.permute.xlu1 %772 }
 0x24c   :  { %v875_v4 = vpop.permute.xlu0 %874  ;;  %v780_v5 = vsel %vm10600_vm13, %v773_v2, %v775_v58  ;;  %v781_v6 = vsel %vm10600_vm13, %v771_v44, %v773_v2 }
 0x24d   :  { %v807_v7 = vmul.f32 %v793_v0, %v781_v6  ;;  %v808_v8 = vmul.f32 %v797_v50, %v780_v5  ;;  %v1001_v6 = vrot.slane %v6952_v35, %v7681_v57 }
 0x24e   :  { %v1493_v34 = vld [vmem:[#allocation2 + $0x88] sm:$0xff]  ;;  %v1494_v0 = vld [vmem:[#allocation2 + $0x90] sm:$0xff] }
 0x24f   :  { %811 = vst [vmem:[#allocation2 + $0xa8] sm:$0xf] %v807_v7  ;;  %812 = vst [vmem:[#allocation2 + $0xb0] sm:$0xf] %v808_v8  ;;  %v777_v15 = vpop.permute.xlu1 %776 }
 0x250   :  { %v879_v16 = vpop.permute.xlu0 %878  ;;  %v779_v17 = vsel %vm10600_vm13, %v775_v58, %v777_v15  ;;  %v782_v53 = vsel %vm10600_vm13, %v777_v15, %v771_v44 }
 0x251   :  { %v806_v18 = vmul.f32 %v789_v9, %v782_v53  ;;  %v809_v19 = vmul.f32 %v801_v10, %v779_v17  ;;  %v1005_v9 = vrot.slane %v6952_v35, %v7694_v62  ;;  %v6951_v10 = vld [vmem:[%s10499_s3 + $0x26] ss:$8 sm:$0xf] }
 0x252   :  { %v1492_v48 = vld [vmem:[#allocation2 + $0x80] sm:$0xff]  ;;  %v1495_v51 = vld [vmem:[#allocation2 + $0x98] sm:$0xff]  ;;  %v961_v35 = vrot.slane %v6951_v10, %v7694_v62 }
 0x253   :  { %810 = vst [vmem:[#allocation2 + $0xa0] sm:$0xf] %v806_v18  ;;  %813 = vst [vmem:[#allocation2 + $0xb8] sm:$0xf] %v809_v19  ;;  %v877_v26 = vpop.permute.xlu1 %876 }
 0x254   :  { %v975_v27 = vpop.permute.xlu0 %974  ;;  %v884_v28 = vsel %vm882_vm14, %v877_v26, %v879_v16  ;;  %v885_v29 = vsel %vm882_vm14, %v875_v4, %v877_v26  ;;  %v953_v26 = vrot.slane %v6951_v10, %v7678_v56 }
 0x255   :  { %v910_v30 = vmul.f32 %v893_v20, %v885_v29  ;;  %v911_v31 = vmul.f32 %v897_v25, %v884_v28  ;;  %v949_v25 = vrot.slane %v6951_v10, %v7691_v60 }
 0x256   :  { %v1497_v54 = vld [vmem:[#allocation2 + $0xa8] sm:$0xff]  ;;  %v1498_v49 = vld [vmem:[#allocation2 + $0xb0] sm:$0xff] }
 0x257   :  { %v918_v36 = vrot.slane %v910_v30, 4  ;;  %v919_v38 = vrot.slane %v911_v31, 4  ;;  %v881_v39 = vpop.permute.xlu1 %880  ;;  %v7099_v40 = vpack.c.bf16 %v1497_v54, %v1493_v34  ;;  %v7125_v5 = vpack.c.bf16 %v1498_v49, %v1494_v0 }
 0x258   :  { %v979_v42 = vpop.permute.xlu0 %978  ;;  %v883_v43 = vsel %vm882_vm14, %v879_v16, %v881_v39  ;;  %v886_v47 = vsel %vm882_vm14, %v881_v39, %v875_v4  ;;  %v957_v54 = vrot.slane %v6951_v10, %v7681_v57 }
 0x259   :  { %926 = vst [vmem:[#allocation2 + $0xc0] sm:$0xf0] %v918_v36  ;;  %927 = vst [vmem:[#allocation2 + $0xc8] sm:$0xf0] %v919_v38  ;;  %v912_v44 = vmul.f32 %v901_v32, %v883_v43  ;;  %v913_v45 = vmul.f32 %v905_v33, %v886_v47  ;;  %7100 = vmatprep.subr.bf16.mxu0 %v7099_v40 }
 0x25a   :  { %v1496_v41 = vld [vmem:[#allocation2 + $0xa0] sm:$0xff]  ;;  %v1499_v52 = vld [vmem:[#allocation2 + $0xb8] sm:$0xff] }
 0x25b   :  { %v920_v58 = vrot.slane %v912_v44, 4  ;;  %v921_v59 = vrot.slane %v913_v45, 4  ;;  %v977_v1 = vpop.permute.xlu1 %976  ;;  %v7101_v61 = vpack.c.bf16 %v1496_v41, %v1492_v48  ;;  %v7123_v63 = vpack.c.bf16 %v1499_v52, %v1495_v51  ;;  %v6954_v36 = vld [vmem:[%s10499_s3 + $0x41] ss:$8 sm:$0xf] }
 0x25c   :  { %v931_v50 = vpop.permute.xlu0 %930  ;;  %v984_v2 = vsel %vm10578_vm15, %v977_v1, %v979_v42  ;;  %v985_v4 = vsel %vm10578_vm15, %v975_v27, %v977_v1  ;;  %v1093_v44 = vrot.slane %v6954_v36, %v7691_v60  ;;  %v1097_v45 = vrot.slane %v6954_v36, %v7678_v56  ;;  %v6956_v1 = vld [vmem:[%s10499_s3 + $0x43] ss:$8 sm:$0xf] }
 0x25d   :  { %928 = vst [vmem:[#allocation2 + $0xd0] sm:$0xf0] %v920_v58  ;;  %929 = vst [vmem:[#allocation2 + $0xd8] sm:$0xf0] %v921_v59  ;;  %v1010_v7 = vmul.f32 %v993_v37, %v985_v4  ;;  %v1011_v8 = vmul.f32 %v997_v46, %v984_v2  ;;  %7102 = vmatpush1.bf16.msra.mxu0 %v7101_v61  ;;  %7124 = vmatprep.subr.bf16.mxu1 %v7123_v63 }
 0x25e   :  { %7126 = vmatpush1.bf16.msra.mxu1 %v7125_v5  ;;  %v1101_v52 = vrot.slane %v6954_v36, %v7681_v57  ;;  %v1105_v58 = vrot.slane %v6954_v36, %v7694_v62 }
 0x25f   :  { %v1018_v12 = vrot.slane %v1010_v7, 4  ;;  %v1019_v15 = vrot.slane %v1011_v8, 4  ;;  %v981_v16 = vpop.permute.xlu1 %980 }
 0x260   :  { %v935_v17 = vpop.permute.xlu0 %934  ;;  %v983_v53 = vsel %vm10578_vm15, %v979_v42, %v981_v16  ;;  %v986_v18 = vsel %vm10578_vm15, %v981_v16, %v975_v27  ;;  %v1501_v59 = vld [vmem:[#allocation2 + $0xc8] sm:$0xff]  ;;  %v1500_v63 = vld [vmem:[#allocation2 + $0xc0] sm:$0xff]  ;;  %v1197_v16 = vrot.slane %v6956_v1, %v7678_v56 }
 0x261   :  { %1026 = vst [vmem:[#allocation2 + $0xe0] sm:$0xf0] %v1018_v12  ;;  %1027 = vst [vmem:[#allocation2 + $0xe8] sm:$0xf0] %v1019_v15  ;;  %v1012_v19 = vmul.f32 %v1001_v6, %v983_v53  ;;  %v1013_v20 = vmul.f32 %v1005_v9, %v986_v18  ;;  %v1193_v15 = vrot.slane %v6956_v1, %v7691_v60 }
 0x263   :  { %v1020_v28 = vrot.slane %v1012_v19, 4  ;;  %v1021_v29 = vrot.slane %v1013_v20, 4  ;;  %v933_v30 = vpop.permute.xlu1 %932 }
 0x264   :  { %v1075_v31 = vpop.permute.xlu0 %1074  ;;  %v940_v32 = vsel %vm10579_vm8, %v933_v30, %v935_v17  ;;  %v941_v27 = vsel %vm10579_vm8, %v931_v50, %v933_v30  ;;  %v1502_v18 = vld [vmem:[#allocation2 + $0xd0] sm:$0xff] }
 0x265   :  { %1028 = vst [vmem:[#allocation2 + $0xf0] sm:$0xf0] %v1020_v28  ;;  %1029 = vst [vmem:[#allocation2 + $0xf8] sm:$0xf0] %v1021_v29  ;;  %v966_v33 = vmul.f32 %v949_v25, %v941_v27  ;;  %v967_v34 = vmul.f32 %v953_v26, %v940_v32 }
 0x267   :  { %970 = vst [vmem:[#allocation2 + $0xe0] sm:$0xf] %v966_v33  ;;  %971 = vst [vmem:[#allocation2 + $0xe8] sm:$0xf] %v967_v34  ;;  %v937_v38 = vpop.permute.xlu1 %936  ;;  %v1201_v34 = vrot.slane %v6956_v1, %v7681_v57 }
 0x268   :  { %v1079_v39 = vpop.permute.xlu0 %1078  ;;  %v939_v40 = vsel %vm10579_vm8, %v935_v17, %v937_v38  ;;  %v942_v42 = vsel %vm10579_vm8, %v937_v38, %v931_v50  ;;  %v1503_v17 = vld [vmem:[#allocation2 + $0xd8] sm:$0xff] }
 0x269   :  { %v968_v43 = vmul.f32 %v957_v54, %v939_v40  ;;  %v969_v47 = vmul.f32 %v961_v35, %v942_v42  ;;  %v1205_v54 = vrot.slane %v6956_v1, %v7694_v62  ;;  %v6953_v35 = vld [vmem:[%s10499_s3 + $0x40] ss:$8 sm:$0xf] }
 0x26a   :  { %v1057_v1 = vrot.slane %v6953_v35, %v7681_v57 }
 0x26b   :  { %972 = vst [vmem:[#allocation2 + $0xf0] sm:$0xf] %v968_v43  ;;  %973 = vst [vmem:[#allocation2 + $0xf8] sm:$0xf] %v969_v47  ;;  %v1077_v37 = vpop.permute.xlu1 %1076 }
 0x26c   :  { %v1175_v46 = vpop.permute.xlu0 %1174  ;;  %v1084_v48 = vsel %vm1082_vm6, %v1077_v37, %v1079_v39  ;;  %v1085_v49 = vsel %vm1082_vm6, %v1075_v31, %v1077_v37  ;;  %v1053_v37 = vrot.slane %v6953_v35, %v7678_v56 }
 0x26d   :  { %v1110_v41 = vmul.f32 %v1093_v44, %v1085_v49  ;;  %v1111_v51 = vmul.f32 %v1097_v45, %v1084_v48  ;;  %v1049_v45 = vrot.slane %v6953_v35, %v7691_v60 }
 0x26e   :  { %v1505_v61 = vld [vmem:[#allocation2 + $0xe8] sm:$0xff]  ;;  %v1504_v0 = vld [vmem:[#allocation2 + $0xe0] sm:$0xff] }
 0x26f   :  { %v1118_v50 = vrot.slane %v1110_v41, 4  ;;  %v1119_v2 = vrot.slane %v1111_v51, 4  ;;  %v1081_v4 = vpop.permute.xlu1 %1080  ;;  %v7103_v5 = vpack.c.bf16 %v1505_v61, %v1501_v59  ;;  %v7105_v6 = vpack.c.bf16 %v1504_v0, %v1500_v63  ;;  %v6955_v63 = vld [vmem:[%s10499_s3 + $0x42] ss:$8 sm:$0xf] }
 0x270   :  { %v1179_v7 = vpop.permute.xlu0 %1178  ;;  %v1083_v8 = vsel %vm1082_vm6, %v1079_v39, %v1081_v4  ;;  %v1086_v9 = vsel %vm1082_vm6, %v1081_v4, %v1075_v31  ;;  %v1061_v61 = vrot.slane %v6953_v35, %v7694_v62 }
 0x271   :  { %1126 = vst [vmem:[#allocation2 + $0x100] sm:$0xf0] %v1118_v50  ;;  %1127 = vst [vmem:[#allocation2 + $0x108] sm:$0xf0] %v1119_v2  ;;  %v1112_v10 = vmul.f32 %v1101_v52, %v1083_v8  ;;  %v1113_v12 = vmul.f32 %v1105_v58, %v1086_v9  ;;  %7104 = vmatprep.subr.bf16.mxu0 %v7103_v5  ;;  %v1153_v8 = vrot.slane %v6955_v63, %v7678_v56 }
 0x272   :  { %7106 = vmatpush1.bf16.msra.mxu0 %v7105_v6  ;;  %v1507_v53 = vld [vmem:[#allocation2 + $0xf8] sm:$0xff]  ;;  %v1506_v19 = vld [vmem:[#allocation2 + $0xf0] sm:$0xff] }
 0x273   :  { %v1120_v20 = vrot.slane %v1112_v10, 4  ;;  %v1121_v25 = vrot.slane %v1113_v12, 4  ;;  %v1177_v26 = vpop.permute.xlu1 %1176  ;;  %v7127_v28 = vpack.c.bf16 %v1507_v53, %v1503_v17  ;;  %v7129_v29 = vpack.c.bf16 %v1506_v19, %v1502_v18  ;;  %v6958_v19 = vld [vmem:[%s10499_s3 + $0x45] ss:$8 sm:$0xf] }
 0x274   :  { %v1031_v30 = vpop.permute.xlu0 %1030  ;;  %v1184_v31 = vsel %vm10540_vm5, %v1177_v26, %v1179_v7  ;;  %v1185_v32 = vsel %vm10540_vm5, %v1175_v46, %v1177_v26  ;;  %v1157_v53 = vrot.slane %v6955_v63, %v7681_v57  ;;  %v1161_v18 = vrot.slane %v6955_v63, %v7694_v62 }
 0x275   :  { %1128 = vst [vmem:[#allocation2 + $0x110] sm:$0xf0] %v1120_v20  ;;  %1129 = vst [vmem:[#allocation2 + $0x118] sm:$0xf0] %v1121_v25  ;;  %v1210_v27 = vmul.f32 %v1193_v15, %v1185_v32  ;;  %v1211_v33 = vmul.f32 %v1197_v16, %v1184_v31  ;;  %7128 = vmatprep.subr.bf16.mxu1 %v7127_v28  ;;  %v1293_v31 = vrot.slane %v6958_v19, %v7691_v60 }
 0x276   :  { %7130 = vmatpush1.bf16.msra.mxu1 %v7129_v29  ;;  %v1297_v32 = vrot.slane %v6958_v19, %v7678_v56 }
 0x277   :  { %v1218_v36 = vrot.slane %v1210_v27, 4  ;;  %v1219_v38 = vrot.slane %v1211_v33, 4  ;;  %v1181_v39 = vpop.permute.xlu1 %1180 }
 0x278   :  { %v1035_v40 = vpop.permute.xlu0 %1034  ;;  %v1183_v42 = vsel %vm10540_vm5, %v1179_v7, %v1181_v39  ;;  %v1186_v43 = vsel %vm10540_vm5, %v1181_v39, %v1175_v46  ;;  %v1149_v7 = vrot.slane %v6955_v63, %v7691_v60  ;;  %v1305_v39 = vrot.slane %v6958_v19, %v7694_v62 }
 0x279   :  { %1226 = vst [vmem:[#allocation2 + $0x120] sm:$0xf0] %v1218_v36  ;;  %1227 = vst [vmem:[#allocation2 + $0x128] sm:$0xf0] %v1219_v38  ;;  %v1212_v47 = vmul.f32 %v1201_v34, %v1183_v42  ;;  %v1213_v44 = vmul.f32 %v1205_v54, %v1186_v43  ;;  %v1301_v38 = vrot.slane %v6958_v19, %v7681_v57  ;;  %vm10542_vm5 = vcmp.lt.s32.totalorder %v7675_v55, 95 }
 0x27a   :  { %v6960_v42 = vld [vmem:[%s10499_s3 + $0x47] ss:$8 sm:$0xf] }
 0x27b   :  { %v1220_v48 = vrot.slane %v1212_v47, 4  ;;  %v1221_v49 = vrot.slane %v1213_v44, 4  ;;  %v1033_v41 = vpop.permute.xlu1 %1032 }
 0x27c   :  { %v1131_v51 = vpop.permute.xlu0 %1130  ;;  %v1040_v52 = vsel %vm1038_vm3, %v1033_v41, %v1035_v40  ;;  %v1041_v46 = vsel %vm1038_vm3, %v1031_v30, %v1033_v41 }
 0x27d   :  { %1228 = vst [vmem:[#allocation2 + $0x130] sm:$0xf0] %v1220_v48  ;;  %1229 = vst [vmem:[#allocation2 + $0x138] sm:$0xf0] %v1221_v49  ;;  %v1066_v58 = vmul.f32 %v1049_v45, %v1041_v46  ;;  %v1067_v59 = vmul.f32 %v1053_v37, %v1040_v52 }
 0x27f   :  { %1070 = vst [vmem:[#allocation2 + $0x100] sm:$0xf] %v1066_v58  ;;  %1071 = vst [vmem:[#allocation2 + $0x108] sm:$0xf] %v1067_v59  ;;  %v1037_v0 = vpop.permute.xlu1 %1036 }
 0x280   :  { %v1135_v50 = vpop.permute.xlu0 %1134  ;;  %v1039_v2 = vsel %vm1038_vm3, %v1035_v40, %v1037_v0  ;;  %v1042_v4 = vsel %vm1038_vm3, %v1037_v0, %v1031_v30 }
 0x281   :  { %v1068_v5 = vmul.f32 %v1057_v1, %v1039_v2  ;;  %v1069_v6 = vmul.f32 %v1061_v61, %v1042_v4  ;;  %v1393_v1 = vrot.slane %v6960_v42, %v7691_v60  ;;  %v1397_v61 = vrot.slane %v6960_v42, %v7678_v56 }
 0x283   :  { %1072 = vst [vmem:[#allocation2 + $0x110] sm:$0xf] %v1068_v5  ;;  %1073 = vst [vmem:[#allocation2 + $0x118] sm:$0xf] %v1069_v6  ;;  %v1133_v9 = vpop.permute.xlu1 %1132 }
 0x284   :  { %v1275_v10 = vpop.permute.xlu0 %1274  ;;  %v1140_v12 = vsel %vm1138_vm4, %v1133_v9, %v1135_v50  ;;  %v1141_v15 = vsel %vm1138_vm4, %v1131_v51, %v1133_v9 }
 0x285   :  { %v1166_v16 = vmul.f32 %v1149_v7, %v1141_v15  ;;  %v1167_v17 = vmul.f32 %v1153_v8, %v1140_v12 }
 0x286   :  { %v1509_v40 = vld [vmem:[#allocation2 + $0x108] sm:$0xff]  ;;  %v1508_v47 = vld [vmem:[#allocation2 + $0x100] sm:$0xff] }
 0x287   :  { %1170 = vst [vmem:[#allocation2 + $0x120] sm:$0xf] %v1166_v16  ;;  %1171 = vst [vmem:[#allocation2 + $0x128] sm:$0xf] %v1167_v17  ;;  %v1137_v20 = vpop.permute.xlu1 %1136  ;;  %v1401_v17 = vrot.slane %v6960_v42, %v7681_v57 }
 0x288   :  { %v1279_v25 = vpop.permute.xlu0 %1278  ;;  %v1139_v26 = vsel %vm1138_vm4, %v1135_v50, %v1137_v20  ;;  %v1142_v28 = vsel %vm1138_vm4, %v1137_v20, %v1131_v51 }
 0x289   :  { %v1168_v29 = vmul.f32 %v1157_v53, %v1139_v26  ;;  %v1169_v30 = vmul.f32 %v1161_v18, %v1142_v28  ;;  %v1405_v53 = vrot.slane %v6960_v42, %v7694_v62  ;;  %v6957_v18 = vld [vmem:[%s10499_s3 + $0x44] ss:$8 sm:$0xf] }
 0x28a   :  { %v1511_v63 = vld [vmem:[#allocation2 + $0x118] sm:$0xff]  ;;  %v1510_v50 = vld [vmem:[#allocation2 + $0x110] sm:$0xff]  ;;  %v1257_v42 = vrot.slane %v6957_v18, %v7681_v57 }
 0x28b   :  { %1172 = vst [vmem:[#allocation2 + $0x130] sm:$0xf] %v1168_v29  ;;  %1173 = vst [vmem:[#allocation2 + $0x138] sm:$0xf] %v1169_v30  ;;  %v1277_v27 = vpop.permute.xlu1 %1276 }
 0x28c   :  { %v1375_v33 = vpop.permute.xlu0 %1374  ;;  %v1284_v34 = vsel %vm10541_vm2, %v1277_v27, %v1279_v25  ;;  %v1285_v54 = vsel %vm10541_vm2, %v1275_v10, %v1277_v27  ;;  %v1253_v27 = vrot.slane %v6957_v18, %v7678_v56 }
 0x28d   :  { %v1310_v35 = vmul.f32 %v1293_v31, %v1285_v54  ;;  %v1311_v36 = vmul.f32 %v1297_v32, %v1284_v34  ;;  %v1249_v32 = vrot.slane %v6957_v18, %v7691_v60 }
 0x28e   :  { %v1513_v43 = vld [vmem:[#allocation2 + $0x128] sm:$0xff]  ;;  %v1512_v44 = vld [vmem:[#allocation2 + $0x120] sm:$0xff] }
 0x28f   :  { %v1318_v45 = vrot.slane %v1310_v35, 4  ;;  %v1319_v37 = vrot.slane %v1311_v36, 4  ;;  %v1281_v48 = vpop.permute.xlu1 %1280  ;;  %v7107_v49 = vpack.c.bf16 %v1513_v43, %v1509_v40  ;;  %v7109_v41 = vpack.c.bf16 %v1512_v44, %v1508_v47  ;;  %v6959_v47 = vld [vmem:[%s10499_s3 + $0x46] ss:$8 sm:$0xf] }
 0x290   :  { %v1379_v51 = vpop.permute.xlu0 %1378  ;;  %v1283_v52 = vsel %vm10541_vm2, %v1279_v25, %v1281_v48  ;;  %v1286_v46 = vsel %vm10541_vm2, %v1281_v48, %v1275_v10  ;;  %vm10543_vm2 = vcmp.lt.s32.totalorder %v7675_v55, 98  ;;  %v1261_v43 = vrot.slane %v6957_v18, %v7694_v62 }
 0x291   :  { %1326 = vst [vmem:[#allocation2 + $0x140] sm:$0xf0] %v1318_v45  ;;  %1327 = vst [vmem:[#allocation2 + $0x148] sm:$0xf0] %v1319_v37  ;;  %v1312_v58 = vmul.f32 %v1301_v38, %v1283_v52  ;;  %v1313_v59 = vmul.f32 %v1305_v39, %v1286_v46  ;;  %7108 = vmatprep.subr.bf16.mxu0 %v7107_v49  ;;  %v1353_v52 = vrot.slane %v6959_v47, %v7678_v56 }
 0x292   :  { %7110 = vmatpush1.bf16.msra.mxu0 %v7109_v41  ;;  %v1515_v0 = vld [vmem:[#allocation2 + $0x138] sm:$0xff]  ;;  %v1514_v2 = vld [vmem:[#allocation2 + $0x130] sm:$0xff] }
 0x293   :  { %v1320_v4 = vrot.slane %v1312_v58, 4  ;;  %v1321_v5 = vrot.slane %v1313_v59, 4  ;;  %v1377_v6 = vpop.permute.xlu1 %1376  ;;  %v7131_v7 = vpack.c.bf16 %v1515_v0, %v1511_v63  ;;  %v7133_v8 = vpack.c.bf16 %v1514_v2, %v1510_v50  ;;  %v6961_v2 = vld [vmem:[%s10499_s3 + $0x60] ss:$8 sm:$0xf] }
 0x294   :  { %v1231_v9 = vpop.permute.xlu0 %1230  ;;  %v1384_v10 = vsel %vm10542_vm5, %v1377_v6, %v1379_v51  ;;  %v1385_v12 = vsel %vm10542_vm5, %v1375_v33, %v1377_v6  ;;  %v1357_v0 = vrot.slane %v6959_v47, %v7681_v57  ;;  %v1361_v50 = vrot.slane %v6959_v47, %v7694_v62 }
 0x295   :  { %1328 = vst [vmem:[#allocation2 + $0x150] sm:$0xf0] %v1320_v4  ;;  %1329 = vst [vmem:[#allocation2 + $0x158] sm:$0xf0] %v1321_v5  ;;  %v1410_v15 = vmul.f32 %v1393_v1, %v1385_v12  ;;  %v1411_v16 = vmul.f32 %v1397_v61, %v1384_v10  ;;  %7132 = vmatprep.subr.bf16.mxu1 %v7131_v7  ;;  %v1453_v10 = vrot.slane %v6961_v2, %v7678_v56 }
 0x296   :  { %7134 = vmatpush1.bf16.msra.mxu1 %v7133_v8 }
 0x297   :  { %v1418_v19 = vrot.slane %v1410_v15, 4  ;;  %v1419_v20 = vrot.slane %v1411_v16, 4  ;;  %v1381_v25 = vpop.permute.xlu1 %1380 }
 0x298   :  { %v1235_v26 = vpop.permute.xlu0 %1234  ;;  %v1383_v28 = vsel %vm10542_vm5, %v1379_v51, %v1381_v25  ;;  %v1386_v29 = vsel %vm10542_vm5, %v1381_v25, %v1375_v33  ;;  %vm1338_vm5 = vcmp.lt.s32.totalorder %v7675_v55, 96  ;;  %v1349_v51 = vrot.slane %v6959_v47, %v7691_v60 }
 0x299   :  { %1426 = vst [vmem:[#allocation2 + $0x160] sm:$0xf0] %v1418_v19  ;;  %1427 = vst [vmem:[#allocation2 + $0x168] sm:$0xf0] %v1419_v20  ;;  %v1412_v30 = vmul.f32 %v1401_v17, %v1383_v28  ;;  %v1413_v31 = vmul.f32 %v1405_v53, %v1386_v29  ;;  %v1457_v19 = vrot.slane %v6961_v2, %v7681_v57 }
 0x29a   :  { %v1461_v20 = vrot.slane %v6961_v2, %v7694_v62 }
 0x29b   :  { %v1420_v34 = vrot.slane %v1412_v30, 4  ;;  %v1421_v54 = vrot.slane %v1413_v31, 4  ;;  %v1233_v35 = vpop.permute.xlu1 %1232 }
 0x29c   :  { %v1331_v36 = vpop.permute.xlu0 %1330  ;;  %v1240_v38 = vsel %vm10543_vm2, %v1233_v35, %v1235_v26  ;;  %v1241_v33 = vsel %vm10543_vm2, %v1231_v9, %v1233_v35 }
 0x29d   :  { %1428 = vst [vmem:[#allocation2 + $0x170] sm:$0xf0] %v1420_v34  ;;  %1429 = vst [vmem:[#allocation2 + $0x178] sm:$0xf0] %v1421_v54  ;;  %v1266_v39 = vmul.f32 %v1249_v32, %v1241_v33  ;;  %v1267_v40 = vmul.f32 %v1253_v27, %v1240_v38  ;;  %v1474_v38 = vld [vmem:[%s10500_s5] sm:$0x3] }
 0x29e   :  { %v1475_v47 = vunpack.c.l.bf16 %v1474_v38  ;;  %s10617_s5 = smov 18  }
 0x29f   :  { %1270 = vst [vmem:[#allocation2 + $0x140] sm:$0xf] %v1266_v39  ;;  %1271 = vst [vmem:[#allocation2 + $0x148] sm:$0xf] %v1267_v40  ;;  %v1237_v44 = vpop.permute.xlu1 %1236 }
 0x2a0   :  { %v1335_v45 = vpop.permute.xlu0 %1334  ;;  %v1239_v37 = vsel %vm10543_vm2, %v1235_v26, %v1237_v44  ;;  %v1242_v48 = vsel %vm10543_vm2, %v1237_v44, %v1231_v9  ;;  %vm10544_vm2 = vcmp.lt.s32.totalorder %v7675_v55, 94  ;;  %v1449_v9 = vrot.slane %v6961_v2, %v7691_v60  ;;  %v7363_v2 = vld [vmem:[%s10607_s23] sm:$0xff] }
 0x2a1   :  { %v1268_v49 = vmul.f32 %v1257_v42, %v1239_v37  ;;  %v1269_v41 = vmul.f32 %v1261_v43, %v1242_v48 }
 0x2a3   :  { %1272 = vst [vmem:[#allocation2 + $0x150] sm:$0xf] %v1268_v49  ;;  %1273 = vst [vmem:[#allocation2 + $0x158] sm:$0xf] %v1269_v41  ;;  %v1333_v46 = vpop.permute.xlu1 %1332  ;;  %v7397_v49 = vmov 5  }
 0x2a4   :  { %v1340_v58 = vsel %vm1338_vm5, %v1333_v46, %v1335_v45  ;;  %v1341_v59 = vsel %vm1338_vm5, %v1331_v36, %v1333_v46  ;;  %v1431_v1 = vpop.permute.xlu0 %1430  ;;  %7331 = vset.pattern.permute.xlu0 %v7397_v49 }
 0x2a5   :  { %v1366_v61 = vmul.f32 %v1349_v51, %v1341_v59  ;;  %v1367_v63 = vmul.f32 %v1353_v52, %v1340_v58  ;;  %v1690_v51 = vld [vmem:[%s10501_s6] sm:$0x3]  ;;  %s10619_s6 = smov 14  }
 0x2a6   :  { %v1517_v25 = vld [vmem:[#allocation2 + $0x148] sm:$0xff]  ;;  %v1516_v28 = vld [vmem:[#allocation2 + $0x140] sm:$0xff] }
 0x2a7   :  { %1370 = vst [vmem:[#allocation2 + $0x160] sm:$0xf] %v1366_v61  ;;  %1371 = vst [vmem:[#allocation2 + $0x168] sm:$0xf] %v1367_v63  ;;  %v1337_v4 = vpop.permute.xlu1 %1336 }
 0x2a8   :  { %v1339_v5 = vsel %vm1338_vm5, %v1335_v45, %v1337_v4  ;;  %v1342_v6 = vsel %vm1338_vm5, %v1337_v4, %v1331_v36  ;;  %v1435_v12 = vpop.permute.xlu0 %1434 }
 0x2a9   :  { %v1368_v7 = vmul.f32 %v1357_v0, %v1339_v5  ;;  %v1369_v8 = vmul.f32 %v1361_v50, %v1342_v6  ;;  %v6980_v6 = vld [vmem:[%s10502_s2 + $0x1] ss:$8 sm:$0xf] }
 0x2aa   :  { %v1519_v36 = vld [vmem:[#allocation2 + $0x158] sm:$0xff]  ;;  %v1518_v39 = vld [vmem:[#allocation2 + $0x150] sm:$0xff] }
 0x2ab   :  { %1372 = vst [vmem:[#allocation2 + $0x170] sm:$0xf] %v1368_v7  ;;  %1373 = vst [vmem:[#allocation2 + $0x178] sm:$0xf] %v1369_v8  ;;  %v1433_v15 = vpop.permute.xlu1 %1432 }
 0x2ac   :  { %v1440_v16 = vsel %vm10544_vm2, %v1433_v15, %v1435_v12  ;;  %v1441_v17 = vsel %vm10544_vm2, %v1431_v1, %v1433_v15 }
 0x2ad   :  { %v1466_v53 = vmul.f32 %v1449_v9, %v1441_v17  ;;  %v1467_v18 = vmul.f32 %v1453_v10, %v1440_v16  ;;  %v2080_v9 = vrot.slane %v6980_v6, %v7678_v56  ;;  %v2084_v10 = vrot.slane %v6980_v6, %v7681_v57 }
 0x2ae   :  { %v1521_v26 = vld [vmem:[#allocation2 + $0x168] sm:$0xff]  ;;  %v1520_v29 = vld [vmem:[#allocation2 + $0x160] sm:$0xff] }
 0x2af   :  { %1470 = vst [vmem:[#allocation2 + $0x180] sm:$0xf] %v1466_v53  ;;  %1471 = vst [vmem:[#allocation2 + $0x188] sm:$0xf] %v1467_v18  ;;  %v1437_v30 = vpop.permute.xlu1 %1436  ;;  %v7111_v31 = vpack.c.bf16 %v1521_v26, %v1517_v25  ;;  %v7113_v32 = vpack.c.bf16 %v1520_v29, %v1516_v28 }
 0x2b0   :  { %v1439_v27 = vsel %vm10544_vm2, %v1435_v12, %v1437_v30  ;;  %v1442_v34 = vsel %vm10544_vm2, %v1437_v30, %v1431_v1  ;;  %vm10570_vm2 = vcmask 818176   ;;  %v1691_v1 = vunpack.c.l.bf16 %v1690_v51  ;;  %v6982_v25 = vld [vmem:[%s10502_s2 + $0x3] ss:$8 sm:$0xf] }
 0x2b1   :  { %v1468_v54 = vmul.f32 %v1457_v19, %v1439_v27  ;;  %v1469_v35 = vmul.f32 %v1461_v20, %v1442_v34  ;;  %7112 = vmatprep.subr.bf16.mxu0 %v7111_v31  ;;  %v2076_v19 = vrot.slane %v6980_v6, %v7691_v60  ;;  %v2088_v20 = vrot.slane %v6980_v6, %v7694_v62  ;;  %v7016_v26 = vld [vmem:[%s10499_s3 + $0x23] ss:$8 sm:$0xf] }
 0x2b2   :  { %7114 = vmatpush1.bf16.msra.mxu0 %v7113_v32  ;;  %v1523_v33 = vld [vmem:[#allocation2 + $0x178] sm:$0xff]  ;;  %v1522_v40 = vld [vmem:[#allocation2 + $0x170] sm:$0xff]  ;;  %v2178_v34 = vrot.slane %v6982_v25, %v7678_v56  ;;  %v3661_v38 = vrot.slane %v7016_v26, %v7678_v56  ;;  %v3669_v49 = vrot.slane %v7016_v26, %v7694_v62 }
 0x2b3   :  { %1472 = vst [vmem:[#allocation2 + $0x190] sm:$0xf] %v1468_v54  ;;  %1473 = vst [vmem:[#allocation2 + $0x198] sm:$0xf] %v1469_v35  ;;  %v7135_v42 = vpack.c.bf16 %v1523_v33, %v1519_v36  ;;  %v7137_v43 = vpack.c.bf16 %v1522_v40, %v1518_v39  ;;  %v2182_v54 = vrot.slane %v6982_v25, %v7681_v57 }
 0x2b4   :  { %v3665_v33 = vrot.slane %v7016_v26, %v7681_v57 }
 0x2b5   :  { %7136 = vmatprep.subr.bf16.mxu1 %v7135_v42 }
 0x2b6   :  { %7138 = vmatpush1.bf16.msra.mxu1 %v7137_v43  ;;  %v1525_v44 = vld [vmem:[#allocation2 + $0x188] sm:$0xf]  ;;  %v1524_v45 = vld [vmem:[#allocation2 + $0x180] sm:$0xf] }
 0x2b7   :  { %6962 = vmatprep.subr.msk.mxu0 %vm98_vm0, %v1525_v44  ;;  %v2186_v44 = vrot.slane %v6982_v25, %v7694_v62 }
 0x2b8   :  { %6963 = vmatpush1.msk.msra.mxu0 %vm98_vm0, %v1524_v45 }
 0x2b9   :  { %6964 = vmatmul.mubr.msk.f32.vlgmr.msra.gmra.mrb[2].mxu0 %vm10570_vm2, %v1475_v47 }
 0x2ba   :  { %v1527_v37 = vld [vmem:[#allocation2 + $0x198] sm:$0xf]  ;;  %v1526_v48 = vld [vmem:[#allocation2 + $0x190] sm:$0xf]  ;;  %1775 = vmatprep.mubr.f32.mxu0 %v10565_v3  ;;  %v1530_v41 = vpop.permute.xlu0 %1529 }
 0x2bb   :  { %6965 = vmatprep.subr.msk.mxu1 %vm98_vm0, %v1527_v37 }
 0x2bc   :  { %6966 = vmatpush1.msk.msra.mxu1 %vm98_vm0, %v1526_v48  ;;  %v3657_v48 = vrot.slane %v7016_v26, %v7691_v60 }
 0x2bd   :  { %6967 = vmatmul.mubr.msk.f32.vlgmr.msra.gmra.mrb[2].mxu1 %vm10570_vm2, %v1475_v47  ;;  %v2174_v47 = vrot.slane %v6982_v25, %v7691_v60  ;;  %vm2437_vm2 = vcmask 293888  }
 0x2be   :  { %1846 = vmatprep.mubr.f32.mxu1 %v10565_v3 }
 0x2bf   :  { %v8320_v4 = vpop.permute.xlu0 %1693 }
 0x38c   :  { %v1614_v52 = vpop.f32.mrb[2].mxu0 }
 0x38d   :  { %v8177_v46 = vadd.f32 %v1614_v52, %v1530_v41  ;;  %v1616_v58 = vpop.f32.mrb[3].mxu0 }
 0x38e   :  { %v8179_v59 = vadd.f32 %v1616_v58, %v1530_v41 }
 0x38f   :  { %10613 = vst [vmem:[#allocation8_spill] sm:$0xff] %v8177_v46  ;;  %2211 = vst [vmem:[#allocation2 + $0x40] sm:$0xf] %v8177_v46  ;;  %2058 = vrot.lane.b32.xlu1 %v8177_v46, %s10588_s1 }
 0x390   :  { %10614 = vst [vmem:[#allocation9_spill] sm:$0xff] %v8179_v59  ;;  %3694 = vst [vmem:[#allocation2 + $0xc0] sm:$0xf] %v8177_v46  ;;  %v1685_v61 = vpop.f32.mrb[2].mxu1  ;;  %6968 = vmatprep.subr.msk.mxu0 %vm98_vm0, %v8179_v59 }
 0x391   :  { %2212 = vst [vmem:[#allocation2 + $0x48] sm:$0xf] %v8179_v59  ;;  %3695 = vst [vmem:[#allocation2 + $0xc8] sm:$0xf] %v8179_v59  ;;  %v8189_v63 = vadd.f32 %v1685_v61, %v1530_v41  ;;  %v1687_v0 = vpop.f32.mrb[3].mxu1  ;;  %6969 = vmatpush1.msk.msra.mxu0 %vm98_vm0, %v8177_v46 }
 0x392   :  { %v8193_v50 = vadd.f32 %v1687_v0, %v1530_v41  ;;  %6970 = vmatmul.mubr.msk.f32.vlgmr.msra.gmra.mrb[4].mxu0 %vm10577_vm1, %v1691_v1 }
 0x393   :  { %10615 = vst [vmem:[#allocation10_spill] sm:$0xff] %v8189_v63  ;;  %2213 = vst [vmem:[#allocation2 + $0x50] sm:$0xf] %v8189_v63  ;;  %2062 = vrot.lane.b32.xlu0 %v8189_v63, %s10588_s1  ;;  %2016 = vrot.lane.b32.xlu1 %v8177_v46, %s10586_s18 }
 0x394   :  { %10616 = vst [vmem:[#allocation11_spill] sm:$0xff] %v8193_v50  ;;  %3696 = vst [vmem:[#allocation2 + $0xd0] sm:$0xf] %v8189_v63  ;;  %6971 = vmatprep.subr.msk.mxu1 %vm98_vm0, %v8193_v50  ;;  %1938 = vmatprep.mubr.f32.mxu0 %v10565_v3 }
 0x395   :  { %2214 = vst [vmem:[#allocation2 + $0x58] sm:$0xf] %v8193_v50  ;;  %3697 = vst [vmem:[#allocation2 + $0xd8] sm:$0xf] %v8193_v50  ;;  %6972 = vmatpush1.msk.msra.mxu1 %vm98_vm0, %v8189_v63 }
 0x396   :  { %6973 = vmatmul.mubr.msk.f32.vlgmr.msra.gmra.mrb[4].mxu1 %vm10577_vm1, %v1691_v1  ;;  %v2028_v1 = vld [vmem:[%s10502_s2] ss:$8 sm:$0xf] }
 0x397   :  { %2156 = vrot.lane.b32.xlu0 %v8177_v46, %s10584_s20  ;;  %2060 = vrot.lane.b32.xlu1 %v8179_v59, %s10588_s1 }
 0x398   :  { %2009 = vmatprep.mubr.f32.mxu1 %v10565_v3 }
 0x39b   :  { %2160 = vrot.lane.b32.xlu0 %v8189_v63, %s10584_s20  ;;  %2064 = vrot.lane.b32.xlu1 %v8193_v50, %s10588_s1 }
 0x39f   :  { %2020 = vrot.lane.b32.xlu0 %v8189_v63, %s10586_s18  ;;  %2158 = vrot.lane.b32.xlu1 %v8179_v59, %s10584_s20 }
 0x3a3   :  { %2113 = vrot.lane.b32.xlu0 %v8177_v46, %s10582_s21  ;;  %2162 = vrot.lane.b32.xlu1 %v8193_v50, %s10584_s20 }
 0x3a7   :  { %2117 = vrot.lane.b32.xlu0 %v8189_v63, %s10582_s21  ;;  %2018 = vrot.lane.b32.xlu1 %v8179_v59, %s10586_s18 }
 0x3ab   :  { %2215 = vrot.lane.b32.xlu0 %v8177_v46, %s10580_s24  ;;  %2022 = vrot.lane.b32.xlu1 %v8193_v50, %s10586_s18 }
 0x3af   :  { %2219 = vrot.lane.b32.xlu0 %v8189_v63, %s10580_s24  ;;  %2115 = vrot.lane.b32.xlu1 %v8179_v59, %s10582_s21 }
 0x3b3   :  { %2313 = vrot.lane.b32.xlu0 %v8177_v46, %s10561_s25  ;;  %2119 = vrot.lane.b32.xlu1 %v8193_v50, %s10582_s21 }
 0x3b7   :  { %2317 = vrot.lane.b32.xlu0 %v8189_v63, %s10561_s25  ;;  %2217 = vrot.lane.b32.xlu1 %v8179_v59, %s10580_s24 }
 0x3bb   :  { %2270 = vrot.lane.b32.xlu0 %v8177_v46, %s10559_s26  ;;  %2221 = vrot.lane.b32.xlu1 %v8193_v50, %s10580_s24 }
 0x3bf   :  { %2274 = vrot.lane.b32.xlu0 %v8189_v63, %s10559_s26  ;;  %2315 = vrot.lane.b32.xlu1 %v8179_v59, %s10561_s25 }
 0x3c3   :  { %2368 = vrot.lane.b32.xlu0 %v8177_v46, %s10557_s19  ;;  %2319 = vrot.lane.b32.xlu1 %v8193_v50, %s10561_s25  ;;  %s10642_s25 = smov 112  }
 0x3c7   :  { %2372 = vrot.lane.b32.xlu0 %v8189_v63, %s10557_s19  ;;  %2272 = vrot.lane.b32.xlu1 %v8179_v59, %s10559_s26 }
 0x3cb   :  { %2434 = vperm.xlu0 %7331, %v7363_v2   ;;  %2276 = vrot.lane.b32.xlu1 %v8193_v50, %s10559_s26  ;;  %s10643_s26 = smov 113  }
 0x3cf   :  { %3208 = vrot.lane.b32.xlu0 %v8177_v46, %s10551_s0  ;;  %2370 = vrot.lane.b32.xlu1 %v8179_v59, %s10557_s19 }
 0x3d3   :  { %3212 = vrot.lane.b32.xlu0 %v8189_v63, %s10551_s0  ;;  %2374 = vrot.lane.b32.xlu1 %v8193_v50, %s10557_s19  ;;  %s10629_s19 = smov 97  }
 0x3d7   :  { %3304 = vrot.lane.b32.xlu0 %v8177_v46, %s10549_s4  ;;  %3210 = vrot.lane.b32.xlu1 %v8179_v59, %s10551_s0 }
 0x3db   :  { %3308 = vrot.lane.b32.xlu0 %v8189_v63, %s10549_s4  ;;  %3214 = vrot.lane.b32.xlu1 %v8193_v50, %s10551_s0  ;;  %s10621_s0 = smov 114  }
 0x3df   :  { %3166 = vrot.lane.b32.xlu0 %v8177_v46, %s10547_s28  ;;  %3306 = vrot.lane.b32.xlu1 %v8179_v59, %s10549_s4 }
 0x3e3   :  { %3170 = vrot.lane.b32.xlu0 %v8189_v63, %s10547_s28  ;;  %3310 = vrot.lane.b32.xlu1 %v8193_v50, %s10549_s4  ;;  %s10624_s4 = smov 110  }
 0x3e7   :  { %3262 = vrot.lane.b32.xlu0 %v8177_v46, %s10545_s29  ;;  %3168 = vrot.lane.b32.xlu1 %v8179_v59, %s10547_s28 }
 0x3eb   :  { %3266 = vrot.lane.b32.xlu0 %v8189_v63, %s10545_s29  ;;  %3172 = vrot.lane.b32.xlu1 %v8193_v50, %s10547_s28  ;;  %s10620_s28 = smov 2  }
 0x3ef   :  { %3400 = vrot.lane.b32.xlu0 %v8177_v46, %s10617_s5  ;;  %3264 = vrot.lane.b32.xlu1 %v8179_v59, %s10545_s29 }
 0x3f3   :  { %3404 = vrot.lane.b32.xlu0 %v8189_v63, %s10617_s5  ;;  %3268 = vrot.lane.b32.xlu1 %v8193_v50, %s10545_s29  ;;  %s10645_s29 = smov 98  }
 0x3f7   :  { %3358 = vrot.lane.b32.xlu0 %v8177_v46, %s10618_s30  ;;  %3402 = vrot.lane.b32.xlu1 %v8179_v59, %s10617_s5 }
 0x3fb   :  { %3362 = vrot.lane.b32.xlu0 %v8189_v63, %s10618_s30  ;;  %3406 = vrot.lane.b32.xlu1 %v8193_v50, %s10617_s5 }
 0x3ff   :  { %3556 = vrot.lane.b32.xlu0 %v8177_v46, %s10619_s6  ;;  %3360 = vrot.lane.b32.xlu1 %v8179_v59, %s10618_s30 }
 0x401   :  { %v2059_v5 = vpop.permute.xlu1 %2058 }
 0x403   :  { %3560 = vrot.lane.b32.xlu0 %v8189_v63, %s10619_s6  ;;  %3364 = vrot.lane.b32.xlu1 %v8193_v50, %s10618_s30 }
 0x405   :  { %v2063_v7 = vpop.permute.xlu0 %2062  ;;  %v8329_v8 = vpop.permute.xlu1 %2016 }
 0x407   :  { %3610 = vrot.lane.b32.xlu0 %v8177_v46, %s10620_s28  ;;  %3558 = vrot.lane.b32.xlu1 %v8179_v59, %s10619_s6 }
 0x409   :  { %v2157_v12 = vpop.permute.xlu0 %2156  ;;  %v2061_v15 = vpop.permute.xlu1 %2060 }
 0x40a   :  { %v8339_v16 = vsel %vm622_vm7, %v2061_v15, %v2063_v7  ;;  %v8343_v17 = vsel %vm622_vm7, %v2059_v5, %v2061_v15  ;;  %v2037_v15 = vrot.slane %v2028_v1, %v7678_v56 }
 0x40b   :  { %v2094_v53 = vmul.f32 %v2080_v9, %v8343_v17  ;;  %v2095_v18 = vmul.f32 %v2084_v10, %v8339_v16  ;;  %3614 = vrot.lane.b32.xlu0 %v8189_v63, %s10620_s28  ;;  %3562 = vrot.lane.b32.xlu1 %v8193_v50, %s10619_s6 }
 0x40d   :  { %v2102_v28 = vrot.slane %v2094_v53, 4  ;;  %v2103_v29 = vrot.slane %v2095_v18, 4  ;;  %v2161_v30 = vpop.permute.xlu0 %2160  ;;  %v2065_v31 = vpop.permute.xlu1 %2064  ;;  %v2041_v53 = vrot.slane %v2028_v1, %v7681_v57 }
 0x40e   :  { %v8361_v32 = vsel %vm622_vm7, %v2063_v7, %v2065_v31  ;;  %v8365_v27 = vsel %vm622_vm7, %v2065_v31, %v2059_v5 }
 0x40f   :  { %2110 = vst [vmem:[#allocation2 + $0x8] sm:$0xf0] %v2102_v28  ;;  %2111 = vst [vmem:[#allocation2 + $0x10] sm:$0xf0] %v2103_v29  ;;  %v2093_v35 = vmul.f32 %v2076_v19, %v8365_v27  ;;  %v2096_v36 = vmul.f32 %v2088_v20, %v8361_v32  ;;  %3782 = vrot.lane.b32.xlu0 %v8177_v46, %s10621_s0  ;;  %3612 = vrot.lane.b32.xlu1 %v8179_v59, %s10620_s28 }
 0x411   :  { %v2101_v39 = vrot.slane %v2093_v35, 4  ;;  %v2104_v40 = vrot.slane %v2096_v36, 4  ;;  %v2021_v42 = vpop.permute.xlu0 %2020  ;;  %v2159_v43 = vpop.permute.xlu1 %2158 }
 0x412   :  { %v2165_v45 = vsel %vm822_vm11, %v2159_v43, %v2161_v30  ;;  %v2166_v37 = vsel %vm822_vm11, %v2157_v12, %v2159_v43 }
 0x413   :  { %2109 = vst [vmem:[#allocation2] sm:$0xf0] %v2101_v39  ;;  %2112 = vst [vmem:[#allocation2 + $0x18] sm:$0xf0] %v2104_v40  ;;  %v2192_v41 = vmul.f32 %v2178_v34, %v2166_v37  ;;  %v2193_v51 = vmul.f32 %v2182_v54, %v2165_v45  ;;  %v3675_v52 = vmul.f32 %v3661_v38, %v2166_v37  ;;  %3786 = vrot.lane.b32.xlu0 %v8189_v63, %s10621_s0 }
 0x414   :  { %v3676_v58 = vmul.f32 %v3665_v33, %v2165_v45  ;;  %3616 = vrot.lane.b32.xlu1 %v8193_v50, %s10620_s28  ;;  %v2033_v38 = vrot.slane %v2028_v1, %v7691_v60  ;;  %v2045_v33 = vrot.slane %v2028_v1, %v7694_v62  ;;  %v6981_v39 = vld [vmem:[%s10502_s2 + $0x2] ss:$8 sm:$0xf] }
 0x415   :  { %v2200_v61 = vrot.slane %v2192_v41, 4  ;;  %v2201_v0 = vrot.slane %v2193_v51, 4  ;;  %v3683_v2 = vrot.slane %v3675_v52, 4  ;;  %v8392_v6 = vpop.permute.xlu0 %2113  ;;  %v2163_v7 = vpop.permute.xlu1 %2162  ;;  %v2131_v1 = vrot.slane %v6981_v39, %v7691_v60 }
 0x416   :  { %v3684_v5 = vrot.slane %v3676_v58, 4  ;;  %v2164_v9 = vsel %vm822_vm11, %v2161_v30, %v2163_v7  ;;  %v2167_v10 = vsel %vm822_vm11, %v2163_v7, %v2157_v12 }
 0x417   :  { %2208 = vst [vmem:[#allocation2 + $0x28] sm:$0xf0] %v2200_v61  ;;  %2209 = vst [vmem:[#allocation2 + $0x30] sm:$0xf0] %v2201_v0  ;;  %v2191_v18 = vmul.f32 %v2174_v47, %v2167_v10  ;;  %v2194_v19 = vmul.f32 %v2186_v44, %v2164_v9  ;;  %v3674_v20 = vmul.f32 %v3657_v48, %v2167_v10  ;;  %3740 = vrot.lane.b32.xlu0 %v8177_v46, %s10622_s27 }
 0x418   :  { %3691 = vst [vmem:[#allocation2 + $0xa8] sm:$0xf0] %v3683_v2  ;;  %3692 = vst [vmem:[#allocation2 + $0xb0] sm:$0xf0] %v3684_v5  ;;  %v3677_v25 = vmul.f32 %v3669_v49, %v2164_v9  ;;  %3784 = vrot.lane.b32.xlu1 %v8179_v59, %s10621_s0  ;;  %v2135_v48 = vrot.slane %v6981_v39, %v7678_v56  ;;  %v2139_v49 = vrot.slane %v6981_v39, %v7681_v57 }
 0x419   :  { %v2199_v26 = vrot.slane %v2191_v18, 4  ;;  %v2202_v12 = vrot.slane %v2194_v19, 4  ;;  %v3682_v28 = vrot.slane %v3674_v20, 4  ;;  %v2118_v30 = vpop.permute.xlu0 %2117  ;;  %v2019_v31 = vpop.permute.xlu1 %2018  ;;  %v2143_v61 = vrot.slane %v6981_v39, %v7694_v62  ;;  %v6983_v0 = vld [vmem:[%s10502_s2 + $0x5] ss:$8 sm:$0xf] }
 0x41a   :  { %v3685_v29 = vrot.slane %v3677_v25, 4  ;;  %v8406_v34 = vsel %vm578_vm9, %v2019_v31, %v2021_v42  ;;  %v8411_v54 = vsel %vm578_vm9, %v8329_v8, %v2019_v31  ;;  %v7017_v2 = vld [vmem:[%s10499_s3 + $0x25] ss:$8 sm:$0xf] }
 0x41b   :  { %2207 = vst [vmem:[#allocation2 + $0x20] sm:$0xf0] %v2199_v26  ;;  %2210 = vst [vmem:[#allocation2 + $0x38] sm:$0xf0] %v2202_v12  ;;  %v2051_v35 = vmul.f32 %v2037_v15, %v8411_v54  ;;  %v2052_v36 = vmul.f32 %v2041_v53, %v8406_v34  ;;  %3744 = vrot.lane.b32.xlu0 %v8189_v63, %s10622_s27  ;;  %v2233_v15 = vrot.slane %v6983_v0, %v7691_v60 }
 0x41c   :  { %3690 = vst [vmem:[#allocation2 + $0xa0] sm:$0xf0] %v3682_v28  ;;  %3693 = vst [vmem:[#allocation2 + $0xb8] sm:$0xf0] %v3685_v29  ;;  %3788 = vrot.lane.b32.xlu1 %v8193_v50, %s10621_s0  ;;  %v2237_v53 = vrot.slane %v6983_v0, %v7678_v56  ;;  %v3703_v20 = vrot.slane %v7017_v2, %v7691_v60  ;;  %v3707_v25 = vrot.slane %v7017_v2, %v7678_v56 }
 0x41d   :  { %2055 = vst [vmem:[#allocation2 + $0x8] sm:$0xf] %v2051_v35  ;;  %2056 = vst [vmem:[#allocation2 + $0x10] sm:$0xf] %v2052_v36  ;;  %v8424_v40 = vpop.permute.xlu0 %2215  ;;  %v2023_v43 = vpop.permute.xlu1 %2022  ;;  %v2241_v12 = vrot.slane %v6983_v0, %v7681_v57  ;;  %v2245_v28 = vrot.slane %v6983_v0, %v7694_v62  ;;  %v3711_v35 = vrot.slane %v7017_v2, %v7681_v57 }
 0x41e   :  { %v8428_v47 = vsel %vm578_vm9, %v2021_v42, %v2023_v43  ;;  %v8433_v44 = vsel %vm578_vm9, %v2023_v43, %v8329_v8  ;;  %v8494_v29 = vld [vmem:[%s10502_s2 + $0x7] ss:$8 sm:$0xf]  ;;  %v3715_v36 = vrot.slane %v7017_v2, %v7694_v62 }
 0x41f   :  { %10623 = vst [vmem:[#allocation12_spill] sm:$0xff] %v8428_v47  ;;  %v2050_v45 = vmul.f32 %v2033_v38, %v8433_v44  ;;  %v2053_v37 = vmul.f32 %v2045_v33, %v8428_v47  ;;  %3938 = vrot.lane.b32.xlu0 %v8177_v46, %s10624_s4 }
 0x420   :  { %3742 = vrot.lane.b32.xlu1 %v8179_v59, %s10622_s27 }
 0x421   :  { %2054 = vst [vmem:[#allocation2] sm:$0xf] %v2050_v45  ;;  %2057 = vst [vmem:[#allocation2 + $0x18] sm:$0xf] %v2053_v37  ;;  %v2220_v42 = vpop.permute.xlu0 %2219  ;;  %v2116_v41 = vpop.permute.xlu1 %2115  ;;  %v2331_v37 = vrot.slane %v8494_v29, %v7691_v60 }
 0x422   :  { %v8445_v8 = vsel %vm678_vm12, %v2116_v41, %v2118_v30  ;;  %v8450_v51 = vsel %vm678_vm12, %v8392_v6, %v2116_v41  ;;  %v8508_v45 = vld [vmem:[%s10499_s3 + $0x41] ss:$8 sm:$0xf] }
 0x423   :  { %10625 = vst [vmem:[#allocation13_spill] sm:$0xff] %v8445_v8  ;;  %10626 = vst [vmem:[#allocation14_spill] sm:$0xff] %v8450_v51  ;;  %v2149_v52 = vmul.f32 %v2135_v48, %v8450_v51  ;;  %v2150_v58 = vmul.f32 %v2139_v49, %v8445_v8  ;;  %3942 = vrot.lane.b32.xlu0 %v8189_v63, %s10624_s4  ;;  %v2335_v48 = vrot.slane %v8494_v29, %v7678_v56 }
 0x424   :  { %3746 = vrot.lane.b32.xlu1 %v8193_v50, %s10622_s27  ;;  %v3871_v2 = vrot.slane %v8508_v45, %v7691_v60 }
 0x425   :  { %2153 = vst [vmem:[#allocation2 + $0x28] sm:$0xf] %v2149_v52  ;;  %2154 = vst [vmem:[#allocation2 + $0x30] sm:$0xf] %v2150_v58  ;;  %v8466_v5 = vpop.permute.xlu0 %2313  ;;  %v2120_v7 = vpop.permute.xlu1 %2119 }
 0x426   :  { %v8470_v9 = vsel %vm678_vm12, %v2118_v30, %v2120_v7  ;;  %v8475_v10 = vsel %vm678_vm12, %v2120_v7, %v8392_v6  ;;  %v3875_v7 = vrot.slane %v8508_v45, %v7678_v56 }
 0x427   :  { %10627 = vst [vmem:[#allocation15_spill] sm:$0xff] %v8470_v9  ;;  %10628 = vst [vmem:[#allocation16_spill] sm:$0xff] %v8475_v10  ;;  %v2148_v18 = vmul.f32 %v2131_v1, %v8475_v10  ;;  %v2151_v19 = vmul.f32 %v2143_v61, %v8470_v9  ;;  %4034 = vrot.lane.b32.xlu0 %v8177_v46, %s10629_s19 }
 0x428   :  { %3940 = vrot.lane.b32.xlu1 %v8179_v59, %s10624_s4 }
 0x429   :  { %2152 = vst [vmem:[#allocation2 + $0x20] sm:$0xf] %v2148_v18  ;;  %2155 = vst [vmem:[#allocation2 + $0x38] sm:$0xf] %v2151_v19  ;;  %v8487_v6 = vpop.permute.xlu0 %2317  ;;  %v2218_v26 = vpop.permute.xlu1 %2217 }
 0x42a   :  { %v2224_v30 = vsel %vm882_vm14, %v2218_v26, %v2220_v42  ;;  %v2225_v31 = vsel %vm882_vm14, %v8424_v40, %v2218_v26 }
 0x42b   :  { %v2250_v38 = vmul.f32 %v2233_v15, %v2225_v31  ;;  %v2251_v33 = vmul.f32 %v2237_v53, %v2224_v30  ;;  %v3720_v39 = vmul.f32 %v3703_v20, %v2225_v31  ;;  %v3721_v43 = vmul.f32 %v3707_v25, %v2224_v30  ;;  %4038 = vrot.lane.b32.xlu0 %v8189_v63, %s10629_s19  ;;  %v8538_v25 = vld [vmem:[%s10502_s2 + $0x6] ss:$8 sm:$0xf] }
 0x42c   :  { %3944 = vrot.lane.b32.xlu1 %v8193_v50, %s10624_s4  ;;  %v2343_v20 = vrot.slane %v8494_v29, %v7694_v62  ;;  %v2419_v11 = vld [vmem:[#allocation2 + $0x30] sm:$0xff] }
 0x42d   :  { %v2258_v49 = vrot.slane %v2250_v38, 4  ;;  %v2259_v41 = vrot.slane %v2251_v33, 4  ;;  %v3728_v52 = vrot.slane %v3720_v39, 4  ;;  %v3729_v58 = vrot.slane %v3721_v43, 4  ;;  %v2222_v1 = vpop.permute.xlu1 %2221  ;;  %v8525_v15 = vpop.permute.xlu0 %2270 }
 0x42e   :  { %v2223_v61 = vsel %vm882_vm14, %v2220_v42, %v2222_v1  ;;  %v2226_v0 = vsel %vm882_vm14, %v2222_v1, %v8424_v40  ;;  %v2339_v40 = vrot.slane %v8494_v29, %v7681_v57  ;;  %v3879_v29 = vrot.slane %v8508_v45, %v7681_v57 }
 0x42f   :  { %2266 = vst [vmem:[#allocation2 + $0x40] sm:$0xf0] %v2258_v49  ;;  %2267 = vst [vmem:[#allocation2 + $0x48] sm:$0xf0] %v2259_v41  ;;  %v2252_v53 = vmul.f32 %v2241_v12, %v2223_v61  ;;  %v2253_v18 = vmul.f32 %v2245_v28, %v2226_v0  ;;  %v3722_v19 = vmul.f32 %v3711_v35, %v2223_v61  ;;  %4130 = vrot.lane.b32.xlu0 %v8177_v46, %s10630_s17 }
 0x430   :  { %3736 = vst [vmem:[#allocation2 + $0xc0] sm:$0xf0] %v3728_v52  ;;  %3737 = vst [vmem:[#allocation2 + $0xc8] sm:$0xf0] %v3729_v58  ;;  %v3723_v42 = vmul.f32 %v3715_v36, %v2226_v0  ;;  %4036 = vrot.lane.b32.xlu1 %v8179_v59, %s10629_s19  ;;  %v3883_v38 = vrot.slane %v8508_v45, %v7694_v62  ;;  %v2288_v52 = vrot.slane %v8538_v25, %v7691_v60 }
 0x431   :  { %v2260_v26 = vrot.slane %v2252_v53, 4  ;;  %v2261_v12 = vrot.slane %v2253_v18, 4  ;;  %v3730_v28 = vrot.slane %v3722_v19, 4  ;;  %v2316_v31 = vpop.permute.xlu1 %2315  ;;  %v7020_v41 = vld [vmem:[%s10499_s3 + $0x40] ss:$8 sm:$0xf]  ;;  %v2292_v45 = vrot.slane %v8538_v25, %v7678_v56  ;;  %v2275_v58 = vpop.permute.xlu0 %2274 }
 0x432   :  { %v3731_v30 = vrot.slane %v3723_v42, 4  ;;  %v2322_v35 = vsel %vm1082_vm6, %v2316_v31, %v8487_v6  ;;  %v2323_v36 = vsel %vm1082_vm6, %v8466_v5, %v2316_v31  ;;  %v3841_v53 = vrot.slane %v7020_v41, %v7691_v60 }
 0x433   :  { %2268 = vst [vmem:[#allocation2 + $0x50] sm:$0xf0] %v2260_v26  ;;  %2269 = vst [vmem:[#allocation2 + $0x58] sm:$0xf0] %v2261_v12  ;;  %v2348_v33 = vmul.f32 %v2331_v37, %v2323_v36  ;;  %v2349_v39 = vmul.f32 %v2335_v48, %v2322_v35  ;;  %v3888_v43 = vmul.f32 %v3871_v2, %v2323_v36 }
 0x434   :  { %3738 = vst [vmem:[#allocation2 + $0xd0] sm:$0xf0] %v3730_v28  ;;  %3739 = vst [vmem:[#allocation2 + $0xd8] sm:$0xf0] %v3731_v30  ;;  %v3889_v49 = vmul.f32 %v3875_v7, %v2322_v35  ;;  %4040 = vrot.lane.b32.xlu1 %v8193_v50, %s10629_s19  ;;  %v3845_v18 = vrot.slane %v7020_v41, %v7678_v56 }
 0x435   :  { %v2356_v1 = vrot.slane %v2348_v33, 4  ;;  %v2357_v61 = vrot.slane %v2349_v39, 4  ;;  %v3896_v37 = vrot.slane %v3888_v43, 4  ;;  %v2320_v0 = vpop.permute.xlu1 %2319  ;;  %v2369_v33 = vpop.permute.xlu0 %2368 }
 0x436   :  { %v3897_v48 = vrot.slane %v3889_v49, 4  ;;  %v2321_v2 = vsel %vm1082_vm6, %v8487_v6, %v2320_v0  ;;  %v2324_v7 = vsel %vm1082_vm6, %v2320_v0, %v8466_v5  ;;  %v2296_v6 = vrot.slane %v8538_v25, %v7681_v57  ;;  %v2422_v14 = vld [vmem:[#allocation2 + $0x48] sm:$0xff] }
 0x437   :  { %2364 = vst [vmem:[#allocation2 + $0x60] sm:$0xf0] %v2356_v1  ;;  %2365 = vst [vmem:[#allocation2 + $0x68] sm:$0xf0] %v2357_v61  ;;  %v2350_v19 = vmul.f32 %v2339_v40, %v2321_v2  ;;  %v2351_v42 = vmul.f32 %v2343_v20, %v2324_v7  ;;  %v3890_v26 = vmul.f32 %v3879_v29, %v2321_v2 }
 0x438   :  { %3904 = vst [vmem:[#allocation2 + $0x100] sm:$0xf0] %v3896_v37  ;;  %3905 = vst [vmem:[#allocation2 + $0x108] sm:$0xf0] %v3897_v48  ;;  %v3891_v12 = vmul.f32 %v3883_v38, %v2324_v7  ;;  %4132 = vrot.lane.b32.xlu1 %v8179_v59, %s10630_s17  ;;  %v2300_v5 = vrot.slane %v8538_v25, %v7694_v62  ;;  %v3849_v29 = vrot.slane %v7020_v41, %v7681_v57 }
 0x439   :  { %v2358_v28 = vrot.slane %v2350_v19, 4  ;;  %v2359_v30 = vrot.slane %v2351_v42, 4  ;;  %v3898_v31 = vrot.slane %v3890_v26, 4  ;;  %v2273_v36 = vpop.permute.xlu1 %2272  ;;  %v3853_v38 = vrot.slane %v7020_v41, %v7694_v62  ;;  %v6986_v25 = vld [vmem:[%s10502_s2 + $0x20] ss:$8 sm:$0xf]  ;;  %v2373_v42 = vpop.permute.xlu0 %2372 }
 0x43a   :  { %v3899_v35 = vrot.slane %v3891_v12, 4  ;;  %v2279_v40 = vsel %vm1038_vm3, %v2273_v36, %v2275_v58  ;;  %v2280_v20 = vsel %vm1038_vm3, %v8525_v15, %v2273_v36  ;;  %v7022_v61 = vld [vmem:[%s10499_s3 + $0x42] ss:$8 sm:$0xf]  ;;  %v2386_v37 = vrot.slane %v6986_v25, %v7691_v60 }
 0x43b   :  { %2366 = vst [vmem:[#allocation2 + $0x70] sm:$0xf0] %v2358_v28  ;;  %2367 = vst [vmem:[#allocation2 + $0x78] sm:$0xf0] %v2359_v30  ;;  %v2305_v39 = vmul.f32 %v2288_v52, %v2280_v20  ;;  %v2306_v43 = vmul.f32 %v2292_v45, %v2279_v40  ;;  %v3858_v49 = vmul.f32 %v3841_v53, %v2280_v20 }
 0x43c   :  { %3906 = vst [vmem:[#allocation2 + $0x110] sm:$0xf0] %v3898_v31  ;;  %3907 = vst [vmem:[#allocation2 + $0x118] sm:$0xf0] %v3899_v35  ;;  %v3859_v1 = vmul.f32 %v3845_v18, %v2279_v40  ;;  %v2390_v48 = vrot.slane %v6986_v25, %v7678_v56  ;;  %v3913_v45 = vrot.slane %v7022_v61, %v7691_v60 }
 0x43d   :  { %2309 = vst [vmem:[#allocation2 + $0x60] sm:$0xf] %v2305_v39  ;;  %2310 = vst [vmem:[#allocation2 + $0x68] sm:$0xf] %v2306_v43  ;;  %v2277_v41 = vpop.permute.xlu1 %2276  ;;  %v3917_v2 = vrot.slane %v7022_v61, %v7678_v56  ;;  %v2398_v12 = vrot.slane %v6986_v25, %v7694_v62 }
 0x43e   :  { %3862 = vst [vmem:[#allocation2 + $0x100] sm:$0xf] %v3858_v49  ;;  %3863 = vst [vmem:[#allocation2 + $0x108] sm:$0xf] %v3859_v1  ;;  %v2278_v0 = vsel %vm1038_vm3, %v2275_v58, %v2277_v41  ;;  %v2281_v52 = vsel %vm1038_vm3, %v2277_v41, %v8525_v15  ;;  %v2394_v58 = vrot.slane %v6986_v25, %v7681_v57 }
 0x43f   :  { %v2307_v7 = vmul.f32 %v2296_v6, %v2278_v0  ;;  %v2308_v53 = vmul.f32 %v2300_v5, %v2281_v52  ;;  %v3860_v18 = vmul.f32 %v3849_v29, %v2278_v0  ;;  %v3861_v19 = vmul.f32 %v3853_v38, %v2281_v52 }
 0x440   :  { %v3921_v6 = vrot.slane %v7022_v61, %v7681_v57  ;;  %v3925_v5 = vrot.slane %v7022_v61, %v7694_v62 }
 0x441   :  { %2311 = vst [vmem:[#allocation2 + $0x70] sm:$0xf] %v2307_v7  ;;  %2312 = vst [vmem:[#allocation2 + $0x78] sm:$0xf] %v2308_v53  ;;  %v2371_v26 = vpop.permute.xlu1 %2370 }
 0x442   :  { %3864 = vst [vmem:[#allocation2 + $0x110] sm:$0xf] %v3860_v18  ;;  %3865 = vst [vmem:[#allocation2 + $0x118] sm:$0xf] %v3861_v19  ;;  %v2377_v15 = vsel %vm1138_vm4, %v2371_v26, %v2373_v42  ;;  %v2378_v28 = vsel %vm1138_vm4, %v2369_v33, %v2371_v26 }
 0x443   :  { %v2403_v30 = vmul.f32 %v2386_v37, %v2378_v28  ;;  %v2404_v31 = vmul.f32 %v2390_v48, %v2377_v15  ;;  %v3930_v35 = vmul.f32 %v3913_v45, %v2378_v28  ;;  %v3931_v36 = vmul.f32 %v3917_v2, %v2377_v15  ;;  %v1857_v15 = vld [vmem:[%s10503_s7] sm:$0x3]  ;;  %s10644_s7 = smov 111  }
 0x444   :  { %v2425_v3 = vld [vmem:[#allocation2 + $0x60] sm:$0xff] }
 0x445   :  { %2407 = vst [vmem:[#allocation2 + $0x80] sm:$0xf] %v2403_v30  ;;  %2408 = vst [vmem:[#allocation2 + $0x88] sm:$0xf] %v2404_v31  ;;  %v2375_v40 = vpop.permute.xlu1 %2374 }
 0x446   :  { %3934 = vst [vmem:[#allocation2 + $0x120] sm:$0xf] %v3930_v35  ;;  %3935 = vst [vmem:[#allocation2 + $0x128] sm:$0xf] %v3931_v36  ;;  %v2376_v20 = vsel %vm1138_vm4, %v2373_v42, %v2375_v40  ;;  %v2379_v29 = vsel %vm1138_vm4, %v2375_v40, %v2369_v33  ;;  %v1858_v35 = vunpack.c.l.bf16 %v1857_v15  ;;  %v2417_v36 = vld [vmem:[#allocation2 + $0x20] sm:$0xff]  ;;  %v2420_v15 = vld [vmem:[#allocation2 + $0x38] sm:$0xff] }
 0x447   :  { %v2405_v38 = vmul.f32 %v2394_v58, %v2376_v20  ;;  %v2406_v25 = vmul.f32 %v2398_v12, %v2379_v29  ;;  %v3932_v39 = vmul.f32 %v3921_v6, %v2376_v20  ;;  %v3933_v43 = vmul.f32 %v3925_v5, %v2379_v29  ;;  %v2418_v6 = vld [vmem:[#allocation2 + $0x28] sm:$0xff] }
 0x449   :  { %2409 = vst [vmem:[#allocation2 + $0x90] sm:$0xf] %v2405_v38  ;;  %2410 = vst [vmem:[#allocation2 + $0x98] sm:$0xf] %v2406_v25  ;;  %v8607_v49 = vpop.permute.xlu1 %3210  ;;  %v2414_v25 = vld [vmem:[#allocation2 + $0x8] sm:$0xff] }
 0x44a   :  { %3936 = vst [vmem:[#allocation2 + $0x130] sm:$0xf] %v3932_v39  ;;  %3937 = vst [vmem:[#allocation2 + $0x138] sm:$0xf] %v3933_v43  ;;  %v8609_v1 = vpop.permute.xlu0 %2434  ;;  %v2426_v39 = vld [vmem:[#allocation2 + $0x68] sm:$0xff] }
 0x44d   :  { %v8611_v61 = vpop.permute.xlu1 %3214 }
 0x44e   :  { %v8613_v41 = vpop.permute.xlu0 %3208 }
 0x451   :  { %v8615_v37 = vpop.permute.xlu1 %3306 }
 0x452   :  { %v8617_v48 = vpop.permute.xlu0 %3212 }
 0x455   :  { %v8619_v33 = vpop.permute.xlu1 %3310 }
 0x456   :  { %v8621_v0 = vpop.permute.xlu0 %3304 }
 0x459   :  { %v8623_v52 = vpop.permute.xlu1 %3168 }
 0x45a   :  { %v8625_v45 = vpop.permute.xlu0 %3308 }
 0x45d   :  { %v8627_v2 = vpop.permute.xlu1 %3172 }
 0x45e   :  { %v8629_v7 = vpop.permute.xlu0 %3166 }
 0x461   :  { %v8631_v53 = vpop.permute.xlu1 %3264 }
 0x462   :  { %v8633_v18 = vpop.permute.xlu0 %3170 }
 0x465   :  { %v8635_v19 = vpop.permute.xlu1 %3268  ;;  %v1777_v42 = vpop.f32.mrb[4].mxu0 }
 0x466   :  { %v1778_v26 = vadd.f32 %v1777_v42, %v8320_v4  ;;  %v8638_v58 = vpop.permute.xlu0 %3262  ;;  %v1779_v12 = vpop.f32.mrb[5].mxu0  ;;  %v7139_v42 = vpack.c.bf16 %v2418_v6, %v2414_v25  ;;  %v2416_v6 = vld [vmem:[#allocation2 + $0x18] sm:$0xff]  ;;  %v2415_v25 = vld [vmem:[#allocation2 + $0x10] sm:$0xff] }
 0x467   :  { %v1780_v28 = vadd.f32 %v1779_v12, %v8320_v4  ;;  %v2413_v12 = vld [vmem:[#allocation2] sm:$0xff] }
 0x468   :  { %v1853_v40 = vmax.f32 %v1778_v26, 0.0 }
 0x469   :  { %v1854_v5 = vmax.f32 %v1780_v28, 0.0  ;;  %v1848_v30 = vpop.f32.mrb[4].mxu1  ;;  %v8644_v31 = vpop.permute.xlu1 %3402  ;;  %v7141_v28 = vpack.c.bf16 %v2417_v36, %v2413_v12  ;;  %v7147_v36 = vpack.c.bf16 %v2420_v15, %v2416_v6  ;;  %v2430_v15 = vld [vmem:[#allocation2 + $0x88] sm:$0xf]  ;;  %v2429_v6 = vld [vmem:[#allocation2 + $0x80] sm:$0xf] }
 0x46a   :  { %v1849_v20 = vadd.f32 %v1848_v30, %v8320_v4  ;;  %v1850_v29 = vpop.f32.mrb[5].mxu1  ;;  %v8647_v38 = vpop.permute.xlu0 %3266  ;;  %v7143_v30 = vpack.c.bf16 %v2426_v39, %v2422_v14  ;;  %v7149_v14 = vpack.c.bf16 %v2419_v11, %v2415_v25  ;;  %v2424_v39 = vld [vmem:[#allocation2 + $0x58] sm:$0xff] }
 0x46b   :  { %v1851_v43 = vadd.f32 %v1850_v29, %v8320_v4  ;;  %6974 = vmatprep.subr.msk.mxu0 %vm98_vm0, %v1854_v5  ;;  %v2428_v5 = vld [vmem:[#allocation2 + $0x78] sm:$0xff]  ;;  %v10631_v29 = vmov 0.0  }
 0x46c   :  { %6975 = vmatpush1.msk.msra.mxu0 %vm98_vm0, %v1853_v40  ;;  %v1855_v22 = vmax.f32 %v1849_v20, 0.0  ;;  %v2421_v40 = vld [vmem:[#allocation2 + $0x40] sm:$0xff]  ;;  %v7151_v12 = vpack.c.bf16 %v2428_v5, %v2424_v39  ;;  %v2432_v5 = vld [vmem:[#allocation2 + $0x98] sm:$0xf] }
 0x46d   :  { %v1856_v13 = vmax.f32 %v1851_v43, 0.0  ;;  %v8652_v26 = vpop.permute.xlu1 %3406  ;;  %7140 = vmatprep.subr.bf16.mxu0 %v7139_v42  ;;  %6976 = vmatmul.mubr.msk.f32.vlgmr.msra.gmra.mrb[6].mxu0 %vm10577_vm1, %v1858_v35  ;;  %v7145_v43 = vpack.c.bf16 %v2425_v3, %v2421_v40  ;;  %v2411_v20 = vld [vmem:[%s10504_s8] sm:$0x3]  ;;  %v2423_v3 = vld [vmem:[#allocation2 + $0x50] sm:$0xff]  ;;  %s10646_s8 = smov 96  }
 0x46e   :  { %v8655_v4 = vpop.permute.xlu0 %3400  ;;  %7142 = vmatpush1.bf16.msra.mxu0 %v7141_v28  ;;  %2517 = vmatprep.mubr.f32.mxu0 %v10631_v29  ;;  %v2412_v11 = vunpack.c.l.bf16 %v2411_v20  ;;  %v2431_v40 = vld [vmem:[#allocation2 + $0x90] sm:$0xf] }
 0x46f   :  { %6977 = vmatprep.subr.msk.mxu1 %vm98_vm0, %v1856_v13  ;;  %7144 = vmatprep.subr.bf16.mxu0 %v7143_v30  ;;  %v2427_v13 = vld [vmem:[#allocation2 + $0x70] sm:$0xff] }
 0x470   :  { %6978 = vmatpush1.msk.msra.mxu1 %vm98_vm0, %v1855_v22  ;;  %v7153_v22 = vpack.c.bf16 %v2427_v13, %v2423_v3  ;;  %v7014_v25 = vld [vmem:[%s10499_s3 + $0x21] ss:$8 sm:$0xf] }
 0x471   :  { %7148 = vmatprep.subr.bf16.mxu1 %v7147_v36  ;;  %v8663_v42 = vpop.permute.xlu1 %3360  ;;  %6979 = vmatmul.mubr.msk.f32.vlgmr.msra.gmra.mrb[6].mxu1 %vm10577_vm1, %v1858_v35  ;;  %v3577_v39 = vrot.slane %v7014_v25, %v7678_v56  ;;  %vm10632_vm1 = vcmp.lt.s32.totalorder %v7675_v55, 110 }
 0x472   :  { %v8666_v28 = vpop.permute.xlu0 %3404  ;;  %7146 = vmatpush1.bf16.msra.mxu0 %v7145_v43  ;;  %7150 = vmatpush1.bf16.msra.mxu1 %v7149_v14  ;;  %v3573_v14 = vrot.slane %v7014_v25, %v7691_v60 }
 0x473   :  { %6987 = vmatprep.subr.msk.mxu0 %vm98_vm0, %v2430_v15  ;;  %7152 = vmatprep.subr.bf16.mxu1 %v7151_v12 }
 0x474   :  { %2588 = vmatprep.mubr.f32.mxu1 %v10631_v29 }
 0x475   :  { %v8670_v30 = vpop.permute.xlu1 %3364 }
 0x476   :  { %v8672_v35 = vpop.permute.xlu0 %3358  ;;  %6988 = vmatpush1.msk.msra.mxu0 %vm98_vm0, %v2429_v6  ;;  %7154 = vmatpush1.bf16.msra.mxu1 %v7153_v22  ;;  %v3581_v6 = vrot.slane %v7014_v25, %v7681_v57 }
 0x477   :  { %6989 = vmatmul.mubr.msk.f32.vlgmr.msra.gmra.mrb[8].mxu0 %vm2437_vm2, %v2412_v11  ;;  %6990 = vmatprep.subr.msk.mxu1 %vm98_vm0, %v2432_v5  ;;  %v7015_v5 = vld [vmem:[%s10499_s3 + $0x22] ss:$8 sm:$0xf] }
 0x478   :  { %3088 = vmatprep.mubr.f32.mxu0 %v10631_v29 }
 0x479   :  { %v3559_v36 = vpop.permute.xlu1 %3558 }
 0x47a   :  { %v8681_v43 = vpop.permute.xlu0 %3362  ;;  %6991 = vmatpush1.msk.msra.mxu1 %vm98_vm0, %v2431_v40 }
 0x47b   :  { %6992 = vmatmul.mubr.msk.f32.vlgmr.msra.gmra.mrb[8].mxu1 %vm2437_vm2, %v2412_v11  ;;  %v3585_v11 = vrot.slane %v7014_v25, %v7694_v62  ;;  %v3627_v25 = vrot.slane %v7015_v5, %v7691_v60 }
 0x47c   :  { %3159 = vmatprep.mubr.f32.mxu1 %v10631_v29 }
 0x47d   :  { %v3563_v20 = vpop.permute.xlu1 %3562 }
 0x47e   :  { %v3557_v12 = vpop.permute.xlu0 %3556 }
 0x47f   :  { %v3566_v13 = vsel %vm722_vm10, %v3557_v12, %v3559_v36  ;;  %v3567_v15 = vsel %vm722_vm10, %v3563_v20, %v3557_v12 }
 0x480   :  { %v3590_v3 = vmul.f32 %v3573_v14, %v3567_v15  ;;  %v3591_v22 = vmul.f32 %v3577_v39, %v3566_v13  ;;  %v3631_v13 = vrot.slane %v7015_v5, %v7678_v56 }
 0x481   :  { %v3613_v21 = vpop.permute.xlu1 %3612 }
 0x482   :  { %v3598_v40 = vrot.slane %v3590_v3, 4  ;;  %v3599_v24 = vrot.slane %v3591_v22, 4  ;;  %v3561_v23 = vpop.permute.xlu0 %3560 }
 0x483   :  { %v3564_v29 = vsel %vm722_vm10, %v3561_v23, %v3563_v20  ;;  %v3565_v12 = vsel %vm722_vm10, %v3559_v36, %v3561_v23  ;;  %v3639_v36 = vrot.slane %v7015_v5, %v7694_v62 }
 0x484   :  { %3606 = vst [vmem:[#allocation2 + $0x80] sm:$0xf0] %v3598_v40  ;;  %3607 = vst [vmem:[#allocation2 + $0x88] sm:$0xf0] %v3599_v24  ;;  %v3592_v14 = vmul.f32 %v3581_v6, %v3565_v12  ;;  %v3593_v39 = vmul.f32 %v3585_v11, %v3564_v29  ;;  %v3635_v29 = vrot.slane %v7015_v5, %v7681_v57 }
 0x485   :  { %v7019_v6 = vld [vmem:[%s10499_s3 + $0x27] ss:$8 sm:$0xf] }
 0x486   :  { %v3600_v15 = vrot.slane %v3592_v14, 4  ;;  %v3601_v9 = vrot.slane %v3593_v39, 4  ;;  %v3617_v3 = vpop.permute.xlu1 %3616  ;;  %v3611_v22 = vpop.permute.xlu0 %3610  ;;  %v3799_v39 = vrot.slane %v7019_v6, %v7691_v60  ;;  %v3811_v5 = vrot.slane %v7019_v6, %v7694_v62 }
 0x487   :  { %v3620_v8 = vsel %vm10600_vm13, %v3611_v22, %v3613_v21  ;;  %v3621_v20 = vsel %vm10600_vm13, %v3617_v3, %v3611_v22 }
 0x488   :  { %3608 = vst [vmem:[#allocation2 + $0x90] sm:$0xf0] %v3600_v15  ;;  %3609 = vst [vmem:[#allocation2 + $0x98] sm:$0xf0] %v3601_v9  ;;  %v3644_v23 = vmul.f32 %v3627_v25, %v3621_v20  ;;  %v3645_v24 = vmul.f32 %v3631_v13, %v3620_v8 }
 0x48a   :  { %3648 = vst [vmem:[#allocation2 + $0xa0] sm:$0xf] %v3644_v23  ;;  %3649 = vst [vmem:[#allocation2 + $0xa8] sm:$0xf] %v3645_v24  ;;  %v3785_v11 = vpop.permute.xlu1 %3784  ;;  %v3615_v40 = vpop.permute.xlu0 %3614  ;;  %v3807_v23 = vrot.slane %v7019_v6, %v7681_v57 }
 0x48b   :  { %v3618_v12 = vsel %vm10600_vm13, %v3615_v40, %v3617_v3  ;;  %v3619_v9 = vsel %vm10600_vm13, %v3613_v21, %v3615_v40  ;;  %v3803_v21 = vrot.slane %v7019_v6, %v7678_v56  ;;  %v7018_v24 = vld [vmem:[%s10499_s3 + $0x26] ss:$8 sm:$0xf]  ;;  %vm10658_vm13 = vcmp.lt.s32.totalorder %v7675_v55, 34 }
 0x48c   :  { %v3646_v14 = vmul.f32 %v3635_v29, %v3619_v9  ;;  %v3647_v8 = vmul.f32 %v3639_v36, %v3618_v12  ;;  %v3757_v6 = vrot.slane %v7018_v24, %v7691_v60 }
 0x48e   :  { %3650 = vst [vmem:[#allocation2 + $0xb0] sm:$0xf] %v3646_v14  ;;  %3651 = vst [vmem:[#allocation2 + $0xb8] sm:$0xf] %v3647_v8  ;;  %v3789_v25 = vpop.permute.xlu1 %3788  ;;  %v3783_v13 = vpop.permute.xlu0 %3782 }
 0x48f   :  { %v3792_v15 = vsel %vm10578_vm15, %v3783_v13, %v3785_v11  ;;  %v3793_v22 = vsel %vm10578_vm15, %v3789_v25, %v3783_v13 }
 0x490   :  { %v3816_v3 = vmul.f32 %v3799_v39, %v3792_v15  ;;  %v3819_v20 = vmul.f32 %v3811_v5, %v3793_v22  ;;  %v3769_v5 = vrot.slane %v7018_v24, %v7694_v62 }
 0x492   :  { %v3824_v29 = vrot.slane %v3816_v3, 4  ;;  %v3827_v36 = vrot.slane %v3819_v20, 4  ;;  %v3743_v40 = vpop.permute.xlu1 %3742  ;;  %v3787_v12 = vpop.permute.xlu0 %3786 }
 0x493   :  { %v3790_v9 = vsel %vm10578_vm15, %v3787_v12, %v3789_v25  ;;  %v3791_v14 = vsel %vm10578_vm15, %v3785_v11, %v3787_v12  ;;  %vm10633_vm15 = vmmov %vm10632_vm1 }
 0x494   :  { %3832 = vst [vmem:[#allocation2 + $0xe0] sm:$0xf0] %v3824_v29  ;;  %3835 = vst [vmem:[#allocation2 + $0xf8] sm:$0xf0] %v3827_v36  ;;  %v3817_v8 = vmul.f32 %v3803_v21, %v3791_v14  ;;  %v3818_v39 = vmul.f32 %v3807_v23, %v3790_v9  ;;  %v3761_v21 = vrot.slane %v7018_v24, %v7678_v56 }
 0x495   :  { %v3765_v23 = vrot.slane %v7018_v24, %v7681_v57  ;;  %v7023_v36 = vld [vmem:[%s10499_s3 + $0x43] ss:$8 sm:$0xf] }
 0x496   :  { %v3825_v13 = vrot.slane %v3817_v8, 4  ;;  %v3826_v15 = vrot.slane %v3818_v39, 4  ;;  %v3747_v22 = vpop.permute.xlu1 %3746  ;;  %v3741_v3 = vpop.permute.xlu0 %3740  ;;  %v3967_v24 = vrot.slane %v7023_v36, %v7694_v62 }
 0x497   :  { %v3750_v20 = vsel %vm10579_vm8, %v3741_v3, %v3743_v40  ;;  %v3751_v25 = vsel %vm10579_vm8, %v3747_v22, %v3741_v3 }
 0x498   :  { %3833 = vst [vmem:[#allocation2 + $0xe8] sm:$0xf0] %v3825_v13  ;;  %3834 = vst [vmem:[#allocation2 + $0xf0] sm:$0xf0] %v3826_v15  ;;  %v3774_v11 = vmul.f32 %v3757_v6, %v3750_v20  ;;  %v3777_v29 = vmul.f32 %v3769_v5, %v3751_v25  ;;  %v3955_v5 = vrot.slane %v7023_v36, %v7691_v60 }
 0x49a   :  { %3778 = vst [vmem:[#allocation2 + $0xe0] sm:$0xf] %v3774_v11  ;;  %3781 = vst [vmem:[#allocation2 + $0xf8] sm:$0xf] %v3777_v29  ;;  %v3941_v12 = vpop.permute.xlu1 %3940  ;;  %v3745_v9 = vpop.permute.xlu0 %3744  ;;  %v3963_v11 = vrot.slane %v7023_v36, %v7681_v57 }
 0x49b   :  { %v3748_v14 = vsel %vm10579_vm8, %v3745_v9, %v3747_v22  ;;  %v3749_v8 = vsel %vm10579_vm8, %v3743_v40, %v3745_v9  ;;  %v3959_v40 = vrot.slane %v7023_v36, %v7678_v56  ;;  %v7025_v29 = vld [vmem:[%s10499_s3 + $0x45] ss:$8 sm:$0xf]  ;;  %vm10634_vm8 = vmmov %vm10632_vm1 }
 0x49c   :  { %v3775_v39 = vmul.f32 %v3761_v21, %v3749_v8  ;;  %v3776_v6 = vmul.f32 %v3765_v23, %v3748_v14  ;;  %v4051_v36 = vrot.slane %v7025_v29, %v7691_v60 }
 0x49e   :  { %3779 = vst [vmem:[#allocation2 + $0xe8] sm:$0xf] %v3775_v39  ;;  %3780 = vst [vmem:[#allocation2 + $0xf0] sm:$0xf] %v3776_v6  ;;  %v3945_v13 = vpop.permute.xlu1 %3944  ;;  %v3939_v15 = vpop.permute.xlu0 %3938 }
 0x49f   :  { %v3948_v3 = vsel %vm10632_vm1, %v3939_v15, %v3941_v12  ;;  %v3949_v20 = vsel %vm10633_vm15, %v3945_v13, %v3939_v15  ;;  %vm10635_vm15 = vcmp.lt.s32.totalorder %v7675_v55, 97 }
 0x4a0   :  { %v3972_v22 = vmul.f32 %v3955_v5, %v3948_v3  ;;  %v3975_v25 = vmul.f32 %v3967_v24, %v3949_v20  ;;  %v4063_v24 = vrot.slane %v7025_v29, %v7694_v62 }
 0x4a2   :  { %v3980_v21 = vrot.slane %v3972_v22, 4  ;;  %v3983_v23 = vrot.slane %v3975_v25, 4  ;;  %v4037_v9 = vpop.permute.xlu1 %4036  ;;  %v3943_v14 = vpop.permute.xlu0 %3942 }
 0x4a3   :  { %v3946_v8 = vsel %vm10634_vm8, %v3943_v14, %v3945_v13  ;;  %v3947_v39 = vsel %vm10632_vm1, %v3941_v12, %v3943_v14  ;;  %vm10636_vm8 = vmmov %vm10635_vm15 }
 0x4a4   :  { %3988 = vst [vmem:[#allocation2 + $0x120] sm:$0xf0] %v3980_v21  ;;  %3991 = vst [vmem:[#allocation2 + $0x138] sm:$0xf0] %v3983_v23  ;;  %v3973_v6 = vmul.f32 %v3959_v40, %v3947_v39  ;;  %v3974_v5 = vmul.f32 %v3963_v11, %v3946_v8  ;;  %v4055_v40 = vrot.slane %v7025_v29, %v7678_v56 }
 0x4a5   :  { %v4059_v11 = vrot.slane %v7025_v29, %v7681_v57  ;;  %v8772_v23 = vld [vmem:[%s10499_s3 + $0x47] ss:$8 sm:$0xf]  ;;  %vm10637_vm1 = vmmov %vm10636_vm8 }
 0x4a6   :  { %v3981_v15 = vrot.slane %v3973_v6, 4  ;;  %v3982_v3 = vrot.slane %v3974_v5, 4  ;;  %v4041_v20 = vpop.permute.xlu1 %4040  ;;  %v4035_v22 = vpop.permute.xlu0 %4034  ;;  %v4147_v29 = vrot.slane %v8772_v23, %v7691_v60 }
 0x4a7   :  { %v4044_v25 = vsel %vm10635_vm15, %v4035_v22, %v4037_v9  ;;  %v4045_v13 = vsel %vm10636_vm8, %v4041_v20, %v4035_v22  ;;  %vm10638_vm15 = vmmov %vm10637_vm1  ;;  %vm10641_vm8 = vcmp.lt.s32.totalorder %v7675_v55, 95 }
 0x4a8   :  { %3989 = vst [vmem:[#allocation2 + $0x128] sm:$0xf0] %v3981_v15  ;;  %3990 = vst [vmem:[#allocation2 + $0x130] sm:$0xf0] %v3982_v3  ;;  %v4068_v12 = vmul.f32 %v4051_v36, %v4044_v25  ;;  %v4071_v21 = vmul.f32 %v4063_v24, %v4045_v13 }
 0x4aa   :  { %v4076_v14 = vrot.slane %v4068_v12, 4  ;;  %v4079_v8 = vrot.slane %v4071_v21, 4  ;;  %v4039_v39 = vpop.permute.xlu0 %4038  ;;  %v8780_v15 = vpop.permute.xlu1 %4132 }
 0x4ab   :  { %v4042_v6 = vsel %vm10637_vm1, %v4039_v39, %v4041_v20  ;;  %v4043_v5 = vsel %vm10638_vm15, %v4037_v9, %v4039_v39  ;;  %10639 = vst [vmem:[#allocation17_spill] sm:$0xff] %v8780_v15  ;;  %vm10648_vm1 = vcmp.lt.s32.totalorder %v7675_v55, 33 }
 0x4ac   :  { %4084 = vst [vmem:[#allocation2 + $0x140] sm:$0xf0] %v4076_v14  ;;  %4087 = vst [vmem:[#allocation2 + $0x158] sm:$0xf0] %v4079_v8  ;;  %v4069_v36 = vmul.f32 %v4055_v40, %v4043_v5  ;;  %v4070_v24 = vmul.f32 %v4059_v11, %v4042_v6 }
 0x4ad   :  { %vm10649_vm15 = vmmov %vm10648_vm1 }
 0x4ae   :  { %v4077_v3 = vrot.slane %v4069_v36, 4  ;;  %v4078_v22 = vrot.slane %v4070_v24, 4  ;;  %v8782_v25 = vpop.permute.xlu0 %4130 }
 0x4af   :  { %10640 = vst [vmem:[#allocation18_spill] sm:$0xff] %v8782_v25  ;;  %v4140_v20 = vsel %vm10641_vm8, %v8782_v25, %v8780_v15  ;;  %vm10650_vm8 = vmmov %vm10648_vm1 }
 0x4b0   :  { %4085 = vst [vmem:[#allocation2 + $0x148] sm:$0xf0] %v4077_v3  ;;  %4086 = vst [vmem:[#allocation2 + $0x150] sm:$0xf0] %v4078_v22  ;;  %v4164_v9 = vmul.f32 %v4147_v29, %v4140_v20  ;;  %v7364_v3 = vld [vmem:[%s10607_s23] sm:$0xff] }
 0x4b1   :  { %v6993_v22 = vld [vmem:[%s10502_s2 + $0x1] ss:$8 sm:$0xf] }
 0x4b2   :  { %v4172_v13 = vrot.slane %v4164_v9, 4  ;;  %v2662_v9 = vrot.slane %v6993_v22, %v7678_v56 }
 0x4b4   :  { %4180 = vst [vmem:[#allocation2 + $0x160] sm:$0xf0] %v4172_v13  ;;  %v2666_v13 = vrot.slane %v6993_v22, %v7681_v57 }
 0x54a   :  { %v2519_v12 = vpop.f32.mrb[8].mxu0 }
 0x54b   :  { %v2520_v21 = vadd.f32 %v2519_v12, %v8609_v1  ;;  %v2521_v40 = vpop.f32.mrb[9].mxu0 }
 0x54c   :  { %v2522_v11 = vadd.f32 %v2521_v40, %v8609_v1 }
 0x54d   :  { %v2595_v14 = vmax.f32 %v2520_v21, 0.0 }
 0x54e   :  { %v2596_v8 = vmax.f32 %v2522_v11, 0.0  ;;  %v2590_v39 = vpop.f32.mrb[8].mxu1 }
 0x54f   :  { %2791 = vst [vmem:[#allocation2 + $0x40] sm:$0xf] %v2595_v14  ;;  %v2591_v6 = vadd.f32 %v2590_v39, %v8609_v1  ;;  %v2592_v5 = vpop.f32.mrb[9].mxu1  ;;  %2641 = vrot.lane.b32.xlu1 %v2595_v14, %s10588_s1  ;;  %v2658_v39 = vrot.slane %v6993_v22, %v7691_v60 }
 0x550   :  { %2792 = vst [vmem:[#allocation2 + $0x48] sm:$0xf] %v2596_v8  ;;  %v2593_v36 = vadd.f32 %v2592_v5, %v8609_v1  ;;  %v7398_v1 = vmov 6   ;;  %v6995_v5 = vld [vmem:[%s10502_s2 + $0x3] ss:$8 sm:$0xf] }
 0x551   :  { %v2597_v24 = vmax.f32 %v2591_v6, 0.0  ;;  %7332 = vset.pattern.permute.xlu0 %v7398_v1  ;;  %v2670_v6 = vrot.slane %v6993_v22, %v7694_v62  ;;  %v8881_v22 = vld [vmem:[%s10499_s3 + $0x3] ss:$8 sm:$0xf] }
 0x552   :  { %v2598_v29 = vmax.f32 %v2593_v36, 0.0  ;;  %v8872_v36 = vld [vmem:[%s10499_s3 + $0x1] ss:$8 sm:$0xf] }
 0x553   :  { %2793 = vst [vmem:[#allocation2 + $0x50] sm:$0xf] %v2597_v24  ;;  %2645 = vrot.lane.b32.xlu0 %v2597_v24, %s10588_s1  ;;  %2643 = vrot.lane.b32.xlu1 %v2596_v8, %s10588_s1 }
 0x554   :  { %2794 = vst [vmem:[#allocation2 + $0x58] sm:$0xf] %v2598_v29 }
 0x557   :  { %2737 = vrot.lane.b32.xlu0 %v2595_v14, %s10584_s20  ;;  %2647 = vrot.lane.b32.xlu1 %v2598_v29, %s10588_s1  ;;  %s10714_s1 = smov 16  }
 0x55b   :  { %2741 = vrot.lane.b32.xlu0 %v2597_v24, %s10584_s20  ;;  %2739 = vrot.lane.b32.xlu1 %v2596_v8, %s10584_s20 }
 0x55f   :  { %2599 = vrot.lane.b32.xlu0 %v2595_v14, %s10586_s18  ;;  %2743 = vrot.lane.b32.xlu1 %v2598_v29, %s10584_s20 }
 0x563   :  { %2603 = vrot.lane.b32.xlu0 %v2597_v24, %s10586_s18  ;;  %2601 = vrot.lane.b32.xlu1 %v2596_v8, %s10586_s18 }
 0x567   :  { %2695 = vrot.lane.b32.xlu0 %v2595_v14, %s10582_s21  ;;  %2605 = vrot.lane.b32.xlu1 %v2598_v29, %s10586_s18  ;;  %s10715_s18 = smov 17  }
 0x56b   :  { %2699 = vrot.lane.b32.xlu0 %v2597_v24, %s10582_s21  ;;  %2697 = vrot.lane.b32.xlu1 %v2596_v8, %s10582_s21 }
 0x56f   :  { %2795 = vrot.lane.b32.xlu0 %v2595_v14, %s10580_s24  ;;  %2701 = vrot.lane.b32.xlu1 %v2598_v29, %s10582_s21 }
 0x573   :  { %2799 = vrot.lane.b32.xlu0 %v2597_v24, %s10580_s24  ;;  %2797 = vrot.lane.b32.xlu1 %v2596_v8, %s10580_s24 }
 0x577   :  { %2891 = vrot.lane.b32.xlu0 %v2595_v14, %s10642_s25  ;;  %2801 = vrot.lane.b32.xlu1 %v2598_v29, %s10580_s24  ;;  %s10711_s24 = smov 31  }
 0x57b   :  { %2895 = vrot.lane.b32.xlu0 %v2597_v24, %s10642_s25  ;;  %2893 = vrot.lane.b32.xlu1 %v2596_v8, %s10642_s25 }
 0x57f   :  { %2849 = vrot.lane.b32.xlu0 %v2595_v14, %s10643_s26  ;;  %2897 = vrot.lane.b32.xlu1 %v2598_v29, %s10642_s25 }
 0x583   :  { %2853 = vrot.lane.b32.xlu0 %v2597_v24, %s10643_s26  ;;  %2851 = vrot.lane.b32.xlu1 %v2596_v8, %s10643_s26 }
 0x587   :  { %2945 = vrot.lane.b32.xlu0 %v2595_v14, %s10644_s7  ;;  %2855 = vrot.lane.b32.xlu1 %v2598_v29, %s10643_s26 }
 0x58b   :  { %2949 = vrot.lane.b32.xlu0 %v2597_v24, %s10644_s7  ;;  %2947 = vrot.lane.b32.xlu1 %v2596_v8, %s10644_s7 }
 0x58f   :  { %4134 = vrot.lane.b32.xlu0 %v8189_v63, %s10630_s17  ;;  %2951 = vrot.lane.b32.xlu1 %v2598_v29, %s10644_s7 }
 0x593   :  { %3992 = vrot.lane.b32.xlu0 %v8177_v46, %s10645_s29  ;;  %4136 = vrot.lane.b32.xlu1 %v8193_v50, %s10630_s17 }
 0x597   :  { %3996 = vrot.lane.b32.xlu0 %v8189_v63, %s10645_s29  ;;  %3994 = vrot.lane.b32.xlu1 %v8179_v59, %s10645_s29 }
 0x59b   :  { %4088 = vrot.lane.b32.xlu0 %v8177_v46, %s10646_s8  ;;  %3998 = vrot.lane.b32.xlu1 %v8193_v50, %s10645_s29 }
 0x59f   :  { %4092 = vrot.lane.b32.xlu0 %v8189_v63, %s10646_s8  ;;  %4090 = vrot.lane.b32.xlu1 %v8179_v59, %s10646_s8 }
 0x5a3   :  { %4184 = vrot.lane.b32.xlu0 %v8177_v46, %s10647_s22  ;;  %4094 = vrot.lane.b32.xlu1 %v8193_v50, %s10646_s8  ;;  %v2766_v46 = vrot.slane %v6995_v5, %v7694_v62 }
 0x5a7   :  { %4188 = vrot.lane.b32.xlu0 %v8189_v63, %s10647_s22  ;;  %4186 = vrot.lane.b32.xlu1 %v8179_v59, %s10647_s22 }
 0x5ab   :  { %4190 = vrot.lane.b32.xlu1 %v8193_v50, %s10647_s22  ;;  %4281 = vperm.xlu0 %7332, %v7364_v3   ;;  %v8907_v50 = vld [vmem:[%s10499_s3 + $0x2] ss:$8 sm:$0xf] }
 0x5c1   :  { %v2642_v20 = vpop.permute.xlu1 %2641 }
 0x5c5   :  { %v2646_v12 = vpop.permute.xlu0 %2645  ;;  %v2644_v21 = vpop.permute.xlu1 %2643 }
 0x5c6   :  { %v2650_v40 = vsel %vm622_vm7, %v2644_v21, %v2646_v12  ;;  %v2651_v11 = vsel %vm622_vm7, %v2642_v20, %v2644_v21 }
 0x5c7   :  { %v2676_v14 = vmul.f32 %v2662_v9, %v2651_v11  ;;  %v2677_v8 = vmul.f32 %v2666_v13, %v2650_v40  ;;  %v2758_v11 = vrot.slane %v6995_v5, %v7678_v56 }
 0x5c9   :  { %v2684_v24 = vrot.slane %v2676_v14, 4  ;;  %v2685_v29 = vrot.slane %v2677_v8, 4  ;;  %v2738_v1 = vpop.permute.xlu0 %2737  ;;  %v2648_v3 = vpop.permute.xlu1 %2647  ;;  %v2762_v14 = vrot.slane %v6995_v5, %v7681_v57 }
 0x5ca   :  { %v2649_v9 = vsel %vm622_vm7, %v2646_v12, %v2648_v3  ;;  %v2652_v13 = vsel %vm622_vm7, %v2648_v3, %v2642_v20  ;;  %v3229_v12 = vrot.slane %v8872_v36, %v7678_v56  ;;  %v3233_v20 = vrot.slane %v8872_v36, %v7681_v57 }
 0x5cb   :  { %2692 = vst [vmem:[#allocation2 + $0x8] sm:$0xf0] %v2684_v24  ;;  %2693 = vst [vmem:[#allocation2 + $0x10] sm:$0xf0] %v2685_v29  ;;  %v2675_v21 = vmul.f32 %v2658_v39, %v2652_v13  ;;  %v2678_v40 = vmul.f32 %v2670_v6, %v2649_v9  ;;  %v2754_v9 = vrot.slane %v6995_v5, %v7691_v60 }
 0x5cc   :  { %v8894_v24 = vld [vmem:[%s10499_s3] ss:$8 sm:$0xf] }
 0x5cd   :  { %v2683_v39 = vrot.slane %v2675_v21, 4  ;;  %v2686_v6 = vrot.slane %v2678_v40, 4  ;;  %v2742_v29 = vpop.permute.xlu0 %2741  ;;  %v2740_v3 = vpop.permute.xlu1 %2739 }
 0x5ce   :  { %v2746_v8 = vsel %vm822_vm11, %v2740_v3, %v2742_v29  ;;  %v2747_v63 = vsel %vm822_vm11, %v2738_v1, %v2740_v3 }
 0x5cf   :  { %2691 = vst [vmem:[#allocation2] sm:$0xf0] %v2683_v39  ;;  %2694 = vst [vmem:[#allocation2 + $0x18] sm:$0xf0] %v2686_v6  ;;  %v2772_v21 = vmul.f32 %v2758_v11, %v2747_v63  ;;  %v2773_v40 = vmul.f32 %v2762_v14, %v2746_v8 }
 0x5d0   :  { %v2611_v63 = vld [vmem:[%s10502_s2] ss:$8 sm:$0xf]  ;;  %v8929_v14 = vld [vmem:[%s10499_s3 + $0x5] ss:$8 sm:$0xf] }
 0x5d1   :  { %v2780_v8 = vrot.slane %v2772_v21, 4  ;;  %v2781_v39 = vrot.slane %v2773_v40, 4  ;;  %v2600_v6 = vpop.permute.xlu0 %2599  ;;  %v2744_v3 = vpop.permute.xlu1 %2743  ;;  %v2620_v21 = vrot.slane %v2611_v63, %v7678_v56  ;;  %v2624_v40 = vrot.slane %v2611_v63, %v7681_v57 }
 0x5d2   :  { %v2745_v13 = vsel %vm822_vm11, %v2742_v29, %v2744_v3  ;;  %v2748_v5 = vsel %vm822_vm11, %v2744_v3, %v2738_v1  ;;  %v8966_v29 = vld [vmem:[%s10499_s3 + $0x4] ss:$8 sm:$0xf]  ;;  %v2628_v25 = vrot.slane %v2611_v63, %v7694_v62  ;;  %v3425_v15 = vrot.slane %v8929_v14, %v7681_v57 }
 0x5d3   :  { %2788 = vst [vmem:[#allocation2 + $0x28] sm:$0xf0] %v2780_v8  ;;  %2789 = vst [vmem:[#allocation2 + $0x30] sm:$0xf0] %v2781_v39  ;;  %v2771_v11 = vmul.f32 %v2754_v9, %v2748_v5  ;;  %v2774_v10 = vmul.f32 %v2766_v46, %v2745_v13  ;;  %v3218_v46 = vsel %vm10648_vm1, %v8613_v41, %v8607_v49 }
 0x5d4   :  { %v3217_v9 = vsel %vm10649_vm15, %v8607_v49, %v8617_v48  ;;  %v3219_v39 = vsel %vm10650_vm8, %v8611_v61, %v8613_v41  ;;  %v2616_v41 = vrot.slane %v2611_v63, %v7691_v60  ;;  %v3243_v1 = vmul.f32 %v3229_v12, %v3218_v46 }
 0x5d5   :  { %v2779_v13 = vrot.slane %v2771_v11, 4  ;;  %v2782_v3 = vrot.slane %v2774_v10, 4  ;;  %v2604_v5 = vpop.permute.xlu0 %2603  ;;  %v2602_v8 = vpop.permute.xlu1 %2601  ;;  %v3244_v51 = vmul.f32 %v3233_v20, %v3217_v9  ;;  %v3429_v47 = vrot.slane %v8929_v14, %v7694_v62 }
 0x5d6   :  { %v2608_v49 = vsel %vm578_vm9, %v2602_v8, %v2604_v5  ;;  %v2609_v10 = vsel %vm578_vm9, %v2600_v6, %v2602_v8  ;;  %v6994_v8 = vld [vmem:[%s10502_s2 + $0x2] ss:$8 sm:$0xf]  ;;  %v3216_v12 = vsel %vm10648_vm1, %v8617_v48, %v8611_v61  ;;  %vm10652_vm15 = vcmp.lt.s32.totalorder %v7675_v55, 34 }
 0x5d7   :  { %2787 = vst [vmem:[#allocation2 + $0x20] sm:$0xf0] %v2779_v13  ;;  %2790 = vst [vmem:[#allocation2 + $0x38] sm:$0xf0] %v2782_v3  ;;  %v2634_v11 = vmul.f32 %v2620_v21, %v2609_v10  ;;  %v2635_v59 = vmul.f32 %v2624_v40, %v2608_v49  ;;  %v10651_v21 = vrot.slane %v8872_v36, %v7691_v60  ;;  %v3252_v20 = vrot.slane %v3244_v51, 4 }
 0x5d8   :  { %v3176_v13 = vsel %vm10652_vm15, %v8629_v7, %v8623_v52  ;;  %vm10653_vm8 = vmmov %vm10652_vm15  ;;  %v2716_v49 = vrot.slane %v6994_v8, %v7678_v56  ;;  %v2720_v10 = vrot.slane %v6994_v8, %v7681_v57  ;;  %vm10655_vm1 = vcmp.lt.s32.totalorder %v7675_v55, 31 }
 0x5d9   :  { %v8984_v40 = vmul.f32 %v10651_v21, %v3219_v39  ;;  %2638 = vst [vmem:[#allocation2 + $0x8] sm:$0xf] %v2634_v11  ;;  %2639 = vst [vmem:[#allocation2 + $0x10] sm:$0xf] %v2635_v59  ;;  %v2696_v46 = vpop.permute.xlu0 %2695  ;;  %v2606_v9 = vpop.permute.xlu1 %2605  ;;  %v3175_v61 = vsel %vm10653_vm8, %v8623_v52, %v8633_v18  ;;  %v3251_v11 = vrot.slane %v3243_v1, 4  ;;  %v10654_v21 = vrot.slane %v8872_v36, %v7694_v62 }
 0x5da   :  { %v2607_v48 = vsel %vm578_vm9, %v2604_v5, %v2606_v9  ;;  %v2610_v3 = vsel %vm578_vm9, %v2606_v9, %v2600_v6  ;;  %v3314_v52 = vsel %vm10655_vm1, %v8621_v0, %v8615_v37  ;;  %vm10656_vm15 = vmmov %vm10655_vm1  ;;  %v3177_v51 = vsel %vm10658_vm13, %v8627_v2, %v8629_v7 }
 0x5db   :  { %v2633_v39 = vmul.f32 %v2616_v41, %v2610_v3  ;;  %v2636_v59 = vmul.f32 %v2628_v25, %v2607_v48  ;;  %v9011_v63 = vmul.f32 %v10654_v21, %v3216_v12  ;;  %v3315_v25 = vsel %vm10656_vm15, %v8619_v33, %v8621_v0  ;;  %vm10657_vm8 = vmmov %vm10655_vm1 }
 0x5dc   :  { %v3313_v6 = vsel %vm10657_vm8, %v8615_v37, %v8625_v45  ;;  %v10659_v36 = vrot.slane %v8894_v24, %v7678_v56  ;;  %vm10660_vm1 = vmmov %vm10658_vm13  ;;  %v10661_v37 = vrot.slane %v8894_v24, %v7681_v57  ;;  %v2712_v3 = vrot.slane %v6994_v8, %v7691_v60 }
 0x5dd   :  { %2637 = vst [vmem:[#allocation2] sm:$0xf] %v2633_v39  ;;  %2640 = vst [vmem:[#allocation2 + $0x18] sm:$0xf] %v2636_v59  ;;  %v2700_v5 = vpop.permute.xlu0 %2699  ;;  %v2698_v41 = vpop.permute.xlu1 %2697  ;;  %v3174_v0 = vsel %vm10660_vm1, %v8633_v18, %v8627_v2  ;;  %v2724_v39 = vrot.slane %v6994_v8, %v7694_v62  ;;  %v3250_v59 = vrot.slane %v8984_v40, 4  ;;  %v10662_v2 = vrot.slane %v8881_v22, %v7691_v60 }
 0x5de   :  { %v3201_v1 = vmul.f32 %v10659_v36, %v3176_v13  ;;  %v3202_v12 = vmul.f32 %v10661_v37, %v3175_v61  ;;  %v2704_v7 = vsel %vm678_vm12, %v2698_v41, %v2700_v5  ;;  %v2705_v9 = vsel %vm678_vm12, %v2696_v46, %v2698_v41  ;;  %v9064_v8 = vld [vmem:[%s10502_s2 + $0x5] ss:$8 sm:$0xf]  ;;  %vm10665_vm13 = vmmov %vm10657_vm8 }
 0x5df   :  { %v2730_v13 = vmul.f32 %v2716_v49, %v2705_v9  ;;  %v2731_v48 = vmul.f32 %v2720_v10, %v2704_v7  ;;  %v9049_v18 = vmul.f32 %v10662_v2, %v3315_v25  ;;  %v10663_v61 = vrot.slane %v8881_v22, %v7678_v56 }
 0x5e0   :  { %v10664_v49 = vrot.slane %v8881_v22, %v7681_v57  ;;  %v9066_v40 = vld [vmem:[#allocation2 + $0x8] sm:$0xff]  ;;  %v9068_v36 = vld [vmem:[#allocation2 + $0x10] sm:$0xff]  ;;  %v3253_v25 = vrot.slane %v9011_v63, 4  ;;  %v10667_v37 = vrot.slane %v8894_v24, %v7694_v62  ;;  %vm10668_vm15 = vcmp.lt.s32.totalorder %v7675_v55, 32 }
 0x5e1   :  { %v9054_v21 = vmul.f32 %v10663_v61, %v3314_v52  ;;  %v3312_v52 = vsel %vm10665_vm13, %v8625_v45, %v8619_v33  ;;  %2734 = vst [vmem:[#allocation2 + $0x28] sm:$0xf] %v2730_v13  ;;  %2735 = vst [vmem:[#allocation2 + $0x30] sm:$0xf] %v2731_v48  ;;  %v2796_v9 = vpop.permute.xlu0 %2795  ;;  %v2702_v2 = vpop.permute.xlu1 %2701  ;;  %v3272_v33 = vsel %vm10668_vm15, %v8638_v58, %v8631_v53 }
 0x5e2   :  { %v9059_v10 = vmul.f32 %v10664_v49, %v3313_v6  ;;  %v10666_v6 = vrot.slane %v8894_v24, %v7691_v60  ;;  %v3203_v7 = vmul.f32 %v10667_v37, %v3174_v0  ;;  %3205 = vst [vmem:[#allocation2 + $0x8] sm:$0xf] %v3201_v1  ;;  %3259 = vst [vmem:[#allocation2 + $0x8] sm:$0xf0] %v3251_v11  ;;  %v3346_v0 = vrot.slane %v9049_v18, 4 }
 0x5e3   :  { %3206 = vst [vmem:[#allocation2 + $0x10] sm:$0xf] %v3202_v12  ;;  %3260 = vst [vmem:[#allocation2 + $0x10] sm:$0xf0] %v3252_v20  ;;  %v2703_v24 = vsel %vm678_vm12, %v2700_v5, %v2702_v2  ;;  %v2706_v63 = vsel %vm678_vm12, %v2702_v2, %v2696_v46  ;;  %v2812_v20 = vrot.slane %v9064_v8, %v7691_v60  ;;  %v3347_v12 = vrot.slane %v9054_v21, 4 }
 0x5e4   :  { %v3200_v41 = vmul.f32 %v10666_v6, %v3177_v51  ;;  %vm10669_vm8 = vmmov %vm10668_vm15  ;;  %v2729_v51 = vmul.f32 %v2712_v3, %v2706_v63  ;;  %v2732_v11 = vmul.f32 %v2724_v39, %v2703_v24  ;;  %v2816_v1 = vrot.slane %v9064_v8, %v7678_v56  ;;  %v9105_v46 = vld [vmem:[#allocation2] sm:$0xff]  ;;  %v9107_v48 = vld [vmem:[#allocation2 + $0x18] sm:$0xff] }
 0x5e5   :  { %v3271_v45 = vsel %vm10669_vm8, %v8631_v53, %v8647_v38  ;;  %v10670_v53 = vrot.slane %v8881_v22, %v7694_v62  ;;  %v3348_v5 = vrot.slane %v9059_v10, 4  ;;  %vm10671_vm1 = vmmov %vm10669_vm8  ;;  %v10672_v39 = vrot.slane %v8907_v50, %v7678_v56  ;;  %v2800_v10 = vpop.permute.xlu0 %2799  ;;  %3258 = vst [vmem:[#allocation2] sm:$0xf0] %v3250_v59  ;;  %v9150_v63 = vld [vmem:[%s10502_s2 + $0x7] ss:$8 sm:$0xf] }
 0x5e6   :  { %v3273_v3 = vsel %vm10671_vm1, %v8635_v19, %v8638_v58  ;;  %vm10673_vm13 = vmmov %vm10671_vm1  ;;  %v10674_v21 = vrot.slane %v8907_v50, %v7681_v57  ;;  %2733 = vst [vmem:[#allocation2 + $0x20] sm:$0xf] %v2729_v51  ;;  %vm10675_vm15 = vcmp.lt.s32.totalorder %v7675_v55, 18  ;;  %v2824_v37 = vrot.slane %v9064_v8, %v7694_v62 }
 0x5e7   :  { %v9102_v13 = vmul.f32 %v10670_v53, %v3312_v52  ;;  %v3297_v61 = vmul.f32 %v10672_v39, %v3272_v33  ;;  %v3270_v22 = vsel %vm10673_vm13, %v8647_v38, %v8635_v19  ;;  %2736 = vst [vmem:[#allocation2 + $0x38] sm:$0xf] %v2732_v11  ;;  %v2798_v52 = vpop.permute.xlu1 %2797  ;;  %3204 = vst [vmem:[#allocation2] sm:$0xf] %v3200_v41 }
 0x5e8   :  { %v3298_v49 = vmul.f32 %v10674_v21, %v3271_v45  ;;  %3207 = vst [vmem:[#allocation2 + $0x18] sm:$0xf] %v3203_v7  ;;  %3261 = vst [vmem:[#allocation2 + $0x18] sm:$0xf0] %v3253_v25  ;;  %v3410_v58 = vsel %vm10675_vm15, %v8655_v4, %v8644_v31  ;;  %v2804_v38 = vsel %vm882_vm14, %v2798_v52, %v2800_v10  ;;  %v2994_v24 = vld [vmem:[#allocation2 + $0x28] sm:$0xff]  ;;  %v2995_v51 = vld [vmem:[#allocation2 + $0x30] sm:$0xff] }
 0x5e9   :  { %vm10676_vm8 = vmmov %vm10675_vm15  ;;  %v2805_v6 = vsel %vm882_vm14, %v2796_v9, %v2798_v52  ;;  %v2830_v59 = vmul.f32 %v2816_v1, %v2804_v38  ;;  %v2820_v25 = vrot.slane %v9064_v8, %v7681_v57  ;;  %v3349_v7 = vrot.slane %v9102_v13, 4  ;;  %v2892_v53 = vpop.permute.xlu0 %2891  ;;  %3301 = vst [vmem:[#allocation2 + $0x28] sm:$0xf] %v3297_v61 }
 0x5ea   :  { %v3411_v19 = vsel %vm10676_vm8, %v8652_v26, %v8655_v4  ;;  %v2829_v41 = vmul.f32 %v2812_v20, %v2805_v6  ;;  %v10677_v2 = vrot.slane %v8907_v50, %v7691_v60  ;;  %v3383_v33 = vrot.slane %v8966_v29, %v7681_v57  ;;  %3355 = vst [vmem:[#allocation2 + $0x28] sm:$0xf0] %v3347_v12  ;;  %vm10681_vm1 = vmmov %vm10676_vm8 }
 0x5eb   :  { %v3387_v45 = vrot.slane %v8966_v29, %v7694_v62  ;;  %v10678_v8 = vrot.slane %v8907_v50, %v7694_v62  ;;  %v2838_v1 = vrot.slane %v2830_v59, 4  ;;  %v2802_v13 = vpop.permute.xlu1 %2801  ;;  %3302 = vst [vmem:[#allocation2 + $0x30] sm:$0xf] %v3298_v49  ;;  %3356 = vst [vmem:[#allocation2 + $0x30] sm:$0xf0] %v3348_v5  ;;  %v10679_v39 = vrot.slane %v8929_v14, %v7691_v60 }
 0x5ec   :  { %v3296_v4 = vmul.f32 %v10677_v2, %v3273_v3  ;;  %v2837_v20 = vrot.slane %v2829_v41, 4  ;;  %v7155_v3 = vpack.c.bf16 %v2994_v24, %v9066_v40  ;;  %v10680_v52 = vrot.slane %v8929_v14, %v7678_v56  ;;  %vm10682_vm13 = vmmov %vm10681_vm1 }
 0x5ed   :  { %v3299_v11 = vmul.f32 %v10678_v8, %v3270_v22  ;;  %v9159_v21 = vmul.f32 %v10679_v39, %v3411_v19  ;;  %v2803_v22 = vsel %vm882_vm14, %v2800_v10, %v2802_v13  ;;  %v2806_v40 = vsel %vm882_vm14, %v2802_v13, %v2796_v9  ;;  %2846 = vst [vmem:[#allocation2 + $0x48] sm:$0xf0] %v2838_v1  ;;  %v2993_v38 = vld [vmem:[#allocation2 + $0x20] sm:$0xff] }
 0x5ee   :  { %v9164_v50 = vmul.f32 %v10680_v52, %v3410_v58  ;;  %2845 = vst [vmem:[#allocation2 + $0x40] sm:$0xf0] %v2837_v20  ;;  %v2831_v12 = vmul.f32 %v2820_v25, %v2803_v22  ;;  %v2832_v5 = vmul.f32 %v2824_v37, %v2806_v40  ;;  %7156 = vmatprep.subr.bf16.mxu0 %v7155_v3  ;;  %vm10683_vm15 = vcmp.lt.s32.totalorder %v7675_v55, 30  ;;  %v2996_v6 = vld [vmem:[#allocation2 + $0x38] sm:$0xff] }
 0x5ef   :  { %v2908_v61 = vrot.slane %v9150_v63, %v7691_v60  ;;  %v2912_v49 = vrot.slane %v9150_v63, %v7678_v56  ;;  %v3408_v58 = vsel %vm10681_vm1, %v8666_v28, %v8652_v26  ;;  %v3409_v9 = vsel %vm10682_vm13, %v8644_v31, %v8666_v28  ;;  %vm10684_vm8 = vmmov %vm10683_vm15  ;;  %v2896_v26 = vpop.permute.xlu0 %2895  ;;  %v2894_v25 = vpop.permute.xlu1 %2893  ;;  %3300 = vst [vmem:[#allocation2 + $0x20] sm:$0xf] %v3296_v4 }
 0x5f0   :  { %v3368_v10 = vsel %vm10683_vm15, %v8672_v35, %v8663_v42  ;;  %v3369_v19 = vsel %vm10684_vm8, %v8670_v30, %v8672_v35  ;;  %v2839_v41 = vrot.slane %v2831_v12, 4  ;;  %v2840_v59 = vrot.slane %v2832_v5, 4  ;;  %3354 = vst [vmem:[#allocation2 + $0x20] sm:$0xf0] %v3346_v0  ;;  %3303 = vst [vmem:[#allocation2 + $0x38] sm:$0xf] %v3299_v11 }
 0x5f1   :  { %v7157_v37 = vpack.c.bf16 %v2993_v38, %v9105_v46  ;;  %v7163_v31 = vpack.c.bf16 %v2996_v6, %v9107_v48  ;;  %3357 = vst [vmem:[#allocation2 + $0x38] sm:$0xf0] %v3349_v7  ;;  %v2900_v28 = vsel %vm1082_vm6, %v2894_v25, %v2896_v26  ;;  %v2901_v35 = vsel %vm1082_vm6, %v2892_v53, %v2894_v25  ;;  %vm10687_vm1 = vmmov %vm10684_vm8  ;;  %v7011_v6 = vld [vmem:[%s10499_s3 + $0x6] ss:$8 sm:$0xf] }
 0x5f2   :  { %v7165_v2 = vpack.c.bf16 %v2995_v51, %v9068_v36  ;;  %v2916_v24 = vrot.slane %v9150_v63, %v7681_v57  ;;  %2847 = vst [vmem:[#allocation2 + $0x50] sm:$0xf0] %v2839_v41  ;;  %2848 = vst [vmem:[#allocation2 + $0x58] sm:$0xf0] %v2840_v59  ;;  %v2925_v46 = vmul.f32 %v2908_v61, %v2901_v35  ;;  %v3442_v48 = vrot.slane %v9159_v21, 4 }
 0x5f3   :  { %v2926_v18 = vmul.f32 %v2912_v49, %v2900_v28  ;;  %7158 = vmatpush1.bf16.msra.mxu0 %v7157_v37  ;;  %7164 = vmatprep.subr.bf16.mxu1 %v7163_v31  ;;  %v2920_v0 = vrot.slane %v9150_v63, %v7694_v62  ;;  %v3443_v7 = vrot.slane %v9164_v50, 4  ;;  %v3436_v36 = vmul.f32 %v3425_v15, %v3409_v9  ;;  %v9214_v51 = vld [vmem:[%s10502_s2 + $0x6] ss:$8 sm:$0xf]  ;;  %v2850_v1 = vpop.permute.xlu0 %2849  ;;  %v2898_v13 = vpop.permute.xlu1 %2897  ;;  %vm10688_vm13 = vmmov %vm10687_vm1 }
 0x5f4   :  { %v3437_v4 = vmul.f32 %v3429_v47, %v3408_v58  ;;  %7166 = vmatpush1.bf16.msra.mxu1 %v7165_v2  ;;  %v9219_v63 = vld [vmem:[%s10499_s3 + $0x7] ss:$8 sm:$0xf]  ;;  %v10685_v8 = vrot.slane %v8966_v29, %v7691_v60  ;;  %v10686_v15 = vrot.slane %v8966_v29, %v7678_v56  ;;  %v2933_v47 = vrot.slane %v2925_v46, 4 }
 0x5f5   :  { %v2934_v20 = vrot.slane %v2926_v18, 4  ;;  %v3366_v3 = vsel %vm10687_vm1, %v8681_v43, %v8670_v30  ;;  %v3367_v39 = vsel %vm10688_vm13, %v8663_v42, %v8681_v43  ;;  %v2899_v21 = vsel %vm1082_vm6, %v2896_v26, %v2898_v13  ;;  %v9239_v50 = vld [vmem:[#allocation2 + $0x48] sm:$0xff]  ;;  %v9241_v22 = vld [vmem:[#allocation2 + $0x40] sm:$0xff] }
 0x5f6   :  { %v3392_v11 = vmul.f32 %v10685_v8, %v3369_v19  ;;  %v3393_v14 = vmul.f32 %v10686_v15, %v3368_v10  ;;  %v2902_v52 = vsel %vm1082_vm6, %v2898_v13, %v2892_v53  ;;  %2941 = vst [vmem:[#allocation2 + $0x60] sm:$0xf0] %v2933_v47  ;;  %v2927_v40 = vmul.f32 %v2916_v24, %v2899_v21  ;;  %v6999_v35 = vld [vmem:[%s10502_s2 + $0x20] ss:$8 sm:$0xf] }
 0x5f7   :  { %2942 = vst [vmem:[#allocation2 + $0x68] sm:$0xf0] %v2934_v20  ;;  %v2928_v12 = vmul.f32 %v2920_v0, %v2902_v52  ;;  %v2866_v30 = vrot.slane %v9214_v51, %v7691_v60  ;;  %v2870_v42 = vrot.slane %v9214_v51, %v7678_v56  ;;  %3451 = vst [vmem:[#allocation2 + $0x48] sm:$0xf0] %v3443_v7  ;;  %v3444_v5 = vrot.slane %v3436_v36, 4  ;;  %v2854_v19 = vpop.permute.xlu0 %2853  ;;  %v2852_v38 = vpop.permute.xlu1 %2851 }
 0x5f8   :  { %3397 = vst [vmem:[#allocation2 + $0x48] sm:$0xf] %v3393_v14  ;;  %3396 = vst [vmem:[#allocation2 + $0x40] sm:$0xf] %v3392_v11  ;;  %v3493_v43 = vrot.slane %v9219_v63, %v7678_v56  ;;  %v3489_v53 = vrot.slane %v9219_v63, %v7691_v60  ;;  %v3445_v61 = vrot.slane %v3437_v4, 4  ;;  %v3394_v49 = vmul.f32 %v3383_v33, %v3367_v39 }
 0x5f9   :  { %3450 = vst [vmem:[#allocation2 + $0x40] sm:$0xf0] %v3442_v48  ;;  %v3395_v58 = vmul.f32 %v3387_v45, %v3366_v3  ;;  %v2935_v9 = vrot.slane %v2927_v40, 4  ;;  %v2936_v10 = vrot.slane %v2928_v12, 4  ;;  %v2858_v41 = vsel %vm1038_vm3, %v2852_v38, %v2854_v19  ;;  %v9264_v26 = vld [vmem:[#allocation2 + $0x58] sm:$0xff]  ;;  %v9266_v33 = vld [vmem:[#allocation2 + $0x50] sm:$0xff] }
 0x5fa   :  { %v2859_v59 = vsel %vm1038_vm3, %v2850_v1, %v2852_v38  ;;  %v2884_v45 = vmul.f32 %v2870_v42, %v2858_v41  ;;  %v2874_v25 = vrot.slane %v9214_v51, %v7681_v57  ;;  %v2878_v37 = vrot.slane %v9214_v51, %v7694_v62  ;;  %3453 = vst [vmem:[#allocation2 + $0x58] sm:$0xf0] %v3445_v61 }
 0x5fb   :  { %2943 = vst [vmem:[#allocation2 + $0x70] sm:$0xf0] %v2935_v9  ;;  %2944 = vst [vmem:[#allocation2 + $0x78] sm:$0xf0] %v2936_v10  ;;  %v2883_v29 = vmul.f32 %v2866_v30, %v2859_v59  ;;  %v3497_v31 = vrot.slane %v9219_v63, %v7681_v57  ;;  %v3501_v28 = vrot.slane %v9219_v63, %v7694_v62  ;;  %v2946_v18 = vpop.permute.xlu0 %2945  ;;  %v2856_v0 = vpop.permute.xlu1 %2855  ;;  %vm10691_vm15 = vcmp.lt.s32.totalorder %v7675_v55, 95 }
 0x5fc   :  { %3399 = vst [vmem:[#allocation2 + $0x58] sm:$0xf] %v3395_v58  ;;  %3398 = vst [vmem:[#allocation2 + $0x50] sm:$0xf] %v3394_v49  ;;  %v3507_v2 = vmul.f32 %v3493_v43, %v8343_v17  ;;  %v3506_v24 = vmul.f32 %v3489_v53, %v8365_v27  ;;  %v3463_v46 = vrot.slane %v7011_v6, %v7678_v56  ;;  %v10689_v49 = vld [vmem:[#allocation12_spill] sm:$0xff]  ;;  %vm10699_vm13 = vcmp.lt.s32.totalorder %v7675_v55, 98 }
 0x5fd   :  { %3452 = vst [vmem:[#allocation2 + $0x50] sm:$0xf0] %v3444_v5  ;;  %2887 = vst [vmem:[#allocation2 + $0x60] sm:$0xf] %v2883_v29  ;;  %v3459_v48 = vrot.slane %v7011_v6, %v7691_v60  ;;  %v2857_v7 = vsel %vm1038_vm3, %v2854_v19, %v2856_v0  ;;  %v2860_v36 = vsel %vm1038_vm3, %v2856_v0, %v2850_v1 }
 0x5fe   :  { %2888 = vst [vmem:[#allocation2 + $0x68] sm:$0xf] %v2884_v45  ;;  %v2885_v4 = vmul.f32 %v2874_v25, %v2857_v7  ;;  %v2886_v51 = vmul.f32 %v2878_v37, %v2860_v36  ;;  %v2962_v17 = vrot.slane %v6999_v35, %v7691_v60  ;;  %v2966_v27 = vrot.slane %v6999_v35, %v7678_v56  ;;  %v9299_v1 = vld [vmem:[%s10499_s3 + $0x20] ss:$8 sm:$0xf]  ;;  %vm10694_vm8 = vmmov %vm10691_vm15 }
 0x5ff   :  { %v9290_v63 = vmul.f32 %v3497_v31, %v8339_v16  ;;  %v3509_v8 = vmul.f32 %v3501_v28, %v8361_v32  ;;  %v3467_v11 = vrot.slane %v7011_v6, %v7681_v57  ;;  %v3515_v15 = vrot.slane %v3507_v2, 4  ;;  %v2950_v13 = vpop.permute.xlu0 %2949  ;;  %v2948_v16 = vpop.permute.xlu1 %2947  ;;  %v9333_v37 = vld [vmem:[%s10499_s3 + $0x44] ss:$8 sm:$0xf]  ;;  %vm10696_vm1 = vmmov %vm10694_vm8 }
 0x600   :  { %v3514_v14 = vrot.slane %v3506_v24, 4  ;;  %v3477_v47 = vmul.f32 %v3463_v46, %v8411_v54  ;;  %v3471_v20 = vrot.slane %v7011_v6, %v7694_v62  ;;  %2889 = vst [vmem:[#allocation2 + $0x70] sm:$0xf] %v2885_v4  ;;  %2890 = vst [vmem:[#allocation2 + $0x78] sm:$0xf] %v2886_v51  ;;  %v3476_v3 = vmul.f32 %v3459_v48, %v8433_v44  ;;  %v10690_v6 = vld [vmem:[#allocation17_spill] sm:$0xff] }
 0x601   :  { %v2954_v32 = vsel %vm1138_vm4, %v2948_v16, %v2950_v13  ;;  %v2955_v39 = vsel %vm1138_vm4, %v2946_v18, %v2948_v16  ;;  %v4151_v54 = vrot.slane %v8772_v23, %v7678_v56  ;;  %v2970_v40 = vrot.slane %v6999_v35, %v7681_v57  ;;  %v9342_v24 = vld [vmem:[%s10505_s9] sm:$0x3]  ;;  %v10693_v4 = vld [vmem:[#allocation16_spill] sm:$0xff]  ;;  %s10712_s9 = smov 34  }
 0x602   :  { %v2979_v21 = vmul.f32 %v2962_v17, %v2955_v39  ;;  %v2980_v52 = vmul.f32 %v2966_v27, %v2954_v32  ;;  %v2974_v12 = vrot.slane %v6999_v35, %v7694_v62  ;;  %v3516_v30 = vrot.slane %v9290_v63, 4  ;;  %v10695_v27 = vld [vmem:[#allocation18_spill] sm:$0xff]  ;;  %v10698_v16 = vld [vmem:[#allocation15_spill] sm:$0xff] }
 0x603   :  { %v3517_v42 = vrot.slane %v3509_v8, 4  ;;  %v3535_v44 = vrot.slane %v9299_v1, %v7678_v56  ;;  %v3531_v43 = vrot.slane %v9299_v1, %v7691_v60  ;;  %v3478_v61 = vmul.f32 %v3467_v11, %v8406_v34  ;;  %v4135_v9 = vpop.permute.xlu0 %4134  ;;  %v2952_v10 = vpop.permute.xlu1 %2951  ;;  %v4233_v11 = vld [vmem:[#allocation2 + $0x28] sm:$0xff] }
 0x604   :  { %v3001_v5 = vld [vmem:[#allocation2 + $0x60] sm:$0xff]  ;;  %v3479_v58 = vmul.f32 %v3471_v20, %v10689_v49  ;;  %2983 = vst [vmem:[#allocation2 + $0x80] sm:$0xf] %v2979_v21  ;;  %2984 = vst [vmem:[#allocation2 + $0x88] sm:$0xf] %v2980_v52  ;;  %v4139_v41 = vsel %vm10691_vm15, %v10690_v6, %v4135_v9  ;;  %v2953_v34 = vsel %vm1138_vm4, %v2950_v13, %v2952_v10  ;;  %v4237_v49 = vld [vmem:[#allocation2 + $0x48] sm:$0xff] }
 0x605   :  { %v3002_v53 = vld [vmem:[#allocation2 + $0x68] sm:$0xff]  ;;  %v7161_v38 = vpack.c.bf16 %v3001_v5, %v9241_v22  ;;  %3480 = vst [vmem:[#allocation2 + $0x60] sm:$0xf] %v3476_v3  ;;  %3522 = vst [vmem:[#allocation2 + $0x60] sm:$0xf0] %v3514_v14  ;;  %v2956_v59 = vsel %vm1138_vm4, %v2952_v10, %v2946_v18  ;;  %v4155_v29 = vrot.slane %v8772_v23, %v7681_v57  ;;  %v4232_v20 = vld [vmem:[#allocation2 + $0x20] sm:$0xff] }
 0x606   :  { %v7159_v19 = vpack.c.bf16 %v3002_v53, %v9239_v50  ;;  %3481 = vst [vmem:[#allocation2 + $0x68] sm:$0xf] %v3477_v47  ;;  %3523 = vst [vmem:[#allocation2 + $0x68] sm:$0xf0] %v3515_v15  ;;  %v4165_v50 = vmul.f32 %v4151_v54, %v4139_v41  ;;  %v2981_v45 = vmul.f32 %v2970_v40, %v2953_v34  ;;  %v4229_v14 = vld [vmem:[#allocation2 + $0x8] sm:$0xff]  ;;  %v2988_v47 = vunpack.c.l.bf16 %v9342_v24  ;;  %v4231_v6 = vld [vmem:[#allocation2 + $0x18] sm:$0xff] }
 0x607   :  { %v2982_v25 = vmul.f32 %v2974_v12, %v2956_v59  ;;  %v4159_v22 = vrot.slane %v8772_v23, %v7694_v62  ;;  %v3539_v31 = vrot.slane %v9299_v1, %v7681_v57  ;;  %v3543_v28 = vrot.slane %v9299_v1, %v7694_v62  ;;  %v3004_v35 = vld [vmem:[#allocation2 + $0x78] sm:$0xff]  ;;  %v3003_v2 = vld [vmem:[#allocation2 + $0x70] sm:$0xff]  ;;  %v9345_v0 = vpop.permute.xlu0 %3992  ;;  %v4137_v48 = vpop.permute.xlu1 %4136  ;;  %vm10700_vm15 = vmmov %vm10699_vm13 }
 0x608   :  { %7160 = vmatprep.subr.bf16.mxu0 %v7159_v19  ;;  %v10692_v23 = vld [vmem:[#allocation14_spill] sm:$0xff]  ;;  %v4173_v18 = vrot.slane %v4165_v50, 4  ;;  %2985 = vst [vmem:[#allocation2 + $0x90] sm:$0xf] %v2981_v45  ;;  %v7167_v7 = vpack.c.bf16 %v3004_v35, %v9264_v26  ;;  %3483 = vst [vmem:[#allocation2 + $0x78] sm:$0xf] %v3479_v58  ;;  %v7169_v36 = vpack.c.bf16 %v3003_v2, %v9266_v33 }
 0x609   :  { %7162 = vmatpush1.bf16.msra.mxu0 %v7161_v38  ;;  %v3549_v46 = vmul.f32 %v3535_v44, %v10692_v23  ;;  %2986 = vst [vmem:[#allocation2 + $0x98] sm:$0xf] %v2982_v25  ;;  %3525 = vst [vmem:[#allocation2 + $0x78] sm:$0xf0] %v3517_v42  ;;  %v3548_v51 = vmul.f32 %v3531_v43, %v10693_v4  ;;  %v4138_v17 = vsel %vm10694_vm8, %v4135_v9, %v4137_v48  ;;  %v10697_v1 = vld [vmem:[#allocation13_spill] sm:$0xff]  ;;  %v4228_v42 = vld [vmem:[#allocation2] sm:$0xff] }
 0x60a   :  { %3482 = vst [vmem:[#allocation2 + $0x70] sm:$0xf] %v3478_v61  ;;  %3524 = vst [vmem:[#allocation2 + $0x70] sm:$0xf0] %v3516_v30  ;;  %v4141_v63 = vsel %vm10696_vm1, %v4137_v48, %v10695_v27  ;;  %v4009_v8 = vrot.slane %v9333_v37, %v7691_v60  ;;  %v4166_v26 = vmul.f32 %v4155_v29, %v4138_v17  ;;  %7168 = vmatprep.subr.bf16.mxu1 %v7167_v7  ;;  %v4235_v58 = vld [vmem:[#allocation2 + $0x38] sm:$0xff]  ;;  %v4234_v34 = vld [vmem:[#allocation2 + $0x30] sm:$0xff] }
 0x60b   :  { %4181 = vst [vmem:[#allocation2 + $0x168] sm:$0xf0] %v4173_v18  ;;  %v4167_v15 = vmul.f32 %v4159_v22, %v4141_v63  ;;  %v4013_v33 = vrot.slane %v9333_v37, %v7678_v56  ;;  %v3550_v13 = vmul.f32 %v3539_v31, %v10697_v1  ;;  %v3551_v3 = vmul.f32 %v3543_v28, %v10698_v16  ;;  %v3006_v32 = vld [vmem:[#allocation2 + $0x88] sm:$0xf]  ;;  %v3005_v39 = vld [vmem:[#allocation2 + $0x80] sm:$0xf]  ;;  %v3997_v40 = vpop.permute.xlu0 %3996  ;;  %v3995_v12 = vpop.permute.xlu1 %3994  ;;  %vm10702_vm8 = vmmov %vm10699_vm13 }
 0x60c   :  { %7170 = vmatpush1.bf16.msra.mxu1 %v7169_v36  ;;  %v4174_v21 = vrot.slane %v4166_v26, 4  ;;  %7000 = vmatprep.subr.msk.mxu0 %vm98_vm0, %v3006_v32  ;;  %3553 = vst [vmem:[#allocation2 + $0x88] sm:$0xf] %v3549_v46  ;;  %3552 = vst [vmem:[#allocation2 + $0x80] sm:$0xf] %v3548_v51  ;;  %v7171_v30 = vpack.c.bf16 %v4233_v11, %v4229_v14  ;;  %v4017_v44 = vrot.slane %v9333_v37, %v7681_v57  ;;  %v4240_v41 = vld [vmem:[#allocation2 + $0x60] sm:$0xff] }
 0x60d   :  { %v4241_v54 = vld [vmem:[#allocation2 + $0x68] sm:$0xff]  ;;  %v4175_v52 = vrot.slane %v4167_v15, 4  ;;  %v4001_v43 = vsel %vm10699_vm13, %v3995_v12, %v3997_v40  ;;  %v4002_v53 = vsel %vm10700_vm15, %v9345_v0, %v3995_v12  ;;  %7001 = vmatpush1.msk.msra.mxu0 %vm98_vm0, %v3005_v39  ;;  %v7173_v5 = vpack.c.bf16 %v4232_v20, %v4228_v42  ;;  %v4236_v31 = vld [vmem:[#allocation2 + $0x40] sm:$0xff]  ;;  %v4230_v28 = vld [vmem:[#allocation2 + $0x10] sm:$0xff] }
 0x60e   :  { %v4021_v61 = vrot.slane %v9333_v37, %v7694_v62  ;;  %v9376_v9 = vld [vmem:[%s10499_s3 + $0x46] ss:$8 sm:$0xf]  ;;  %4182 = vst [vmem:[#allocation2 + $0x170] sm:$0xf0] %v4174_v21  ;;  %v4026_v10 = vmul.f32 %v4009_v8, %v4002_v53  ;;  %v4027_v19 = vmul.f32 %v4013_v33, %v4001_v43  ;;  %7172 = vmatprep.subr.bf16.mxu0 %v7171_v30  ;;  %v10701_v45 = vmov 0.0   ;;  %vm10703_vm1 = vmmov %vm10702_vm8 }
 0x60f   :  { %4183 = vst [vmem:[#allocation2 + $0x178] sm:$0xf0] %v4175_v52  ;;  %7002 = vmatmul.mubr.msk.f32.vlgmr.msra.gmra.mrb[6].mxu0 %vm2437_vm2, %v2988_v47  ;;  %v7175_v38 = vpack.c.bf16 %v4241_v54, %v4237_v49  ;;  %v3007_v29 = vld [vmem:[#allocation2 + $0x90] sm:$0xf]  ;;  %v9382_v25 = vpop.permute.xlu0 %4088  ;;  %v3999_v22 = vpop.permute.xlu1 %3998  ;;  %v7195_v37 = vpack.c.bf16 %v4235_v58, %v4231_v6  ;;  %v4105_v35 = vrot.slane %v9376_v9, %v7691_v60  ;;  %v4239_v7 = vld [vmem:[#allocation2 + $0x58] sm:$0xff]  ;;  %v4249_v17 = vld [vmem:[#allocation2 + $0xa8] sm:$0xff] }
 0x610   :  { %7174 = vmatpush1.bf16.msra.mxu0 %v7173_v5  ;;  %v3008_v59 = vld [vmem:[#allocation2 + $0x98] sm:$0xf]  ;;  %4363 = vmatprep.mubr.f32.mxu0 %v10701_v45  ;;  %4030 = vst [vmem:[#allocation2 + $0x140] sm:$0xf] %v4026_v10  ;;  %4031 = vst [vmem:[#allocation2 + $0x148] sm:$0xf] %v4027_v19  ;;  %v4109_v2 = vrot.slane %v9376_v9, %v7678_v56  ;;  %v4000_v23 = vsel %vm10702_vm8, %v3997_v40, %v3999_v22 }
 0x611   :  { %v4243_v50 = vld [vmem:[#allocation2 + $0x78] sm:$0xff]  ;;  %7003 = vmatprep.subr.msk.mxu1 %vm98_vm0, %v3008_v59  ;;  %3555 = vst [vmem:[#allocation2 + $0x98] sm:$0xf] %v3551_v3  ;;  %7176 = vmatprep.subr.bf16.mxu0 %v7175_v38  ;;  %3554 = vst [vmem:[#allocation2 + $0x90] sm:$0xf] %v3550_v13  ;;  %v4003_v46 = vsel %vm10703_vm1, %v3999_v22, %v9345_v0  ;;  %v7177_v18 = vpack.c.bf16 %v4240_v41, %v4236_v31  ;;  %v4242_v27 = vld [vmem:[#allocation2 + $0x70] sm:$0xff] }
 0x612   :  { %7004 = vmatpush1.msk.msra.mxu1 %vm98_vm0, %v3007_v29  ;;  %v7197_v48 = vpack.c.bf16 %v4234_v34, %v4230_v28  ;;  %v4028_v36 = vmul.f32 %v4017_v44, %v4000_v23  ;;  %v4029_v4 = vmul.f32 %v4021_v61, %v4003_v46  ;;  %v7199_v51 = vpack.c.bf16 %v4243_v50, %v4239_v7  ;;  %v4257_v63 = vld [vmem:[#allocation2 + $0xe8] sm:$0xff]  ;;  %v4248_v11 = vld [vmem:[#allocation2 + $0xa0] sm:$0xff]  ;;  %v4238_v20 = vld [vmem:[#allocation2 + $0x50] sm:$0xff] }
 0x613   :  { %7196 = vmatprep.subr.bf16.mxu1 %v7195_v37  ;;  %7005 = vmatmul.mubr.msk.f32.vlgmr.msra.gmra.mrb[6].mxu1 %vm2437_vm2, %v2988_v47  ;;  %v4245_v8 = vld [vmem:[#allocation2 + $0x88] sm:$0xff]  ;;  %v4244_v0 = vld [vmem:[#allocation2 + $0x80] sm:$0xff]  ;;  %v4093_v26 = vpop.permute.xlu0 %4092  ;;  %v4091_v15 = vpop.permute.xlu1 %4090  ;;  %v7201_v13 = vpack.c.bf16 %v4242_v27, %v4238_v20  ;;  %v4251_v3 = vld [vmem:[#allocation2 + $0xb8] sm:$0xff]  ;;  %v4113_v52 = vrot.slane %v9376_v9, %v7681_v57  ;;  %v4117_v40 = vrot.slane %v9376_v9, %v7694_v62  ;;  %vm10704_vm2 = vcmp.lt.s32.totalorder %v7675_v55, 94 }
 0x614   :  { %7178 = vmatpush1.bf16.msra.mxu0 %v7177_v18  ;;  %7198 = vmatpush1.bf16.msra.mxu1 %v7197_v48  ;;  %4032 = vst [vmem:[#allocation2 + $0x150] sm:$0xf] %v4028_v36  ;;  %4033 = vst [vmem:[#allocation2 + $0x158] sm:$0xf] %v4029_v4  ;;  %v7179_v33 = vpack.c.bf16 %v4249_v17, %v4245_v8  ;;  %v7181_v14 = vpack.c.bf16 %v4248_v11, %v4244_v0  ;;  %v4253_v24 = vld [vmem:[#allocation2 + $0xc8] sm:$0xff]  ;;  %v4252_v32 = vld [vmem:[#allocation2 + $0xc0] sm:$0xff] }
 0x615   :  { %7200 = vmatprep.subr.bf16.mxu1 %v7199_v51  ;;  %4434 = vmatprep.mubr.f32.mxu1 %v10701_v45  ;;  %v4097_v47 = vsel %vm1338_vm5, %v4091_v15, %v4093_v26  ;;  %v4098_v1 = vsel %vm1338_vm5, %v9382_v25, %v4091_v15  ;;  %v7183_v16 = vpack.c.bf16 %v4257_v63, %v4253_v24  ;;  %v4256_v39 = vld [vmem:[#allocation2 + $0xe0] sm:$0xff]  ;;  %v4250_v12 = vld [vmem:[#allocation2 + $0xb0] sm:$0xff]  ;;  %v4259_v30 = vld [vmem:[#allocation2 + $0xf8] sm:$0xff]  ;;  %vm10708_vm1 = vcmask 818176  }
 0x616   :  { %v4122_v54 = vmul.f32 %v4105_v35, %v4098_v1  ;;  %v4123_v21 = vmul.f32 %v4109_v2, %v4097_v47  ;;  %7180 = vmatprep.subr.bf16.mxu0 %v7179_v33  ;;  %v4265_v42 = vld [vmem:[#allocation2 + $0x128] sm:$0xff]  ;;  %v7185_v58 = vpack.c.bf16 %v4256_v39, %v4252_v32  ;;  %v4255_v10 = vld [vmem:[#allocation2 + $0xd8] sm:$0xff]  ;;  %v4258_v59 = vld [vmem:[#allocation2 + $0xf0] sm:$0xff] }
 0x617   :  { %v9411_v53 = vld [vmem:[%s10499_s3 + $0x60] ss:$8 sm:$0xf]  ;;  %v4185_v5 = vpop.permute.xlu0 %4184  ;;  %v4095_v61 = vpop.permute.xlu1 %4094  ;;  %v7207_v41 = vpack.c.bf16 %v4259_v30, %v4255_v10  ;;  %vm10705_vm13 = vmmov %vm10704_vm2 }
 0x618   :  { %7182 = vmatpush1.bf16.msra.mxu0 %v7181_v14  ;;  %7202 = vmatpush1.bf16.msra.mxu1 %v7201_v13  ;;  %v4247_v44 = vld [vmem:[#allocation2 + $0x98] sm:$0xff]  ;;  %v4246_v43 = vld [vmem:[#allocation2 + $0x90] sm:$0xff]  ;;  %4126 = vst [vmem:[#allocation2 + $0x160] sm:$0xf] %v4122_v54  ;;  %4127 = vst [vmem:[#allocation2 + $0x168] sm:$0xf] %v4123_v21  ;;  %v4096_v38 = vsel %vm1338_vm5, %v4093_v26, %v4095_v61  ;;  %v4099_v6 = vsel %vm1338_vm5, %v4095_v61, %v9382_v25 }
 0x619   :  { %7184 = vmatprep.subr.bf16.mxu0 %v7183_v16  ;;  %v7203_v49 = vpack.c.bf16 %v4251_v3, %v4247_v44  ;;  %v7205_v9 = vpack.c.bf16 %v4250_v12, %v4246_v43  ;;  %v4261_v19 = vld [vmem:[#allocation2 + $0x108] sm:$0xff]  ;;  %v4124_v29 = vmul.f32 %v4113_v52, %v4096_v38  ;;  %v4125_v50 = vmul.f32 %v4117_v40, %v4099_v6  ;;  %v4264_v31 = vld [vmem:[#allocation2 + $0x120] sm:$0xff]  ;;  %v4267_v28 = vld [vmem:[#allocation2 + $0x138] sm:$0xff] }
 0x61a   :  { %v7187_v34 = vpack.c.bf16 %v4265_v42, %v4261_v19  ;;  %v4201_v22 = vrot.slane %v9411_v53, %v7691_v60  ;;  %v4205_v37 = vrot.slane %v9411_v53, %v7678_v56  ;;  %v4254_v35 = vld [vmem:[#allocation2 + $0xd0] sm:$0xff]  ;;  %v4260_v23 = vld [vmem:[#allocation2 + $0x100] sm:$0xff]  ;;  %v4263_v18 = vld [vmem:[#allocation2 + $0x118] sm:$0xff]  ;;  %v4209_v27 = vrot.slane %v9411_v53, %v7681_v57 }
 0x61b   :  { %7204 = vmatprep.subr.bf16.mxu1 %v7203_v49  ;;  %4128 = vst [vmem:[#allocation2 + $0x170] sm:$0xf] %v4124_v29  ;;  %4129 = vst [vmem:[#allocation2 + $0x178] sm:$0xf] %v4125_v50  ;;  %v4189_v25 = vpop.permute.xlu0 %4188  ;;  %v4187_v2 = vpop.permute.xlu1 %4186  ;;  %v7209_v46 = vpack.c.bf16 %v4258_v59, %v4254_v35  ;;  %v7189_v36 = vpack.c.bf16 %v4264_v31, %v4260_v23  ;;  %v7211_v4 = vpack.c.bf16 %v4267_v28, %v4263_v18  ;;  %v4269_v8 = vld [vmem:[#allocation2 + $0x148] sm:$0xff]  ;;  %v4266_v0 = vld [vmem:[#allocation2 + $0x130] sm:$0xff] }
 0x61c   :  { %7186 = vmatpush1.bf16.msra.mxu0 %v7185_v58  ;;  %7206 = vmatpush1.bf16.msra.mxu1 %v7205_v9  ;;  %v4193_v48 = vsel %vm10704_vm2, %v4187_v2, %v4189_v25  ;;  %v4194_v7 = vsel %vm10705_vm13, %v4185_v5, %v4187_v2  ;;  %v4213_v63 = vrot.slane %v9411_v53, %v7694_v62  ;;  %v4268_v26 = vld [vmem:[#allocation2 + $0x140] sm:$0xff]  ;;  %v4262_v24 = vld [vmem:[#allocation2 + $0x110] sm:$0xff]  ;;  %vm10706_vm15 = vmmov %vm10704_vm2  ;;  %vm10719_vm13 = vcmp.lt.s32.totalorder %v7675_v55, 33 }
 0x61d   :  { %7208 = vmatprep.subr.bf16.mxu1 %v7207_v41  ;;  %7188 = vmatprep.subr.bf16.mxu0 %v7187_v34  ;;  %v4218_v51 = vmul.f32 %v4201_v22, %v4194_v7  ;;  %v4219_v17 = vmul.f32 %v4205_v37, %v4193_v48  ;;  %vm10707_vm8 = vmmov %vm10704_vm2  ;;  %v7213_v13 = vpack.c.bf16 %v4266_v0, %v4262_v24  ;;  %v4271_v32 = vld [vmem:[#allocation2 + $0x158] sm:$0xff]  ;;  %v4226_v39 = vld [vmem:[%s10506_s10] sm:$0x3]  ;;  %s10710_s10 = smov 33  }
 0x61e   :  { %v4270_v21 = vld [vmem:[#allocation2 + $0x150] sm:$0xff]  ;;  %v4227_v30 = vunpack.c.l.bf16 %v4226_v39  ;;  %vm10709_vm2 = vmmov %vm10708_vm1 }
 0x61f   :  { %v4273_v11 = vld [vmem:[#allocation2 + $0x168] sm:$0xff]  ;;  %v4272_v15 = vld [vmem:[#allocation2 + $0x160] sm:$0xff]  ;;  %4222 = vst [vmem:[#allocation2 + $0x180] sm:$0xf] %v4218_v51  ;;  %4223 = vst [vmem:[#allocation2 + $0x188] sm:$0xf] %v4219_v17  ;;  %v4191_v33 = vpop.permute.xlu1 %4190 }
 0x620   :  { %7190 = vmatpush1.bf16.msra.mxu0 %v7189_v36  ;;  %7210 = vmatpush1.bf16.msra.mxu1 %v7209_v46  ;;  %v7191_v14 = vpack.c.bf16 %v4273_v11, %v4269_v8  ;;  %v7193_v20 = vpack.c.bf16 %v4272_v15, %v4268_v26  ;;  %v4192_v47 = vsel %vm10706_vm15, %v4189_v25, %v4191_v33  ;;  %v7035_v50 = vld [vmem:[%s10499_s3 + $0x1] ss:$8 sm:$0xf]  ;;  %vm10720_vm15 = vmmov %vm10719_vm13  ;;  %v7037_v7 = vld [vmem:[%s10499_s3 + $0x3] ss:$8 sm:$0xf] }
 0x621   :  { %7212 = vmatprep.subr.bf16.mxu1 %v7211_v4  ;;  %v4195_v1 = vsel %vm10707_vm8, %v4191_v33, %v4185_v5  ;;  %v4220_v16 = vmul.f32 %v4209_v27, %v4192_v47  ;;  %v4508_v37 = vrot.slane %v7035_v50, %v7678_v56  ;;  %v4512_v31 = vrot.slane %v7035_v50, %v7681_v57  ;;  %vm10721_vm8 = vmmov %vm10719_vm13 }
 0x622   :  { %v4221_v3 = vmul.f32 %v4213_v63, %v4195_v1  ;;  %7192 = vmatprep.subr.bf16.mxu0 %v7191_v14  ;;  %v4275_v54 = vld [vmem:[#allocation2 + $0x178] sm:$0xff]  ;;  %v4274_v52 = vld [vmem:[#allocation2 + $0x170] sm:$0xff]  ;;  %v4504_v23 = vrot.slane %v7035_v50, %v7691_v60  ;;  %v4516_v48 = vrot.slane %v7035_v50, %v7694_v62  ;;  %v4604_v8 = vrot.slane %v7037_v7, %v7678_v56 }
 0x623   :  { %4224 = vst [vmem:[#allocation2 + $0x190] sm:$0xf] %v4220_v16  ;;  %v7215_v40 = vpack.c.bf16 %v4275_v54, %v4271_v32  ;;  %v7217_v12 = vpack.c.bf16 %v4274_v52, %v4270_v21  ;;  %v4608_v26 = vrot.slane %v7037_v7, %v7681_v57  ;;  %v4600_v1 = vrot.slane %v7037_v7, %v7691_v60  ;;  %v4457_v32 = vld [vmem:[%s10499_s3] ss:$8 sm:$0xf] }
 0x624   :  { %7194 = vmatpush1.bf16.msra.mxu0 %v7193_v20  ;;  %7214 = vmatpush1.bf16.msra.mxu1 %v7213_v13  ;;  %4225 = vst [vmem:[#allocation2 + $0x198] sm:$0xf] %v4221_v3  ;;  %v4612_v3 = vrot.slane %v7037_v7, %v7694_v62  ;;  %v7036_v50 = vld [vmem:[%s10499_s3 + $0x2] ss:$8 sm:$0xf] }
 0x625   :  { %7216 = vmatprep.subr.bf16.mxu1 %v7215_v40 }
 0x626   :  { %v4277_v42 = vld [vmem:[#allocation2 + $0x188] sm:$0xf]  ;;  %v4276_v44 = vld [vmem:[#allocation2 + $0x180] sm:$0xf] }
 0x627   :  { %7029 = vmatprep.subr.msk.mxu0 %vm98_vm0, %v4277_v42 }
 0x628   :  { %7218 = vmatpush1.bf16.msra.mxu1 %v7217_v12  ;;  %7030 = vmatpush1.msk.msra.mxu0 %vm98_vm0, %v4276_v44 }
 0x629   :  { %7031 = vmatmul.mubr.msk.f32.vlgmr.msra.gmra.mrb[10].mxu0 %vm10708_vm1, %v4227_v30  ;;  %vm10722_vm1 = vmmov %vm10721_vm8 }
 0x62a   :  { %v4278_v53 = vld [vmem:[#allocation2 + $0x190] sm:$0xf]  ;;  %5734 = vmatprep.mubr.f32.mxu0 %v10701_v45  ;;  %v4282_v5 = vpop.permute.xlu0 %4281 }
 0x62b   :  { %v4279_v43 = vld [vmem:[#allocation2 + $0x198] sm:$0xf] }
 0x62c   :  { %7032 = vmatprep.subr.msk.mxu1 %vm98_vm0, %v4279_v43  ;;  %v4470_v43 = vrot.slane %v4457_v32, %v7681_v57 }
 0x62d   :  { %7033 = vmatpush1.msk.msra.mxu1 %vm98_vm0, %v4278_v53 }
 0x62e   :  { %7034 = vmatmul.mubr.msk.f32.vlgmr.msra.gmra.mrb[10].mxu1 %vm10709_vm2, %v4227_v30  ;;  %vm10723_vm2 = vcmp.lt.s32.totalorder %v7675_v55, 31  ;;  %v4466_v30 = vrot.slane %v4457_v32, %v7678_v56 }
 0x62f   :  { %5805 = vmatprep.mubr.f32.mxu1 %v10701_v45 }
 0x6fc   :  { %v4365_v61 = vpop.f32.mrb[10].mxu0 }
 0x6fd   :  { %v4366_v49 = vadd.f32 %v4365_v61, %v4282_v5  ;;  %v4367_v58 = vpop.f32.mrb[11].mxu0 }
 0x6fe   :  { %v4368_v9 = vadd.f32 %v4367_v58, %v4282_v5 }
 0x6ff   :  { %v9445_v10 = vmax.f32 %v4366_v49, 0.0 }
 0x700   :  { %v9447_v19 = vmax.f32 %v4368_v9, 0.0 }
 0x701   :  { %v4436_v38 = vpop.f32.mrb[10].mxu1  ;;  %5021 = vst [vmem:[#allocation2 + $0xc0] sm:$0xf] %v9445_v10  ;;  %4487 = vrot.lane.b32.xlu1 %v9445_v10, %s10710_s10 }
 0x702   :  { %v4437_v6 = vadd.f32 %v4436_v38, %v4282_v5  ;;  %v4438_v41 = vpop.f32.mrb[11].mxu1  ;;  %5022 = vst [vmem:[#allocation2 + $0xc8] sm:$0xf] %v9447_v19  ;;  %v4462_v38 = vrot.slane %v4457_v32, %v7691_v60 }
 0x703   :  { %v4439_v34 = vadd.f32 %v4438_v41, %v4282_v5 }
 0x704   :  { %v9453_v59 = vmax.f32 %v4437_v6, 0.0 }
 0x705   :  { %v9455_v29 = vmax.f32 %v4439_v34, 0.0  ;;  %4489 = vrot.lane.b32.xlu1 %v9447_v19, %s10710_s10  ;;  %v4474_v34 = vrot.slane %v4457_v32, %v7694_v62 }
 0x706   :  { %5023 = vst [vmem:[#allocation2 + $0xd0] sm:$0xf] %v9453_v59  ;;  %4491 = vrot.lane.b32.xlu0 %v9453_v59, %s10710_s10 }
 0x707   :  { %5024 = vst [vmem:[#allocation2 + $0xd8] sm:$0xf] %v9455_v29 }
 0x709   :  { %4493 = vrot.lane.b32.xlu1 %v9455_v29, %s10710_s10  ;;  %s10820_s10 = sld [smem:[#allocation20_spill]] }
 0x70a   :  { %4583 = vrot.lane.b32.xlu0 %v9445_v10, %s10711_s24 }
 0x70d   :  { %4585 = vrot.lane.b32.xlu1 %v9447_v19, %s10711_s24 }
 0x70e   :  { %4587 = vrot.lane.b32.xlu0 %v9453_v59, %s10711_s24 }
 0x711   :  { %4589 = vrot.lane.b32.xlu1 %v9455_v29, %s10711_s24 }
 0x712   :  { %4445 = vrot.lane.b32.xlu0 %v9445_v10, %s10712_s9 }
 0x715   :  { %4447 = vrot.lane.b32.xlu1 %v9447_v19, %s10712_s9 }
 0x716   :  { %4449 = vrot.lane.b32.xlu0 %v9453_v59, %s10712_s9 }
 0x719   :  { %4451 = vrot.lane.b32.xlu1 %v9455_v29, %s10712_s9 }
 0x71a   :  { %4541 = vrot.lane.b32.xlu0 %v9445_v10, %s10713_s16 }
 0x71d   :  { %4543 = vrot.lane.b32.xlu1 %v9447_v19, %s10713_s16 }
 0x71e   :  { %4545 = vrot.lane.b32.xlu0 %v9453_v59, %s10713_s16 }
 0x721   :  { %4547 = vrot.lane.b32.xlu1 %v9455_v29, %s10713_s16 }
 0x722   :  { %4679 = vrot.lane.b32.xlu0 %v9445_v10, %s10617_s5 }
 0x725   :  { %4681 = vrot.lane.b32.xlu1 %v9447_v19, %s10617_s5 }
 0x726   :  { %4683 = vrot.lane.b32.xlu0 %v9453_v59, %s10617_s5 }
 0x729   :  { %4685 = vrot.lane.b32.xlu1 %v9455_v29, %s10617_s5  ;;  %s10716_s5 = smov 1  }
 0x72a   :  { %4775 = vrot.lane.b32.xlu0 %v9445_v10, %s10714_s1 }
 0x72d   :  { %4777 = vrot.lane.b32.xlu1 %v9447_v19, %s10714_s1 }
 0x72e   :  { %4779 = vrot.lane.b32.xlu0 %v9453_v59, %s10714_s1 }
 0x731   :  { %4781 = vrot.lane.b32.xlu1 %v9455_v29, %s10714_s1 }
 0x732   :  { %4637 = vrot.lane.b32.xlu0 %v9445_v10, %s10618_s30 }
 0x735   :  { %4639 = vrot.lane.b32.xlu1 %v9447_v19, %s10618_s30 }
 0x736   :  { %4641 = vrot.lane.b32.xlu0 %v9453_v59, %s10618_s30 }
 0x739   :  { %4643 = vrot.lane.b32.xlu1 %v9455_v29, %s10618_s30  ;;  %s10717_s30 = smov 15  }
 0x73a   :  { %4733 = vrot.lane.b32.xlu0 %v9445_v10, %s10715_s18 }
 0x73d   :  { %4735 = vrot.lane.b32.xlu1 %v9447_v19, %s10715_s18 }
 0x73e   :  { %4737 = vrot.lane.b32.xlu0 %v9453_v59, %s10715_s18 }
 0x741   :  { %4739 = vrot.lane.b32.xlu1 %v9455_v29, %s10715_s18 }
 0x742   :  { %4871 = vrot.lane.b32.xlu0 %v9445_v10, %s10619_s6 }
 0x745   :  { %4873 = vrot.lane.b32.xlu1 %v9447_v19, %s10619_s6 }
 0x746   :  { %4875 = vrot.lane.b32.xlu0 %v9453_v59, %s10619_s6 }
 0x749   :  { %4877 = vrot.lane.b32.xlu1 %v9455_v29, %s10619_s6  ;;  %s10718_s6 = smov 127  }
 0x74a   :  { %4967 = vrot.lane.b32.xlu0 %v9445_v10, %s10716_s5 }
 0x74d   :  { %4969 = vrot.lane.b32.xlu1 %v9447_v19, %s10716_s5 }
 0x74e   :  { %4971 = vrot.lane.b32.xlu0 %v9453_v59, %s10716_s5 }
 0x751   :  { %4973 = vrot.lane.b32.xlu1 %v9455_v29, %s10716_s5 }
 0x752   :  { %4829 = vrot.lane.b32.xlu0 %v9445_v10, %s10717_s30 }
 0x755   :  { %4831 = vrot.lane.b32.xlu1 %v9447_v19, %s10717_s30 }
 0x756   :  { %4833 = vrot.lane.b32.xlu0 %v9453_v59, %s10717_s30 }
 0x759   :  { %4835 = vrot.lane.b32.xlu1 %v9455_v29, %s10717_s30 }
 0x75a   :  { %4925 = vrot.lane.b32.xlu0 %v9445_v10, %s10620_s28 }
 0x75d   :  { %4927 = vrot.lane.b32.xlu1 %v9447_v19, %s10620_s28 }
 0x75e   :  { %4929 = vrot.lane.b32.xlu0 %v9453_v59, %s10620_s28 }
 0x761   :  { %4931 = vrot.lane.b32.xlu1 %v9455_v29, %s10620_s28 }
 0x762   :  { %5025 = vrot.lane.b32.xlu0 %v9445_v10, %s10718_s6 }
 0x765   :  { %5027 = vrot.lane.b32.xlu1 %v9447_v19, %s10718_s6 }
 0x766   :  { %5029 = vrot.lane.b32.xlu0 %v9453_v59, %s10718_s6 }
 0x769   :  { %5031 = vrot.lane.b32.xlu1 %v9455_v29, %s10718_s6 }
 0x76a   :  { %5121 = vrot.lane.b32.xlu0 %v9445_v10, %s10621_s0 }
 0x76d   :  { %5123 = vrot.lane.b32.xlu1 %v9447_v19, %s10621_s0 }
 0x76e   :  { %5125 = vrot.lane.b32.xlu0 %v9453_v59, %s10621_s0 }
 0x771   :  { %5127 = vrot.lane.b32.xlu1 %v9455_v29, %s10621_s0 }
 0x772   :  { %5079 = vrot.lane.b32.xlu0 %v9445_v10, %s10622_s27 }
 0x773   :  { %v4488_v22 = vpop.permute.xlu1 %4487 }
 0x775   :  { %5081 = vrot.lane.b32.xlu1 %v9447_v19, %s10622_s27 }
 0x776   :  { %5083 = vrot.lane.b32.xlu0 %v9453_v59, %s10622_s27 }
 0x777   :  { %v4490_v35 = vpop.permute.xlu1 %4489 }
 0x778   :  { %v4492_v28 = vpop.permute.xlu0 %4491  ;;  %v4497_v2 = vsel %vm10720_vm15, %v4488_v22, %v4490_v35  ;;  %vm10725_vm15 = vmmov %vm10723_vm2 }
 0x779   :  { %v4496_v25 = vsel %vm10719_vm13, %v4490_v35, %v4492_v28  ;;  %v4522_v46 = vmul.f32 %v4508_v37, %v4497_v2  ;;  %5085 = vrot.lane.b32.xlu1 %v9455_v29, %s10622_s27  ;;  %vm10724_vm13 = vmmov %vm10723_vm2  ;;  %v4562_v35 = vrot.slane %v7036_v50, %v7678_v56 }
 0x77a   :  { %v4523_v18 = vmul.f32 %v4512_v31, %v4496_v25  ;;  %5217 = vrot.lane.b32.xlu0 %v9445_v10, %s10642_s25 }
 0x77b   :  { %v4530_v36 = vrot.slane %v4522_v46, 4  ;;  %v4494_v17 = vpop.permute.xlu1 %4493 }
 0x77c   :  { %v4531_v4 = vrot.slane %v4523_v18, 4  ;;  %v4584_v51 = vpop.permute.xlu0 %4583  ;;  %v4495_v27 = vsel %vm10721_vm8, %v4492_v28, %v4494_v17  ;;  %v4498_v63 = vsel %vm10722_vm1, %v4494_v17, %v4488_v22  ;;  %vm10726_vm8 = vmmov %vm10723_vm2  ;;  %vm10727_vm1 = vcmp.lt.s32.totalorder %v7675_v55, 34 }
 0x77d   :  { %4538 = vst [vmem:[#allocation2 + $0x8] sm:$0xf0] %v4530_v36  ;;  %v4521_v0 = vmul.f32 %v4504_v23, %v4498_v63  ;;  %v4524_v11 = vmul.f32 %v4516_v48, %v4495_v27  ;;  %5219 = vrot.lane.b32.xlu1 %v9447_v19, %s10642_s25  ;;  %v4566_v23 = vrot.slane %v7036_v50, %v7681_v57  ;;  %v7039_v27 = vld [vmem:[%s10499_s3 + $0x5] ss:$8 sm:$0xf] }
 0x77e   :  { %4539 = vst [vmem:[#allocation2 + $0x10] sm:$0xf0] %v4531_v4  ;;  %5221 = vrot.lane.b32.xlu0 %v9453_v59, %s10642_s25  ;;  %v4558_v36 = vrot.slane %v7036_v50, %v7691_v60  ;;  %v4570_v17 = vrot.slane %v7036_v50, %v7694_v62  ;;  %v4708_v32 = vrot.slane %v7039_v27, %v7694_v62 }
 0x77f   :  { %v4529_v15 = vrot.slane %v4521_v0, 4  ;;  %v4532_v33 = vrot.slane %v4524_v11, 4  ;;  %v4586_v20 = vpop.permute.xlu1 %4585 }
 0x780   :  { %v4588_v14 = vpop.permute.xlu0 %4587  ;;  %v4593_v47 = vsel %vm10724_vm13, %v4584_v51, %v4586_v20  ;;  %vm10729_vm13 = vmmov %vm10727_vm1 }
 0x781   :  { %v4592_v24 = vsel %vm10723_vm2, %v4586_v20, %v4588_v14  ;;  %4537 = vst [vmem:[#allocation2] sm:$0xf0] %v4529_v15  ;;  %4540 = vst [vmem:[#allocation2 + $0x18] sm:$0xf0] %v4532_v33  ;;  %v4618_v13 = vmul.f32 %v4604_v8, %v4593_v47  ;;  %5223 = vrot.lane.b32.xlu1 %v9455_v29, %s10642_s25 }
 0x782   :  { %v4619_v16 = vmul.f32 %v4608_v26, %v4592_v24  ;;  %5313 = vrot.lane.b32.xlu0 %v9445_v10, %s10624_s4  ;;  %vm10728_vm2 = vmmov %vm10727_vm1  ;;  %v4700_v26 = vrot.slane %v7039_v27, %v7678_v56 }
 0x783   :  { %v4626_v39 = vrot.slane %v4618_v13, 4  ;;  %v4590_v52 = vpop.permute.xlu1 %4589  ;;  %v4696_v13 = vrot.slane %v7039_v27, %v7691_v60 }
 0x784   :  { %v4627_v54 = vrot.slane %v4619_v16, 4  ;;  %v4446_v21 = vpop.permute.xlu0 %4445  ;;  %v4591_v40 = vsel %vm10725_vm15, %v4588_v14, %v4590_v52  ;;  %v4594_v12 = vsel %vm10726_vm8, %v4590_v52, %v4584_v51  ;;  %vm10730_vm15 = vmmov %vm10727_vm1  ;;  %vm10731_vm8 = vcmp.lt.s32.totalorder %v7675_v55, 32 }
 0x785   :  { %4634 = vst [vmem:[#allocation2 + $0x28] sm:$0xf0] %v4626_v39  ;;  %v4617_v42 = vmul.f32 %v4600_v1, %v4594_v12  ;;  %v4620_v44 = vmul.f32 %v4612_v3, %v4591_v40  ;;  %5315 = vrot.lane.b32.xlu1 %v9447_v19, %s10624_s4  ;;  %v4704_v14 = vrot.slane %v7039_v27, %v7681_v57  ;;  %v7041_v39 = vld [vmem:[%s10499_s3 + $0x7] ss:$8 sm:$0xf] }
 0x786   :  { %4635 = vst [vmem:[#allocation2 + $0x30] sm:$0xf0] %v4627_v54  ;;  %5317 = vrot.lane.b32.xlu0 %v9453_v59, %s10624_s4 }
 0x787   :  { %v4625_v53 = vrot.slane %v4617_v42, 4  ;;  %v4628_v5 = vrot.slane %v4620_v44, 4  ;;  %v4448_v49 = vpop.permute.xlu1 %4447 }
 0x788   :  { %v4450_v61 = vpop.permute.xlu0 %4449  ;;  %v4455_v9 = vsel %vm10728_vm2, %v4446_v21, %v4448_v49 }
 0x789   :  { %v4454_v58 = vsel %vm10727_vm1, %v4448_v49, %v4450_v61  ;;  %4633 = vst [vmem:[#allocation2 + $0x20] sm:$0xf0] %v4625_v53  ;;  %4636 = vst [vmem:[#allocation2 + $0x38] sm:$0xf0] %v4628_v5  ;;  %v4480_v6 = vmul.f32 %v4466_v30, %v4455_v9  ;;  %5319 = vrot.lane.b32.xlu1 %v9455_v29, %s10624_s4  ;;  %v4796_v53 = vrot.slane %v7041_v39, %v7678_v56 }
 0x78a   :  { %v4481_v41 = vmul.f32 %v4470_v43, %v4454_v58  ;;  %5175 = vrot.lane.b32.xlu0 %v9445_v10, %s10643_s26  ;;  %vm10732_vm1 = vmmov %vm10731_vm8  ;;  %v4800_v49 = vrot.slane %v7041_v39, %v7681_v57 }
 0x78b   :  { %4484 = vst [vmem:[#allocation2 + $0x8] sm:$0xf] %v4480_v6  ;;  %v4452_v37 = vpop.permute.xlu1 %4451  ;;  %vm10733_vm2 = vmmov %vm10732_vm1 }
 0x78c   :  { %4485 = vst [vmem:[#allocation2 + $0x10] sm:$0xf] %v4481_v41  ;;  %v4542_v22 = vpop.permute.xlu0 %4541  ;;  %v4453_v31 = vsel %vm10729_vm13, %v4450_v61, %v4452_v37  ;;  %v4456_v28 = vsel %vm10730_vm15, %v4452_v37, %v4446_v21  ;;  %vm10734_vm13 = vmmov %vm10732_vm1  ;;  %vm10735_vm15 = vcmp.lt.s32.totalorder %v7675_v55, 18 }
 0x78d   :  { %v4479_v25 = vmul.f32 %v4462_v38, %v4456_v28  ;;  %v4482_v2 = vmul.f32 %v4474_v34, %v4453_v31  ;;  %5177 = vrot.lane.b32.xlu1 %v9447_v19, %s10643_s26 }
 0x78e   :  { %5179 = vrot.lane.b32.xlu0 %v9453_v59, %s10643_s26 }
 0x78f   :  { %4483 = vst [vmem:[#allocation2] sm:$0xf] %v4479_v25  ;;  %4486 = vst [vmem:[#allocation2 + $0x18] sm:$0xf] %v4482_v2  ;;  %v4544_v18 = vpop.permute.xlu1 %4543 }
 0x790   :  { %v4546_v46 = vpop.permute.xlu0 %4545  ;;  %v4551_v7 = vsel %vm10732_vm1, %v4542_v22, %v4544_v18 }
 0x791   :  { %v4550_v48 = vsel %vm10731_vm8, %v4544_v18, %v4546_v46  ;;  %v4576_v4 = vmul.f32 %v4562_v35, %v4551_v7  ;;  %5181 = vrot.lane.b32.xlu1 %v9455_v29, %s10643_s26  ;;  %vm10736_vm8 = vmmov %vm10735_vm15 }
 0x792   :  { %v4577_v51 = vmul.f32 %v4566_v23, %v4550_v48  ;;  %5271 = vrot.lane.b32.xlu0 %v9445_v10, %s10644_s7  ;;  %v5604_v54 = vld [vmem:[#allocation2 + $0x8] sm:$0xff]  ;;  %vm10737_vm1 = vmmov %vm10736_vm8  ;;  %v4792_v23 = vrot.slane %v7041_v39, %v7691_v60 }
 0x793   :  { %4580 = vst [vmem:[#allocation2 + $0x28] sm:$0xf] %v4576_v4  ;;  %v4548_v8 = vpop.permute.xlu1 %4547  ;;  %v5605_v2 = vld [vmem:[#allocation2 + $0x10] sm:$0xff] }
 0x794   :  { %4581 = vst [vmem:[#allocation2 + $0x30] sm:$0xf] %v4577_v51  ;;  %v4680_v63 = vpop.permute.xlu0 %4679  ;;  %v4549_v0 = vsel %vm10733_vm2, %v4546_v46, %v4548_v8  ;;  %v4552_v11 = vsel %vm10734_vm13, %v4548_v8, %v4542_v22  ;;  %vm10738_vm2 = vmmov %vm10737_vm1  ;;  %v4804_v46 = vrot.slane %v7041_v39, %v7694_v62  ;;  %vm10739_vm13 = vcmp.lt.s32.totalorder %v7675_v55, 30  ;;  %v7040_v39 = vld [vmem:[%s10499_s3 + $0x6] ss:$8 sm:$0xf] }
 0x795   :  { %v4575_v15 = vmul.f32 %v4558_v36, %v4552_v11  ;;  %v4578_v33 = vmul.f32 %v4570_v17, %v4549_v0  ;;  %5273 = vrot.lane.b32.xlu1 %v9447_v19, %s10644_s7  ;;  %v7038_v36 = vld [vmem:[%s10499_s3 + $0x4] ss:$8 sm:$0xf] }
 0x796   :  { %5275 = vrot.lane.b32.xlu0 %v9453_v59, %s10644_s7  ;;  %v5603_v58 = vld [vmem:[#allocation2] sm:$0xff]  ;;  %v5606_v9 = vld [vmem:[#allocation2 + $0x18] sm:$0xff]  ;;  %v4658_v0 = vrot.slane %v7038_v36, %v7678_v56 }
 0x797   :  { %4579 = vst [vmem:[#allocation2 + $0x20] sm:$0xf] %v4575_v15  ;;  %4582 = vst [vmem:[#allocation2 + $0x38] sm:$0xf] %v4578_v33  ;;  %v4682_v24 = vpop.permute.xlu1 %4681  ;;  %v4662_v15 = vrot.slane %v7038_v36, %v7681_v57 }
 0x798   :  { %v4684_v20 = vpop.permute.xlu0 %4683  ;;  %v4689_v1 = vsel %vm10736_vm8, %v4680_v63, %v4682_v24  ;;  %vm10741_vm8 = vmmov %vm10739_vm13 }
 0x799   :  { %v4688_v47 = vsel %vm10735_vm15, %v4682_v24, %v4684_v20  ;;  %v4714_v16 = vmul.f32 %v4700_v26, %v4689_v1  ;;  %5277 = vrot.lane.b32.xlu1 %v9455_v29, %s10644_s7  ;;  %vm10740_vm15 = vmmov %vm10739_vm13 }
 0x79a   :  { %v4715_v3 = vmul.f32 %v4704_v14, %v4688_v47  ;;  %5409 = vrot.lane.b32.xlu0 %v9445_v10, %s10629_s19  ;;  %v5608_v21 = vld [vmem:[#allocation2 + $0x28] sm:$0xff] }
 0x79b   :  { %v4722_v52 = vrot.slane %v4714_v16, 4  ;;  %v4686_v30 = vpop.permute.xlu1 %4685  ;;  %v7219_v42 = vpack.c.bf16 %v5608_v21, %v5604_v54  ;;  %v5609_v41 = vld [vmem:[#allocation2 + $0x30] sm:$0xff] }
 0x79c   :  { %v4723_v40 = vrot.slane %v4715_v3, 4  ;;  %v4776_v12 = vpop.permute.xlu0 %4775  ;;  %v4687_v44 = vsel %vm10737_vm1, %v4684_v20, %v4686_v30  ;;  %v4690_v43 = vsel %vm10738_vm2, %v4686_v30, %v4680_v63  ;;  %v7245_v7 = vpack.c.bf16 %v5609_v41, %v5605_v2  ;;  %vm10742_vm1 = vmmov %vm10741_vm8 }
 0x79d   :  { %4730 = vst [vmem:[#allocation2 + $0x48] sm:$0xf0] %v4722_v52  ;;  %v4713_v5 = vmul.f32 %v4696_v13, %v4690_v43  ;;  %v4716_v61 = vmul.f32 %v4708_v32, %v4687_v44  ;;  %5411 = vrot.lane.b32.xlu1 %v9447_v19, %s10629_s19  ;;  %7220 = vmatprep.subr.bf16.mxu0 %v7219_v42 }
 0x79e   :  { %4731 = vst [vmem:[#allocation2 + $0x50] sm:$0xf0] %v4723_v40  ;;  %5413 = vrot.lane.b32.xlu0 %v9453_v59, %s10629_s19  ;;  %v5607_v38 = vld [vmem:[#allocation2 + $0x20] sm:$0xff]  ;;  %v5610_v6 = vld [vmem:[#allocation2 + $0x38] sm:$0xff]  ;;  %v4654_v13 = vrot.slane %v7038_v36, %v7691_v60  ;;  %v4666_v32 = vrot.slane %v7038_v36, %v7694_v62  ;;  %v4758_v44 = vrot.slane %v7040_v39, %v7681_v57 }
 0x79f   :  { %v4721_v34 = vrot.slane %v4713_v5, 4  ;;  %v4724_v50 = vrot.slane %v4716_v61, 4  ;;  %v4778_v37 = vpop.permute.xlu1 %4777  ;;  %v7221_v31 = vpack.c.bf16 %v5607_v38, %v5603_v58  ;;  %v7243_v28 = vpack.c.bf16 %v5610_v6, %v5606_v9  ;;  %v7043_v6 = vld [vmem:[%s10499_s3 + $0x21] ss:$8 sm:$0xf] }
 0x7a0   :  { %v4780_v22 = vpop.permute.xlu0 %4779  ;;  %v4785_v25 = vsel %vm622_vm7, %v4776_v12, %v4778_v37  ;;  %v4762_v38 = vrot.slane %v7040_v39, %v7694_v62  ;;  %v4900_v36 = vrot.slane %v7043_v6, %v7694_v62 }
 0x7a1   :  { %v4784_v35 = vsel %vm622_vm7, %v4778_v37, %v4780_v22  ;;  %4729 = vst [vmem:[#allocation2 + $0x40] sm:$0xf0] %v4721_v34  ;;  %4732 = vst [vmem:[#allocation2 + $0x58] sm:$0xf0] %v4724_v50  ;;  %v4810_v18 = vmul.f32 %v4796_v53, %v4785_v25  ;;  %5415 = vrot.lane.b32.xlu1 %v9455_v29, %s10629_s19  ;;  %7222 = vmatpush1.bf16.msra.mxu0 %v7221_v31 }
 0x7a2   :  { %v4811_v48 = vmul.f32 %v4800_v49, %v4784_v35  ;;  %5505 = vrot.lane.b32.xlu0 %v9445_v10, %s10630_s17  ;;  %7244 = vmatprep.subr.bf16.mxu1 %v7243_v28  ;;  %v4750_v49 = vrot.slane %v7040_v39, %v7691_v60  ;;  %v4892_v37 = vrot.slane %v7043_v6, %v7678_v56 }
 0x7a3   :  { %v4818_v4 = vrot.slane %v4810_v18, 4  ;;  %7246 = vmatpush1.bf16.msra.mxu1 %v7245_v7  ;;  %v4782_v27 = vpop.permute.xlu1 %4781  ;;  %v4896_v35 = vrot.slane %v7043_v6, %v7681_v57  ;;  %v4888_v18 = vrot.slane %v7043_v6, %v7691_v60 }
 0x7a4   :  { %v4819_v51 = vrot.slane %v4811_v48, 4  ;;  %v4638_v17 = vpop.permute.xlu0 %4637  ;;  %v4783_v63 = vsel %vm622_vm7, %v4780_v22, %v4782_v27  ;;  %v4786_v8 = vsel %vm622_vm7, %v4782_v27, %v4776_v12  ;;  %v4754_v12 = vrot.slane %v7040_v39, %v7678_v56 }
 0x7a5   :  { %4826 = vst [vmem:[#allocation2 + $0x68] sm:$0xf0] %v4818_v4  ;;  %v4809_v11 = vmul.f32 %v4792_v23, %v4786_v8  ;;  %v4812_v26 = vmul.f32 %v4804_v46, %v4783_v63  ;;  %5507 = vrot.lane.b32.xlu1 %v9447_v19, %s10630_s17  ;;  %v7045_v4 = vld [vmem:[%s10499_s3 + $0x23] ss:$8 sm:$0xf] }
 0x7a6   :  { %4827 = vst [vmem:[#allocation2 + $0x70] sm:$0xf0] %v4819_v51  ;;  %5509 = vrot.lane.b32.xlu0 %v9453_v59, %s10630_s17 }
 0x7a7   :  { %v4817_v33 = vrot.slane %v4809_v11, 4  ;;  %v4820_v14 = vrot.slane %v4812_v26, 4  ;;  %v4640_v24 = vpop.permute.xlu1 %4639 }
 0x7a8   :  { %v4642_v20 = vpop.permute.xlu0 %4641  ;;  %v4647_v1 = vsel %vm10740_vm15, %v4638_v17, %v4640_v24 }
 0x7a9   :  { %v4646_v47 = vsel %vm10739_vm13, %v4640_v24, %v4642_v20  ;;  %4825 = vst [vmem:[#allocation2 + $0x60] sm:$0xf0] %v4817_v33  ;;  %4828 = vst [vmem:[#allocation2 + $0x78] sm:$0xf0] %v4820_v14  ;;  %v4672_v16 = vmul.f32 %v4658_v0, %v4647_v1  ;;  %5511 = vrot.lane.b32.xlu1 %v9455_v29, %s10630_s17 }
 0x7aa   :  { %v4673_v3 = vmul.f32 %v4662_v15, %v4646_v47  ;;  %5367 = vrot.lane.b32.xlu0 %v9445_v10, %s10645_s29  ;;  %v4988_v15 = vrot.slane %v7045_v4, %v7678_v56 }
 0x7ab   :  { %4676 = vst [vmem:[#allocation2 + $0x48] sm:$0xf] %v4672_v16  ;;  %v4644_v21 = vpop.permute.xlu1 %4643 }
 0x7ac   :  { %4677 = vst [vmem:[#allocation2 + $0x50] sm:$0xf] %v4673_v3  ;;  %v4734_v54 = vpop.permute.xlu0 %4733  ;;  %v4645_v52 = vsel %vm10741_vm8, %v4642_v20, %v4644_v21  ;;  %v4648_v40 = vsel %vm10742_vm1, %v4644_v21, %v4638_v17  ;;  %v4992_v20 = vrot.slane %v7045_v4, %v7681_v57  ;;  %vm10747_vm8 = vcmp.lt.s32.totalorder %v7675_v55, 114 }
 0x7ad   :  { %v4671_v30 = vmul.f32 %v4654_v13, %v4648_v40  ;;  %v4674_v42 = vmul.f32 %v4666_v32, %v4645_v52  ;;  %5369 = vrot.lane.b32.xlu1 %v9447_v19, %s10645_s29  ;;  %vm10748_vm1 = vmmov %vm10747_vm8 }
 0x7ae   :  { %5371 = vrot.lane.b32.xlu0 %v9453_v59, %s10645_s29 }
 0x7af   :  { %4675 = vst [vmem:[#allocation2 + $0x40] sm:$0xf] %v4671_v30  ;;  %4678 = vst [vmem:[#allocation2 + $0x58] sm:$0xf] %v4674_v42  ;;  %v4736_v53 = vpop.permute.xlu1 %4735  ;;  %v4996_v30 = vrot.slane %v7045_v4, %v7694_v62 }
 0x7b0   :  { %v4738_v43 = vpop.permute.xlu0 %4737  ;;  %v4743_v61 = vsel %vm578_vm9, %v4734_v54, %v4736_v53 }
 0x7b1   :  { %v4742_v5 = vsel %vm578_vm9, %v4736_v53, %v4738_v43  ;;  %v4768_v58 = vmul.f32 %v4754_v12, %v4743_v61  ;;  %5373 = vrot.lane.b32.xlu1 %v9455_v29, %s10645_s29  ;;  %v4984_v12 = vrot.slane %v7045_v4, %v7691_v60  ;;  %v7042_v53 = vld [vmem:[%s10499_s3 + $0x20] ss:$8 sm:$0xf] }
 0x7b2   :  { %v4769_v9 = vmul.f32 %v4758_v44, %v4742_v5  ;;  %5463 = vrot.lane.b32.xlu0 %v9445_v10, %s10646_s8  ;;  %v5612_v51 = vld [vmem:[#allocation2 + $0x48] sm:$0xff] }
 0x7b3   :  { %4772 = vst [vmem:[#allocation2 + $0x68] sm:$0xf] %v4768_v58  ;;  %v4740_v34 = vpop.permute.xlu1 %4739  ;;  %v5613_v40 = vld [vmem:[#allocation2 + $0x50] sm:$0xff] }
 0x7b4   :  { %4773 = vst [vmem:[#allocation2 + $0x70] sm:$0xf] %v4769_v9  ;;  %v4872_v41 = vpop.permute.xlu0 %4871  ;;  %v4741_v50 = vsel %vm578_vm9, %v4738_v43, %v4740_v34  ;;  %v4744_v22 = vsel %vm578_vm9, %v4740_v34, %v4734_v54  ;;  %v4854_v34 = vrot.slane %v7042_v53, %v7681_v57 }
 0x7b5   :  { %v4767_v31 = vmul.f32 %v4750_v49, %v4744_v22  ;;  %v4770_v28 = vmul.f32 %v4762_v38, %v4741_v50  ;;  %5465 = vrot.lane.b32.xlu1 %v9447_v19, %s10646_s8 }
 0x7b6   :  { %5467 = vrot.lane.b32.xlu0 %v9453_v59, %s10646_s8  ;;  %v5611_v24 = vld [vmem:[#allocation2 + $0x40] sm:$0xff]  ;;  %v5614_v47 = vld [vmem:[#allocation2 + $0x58] sm:$0xff] }
 0x7b7   :  { %4771 = vst [vmem:[#allocation2 + $0x60] sm:$0xf] %v4767_v31  ;;  %4774 = vst [vmem:[#allocation2 + $0x78] sm:$0xf] %v4770_v28  ;;  %v4874_v2 = vpop.permute.xlu1 %4873 }
 0x7b8   :  { %v4876_v25 = vpop.permute.xlu0 %4875  ;;  %v4881_v46 = vsel %vm722_vm10, %v4872_v41, %v4874_v2 }
 0x7b9   :  { %v4880_v23 = vsel %vm722_vm10, %v4874_v2, %v4876_v25  ;;  %v4906_v48 = vmul.f32 %v4892_v37, %v4881_v46  ;;  %5469 = vrot.lane.b32.xlu1 %v9455_v29, %s10646_s8  ;;  %v4858_v46 = vrot.slane %v7042_v53, %v7694_v62 }
 0x7ba   :  { %v4907_v7 = vmul.f32 %v4896_v35, %v4880_v23  ;;  %5559 = vrot.lane.b32.xlu0 %v9445_v10, %s10647_s22  ;;  %v5616_v17 = vld [vmem:[#allocation2 + $0x68] sm:$0xff]  ;;  %v4846_v23 = vrot.slane %v7042_v53, %v7691_v60 }
 0x7bb   :  { %v4914_v27 = vrot.slane %v4906_v48, 4  ;;  %v4878_v0 = vpop.permute.xlu1 %4877  ;;  %v7223_v11 = vpack.c.bf16 %v5616_v17, %v5612_v51  ;;  %v5617_v16 = vld [vmem:[#allocation2 + $0x70] sm:$0xff] }
 0x7bc   :  { %v4915_v63 = vrot.slane %v4907_v7, 4  ;;  %v4968_v8 = vpop.permute.xlu0 %4967  ;;  %v4879_v26 = vsel %vm722_vm10, %v4876_v25, %v4878_v0  ;;  %v4882_v10 = vsel %vm722_vm10, %v4878_v0, %v4872_v41  ;;  %v7249_v43 = vpack.c.bf16 %v5617_v16, %v5613_v40 }
 0x7bd   :  { %4922 = vst [vmem:[#allocation2 + $0x88] sm:$0xf0] %v4914_v27  ;;  %v4905_v33 = vmul.f32 %v4888_v18, %v4882_v10  ;;  %v4908_v14 = vmul.f32 %v4900_v36, %v4879_v26  ;;  %5561 = vrot.lane.b32.xlu1 %v9447_v19, %s10647_s22  ;;  %7224 = vmatprep.subr.bf16.mxu0 %v7223_v11  ;;  %v7044_v18 = vld [vmem:[%s10499_s3 + $0x22] ss:$8 sm:$0xf]  ;;  %vm10743_vm10 = vcmp.lt.s32.totalorder %v7675_v55, 2 }
 0x7be   :  { %4923 = vst [vmem:[#allocation2 + $0x90] sm:$0xf0] %v4915_v63  ;;  %5563 = vrot.lane.b32.xlu0 %v9453_v59, %s10647_s22  ;;  %v5615_v1 = vld [vmem:[#allocation2 + $0x60] sm:$0xff]  ;;  %v5618_v13 = vld [vmem:[#allocation2 + $0x78] sm:$0xff]  ;;  %v4850_v41 = vrot.slane %v7042_v53, %v7678_v56  ;;  %v4946_v27 = vrot.slane %v7044_v18, %v7678_v56  ;;  %v4950_v63 = vrot.slane %v7044_v18, %v7681_v57  ;;  %vm10744_vm2 = vmmov %vm10743_vm10 }
 0x7bf   :  { %v4913_v3 = vrot.slane %v4905_v33, 4  ;;  %v4916_v32 = vrot.slane %v4908_v14, 4  ;;  %v4970_v54 = vpop.permute.xlu1 %4969  ;;  %v7225_v21 = vpack.c.bf16 %v5615_v1, %v5611_v24  ;;  %v7247_v52 = vpack.c.bf16 %v5618_v13, %v5614_v47  ;;  %vm10745_vm13 = vmmov %vm10744_vm2 }
 0x7c0   :  { %v4972_v39 = vpop.permute.xlu0 %4971  ;;  %v4977_v19 = vsel %vm822_vm11, %v4968_v8, %v4970_v54  ;;  %v4942_v33 = vrot.slane %v7044_v18, %v7691_v60  ;;  %v4954_v14 = vrot.slane %v7044_v18, %v7694_v62  ;;  %vm10746_vm15 = vmmov %vm10744_vm2 }
 0x7c1   :  { %v4976_v59 = vsel %vm822_vm11, %v4970_v54, %v4972_v39  ;;  %4921 = vst [vmem:[#allocation2 + $0x80] sm:$0xf0] %v4913_v3  ;;  %4924 = vst [vmem:[#allocation2 + $0x98] sm:$0xf0] %v4916_v32  ;;  %v5002_v42 = vmul.f32 %v4988_v15, %v4977_v19  ;;  %5565 = vrot.lane.b32.xlu1 %v9455_v29, %s10647_s22  ;;  %7226 = vmatpush1.bf16.msra.mxu0 %v7225_v21 }
 0x7c2   :  { %v5003_v44 = vmul.f32 %v4992_v20, %v4976_v59  ;;  %7248 = vmatprep.subr.bf16.mxu1 %v7247_v52  ;;  %v7046_v20 = vld [vmem:[%s10499_s3 + $0x25] ss:$8 sm:$0xf] }
 0x7c3   :  { %v5010_v5 = vrot.slane %v5002_v42, 4  ;;  %7250 = vmatpush1.bf16.msra.mxu1 %v7249_v43  ;;  %v4974_v58 = vpop.permute.xlu1 %4973  ;;  %v5042_v32 = vrot.slane %v7046_v20, %v7691_v60  ;;  %v7048_v43 = vld [vmem:[%s10499_s3 + $0x27] ss:$8 sm:$0xf] }
 0x7c4   :  { %v5011_v61 = vrot.slane %v5003_v44, 4  ;;  %v4830_v49 = vpop.permute.xlu0 %4829  ;;  %v4975_v9 = vsel %vm822_vm11, %v4972_v39, %v4974_v58  ;;  %v4978_v38 = vsel %vm822_vm11, %v4974_v58, %v4968_v8  ;;  %v5046_v39 = vrot.slane %v7046_v20, %v7678_v56 }
 0x7c5   :  { %5018 = vst [vmem:[#allocation2 + $0xa8] sm:$0xf0] %v5010_v5  ;;  %v5001_v29 = vmul.f32 %v4984_v12, %v4978_v38  ;;  %v5004_v6 = vmul.f32 %v4996_v30, %v4975_v9  ;;  %v5050_v12 = vrot.slane %v7046_v20, %v7681_v57  ;;  %v5054_v30 = vrot.slane %v7046_v20, %v7694_v62 }
 0x7c6   :  { %5019 = vst [vmem:[#allocation2 + $0xb0] sm:$0xf0] %v5011_v61 }
 0x7c7   :  { %v5009_v50 = vrot.slane %v5001_v29, 4  ;;  %v5012_v22 = vrot.slane %v5004_v6, 4  ;;  %v4832_v31 = vpop.permute.xlu1 %4831 }
 0x7c8   :  { %v4834_v37 = vpop.permute.xlu0 %4833  ;;  %v4839_v35 = vsel %vm678_vm12, %v4830_v49, %v4832_v31 }
 0x7c9   :  { %v4838_v28 = vsel %vm678_vm12, %v4832_v31, %v4834_v37  ;;  %5017 = vst [vmem:[#allocation2 + $0xa0] sm:$0xf0] %v5009_v50  ;;  %5020 = vst [vmem:[#allocation2 + $0xb8] sm:$0xf0] %v5012_v22  ;;  %v4864_v25 = vmul.f32 %v4850_v41, %v4839_v35  ;;  %v5138_v41 = vrot.slane %v7048_v43, %v7691_v60 }
 0x7ca   :  { %v4865_v2 = vmul.f32 %v4854_v34, %v4838_v28  ;;  %v5142_v34 = vrot.slane %v7048_v43, %v7678_v56 }
 0x7cb   :  { %4868 = vst [vmem:[#allocation2 + $0x88] sm:$0xf] %v4864_v25  ;;  %v4836_v7 = vpop.permute.xlu1 %4835 }
 0x7cc   :  { %4869 = vst [vmem:[#allocation2 + $0x90] sm:$0xf] %v4865_v2  ;;  %v4926_v48 = vpop.permute.xlu0 %4925  ;;  %v4837_v36 = vsel %vm678_vm12, %v4834_v37, %v4836_v7  ;;  %v4840_v4 = vsel %vm678_vm12, %v4836_v7, %v4830_v49 }
 0x7cd   :  { %v4863_v51 = vmul.f32 %v4846_v23, %v4840_v4  ;;  %v4866_v17 = vmul.f32 %v4858_v46, %v4837_v36 }
 0x7cf   :  { %4867 = vst [vmem:[#allocation2 + $0x80] sm:$0xf] %v4863_v51  ;;  %4870 = vst [vmem:[#allocation2 + $0x98] sm:$0xf] %v4866_v17  ;;  %v4928_v0 = vpop.permute.xlu1 %4927  ;;  %v5146_v51 = vrot.slane %v7048_v43, %v7681_v57 }
 0x7d0   :  { %v4930_v8 = vpop.permute.xlu0 %4929  ;;  %v4935_v26 = vsel %vm10744_vm2, %v4926_v48, %v4928_v0  ;;  %vm10750_vm2 = vmmov %vm10748_vm1 }
 0x7d1   :  { %v4934_v11 = vsel %vm10743_vm10, %v4928_v0, %v4930_v8  ;;  %v4960_v10 = vmul.f32 %v4946_v27, %v4935_v26  ;;  %vm10749_vm10 = vmmov %vm10748_vm1 }
 0x7d2   :  { %v4961_v15 = vmul.f32 %v4950_v63, %v4934_v11  ;;  %v5620_v42 = vld [vmem:[#allocation2 + $0x88] sm:$0xff]  ;;  %v5150_v63 = vrot.slane %v7048_v43, %v7694_v62 }
 0x7d3   :  { %4964 = vst [vmem:[#allocation2 + $0xa8] sm:$0xf] %v4960_v10  ;;  %v4932_v47 = vpop.permute.xlu1 %4931 }
 0x7d4   :  { %4965 = vst [vmem:[#allocation2 + $0xb0] sm:$0xf] %v4961_v15  ;;  %v5026_v24 = vpop.permute.xlu0 %5025  ;;  %v4933_v1 = vsel %vm10745_vm13, %v4930_v8, %v4932_v47  ;;  %v4936_v13 = vsel %vm10746_vm15, %v4932_v47, %v4926_v48  ;;  %v5621_v48 = vld [vmem:[#allocation2 + $0x90] sm:$0xff]  ;;  %vm10751_vm13 = vcmp.lt.s32.totalorder %v7675_v55, 126 }
 0x7d5   :  { %v4959_v16 = vmul.f32 %v4942_v33, %v4936_v13  ;;  %v4962_v3 = vmul.f32 %v4954_v14, %v4933_v1  ;;  %v7047_v8 = vld [vmem:[%s10499_s3 + $0x26] ss:$8 sm:$0xf]  ;;  %vm10752_vm15 = vmmov %vm10751_vm13 }
 0x7d6   :  { %v5619_v50 = vld [vmem:[#allocation2 + $0x80] sm:$0xff]  ;;  %v5622_v31 = vld [vmem:[#allocation2 + $0x98] sm:$0xff]  ;;  %v5100_v47 = vrot.slane %v7047_v8, %v7678_v56 }
 0x7d7   :  { %4963 = vst [vmem:[#allocation2 + $0xa0] sm:$0xf] %v4959_v16  ;;  %4966 = vst [vmem:[#allocation2 + $0xb8] sm:$0xf] %v4962_v3  ;;  %v5028_v21 = vpop.permute.xlu1 %5027 }
 0x7d8   :  { %v5030_v54 = vpop.permute.xlu0 %5029  ;;  %v5035_v59 = vsel %vm882_vm14, %v5026_v24, %v5028_v21 }
 0x7d9   :  { %v5034_v52 = vsel %vm882_vm14, %v5028_v21, %v5030_v54  ;;  %v5059_v19 = vmul.f32 %v5042_v32, %v5035_v59  ;;  %v5108_v59 = vrot.slane %v7047_v8, %v7694_v62 }
 0x7da   :  { %v5060_v40 = vmul.f32 %v5046_v39, %v5034_v52  ;;  %v5624_v44 = vld [vmem:[#allocation2 + $0xa8] sm:$0xff]  ;;  %v5104_v52 = vrot.slane %v7047_v8, %v7681_v57 }
 0x7db   :  { %v5067_v53 = vrot.slane %v5059_v19, 4  ;;  %v5032_v49 = vpop.permute.xlu1 %5031  ;;  %v7227_v58 = vpack.c.bf16 %v5624_v44, %v5620_v42  ;;  %v5625_v22 = vld [vmem:[#allocation2 + $0xb0] sm:$0xff] }
 0x7dc   :  { %v5068_v5 = vrot.slane %v5060_v40, 4  ;;  %v5122_v61 = vpop.permute.xlu0 %5121  ;;  %v5033_v9 = vsel %vm882_vm14, %v5030_v54, %v5032_v49  ;;  %v5036_v38 = vsel %vm882_vm14, %v5032_v49, %v5026_v24  ;;  %v7253_v4 = vpack.c.bf16 %v5625_v22, %v5621_v48  ;;  %v7050_v19 = vld [vmem:[%s10499_s3 + $0x41] ss:$8 sm:$0xf] }
 0x7dd   :  { %5075 = vst [vmem:[#allocation2 + $0xc0] sm:$0xf0] %v5067_v53  ;;  %v5061_v29 = vmul.f32 %v5050_v12, %v5033_v9  ;;  %v5062_v6 = vmul.f32 %v5054_v30, %v5036_v38  ;;  %7228 = vmatprep.subr.bf16.mxu0 %v7227_v58  ;;  %v5096_v24 = vrot.slane %v7047_v8, %v7691_v60 }
 0x7de   :  { %5076 = vst [vmem:[#allocation2 + $0xc8] sm:$0xf0] %v5068_v5  ;;  %v5623_v37 = vld [vmem:[#allocation2 + $0xa0] sm:$0xff]  ;;  %v5626_v28 = vld [vmem:[#allocation2 + $0xb8] sm:$0xff]  ;;  %v5234_v53 = vrot.slane %v7050_v19, %v7691_v60  ;;  %v5238_v5 = vrot.slane %v7050_v19, %v7678_v56 }
 0x7df   :  { %v5069_v35 = vrot.slane %v5061_v29, 4  ;;  %v5070_v25 = vrot.slane %v5062_v6, 4  ;;  %v5124_v23 = vpop.permute.xlu1 %5123  ;;  %v7229_v46 = vpack.c.bf16 %v5623_v37, %v5619_v50  ;;  %v7251_v18 = vpack.c.bf16 %v5626_v28, %v5622_v31  ;;  %v7052_v50 = vld [vmem:[%s10499_s3 + $0x43] ss:$8 sm:$0xf] }
 0x7e0   :  { %v5126_v2 = vpop.permute.xlu0 %5125  ;;  %v5131_v36 = vsel %vm10748_vm1, %v5122_v61, %v5124_v23  ;;  %v5242_v6 = vrot.slane %v7050_v19, %v7681_v57 }
 0x7e1   :  { %v5130_v7 = vsel %vm10747_vm8, %v5124_v23, %v5126_v2  ;;  %5077 = vst [vmem:[#allocation2 + $0xd0] sm:$0xf0] %v5069_v35  ;;  %5078 = vst [vmem:[#allocation2 + $0xd8] sm:$0xf0] %v5070_v25  ;;  %v5155_v17 = vmul.f32 %v5138_v41, %v5131_v36  ;;  %7230 = vmatpush1.bf16.msra.mxu0 %v7229_v46  ;;  %7252 = vmatprep.subr.bf16.mxu1 %v7251_v18 }
 0x7e2   :  { %v5156_v27 = vmul.f32 %v5142_v34, %v5130_v7  ;;  %7254 = vmatpush1.bf16.msra.mxu1 %v7253_v4  ;;  %vm10753_vm8 = vmmov %vm10751_vm13  ;;  %v5246_v41 = vrot.slane %v7050_v19, %v7694_v62  ;;  %v5330_v4 = vrot.slane %v7052_v50, %v7691_v60 }
 0x7e3   :  { %v5163_v0 = vrot.slane %v5155_v17, 4  ;;  %v5128_v10 = vpop.permute.xlu1 %5127  ;;  %vm10754_vm1 = vmmov %vm10753_vm8 }
 0x7e4   :  { %v5164_v11 = vrot.slane %v5156_v27, 4  ;;  %v5080_v26 = vpop.permute.xlu0 %5079  ;;  %v5129_v15 = vsel %vm10749_vm10, %v5126_v2, %v5128_v10  ;;  %v5132_v33 = vsel %vm10750_vm2, %v5128_v10, %v5122_v61  ;;  %v5627_v37 = vld [vmem:[#allocation2 + $0xc0] sm:$0xff]  ;;  %vm10755_vm10 = vcmp.lt.s32.totalorder %v7675_v55, 110 }
 0x7e5   :  { %5171 = vst [vmem:[#allocation2 + $0xe0] sm:$0xf0] %v5163_v0  ;;  %v5157_v14 = vmul.f32 %v5146_v51, %v5129_v15  ;;  %v5158_v20 = vmul.f32 %v5150_v63, %v5132_v33  ;;  %v5628_v34 = vld [vmem:[#allocation2 + $0xc8] sm:$0xff]  ;;  %v5334_v51 = vrot.slane %v7052_v50, %v7678_v56  ;;  %vm10756_vm2 = vmmov %vm10755_vm10 }
 0x7e6   :  { %5172 = vst [vmem:[#allocation2 + $0xe8] sm:$0xf0] %v5164_v11 }
 0x7e7   :  { %v5165_v1 = vrot.slane %v5157_v14, 4  ;;  %v5166_v13 = vrot.slane %v5158_v20, 4  ;;  %v5082_v3 = vpop.permute.xlu1 %5081 }
 0x7e8   :  { %v5084_v16 = vpop.permute.xlu0 %5083  ;;  %v5089_v39 = vsel %vm10752_vm15, %v5080_v26, %v5082_v3  ;;  %v5630_v17 = vld [vmem:[#allocation2 + $0xd8] sm:$0xff]  ;;  %v5629_v63 = vld [vmem:[#allocation2 + $0xd0] sm:$0xff]  ;;  %vm10758_vm15 = vmmov %vm10756_vm2 }
 0x7e9   :  { %v5088_v32 = vsel %vm10751_vm13, %v5082_v3, %v5084_v16  ;;  %5173 = vst [vmem:[#allocation2 + $0xf0] sm:$0xf0] %v5165_v1  ;;  %5174 = vst [vmem:[#allocation2 + $0xf8] sm:$0xf0] %v5166_v13  ;;  %v5113_v54 = vmul.f32 %v5096_v24, %v5089_v39  ;;  %v5338_v1 = vrot.slane %v7052_v50, %v7681_v57 }
 0x7ea   :  { %v5114_v21 = vmul.f32 %v5100_v47, %v5088_v32  ;;  %v5342_v13 = vrot.slane %v7052_v50, %v7694_v62  ;;  %vm10757_vm13 = vmmov %vm10756_vm2 }
 0x7eb   :  { %5117 = vst [vmem:[#allocation2 + $0xe0] sm:$0xf] %v5113_v54  ;;  %v5086_v12 = vpop.permute.xlu1 %5085 }
 0x7ec   :  { %5118 = vst [vmem:[#allocation2 + $0xe8] sm:$0xf] %v5114_v21  ;;  %v5218_v40 = vpop.permute.xlu0 %5217  ;;  %v5087_v30 = vsel %vm10753_vm8, %v5084_v16, %v5086_v12  ;;  %v5090_v42 = vsel %vm10754_vm1, %v5086_v12, %v5080_v26  ;;  %v7049_v16 = vld [vmem:[%s10499_s3 + $0x40] ss:$8 sm:$0xf]  ;;  %vm10759_vm8 = vcmp.lt.s32.totalorder %v7675_v55, 97 }
 0x7ed   :  { %v5115_v44 = vmul.f32 %v5104_v52, %v5087_v30  ;;  %v5116_v43 = vmul.f32 %v5108_v59, %v5090_v42  ;;  %v5196_v12 = vrot.slane %v7049_v16, %v7678_v56  ;;  %vm10760_vm1 = vmmov %vm10759_vm8 }
 0x7ef   :  { %5119 = vst [vmem:[#allocation2 + $0xf0] sm:$0xf] %v5115_v44  ;;  %5120 = vst [vmem:[#allocation2 + $0xf8] sm:$0xf] %v5116_v43  ;;  %v5220_v49 = vpop.permute.xlu1 %5219 }
 0x7f0   :  { %v5222_v61 = vpop.permute.xlu0 %5221  ;;  %v5227_v9 = vsel %vm1082_vm6, %v5218_v40, %v5220_v49 }
 0x7f1   :  { %v5226_v58 = vsel %vm1082_vm6, %v5220_v49, %v5222_v61  ;;  %v5251_v38 = vmul.f32 %v5234_v53, %v5227_v9  ;;  %v5204_v9 = vrot.slane %v7049_v16, %v7694_v62 }
 0x7f2   :  { %v5252_v29 = vmul.f32 %v5238_v5, %v5226_v58  ;;  %v5631_v31 = vld [vmem:[#allocation2 + $0xe0] sm:$0xff]  ;;  %v5200_v58 = vrot.slane %v7049_v16, %v7681_v57 }
 0x7f3   :  { %v5632_v22 = vld [vmem:[#allocation2 + $0xe8] sm:$0xff]  ;;  %v5259_v28 = vrot.slane %v5251_v38, 4  ;;  %v5224_v2 = vpop.permute.xlu1 %5223  ;;  %v7233_v46 = vpack.c.bf16 %v5631_v31, %v5627_v37 }
 0x7f4   :  { %v5260_v35 = vrot.slane %v5252_v29, 4  ;;  %v5314_v25 = vpop.permute.xlu0 %5313  ;;  %v7231_v23 = vpack.c.bf16 %v5632_v22, %v5628_v34  ;;  %v5225_v18 = vsel %vm1082_vm6, %v5222_v61, %v5224_v2  ;;  %v5228_v48 = vsel %vm1082_vm6, %v5224_v2, %v5218_v40  ;;  %v7051_v38 = vld [vmem:[%s10499_s3 + $0x42] ss:$8 sm:$0xf] }
 0x7f5   :  { %5267 = vst [vmem:[#allocation2 + $0x100] sm:$0xf0] %v5259_v28  ;;  %v5253_v7 = vmul.f32 %v5242_v6, %v5225_v18  ;;  %v5254_v36 = vmul.f32 %v5246_v41, %v5228_v48  ;;  %v5192_v40 = vrot.slane %v7049_v16, %v7691_v60  ;;  %v5288_v37 = vrot.slane %v7051_v38, %v7691_v60 }
 0x7f6   :  { %5268 = vst [vmem:[#allocation2 + $0x108] sm:$0xf0] %v5260_v35  ;;  %7232 = vmatprep.subr.bf16.mxu0 %v7231_v23  ;;  %v5634_v27 = vld [vmem:[#allocation2 + $0xf8] sm:$0xff]  ;;  %v5633_v8 = vld [vmem:[#allocation2 + $0xf0] sm:$0xff]  ;;  %v5292_v31 = vrot.slane %v7051_v38, %v7678_v56  ;;  %v5296_v18 = vrot.slane %v7051_v38, %v7681_v57  ;;  %v5300_v48 = vrot.slane %v7051_v38, %v7694_v62 }
 0x7f7   :  { %7234 = vmatpush1.bf16.msra.mxu0 %v7233_v46  ;;  %v5261_v0 = vrot.slane %v5253_v7, 4  ;;  %v5262_v11 = vrot.slane %v5254_v36, 4  ;;  %v5316_v10 = vpop.permute.xlu1 %5315  ;;  %v7255_v15 = vpack.c.bf16 %v5634_v27, %v5630_v17  ;;  %v7257_v33 = vpack.c.bf16 %v5633_v8, %v5629_v63  ;;  %v7054_v7 = vld [vmem:[%s10499_s3 + $0x45] ss:$8 sm:$0xf] }
 0x7f8   :  { %v5318_v26 = vpop.permute.xlu0 %5317  ;;  %v5323_v20 = vsel %vm10756_vm2, %v5314_v25, %v5316_v10  ;;  %v5426_v8 = vrot.slane %v7054_v7, %v7691_v60  ;;  %vm10762_vm2 = vmmov %vm10760_vm1 }
 0x7f9   :  { %v5322_v14 = vsel %vm10755_vm10, %v5316_v10, %v5318_v26  ;;  %5269 = vst [vmem:[#allocation2 + $0x110] sm:$0xf0] %v5261_v0  ;;  %5270 = vst [vmem:[#allocation2 + $0x118] sm:$0xf0] %v5262_v11  ;;  %v5347_v24 = vmul.f32 %v5330_v4, %v5323_v20  ;;  %7256 = vmatprep.subr.bf16.mxu1 %v7255_v15  ;;  %v5430_v0 = vrot.slane %v7054_v7, %v7678_v56 }
 0x7fa   :  { %v5348_v47 = vmul.f32 %v5334_v51, %v5322_v14  ;;  %7258 = vmatpush1.bf16.msra.mxu1 %v7257_v33  ;;  %v5434_v20 = vrot.slane %v7054_v7, %v7681_v57  ;;  %vm10761_vm10 = vmmov %vm10760_vm1 }
 0x7fb   :  { %v5355_v3 = vrot.slane %v5347_v24, 4  ;;  %v5320_v54 = vpop.permute.xlu1 %5319  ;;  %v5438_v24 = vrot.slane %v7054_v7, %v7694_v62 }
 0x7fc   :  { %v5356_v32 = vrot.slane %v5348_v47, 4  ;;  %v5176_v39 = vpop.permute.xlu0 %5175  ;;  %v5321_v21 = vsel %vm10757_vm13, %v5318_v26, %v5320_v54  ;;  %v5324_v52 = vsel %vm10758_vm15, %v5320_v54, %v5314_v25  ;;  %vm10763_vm13 = vcmp.lt.s32.totalorder %v7675_v55, 95 }
 0x7fd   :  { %5363 = vst [vmem:[#allocation2 + $0x120] sm:$0xf0] %v5355_v3  ;;  %v5349_v59 = vmul.f32 %v5338_v1, %v5321_v21  ;;  %v5350_v19 = vmul.f32 %v5342_v13, %v5324_v52  ;;  %v7056_v1 = vld [vmem:[%s10499_s3 + $0x47] ss:$8 sm:$0xf]  ;;  %vm10764_vm15 = vmmov %vm10763_vm13 }
 0x7fe   :  { %5364 = vst [vmem:[#allocation2 + $0x128] sm:$0xf0] %v5356_v32 }
 0x7ff   :  { %v5357_v30 = vrot.slane %v5349_v59, 4  ;;  %v5358_v42 = vrot.slane %v5350_v19, 4  ;;  %v5178_v43 = vpop.permute.xlu1 %5177 }
 0x800   :  { %v5180_v44 = vpop.permute.xlu0 %5179  ;;  %v5185_v5 = vsel %vm1038_vm3, %v5176_v39, %v5178_v43 }
 0x801   :  { %v5184_v53 = vsel %vm1038_vm3, %v5178_v43, %v5180_v44  ;;  %5365 = vst [vmem:[#allocation2 + $0x130] sm:$0xf0] %v5357_v30  ;;  %5366 = vst [vmem:[#allocation2 + $0x138] sm:$0xf0] %v5358_v42  ;;  %v5209_v61 = vmul.f32 %v5192_v40, %v5185_v5  ;;  %v5522_v42 = vrot.slane %v7056_v1, %v7691_v60 }
 0x802   :  { %v5210_v49 = vmul.f32 %v5196_v12, %v5184_v53 }
 0x803   :  { %5213 = vst [vmem:[#allocation2 + $0x100] sm:$0xf] %v5209_v61  ;;  %v5182_v6 = vpop.permute.xlu1 %5181 }
 0x804   :  { %5214 = vst [vmem:[#allocation2 + $0x108] sm:$0xf] %v5210_v49  ;;  %v5272_v29 = vpop.permute.xlu0 %5271  ;;  %v5183_v41 = vsel %vm1038_vm3, %v5180_v44, %v5182_v6  ;;  %v5186_v34 = vsel %vm1038_vm3, %v5182_v6, %v5176_v39  ;;  %v5526_v44 = vrot.slane %v7056_v1, %v7678_v56 }
 0x805   :  { %v5211_v50 = vmul.f32 %v5200_v58, %v5183_v41  ;;  %v5212_v22 = vmul.f32 %v5204_v9, %v5186_v34 }
 0x807   :  { %5215 = vst [vmem:[#allocation2 + $0x110] sm:$0xf] %v5211_v50  ;;  %5216 = vst [vmem:[#allocation2 + $0x118] sm:$0xf] %v5212_v22  ;;  %v5274_v35 = vpop.permute.xlu1 %5273 }
 0x808   :  { %v5276_v28 = vpop.permute.xlu0 %5275  ;;  %v5281_v2 = vsel %vm1138_vm4, %v5272_v29, %v5274_v35 }
 0x809   :  { %v5280_v25 = vsel %vm1138_vm4, %v5274_v35, %v5276_v28  ;;  %v5305_v23 = vmul.f32 %v5288_v37, %v5281_v2  ;;  %v5530_v37 = vrot.slane %v7056_v1, %v7681_v57 }
 0x80a   :  { %v5306_v46 = vmul.f32 %v5292_v31, %v5280_v25  ;;  %v5635_v16 = vld [vmem:[#allocation2 + $0x100] sm:$0xff]  ;;  %v5534_v31 = vrot.slane %v7056_v1, %v7694_v62 }
 0x80b   :  { %5309 = vst [vmem:[#allocation2 + $0x120] sm:$0xf] %v5305_v23  ;;  %v5278_v4 = vpop.permute.xlu1 %5277  ;;  %v5636_v47 = vld [vmem:[#allocation2 + $0x108] sm:$0xff] }
 0x80c   :  { %5310 = vst [vmem:[#allocation2 + $0x128] sm:$0xf] %v5306_v46  ;;  %v5410_v36 = vpop.permute.xlu0 %5409  ;;  %v5279_v51 = vsel %vm1138_vm4, %v5276_v28, %v5278_v4  ;;  %v5282_v17 = vsel %vm1138_vm4, %v5278_v4, %v5272_v29  ;;  %v7053_v28 = vld [vmem:[%s10499_s3 + $0x44] ss:$8 sm:$0xf] }
 0x80d   :  { %v5307_v27 = vmul.f32 %v5296_v18, %v5279_v51  ;;  %v5308_v63 = vmul.f32 %v5300_v48, %v5282_v17  ;;  %v5388_v4 = vrot.slane %v7053_v28, %v7678_v56 }
 0x80e   :  { %v5638_v43 = vld [vmem:[#allocation2 + $0x118] sm:$0xff]  ;;  %v5637_v5 = vld [vmem:[#allocation2 + $0x110] sm:$0xff] }
 0x80f   :  { %5311 = vst [vmem:[#allocation2 + $0x130] sm:$0xf] %v5307_v27  ;;  %5312 = vst [vmem:[#allocation2 + $0x138] sm:$0xf] %v5308_v63  ;;  %v5412_v26 = vpop.permute.xlu1 %5411 }
 0x810   :  { %v5414_v11 = vpop.permute.xlu0 %5413  ;;  %v5419_v15 = vsel %vm10760_vm1, %v5410_v36, %v5412_v26 }
 0x811   :  { %v5418_v10 = vsel %vm10759_vm8, %v5412_v26, %v5414_v11  ;;  %v5443_v33 = vmul.f32 %v5426_v8, %v5419_v15  ;;  %vm10765_vm8 = vmmov %vm10763_vm13  ;;  %v5396_v15 = vrot.slane %v7053_v28, %v7694_v62 }
 0x812   :  { %v5444_v14 = vmul.f32 %v5430_v0, %v5418_v10  ;;  %v5639_v3 = vld [vmem:[#allocation2 + $0x120] sm:$0xff]  ;;  %vm10766_vm1 = vmmov %vm10765_vm8  ;;  %v5392_v10 = vrot.slane %v7053_v28, %v7681_v57 }
 0x813   :  { %v5640_v13 = vld [vmem:[#allocation2 + $0x128] sm:$0xff]  ;;  %v5451_v32 = vrot.slane %v5443_v33, 4  ;;  %v5416_v21 = vpop.permute.xlu1 %5415  ;;  %v7237_v59 = vpack.c.bf16 %v5639_v3, %v5635_v16 }
 0x814   :  { %v5452_v39 = vrot.slane %v5444_v14, 4  ;;  %v5506_v54 = vpop.permute.xlu0 %5505  ;;  %v7235_v52 = vpack.c.bf16 %v5640_v13, %v5636_v47  ;;  %v5417_v19 = vsel %vm10761_vm10, %v5414_v11, %v5416_v21  ;;  %v5420_v40 = vsel %vm10762_vm2, %v5416_v21, %v5410_v36  ;;  %v7055_v33 = vld [vmem:[%s10499_s3 + $0x46] ss:$8 sm:$0xf] }
 0x815   :  { %5459 = vst [vmem:[#allocation2 + $0x140] sm:$0xf0] %v5451_v32  ;;  %v5445_v12 = vmul.f32 %v5434_v20, %v5417_v19  ;;  %v5446_v30 = vmul.f32 %v5438_v24, %v5420_v40  ;;  %v5384_v36 = vrot.slane %v7053_v28, %v7691_v60  ;;  %vm10767_vm10 = vcmp.lt.s32.totalorder %v7675_v55, 98 }
 0x816   :  { %5460 = vst [vmem:[#allocation2 + $0x148] sm:$0xf0] %v5452_v39  ;;  %7236 = vmatprep.subr.bf16.mxu0 %v7235_v52  ;;  %v5642_v53 = vld [vmem:[#allocation2 + $0x138] sm:$0xff]  ;;  %v5641_v61 = vld [vmem:[#allocation2 + $0x130] sm:$0xff]  ;;  %vm10768_vm2 = vmmov %vm10767_vm10  ;;  %v5480_v16 = vrot.slane %v7055_v33, %v7691_v60  ;;  %v5484_v3 = vrot.slane %v7055_v33, %v7678_v56  ;;  %v5488_v19 = vrot.slane %v7055_v33, %v7681_v57 }
 0x817   :  { %7238 = vmatpush1.bf16.msra.mxu0 %v7237_v59  ;;  %v5453_v49 = vrot.slane %v5445_v12, 4  ;;  %v5454_v58 = vrot.slane %v5446_v30, 4  ;;  %v5508_v38 = vpop.permute.xlu1 %5507  ;;  %v7259_v29 = vpack.c.bf16 %v5642_v53, %v5638_v43  ;;  %v7261_v6 = vpack.c.bf16 %v5641_v61, %v5637_v5  ;;  %v7057_v12 = vld [vmem:[%s10499_s3 + $0x60] ss:$8 sm:$0xf] }
 0x818   :  { %v5510_v9 = vpop.permute.xlu0 %5509  ;;  %v5515_v34 = vsel %vm10764_vm15, %v5506_v54, %v5508_v38  ;;  %vm10770_vm15 = vmmov %vm10768_vm2  ;;  %v5492_v40 = vrot.slane %v7055_v33, %v7694_v62  ;;  %v5576_v61 = vrot.slane %v7057_v12, %v7691_v60  ;;  %v10023_v33 = vld [vmem:[%s10607_s23] sm:$0xff] }
 0x819   :  { %v5514_v41 = vsel %vm10763_vm13, %v5508_v38, %v5510_v9  ;;  %5461 = vst [vmem:[#allocation2 + $0x150] sm:$0xf0] %v5453_v49  ;;  %5462 = vst [vmem:[#allocation2 + $0x158] sm:$0xf0] %v5454_v58  ;;  %v5539_v50 = vmul.f32 %v5522_v42, %v5515_v34  ;;  %7260 = vmatprep.subr.bf16.mxu1 %v7259_v29  ;;  %v5580_v49 = vrot.slane %v7057_v12, %v7678_v56 }
 0x81a   :  { %v5540_v22 = vmul.f32 %v5526_v44, %v5514_v41  ;;  %7262 = vmatpush1.bf16.msra.mxu1 %v7261_v6  ;;  %vm10769_vm13 = vmmov %vm10768_vm2  ;;  %v5584_v34 = vrot.slane %v7057_v12, %v7681_v57 }
 0x81b   :  { %v5547_v35 = vrot.slane %v5539_v50, 4  ;;  %v5512_v23 = vpop.permute.xlu1 %5511  ;;  %v5588_v50 = vrot.slane %v7057_v12, %v7694_v62 }
 0x81c   :  { %v5548_v25 = vrot.slane %v5540_v22, 4  ;;  %v5368_v2 = vpop.permute.xlu0 %5367  ;;  %v5513_v46 = vsel %vm10765_vm8, %v5510_v9, %v5512_v23  ;;  %v5516_v18 = vsel %vm10766_vm1, %v5512_v23, %v5506_v54  ;;  %vm10771_vm8 = vcmp.lt.s32.totalorder %v7675_v55, 94 }
 0x81d   :  { %5555 = vst [vmem:[#allocation2 + $0x160] sm:$0xf0] %v5547_v35  ;;  %v5541_v48 = vmul.f32 %v5530_v37, %v5513_v46  ;;  %v5542_v7 = vmul.f32 %v5534_v31, %v5516_v18  ;;  %vm10772_vm1 = vmmov %vm10771_vm8 }
 0x81e   :  { %5556 = vst [vmem:[#allocation2 + $0x168] sm:$0xf0] %v5548_v25 }
 0x81f   :  { %v5549_v51 = vrot.slane %v5541_v48, 4  ;;  %v5550_v17 = vrot.slane %v5542_v7, 4  ;;  %v5370_v63 = vpop.permute.xlu1 %5369 }
 0x820   :  { %v5372_v27 = vpop.permute.xlu0 %5371  ;;  %v5377_v0 = vsel %vm10768_vm2, %v5368_v2, %v5370_v63  ;;  %vm10775_vm2 = vcmask 818176  }
 0x821   :  { %v5376_v8 = vsel %vm10767_vm10, %v5370_v63, %v5372_v27  ;;  %5557 = vst [vmem:[#allocation2 + $0x170] sm:$0xf0] %v5549_v51  ;;  %5558 = vst [vmem:[#allocation2 + $0x178] sm:$0xf0] %v5550_v17  ;;  %v5401_v11 = vmul.f32 %v5384_v36, %v5377_v0  ;;  %v5601_v36 = vld [vmem:[%s10507_s11] sm:$0x3] }
 0x822   :  { %v5402_v26 = vmul.f32 %v5388_v4, %v5376_v8  ;;  %vm10774_vm10 = vmmov %vm10772_vm1  ;;  %v5602_v8 = vunpack.c.l.bf16 %v5601_v36 }
 0x823   :  { %5405 = vst [vmem:[#allocation2 + $0x140] sm:$0xf] %v5401_v11  ;;  %v5374_v20 = vpop.permute.xlu1 %5373 }
 0x824   :  { %5406 = vst [vmem:[#allocation2 + $0x148] sm:$0xf] %v5402_v26  ;;  %v5464_v14 = vpop.permute.xlu0 %5463  ;;  %v5375_v24 = vsel %vm10769_vm13, %v5372_v27, %v5374_v20  ;;  %v5378_v47 = vsel %vm10770_vm15, %v5374_v20, %v5368_v2  ;;  %vm10776_vm13 = vmmov %vm10775_vm2  ;;  %vm10780_vm15 = vcmask 31744  }
 0x825   :  { %v5403_v1 = vmul.f32 %v5392_v10, %v5375_v24  ;;  %v5404_v13 = vmul.f32 %v5396_v15, %v5378_v47  ;;  %v7399_v15 = vmov 7   ;;  %v10777_v47 = vld [vmem:[#allocation9_spill] sm:$0xff] }
 0x826   :  { %7333 = vset.pattern.permute.xlu0 %v7399_v15 }
 0x827   :  { %5407 = vst [vmem:[#allocation2 + $0x150] sm:$0xf] %v5403_v1  ;;  %5408 = vst [vmem:[#allocation2 + $0x158] sm:$0xf] %v5404_v13  ;;  %v5466_v39 = vpop.permute.xlu1 %5465  ;;  %5827 = vperm.xlu0 %7333, %v10023_v33  }
 0x828   :  { %v5468_v32 = vpop.permute.xlu0 %5467  ;;  %v5473_v21 = vsel %vm1338_vm5, %v5464_v14, %v5466_v39 }
 0x829   :  { %v5472_v54 = vsel %vm1338_vm5, %v5466_v39, %v5468_v32  ;;  %v5497_v52 = vmul.f32 %v5480_v16, %v5473_v21  ;;  %v10778_v16 = vld [vmem:[#allocation8_spill] sm:$0xff] }
 0x82a   :  { %v5498_v59 = vmul.f32 %v5484_v3, %v5472_v54  ;;  %v5643_v31 = vld [vmem:[#allocation2 + $0x140] sm:$0xff] }
 0x82b   :  { %5501 = vst [vmem:[#allocation2 + $0x160] sm:$0xf] %v5497_v52  ;;  %v5470_v42 = vpop.permute.xlu1 %5469  ;;  %v5644_v22 = vld [vmem:[#allocation2 + $0x148] sm:$0xff]  ;;  %v10779_v54 = vld [vmem:[#allocation11_spill] sm:$0xff]  ;;  %v10781_v52 = vld [vmem:[#allocation10_spill] sm:$0xff] }
 0x82c   :  { %5502 = vst [vmem:[#allocation2 + $0x168] sm:$0xf] %v5498_v59  ;;  %v5560_v30 = vpop.permute.xlu0 %5559  ;;  %v5471_v44 = vsel %vm1338_vm5, %v5468_v32, %v5470_v42  ;;  %v5474_v43 = vsel %vm1338_vm5, %v5470_v42, %v5464_v14  ;;  %vm10773_vm5 = vmmov %vm10772_vm1  ;;  %v5824_v14 = vld [vmem:[%s10508_s12] sm:$0x3] }
 0x82d   :  { %v5499_v53 = vmul.f32 %v5488_v19, %v5471_v44  ;;  %v5500_v5 = vmul.f32 %v5492_v40, %v5474_v43  ;;  %v5825_v13 = vunpack.c.l.bf16 %v5824_v14  ;;  %v7400_v19 = vmov 8   ;;  %v5993_v44 = vld [vmem:[%s10509_s13] sm:$0x3] }
 0x82e   :  { %v5646_v7 = vld [vmem:[#allocation2 + $0x158] sm:$0xff]  ;;  %v5645_v51 = vld [vmem:[#allocation2 + $0x150] sm:$0xff]  ;;  %7334 = vset.pattern.permute.xlu1 %v7400_v19 }
 0x82f   :  { %5503 = vst [vmem:[#allocation2 + $0x170] sm:$0xf] %v5499_v53  ;;  %5504 = vst [vmem:[#allocation2 + $0x178] sm:$0xf] %v5500_v5  ;;  %v5562_v9 = vpop.permute.xlu1 %5561  ;;  %5996 = vperm.xlu1 %7334, %v10023_v33   ;;  %v10783_v53 = vld [vmem:[#allocation6_spill] sm:$0xff] }
 0x830   :  { %v5564_v58 = vpop.permute.xlu0 %5563  ;;  %v5569_v29 = vsel %vm10772_vm1, %v5560_v30, %v5562_v9 }
 0x831   :  { %v5568_v38 = vsel %vm10771_vm8, %v5562_v9, %v5564_v58  ;;  %v5593_v6 = vmul.f32 %v5576_v61, %v5569_v29  ;;  %vm10782_vm8 = vmmov %vm10780_vm15 }
 0x832   :  { %v5594_v41 = vmul.f32 %v5580_v49, %v5568_v38  ;;  %v5647_v28 = vld [vmem:[#allocation2 + $0x160] sm:$0xff]  ;;  %v5994_v49 = vunpack.c.l.bf16 %v5993_v44  ;;  %vm10786_vm1 = vmmov %vm10782_vm8  ;;  %v7412_v44 = vmov 20  }
 0x833   :  { %v5648_v37 = vld [vmem:[#allocation2 + $0x168] sm:$0xff]  ;;  %5597 = vst [vmem:[#allocation2 + $0x180] sm:$0xf] %v5593_v6  ;;  %v5566_v35 = vpop.permute.xlu1 %5565  ;;  %v7241_v2 = vpack.c.bf16 %v5647_v28, %v5643_v31  ;;  %v7402_v31 = vmov 9   ;;  %v7403_v28 = vmov 13  }
 0x834   :  { %5598 = vst [vmem:[#allocation2 + $0x188] sm:$0xf] %v5594_v41  ;;  %v7239_v25 = vpack.c.bf16 %v5648_v37, %v5644_v22  ;;  %v5567_v23 = vsel %vm10773_vm5, %v5564_v58, %v5566_v35  ;;  %v5570_v46 = vsel %vm10774_vm10, %v5566_v35, %v5560_v30  ;;  %v10784_v58 = vld [vmem:[#allocation4_spill] sm:$0xff]  ;;  %v10785_v41 = vld [vmem:[#allocation7_spill] sm:$0xff]  ;;  %vm10788_vm5 = vmmov %vm10786_vm1  ;;  %v7401_v37 = vmov 11   ;;  %7335 = vset.pattern.permute.xlu1 %v7402_v31 }
 0x835   :  { %v5595_v18 = vmul.f32 %v5584_v34, %v5567_v23  ;;  %v5596_v48 = vmul.f32 %v5588_v50, %v5570_v46  ;;  %v10787_v50 = vld [vmem:[#allocation5_spill] sm:$0xff]  ;;  %7336 = vset.pattern.permute.xlu0 %v7401_v37  ;;  %6169 = vperm.xlu1 %7335, %v10023_v33   ;;  %v7404_v35 = vmov 10   ;;  %v7407_v23 = vmov 15   ;;  %vm10794_vm10 = vmmov %vm10786_vm1 }
 0x836   :  { %7240 = vmatprep.subr.bf16.mxu0 %v7239_v25  ;;  %v5650_v4 = vld [vmem:[#allocation2 + $0x178] sm:$0xff]  ;;  %v5649_v17 = vld [vmem:[#allocation2 + $0x170] sm:$0xff]  ;;  %6368 = vperm.xlu0 %7336, %v10023_v33   ;;  %v7405_v25 = vmov 14   ;;  %v7408_v46 = vmov 17  }
 0x837   :  { %7242 = vmatpush1.bf16.msra.mxu0 %v7241_v2  ;;  %5599 = vst [vmem:[#allocation2 + $0x190] sm:$0xf] %v5595_v18  ;;  %5600 = vst [vmem:[#allocation2 + $0x198] sm:$0xf] %v5596_v48  ;;  %v7263_v27 = vpack.c.bf16 %v5650_v4, %v5646_v7  ;;  %v7265_v63 = vpack.c.bf16 %v5649_v17, %v5645_v51  ;;  %v7406_v2 = vmov 12   ;;  %v7409_v18 = vmov 16  }
 0x838   :  { %v7410_v48 = vmov 18   ;;  %v7411_v7 = vmov 19  }
 0x839   :  { %7264 = vmatprep.subr.bf16.mxu1 %v7263_v27  ;;  %7337 = vset.pattern.permute.xlu1 %v7404_v35 }
 0x83a   :  { %7266 = vmatpush1.bf16.msra.mxu1 %v7265_v63  ;;  %v5651_v11 = vld [vmem:[#allocation2 + $0x180] sm:$0xf]  ;;  %7339 = vset.pattern.permute.xlu0 %v7403_v28 }
 0x83b   :  { %v5652_v0 = vld [vmem:[#allocation2 + $0x188] sm:$0xf]  ;;  %6472 = vperm.xlu0 %7339, %v10023_v33   ;;  %6376 = vperm.xlu1 %7337, %v10023_v33  }
 0x83c   :  { %7058 = vmatprep.subr.msk.mxu0 %vm98_vm0, %v5652_v0 }
 0x83d   :  { %7059 = vmatpush1.msk.msra.mxu0 %vm98_vm0, %v5651_v11 }
 0x83e   :  { %7060 = vmatmul.mubr.msk.f32.vlgmr.msra.gmra.mrb[6].mxu0 %vm10775_vm2, %v5602_v8  ;;  %v5654_v26 = vld [vmem:[#allocation2 + $0x198] sm:$0xf]  ;;  %v5653_v10 = vld [vmem:[#allocation2 + $0x190] sm:$0xf]  ;;  %vm10795_vm2 = vmmov %vm10786_vm1 }
 0x83f   :  { %5909 = vmatprep.mubr.f32.mxu0 %v10701_v45  ;;  %7061 = vmatprep.subr.msk.mxu1 %vm98_vm0, %v5654_v26  ;;  %v6166_v26 = vld [vmem:[%s10510_s14] sm:$0xf] }
 0x840   :  { %7062 = vmatpush1.msk.msra.mxu1 %vm98_vm0, %v5653_v10  ;;  %7340 = vset.pattern.permute.xlu0 %v7405_v25  ;;  %v10789_v10 = vld [vmem:[#allocation3_spill] sm:$0xff] }
 0x841   :  { %7063 = vmatmul.mubr.msk.f32.vlgmr.msra.gmra.mrb[6].mxu1 %vm10776_vm13, %v5602_v8  ;;  %7338 = vset.pattern.permute.xlu1 %v7406_v2  ;;  %v10790_v15 = vunpack.c.l.bf16 %v10789_v10 }
 0x842   :  { %5980 = vmatprep.mubr.f32.mxu1 %v10701_v45  ;;  %6522 = vperm.xlu0 %7340, %v10023_v33  }
 0x843   :  { %6422 = vperm.xlu1 %7338, %v10023_v33  }
 0x846   :  { %7341 = vset.pattern.permute.xlu0 %v7407_v23 }
 0x847   :  { %7343 = vset.pattern.permute.xlu1 %v7408_v46  ;;  %6534 = vperm.xlu0 %7341, %v10023_v33   ;;  %v10189_v46 = vld [vmem:[%s10502_s2] ss:$8 sm:$0xf] }
 0x848   :  { %6634 = vperm.xlu1 %7343, %v10023_v33  }
 0x84b   :  { %7342 = vset.pattern.permute.xlu0 %v7409_v18 }
 0x84c   :  { %7344 = vset.pattern.permute.xlu1 %v7410_v48  ;;  %6584 = vperm.xlu0 %7342, %v10023_v33   ;;  %v10194_v48 = vld [vmem:[%s10502_s2 + $0x1] ss:$8 sm:$0xf] }
 0x84d   :  { %6684 = vperm.xlu1 %7344, %v10023_v33  }
 0x850   :  { %7345 = vset.pattern.permute.xlu0 %v7411_v7 }
 0x851   :  { %6734 = vperm.xlu0 %7345, %v10023_v33  }
 0x855   :  { %7346 = vset.pattern.permute.xlu0 %v7412_v44 }
 0x8a6   :  { %v5828_v40 = vpop.permute.xlu0 %5827 }
 0x8ae   :  { %v5997_v36 = vpop.permute.xlu1 %5996 }
 0x911   :  { %v5736_v20 = vpop.f32.mrb[6].mxu0 }
 0x912   :  { %v5738_v24 = vpop.f32.mrb[7].mxu0  ;;  %v7267_v3 = vadd.f32 %v5736_v20, %v10778_v16 }
 0x913   :  { %v7268_v1 = vadd.f32 %v5738_v24, %v10777_v47 }
 0x914   :  { %v5807_v32 = vpop.f32.mrb[6].mxu1 }
 0x915   :  { %7064 = vmatprep.subr.msk.mxu0 %vm98_vm0, %v7268_v1  ;;  %v5809_v39 = vpop.f32.mrb[7].mxu1  ;;  %v7269_v59 = vadd.f32 %v5807_v32, %v10781_v52  ;;  %v6167_v1 = vunpack.c.l.bf16 %v6166_v26  ;;  %v6170_v32 = vpop.permute.xlu1 %6169  ;;  %v6404_v26 = vrot.slane %v10194_v48, %v7678_v56 }
 0x916   :  { %7065 = vmatpush1.msk.msra.mxu0 %vm98_vm0, %v7267_v3  ;;  %v7270_v21 = vadd.f32 %v5809_v39, %v10779_v54 }
 0x917   :  { %7066 = vmatmul.mubr.msk.f32.vlgmr.msra.gmra.mrb[12].mxu0 %vm10780_vm15, %v5825_v13 }
 0x918   :  { %6078 = vmatprep.mubr.f32.mxu0 %v10701_v45  ;;  %7067 = vmatprep.subr.msk.mxu1 %vm98_vm0, %v7270_v21 }
 0x919   :  { %7068 = vmatpush1.msk.msra.mxu1 %vm98_vm0, %v7269_v59 }
 0x91a   :  { %7069 = vmatmul.mubr.msk.f32.vlgmr.msra.gmra.mrb[12].mxu1 %vm10782_vm8, %v5825_v13  ;;  %v10792_v13 = vunpack.c.h.bf16 %v10789_v10  ;;  %v10226_v10 = vld [vmem:[%s10502_s2 + $0x2] ss:$8 sm:$0xf] }
 0x91b   :  { %6149 = vmatprep.mubr.f32.mxu1 %v10701_v45 }
 0x9ea   :  { %v5911_v12 = vpop.f32.mrb[12].mxu0 }
 0x9eb   :  { %v5912_v30 = vadd.f32 %v5911_v12, %v5828_v40  ;;  %v5913_v42 = vpop.f32.mrb[13].mxu0  ;;  %v10145_v12 = vpop.permute.xlu0 %6368 }
 0x9ec   :  { %v5914_v43 = vadd.f32 %v5913_v42, %v5828_v40  ;;  %v10149_v42 = vpop.permute.xlu1 %6376 }
 0x9ed   :  { %v5982_v61 = vpop.f32.mrb[12].mxu1  ;;  %v5989_v9 = vmul.f32 %v5912_v30, %v10784_v58 }
 0x9ee   :  { %v5990_v5 = vmul.f32 %v5914_v43, %v10783_v53  ;;  %v5983_v38 = vadd.f32 %v5982_v61, %v5828_v40  ;;  %v5984_v29 = vpop.f32.mrb[13].mxu1 }
 0x9ef   :  { %v5985_v6 = vadd.f32 %v5984_v29, %v5828_v40  ;;  %v10147_v30 = vpop.permute.xlu0 %6472 }
 0x9f0   :  { %7070 = vmatprep.subr.msk.mxu0 %vm98_vm0, %v5990_v5  ;;  %v5991_v22 = vmul.f32 %v5983_v38, %v10787_v50  ;;  %v10154_v53 = vpop.permute.xlu1 %6422 }
 0x9f1   :  { %7071 = vmatpush1.msk.msra.mxu0 %vm98_vm0, %v5989_v9  ;;  %v5992_v34 = vmul.f32 %v5985_v6, %v10785_v41 }
 0x9f2   :  { %7072 = vmatmul.mubr.msk.f32.vlgmr.msra.gmra.mrb[14].mxu0 %vm10786_vm1, %v5994_v49 }
 0x9f3   :  { %6251 = vmatprep.mubr.f32.mxu0 %v10701_v45  ;;  %7073 = vmatprep.subr.msk.mxu1 %vm98_vm0, %v5992_v34  ;;  %v10152_v43 = vpop.permute.xlu0 %6522 }
 0x9f4   :  { %7074 = vmatpush1.msk.msra.mxu1 %vm98_vm0, %v5991_v22  ;;  %v10156_v61 = vpop.permute.xlu1 %6634 }
 0x9f5   :  { %7075 = vmatmul.mubr.msk.f32.vlgmr.msra.gmra.mrb[14].mxu1 %vm10788_vm5, %v5994_v49 }
 0x9f6   :  { %6322 = vmatprep.mubr.f32.mxu1 %v10701_v45 }
 0x9f7   :  { %v6535_v5 = vpop.permute.xlu0 %6534 }
 0x9f8   :  { %v10160_v58 = vpop.permute.xlu1 %6684 }
 0x9f9   :  { %10796 = vst [vmem:[#allocation14_spill] sm:$0xff] %v10160_v58 }
 0x9fb   :  { %v10158_v49 = vpop.permute.xlu0 %6584 }
 0x9ff   :  { %v10162_v9 = vpop.permute.xlu0 %6734 }
 0xa00   :  { %10797 = vst [vmem:[#allocation16_spill] sm:$0xff] %v10162_v9 }
 0xac5   :  { %v6080_v4 = vpop.f32.mrb[14].mxu0 }
 0xac6   :  { %v6081_v51 = vadd.f32 %v6080_v4, %v5997_v36  ;;  %v6082_v17 = vpop.f32.mrb[15].mxu0 }
 0xac7   :  { %v6083_v27 = vadd.f32 %v6082_v17, %v5997_v36 }
 0xac8   :  { %v6151_v8 = vpop.f32.mrb[14].mxu1 }
 0xac9   :  { %v6160_v63 = vcombine.low %v6081_v51, %v6083_v27  ;;  %v6152_v0 = vadd.f32 %v6151_v8, %v5997_v36  ;;  %v6153_v11 = vpop.f32.mrb[15].mxu1  ;;  %v6350_v51 = vrot.slane %v10189_v46, %v7678_v56 }
 0xaca   :  { %v6154_v20 = vadd.f32 %v6153_v11, %v5997_v36  ;;  %v10202_v36 = vld [vmem:[%s10502_s2 + $0x5] ss:$8 sm:$0xf]  ;;  %v6358_v11 = vrot.slane %v10189_v46, %v7694_v62 }
 0xacb   :  { %v10073_v14 = vadd.f32 %v6160_v63, %v10790_v15  ;;  %v6354_v63 = vrot.slane %v10189_v46, %v7681_v57 }
 0xacc   :  { %v6161_v24 = vcombine.low %v6152_v0, %v6154_v20  ;;  %v6346_v0 = vrot.slane %v10189_v46, %v7691_v60 }
 0xacd   :  { %10791 = vst [vmem:[#allocation12_spill] sm:$0xff] %v10073_v14  ;;  %v6174_v47 = vcombine.high %v10073_v14, %v10073_v14 }
 0xace   :  { %v10079_v16 = vadd.f32 %v6161_v24, %v10792_v13  ;;  %v6408_v24 = vrot.slane %v10194_v48, %v7681_v57  ;;  %v10239_v13 = vld [vmem:[%s10502_s2 + $0x3] ss:$8 sm:$0xf] }
 0xacf   :  { %7076 = vmatprep.subr.msk.mxu0 %vm98_vm0, %v6174_v47  ;;  %v6504_v46 = vrot.slane %v10239_v13, %v7678_v56 }
 0xad0   :  { %10793 = vst [vmem:[#allocation17_spill] sm:$0xff] %v10079_v16  ;;  %7077 = vmatpush1.msk.msra.mxu0 %vm98_vm0, %v10073_v14  ;;  %v6175_v3 = vcombine.high %v10079_v16, %v10079_v16 }
 0xad1   :  { %7078 = vmatmul.mubr.msk.f32.vlgmr.msra.gmra.mrb[16].mxu0 %vm10794_vm10, %v6167_v1 }
 0xad2   :  { %6839 = vmatprep.mubr.f32.mxu0 %v10701_v45  ;;  %7079 = vmatprep.subr.msk.mxu1 %vm98_vm0, %v6175_v3  ;;  %v6400_v3 = vrot.slane %v10194_v48, %v7691_v60 }
 0xad3   :  { %7080 = vmatpush1.msk.msra.mxu1 %vm98_vm0, %v10079_v16  ;;  %vm6771_vm0 = vcmask 64512  }
 0xad4   :  { %7081 = vmatmul.mubr.msk.f32.vlgmr.msra.gmra.mrb[16].mxu1 %vm10795_vm2, %v6167_v1 }
 0xad5   :  { %6910 = vmatprep.mubr.f32.mxu1 %v10701_v45 }
 0xba4   :  { %v6253_v39 = vpop.f32.mrb[16].mxu0 }
 0xba5   :  { %v10093_v54 = vadd.f32 %v6253_v39, %v6170_v32  ;;  %v6255_v21 = vpop.f32.mrb[17].mxu0 }
 0xba6   :  { %v6256_v45 = vadd.f32 %v6255_v21, %v6170_v32 }
 0xba7   :  { %6383 = vrot.lane.b32.xlu1 %v10093_v54, %s10714_s1  ;;  %6329 = vrot.lane.b32.xlu0 %v10093_v54, %s10715_s18  ;;  %v6324_v52 = vpop.f32.mrb[16].mxu1  ;;  %v10197_v7 = vmul.f32 %v6535_v5, %v10093_v54 }
 0xba8   :  { %v10099_v59 = vadd.f32 %v6324_v52, %v6170_v32  ;;  %v6326_v19 = vpop.f32.mrb[17].mxu1  ;;  %v10204_v4 = vmul.f32 %v6535_v5, %v6256_v45  ;;  %v6454_v52 = vrot.slane %v10226_v10, %v7678_v56 }
 0xba9   :  { %v6327_v40 = vadd.f32 %v6326_v19, %v6170_v32  ;;  %v6412_v32 = vrot.slane %v10194_v48, %v7694_v62  ;;  %v6450_v19 = vrot.slane %v10226_v10, %v7691_v60  ;;  %v10272_v48 = vld [vmem:[%s10502_s2 + $0x7] ss:$8 sm:$0xf] }
 0xbaa   :  { %v10209_v17 = vmul.f32 %v6535_v5, %v10099_v59 }
 0xbab   :  { %6433 = vrot.lane.b32.xlu1 %v10093_v54, %s10717_s30  ;;  %6333 = vrot.lane.b32.xlu0 %v10099_v59, %s10715_s18  ;;  %v10211_v27 = vmul.f32 %v6535_v5, %v6327_v40  ;;  %v6462_v5 = vrot.slane %v10226_v10, %v7694_v62 }
 0xbac   :  { %10798 = vst [vmem:[#allocation18_spill] sm:$0xff] %v10209_v17 }
 0xbad   :  { %10799 = vst [vmem:[#allocation13_spill] sm:$0xff] %v10211_v27 }
 0xbaf   :  { %6483 = vrot.lane.b32.xlu1 %v10093_v54, %s10716_s5  ;;  %6387 = vrot.lane.b32.xlu0 %v10099_v59, %s10714_s1 }
 0xbb3   :  { %6545 = vrot.lane.b32.xlu1 %v10093_v54, %s10718_s6  ;;  %6437 = vrot.lane.b32.xlu0 %v10099_v59, %s10717_s30 }
 0xbb7   :  { %6549 = vrot.lane.b32.xlu1 %v10099_v59, %s10718_s6  ;;  %6487 = vrot.lane.b32.xlu0 %v10099_v59, %s10716_s5 }
 0xbbb   :  { %6645 = vrot.lane.b32.xlu1 %v10093_v54, %s10642_s25  ;;  %6595 = vrot.lane.b32.xlu0 %v10093_v54, %s10643_s26 }
 0xbbf   :  { %6331 = vrot.lane.b32.xlu1 %v6256_v45, %s10715_s18  ;;  %6599 = vrot.lane.b32.xlu0 %v10099_v59, %s10643_s26 }
 0xbc3   :  { %6335 = vrot.lane.b32.xlu1 %v6327_v40, %s10715_s18  ;;  %6649 = vrot.lane.b32.xlu0 %v10099_v59, %s10642_s25 }
 0xbc7   :  { %6385 = vrot.lane.b32.xlu1 %v6256_v45, %s10714_s1  ;;  %6547 = vrot.lane.b32.xlu0 %v6256_v45, %s10718_s6 }
 0xbcb   :  { %6389 = vrot.lane.b32.xlu1 %v6327_v40, %s10714_s1  ;;  %6551 = vrot.lane.b32.xlu0 %v6327_v40, %s10718_s6 }
 0xbcf   :  { %6435 = vrot.lane.b32.xlu1 %v6256_v45, %s10717_s30  ;;  %6695 = vrot.lane.b32.xlu0 %v10093_v54, %s10644_s7  ;;  %v6500_v54 = vrot.slane %v10239_v13, %v7691_v60 }
 0xbd3   :  { %6439 = vrot.lane.b32.xlu1 %v6327_v40, %s10717_s30  ;;  %6699 = vrot.lane.b32.xlu0 %v10099_v59, %s10644_s7 }
 0xbd7   :  { %6485 = vrot.lane.b32.xlu1 %v6256_v45, %s10716_s5  ;;  %6768 = vperm.xlu0 %7346, %v10023_v33  }
 0xbdb   :  { %6489 = vrot.lane.b32.xlu1 %v6327_v40, %s10716_s5 }
 0xbdf   :  { %6597 = vrot.lane.b32.xlu1 %v6256_v45, %s10643_s26 }
 0xbe3   :  { %6601 = vrot.lane.b32.xlu1 %v6327_v40, %s10643_s26 }
 0xbe7   :  { %6647 = vrot.lane.b32.xlu1 %v6256_v45, %s10642_s25 }
 0xbeb   :  { %6651 = vrot.lane.b32.xlu1 %v6327_v40, %s10642_s25 }
 0xbef   :  { %6697 = vrot.lane.b32.xlu1 %v6256_v45, %s10644_s7  ;;  %v10260_v45 = vld [vmem:[%s10502_s2 + $0x6] ss:$8 sm:$0xf] }
 0xbf3   :  { %6701 = vrot.lane.b32.xlu1 %v6327_v40, %s10644_s7 }
 0xc19   :  { %v10164_v38 = vpop.permute.xlu1 %6383  ;;  %v6330_v29 = vpop.permute.xlu0 %6329 }
 0xc1d   :  { %v10166_v6 = vpop.permute.xlu1 %6433  ;;  %v10170_v33 = vpop.permute.xlu0 %6333 }
 0xc21   :  { %v10168_v41 = vpop.permute.xlu1 %6483  ;;  %v10174_v50 = vpop.permute.xlu0 %6387 }
 0xc25   :  { %v10172_v34 = vpop.permute.xlu1 %6545  ;;  %v10180_v31 = vpop.permute.xlu0 %6437 }
 0xc29   :  { %v10176_v22 = vpop.permute.xlu1 %6549  ;;  %v10182_v35 = vpop.permute.xlu0 %6487 }
 0xc2d   :  { %v10178_v37 = vpop.permute.xlu1 %6645  ;;  %v10184_v23 = vpop.permute.xlu0 %6595 }
 0xc31   :  { %v6332_v28 = vpop.permute.xlu1 %6331  ;;  %v10215_v8 = vpop.permute.xlu0 %6599 }
 0xc32   :  { %v6339_v21 = vsel %vm578_vm9, %v6330_v29, %v6332_v28 }
 0xc33   :  { %v6364_v1 = vmul.f32 %v6350_v51, %v6339_v21  ;;  %v10301_v21 = vld [vmem:[%s10502_s2 + $0x20] ss:$8 sm:$0xf] }
 0xc35   :  { %v6336_v25 = vpop.permute.xlu1 %6335  ;;  %v10283_v47 = vpop.permute.xlu0 %6649 }
 0xc36   :  { %v6340_v20 = vsel %vm578_vm9, %v6336_v25, %v6330_v29 }
 0xc37   :  { %v6363_v40 = vmul.f32 %v6346_v0, %v6340_v20  ;;  %v6338_v0 = vsel %vm578_vm9, %v6332_v28, %v10170_v33 }
 0xc38   :  { %v6365_v16 = vmul.f32 %v6354_v63, %v6338_v0  ;;  %v6712_v0 = vrot.slane %v10301_v21, %v7691_v60 }
 0xc39   :  { %v6386_v2 = vpop.permute.xlu1 %6385  ;;  %v6548_v27 = vpop.permute.xlu0 %6547 }
 0xc3a   :  { %v6393_v28 = vsel %vm622_vm7, %v10164_v38, %v6386_v2  ;;  %v6392_v51 = vsel %vm622_vm7, %v6386_v2, %v10174_v50 }
 0xc3b   :  { %v6418_v9 = vmul.f32 %v6404_v26, %v6393_v28  ;;  %v6419_v58 = vmul.f32 %v6408_v24, %v6392_v51 }
 0xc3d   :  { %v6390_v18 = vpop.permute.xlu1 %6389 }
 0xc3e   :  { %v6394_v44 = vsel %vm622_vm7, %v6390_v18, %v10164_v38  ;;  %v6391_v38 = vsel %vm622_vm7, %v10174_v50, %v6390_v18  ;;  %v6716_v50 = vrot.slane %v10301_v21, %v7678_v56 }
 0xc3f   :  { %v6417_v14 = vmul.f32 %v6400_v3, %v6394_v44  ;;  %v6337_v3 = vsel %vm578_vm9, %v10170_v33, %v6336_v25  ;;  %v6371_v44 = vmul.f32 %v10145_v12, %v6363_v40  ;;  %v6372_v25 = vmul.f32 %v10145_v12, %v6364_v1 }
 0xc40   :  { %v6366_v2 = vmul.f32 %v6358_v11, %v6337_v3  ;;  %v6373_v33 = vmul.f32 %v10145_v12, %v6365_v16  ;;  %v6420_v18 = vmul.f32 %v6412_v32, %v6391_v38 }
 0xc41   :  { %v6436_v15 = vpop.permute.xlu1 %6435  ;;  %v6425_v59 = vmul.f32 %v10154_v53, %v6417_v14  ;;  %v6379_v1 = vadd.f32 %v10149_v42, %v6371_v44 }
 0xc42   :  { %v6443_v63 = vsel %vm678_vm12, %v10166_v6, %v6436_v15  ;;  %v6442_v11 = vsel %vm678_vm12, %v6436_v15, %v10180_v31  ;;  %v6374_v15 = vmul.f32 %v10145_v12, %v6366_v2  ;;  %v6555_v12 = vsel %vm882_vm14, %v10172_v34, %v6548_v27 }
 0xc43   :  { %v6429_v28 = vadd.f32 %v6425_v59, %v6379_v1 }
 0xc45   :  { %v6440_v29 = vpop.permute.xlu1 %6439 }
 0xc46   :  { %v6444_v20 = vsel %vm678_vm12, %v6440_v29, %v10166_v6  ;;  %v6468_v6 = vmul.f32 %v6454_v52, %v6443_v63  ;;  %v6441_v26 = vsel %vm678_vm12, %v10180_v31, %v6440_v29  ;;  %v6381_v63 = vadd.f32 %v10149_v42, %v6373_v33 }
 0xc47   :  { %v6467_v40 = vmul.f32 %v6450_v19, %v6444_v20  ;;  %v6380_v19 = vadd.f32 %v10149_v42, %v6372_v25  ;;  %v6426_v20 = vmul.f32 %v10154_v53, %v6418_v9  ;;  %v10800_v9 = vrot.slane %v10226_v10, %v7681_v57 }
 0xc48   :  { %v6470_v59 = vmul.f32 %v6462_v5, %v6441_v26  ;;  %v6476_v3 = vmul.f32 %v10147_v30, %v6468_v6  ;;  %v6382_v25 = vadd.f32 %v10149_v42, %v6374_v15  ;;  %v10802_v10 = vrot.slane %v10239_v13, %v7694_v62 }
 0xc49   :  { %v6486_v39 = vpop.permute.xlu1 %6485  ;;  %v6475_v24 = vmul.f32 %v10147_v30, %v6467_v40  ;;  %v6430_v40 = vadd.f32 %v6426_v20, %v6380_v19  ;;  %v10804_v42 = vrot.slane %v10202_v36, %v7678_v56  ;;  %v10805_v20 = vrot.slane %v10202_v36, %v7681_v57 }
 0xc4a   :  { %v6493_v14 = vsel %vm822_vm11, %v10168_v41, %v6486_v39  ;;  %v6492_v51 = vsel %vm822_vm11, %v6486_v39, %v10182_v35  ;;  %v6469_v39 = vmul.f32 %v10800_v9, %v6442_v11 }
 0xc4b   :  { %v6479_v44 = vadd.f32 %v6475_v24, %v6429_v28  ;;  %v6480_v24 = vadd.f32 %v6476_v3, %v6430_v40 }
 0xc4d   :  { %v6490_v17 = vpop.permute.xlu1 %6489 }
 0xc4e   :  { %v6494_v16 = vsel %vm822_vm11, %v6490_v17, %v10168_v41  ;;  %v6518_v41 = vmul.f32 %v6504_v46, %v6493_v14  ;;  %v6491_v52 = vsel %vm822_vm11, %v10182_v35, %v6490_v17  ;;  %v6427_v46 = vmul.f32 %v10154_v53, %v6419_v58  ;;  %v6552_v17 = vpop.permute.xlu0 %6551 }
 0xc4f   :  { %v6517_v32 = vmul.f32 %v6500_v54, %v6494_v16  ;;  %v6554_v54 = vsel %vm882_vm14, %v6548_v27, %v10176_v22  ;;  %v6428_v35 = vmul.f32 %v10154_v53, %v6420_v18  ;;  %v10801_v27 = vrot.slane %v10239_v13, %v7681_v57 }
 0xc50   :  { %v6520_v5 = vmul.f32 %v10802_v10, %v6491_v52  ;;  %v10803_v53 = vrot.slane %v10202_v36, %v7691_v60  ;;  %v6526_v2 = vmul.f32 %v10152_v43, %v6518_v41  ;;  %v6580_v33 = vmul.f32 %v10804_v42, %v6554_v54 }
 0xc51   :  { %v6525_v31 = vmul.f32 %v10152_v43, %v6517_v32  ;;  %v6598_v29 = vpop.permute.xlu1 %6597  ;;  %v6519_v38 = vmul.f32 %v10801_v27, %v6492_v51  ;;  %v6553_v11 = vsel %vm882_vm14, %v10176_v22, %v6552_v17  ;;  %v6477_v13 = vmul.f32 %v10147_v30, %v6469_v39 }
 0xc52   :  { %v6579_v58 = vmul.f32 %v10803_v53, %v6555_v12  ;;  %v6478_v14 = vmul.f32 %v10147_v30, %v6470_v59  ;;  %v6431_v16 = vadd.f32 %v6427_v46, %v6381_v63  ;;  %v6432_v6 = vadd.f32 %v6428_v35, %v6382_v25  ;;  %v6696_v9 = vpop.permute.xlu0 %6695 }
 0xc53   :  { %v6529_v1 = vadd.f32 %v6525_v31, %v6479_v44  ;;  %v6556_v26 = vsel %vm882_vm14, %v6552_v17, %v10172_v34  ;;  %v6527_v32 = vmul.f32 %v10152_v43, %v6519_v38  ;;  %v6528_v19 = vmul.f32 %v10152_v43, %v6520_v5 }
 0xc54   :  { %v6604_v15 = vsel %vm1038_vm3, %v6598_v29, %v10215_v8  ;;  %v6605_v22 = vsel %vm1038_vm3, %v10184_v23, %v6598_v29  ;;  %v6587_v30 = vmul.f32 %v10158_v49, %v6579_v58  ;;  %v6581_v28 = vmul.f32 %v10805_v20, %v6553_v11 }
 0xc55   :  { %v6602_v18 = vpop.permute.xlu1 %6601  ;;  %v6530_v34 = vadd.f32 %v6526_v2, %v6480_v24  ;;  %v6541_v51 = vadd.f32 %v10197_v7, %v6529_v1  ;;  %v6481_v52 = vadd.f32 %v6477_v13, %v6431_v16  ;;  %v6482_v43 = vadd.f32 %v6478_v14, %v6432_v6  ;;  %v10813_v13 = vld [vmem:[#allocation13_spill] sm:$0xff] }
 0xc56   :  { %v10806_v54 = vrot.slane %v10202_v36, %v7694_v62  ;;  %v10807_v39 = vrot.slane %v10260_v45, %v7691_v60  ;;  %v10808_v59 = vrot.slane %v10260_v45, %v7678_v56  ;;  %v6603_v35 = vsel %vm1038_vm3, %v10215_v8, %v6602_v18  ;;  %v6700_v24 = vpop.permute.xlu0 %6699 }
 0xc57   :  { %v6531_v17 = vadd.f32 %v6527_v32, %v6481_v52  ;;  %v6532_v3 = vadd.f32 %v6528_v19, %v6482_v43  ;;  %v10809_v44 = vrot.slane %v10272_v48, %v7691_v60  ;;  %v6720_v63 = vrot.slane %v10301_v21, %v7681_v57 }
 0xc58   :  { %v6582_v12 = vmul.f32 %v10806_v54, %v6556_v26  ;;  %v6629_v7 = vmul.f32 %v10807_v39, %v6605_v22  ;;  %v6630_v46 = vmul.f32 %v10808_v59, %v6604_v15  ;;  %v6542_v25 = vadd.f32 %v10204_v4, %v6530_v34  ;;  %v10815_v26 = vld [vmem:[#allocation14_spill] sm:$0xff]  ;;  %v10818_v39 = vld [vmem:[#allocation16_spill] sm:$0xff] }
 0xc59   :  { %v6648_v41 = vpop.permute.xlu1 %6647  ;;  %v6591_v27 = vadd.f32 %v6587_v30, %v6541_v51  ;;  %v6606_v38 = vsel %vm1038_vm3, %v6602_v18, %v10184_v23  ;;  %v10810_v10 = vrot.slane %v10272_v48, %v7678_v56  ;;  %v6588_v40 = vmul.f32 %v10158_v49, %v6580_v33  ;;  %v10812_v33 = vld [vmem:[#allocation18_spill] sm:$0xff] }
 0xc5a   :  { %v6654_v31 = vsel %vm1082_vm6, %v6648_v41, %v10283_v47  ;;  %v6655_v29 = vsel %vm1082_vm6, %v10178_v37, %v6648_v41  ;;  %v6589_v53 = vmul.f32 %v10158_v49, %v6581_v28  ;;  %v10811_v58 = vrot.slane %v10260_v45, %v7681_v57 }
 0xc5b   :  { %v6679_v36 = vmul.f32 %v10809_v44, %v6655_v29  ;;  %v6680_v8 = vmul.f32 %v10810_v10, %v6654_v31  ;;  %v6590_v1 = vmul.f32 %v10158_v49, %v6582_v12  ;;  %v6637_v23 = vmul.f32 %v10156_v61, %v6629_v7 }
 0xc5c   :  { %v6631_v2 = vmul.f32 %v10811_v58, %v6603_v35  ;;  %v6638_v18 = vmul.f32 %v10156_v61, %v6630_v46  ;;  %v6543_v11 = vadd.f32 %v10812_v33, %v6531_v17  ;;  %v6544_v14 = vadd.f32 %v10813_v13, %v6532_v3  ;;  %v6765_v58 = vld [vmem:[%s10511_s15] sm:$0x3] }
 0xc5d   :  { %v6652_v5 = vpop.permute.xlu1 %6651  ;;  %v10814_v16 = vrot.slane %v10260_v45, %v7694_v62  ;;  %v6592_v49 = vadd.f32 %v6588_v40, %v6542_v25  ;;  %v6641_v32 = vadd.f32 %v6637_v23, %v6591_v27  ;;  %v6688_v19 = vmul.f32 %v10815_v26, %v6680_v8 }
 0xc5e   :  { %v6653_v4 = vsel %vm1082_vm6, %v10283_v47, %v6652_v5  ;;  %v6656_v42 = vsel %vm1082_vm6, %v6652_v5, %v10178_v37  ;;  %v6687_v47 = vmul.f32 %v10815_v26, %v6679_v36  ;;  %v10816_v15 = vrot.slane %v10272_v48, %v7681_v57 }
 0xc5f   :  { %v6632_v6 = vmul.f32 %v10814_v16, %v6606_v38  ;;  %v6639_v30 = vmul.f32 %v10156_v61, %v6631_v2  ;;  %v10817_v20 = vrot.slane %v10272_v48, %v7694_v62  ;;  %v6642_v51 = vadd.f32 %v6638_v18, %v6592_v49 }
 0xc60   :  { %v6681_v22 = vmul.f32 %v10816_v15, %v6653_v4  ;;  %v6724_v52 = vrot.slane %v10301_v21, %v7694_v62  ;;  %v6593_v48 = vadd.f32 %v6589_v53, %v6543_v11  ;;  %v6594_v43 = vadd.f32 %v6590_v1, %v6544_v14 }
 0xc61   :  { %v6698_v37 = vpop.permute.xlu1 %6697  ;;  %v6682_v28 = vmul.f32 %v10817_v20, %v6656_v42  ;;  %v6640_v31 = vmul.f32 %v10156_v61, %v6632_v6  ;;  %v6691_v29 = vadd.f32 %v6687_v47, %v6641_v32  ;;  %v6692_v54 = vadd.f32 %v6688_v19, %v6642_v51  ;;  %v6769_v47 = vpop.permute.xlu0 %6768  ;;  %v10819_v20 = vld [vmem:[#allocation12_spill] sm:$0xff]  ;;  %v10821_v51 = vld [vmem:[#allocation17_spill] sm:$0xff] }
 0xc62   :  { %v6704_v45 = vsel %vm1138_vm4, %v6698_v37, %v6700_v24  ;;  %v6705_v34 = vsel %vm1138_vm4, %v6696_v9, %v6698_v37  ;;  %v6689_v12 = vmul.f32 %v10815_v26, %v6681_v22  ;;  %v6643_v59 = vadd.f32 %v6639_v30, %v6593_v48 }
 0xc63   :  { %v6729_v41 = vmul.f32 %v6712_v0, %v6705_v34  ;;  %v6730_v57 = vmul.f32 %v6716_v50, %v6704_v45  ;;  %v6690_v56 = vmul.f32 %v10815_v26, %v6682_v28  ;;  %v6644_v17 = vadd.f32 %v6640_v31, %v6594_v43 }
 0xc64   :  { %v6693_v3 = vadd.f32 %v6689_v12, %v6643_v59  ;;  %v6766_v42 = vunpack.c.l.bf16 %v6765_v58 }
 0xc65   :  { %v6737_v7 = vmul.f32 %v10818_v39, %v6729_v41  ;;  %v6738_v60 = vmul.f32 %v10818_v39, %v6730_v57  ;;  %v6702_v0 = vpop.permute.xlu1 %6701  ;;  %v6694_v27 = vadd.f32 %v6690_v56, %v6644_v17 }
 0xc66   :  { %v6703_v50 = vsel %vm1138_vm4, %v6700_v24, %v6702_v0  ;;  %v6706_v62 = vsel %vm1138_vm4, %v6702_v0, %v6696_v9 }
 0xc67   :  { %v6741_v21 = vadd.f32 %v6737_v7, %v6691_v29  ;;  %v6742_v61 = vadd.f32 %v6738_v60, %v6692_v54  ;;  %v6731_v46 = vmul.f32 %v6720_v63, %v6703_v50  ;;  %v6732_v35 = vmul.f32 %v6724_v52, %v6706_v62 }
 0xc69   :  { %v6749_v44 = vmul.f32 0.70710677, %v6741_v21  ;;  %v6750_v36 = vmul.f32 0.70710677, %v6742_v61  ;;  %v6739_v25 = vmul.f32 %v10818_v39, %v6731_v46  ;;  %v6740_v38 = vmul.f32 %v10818_v39, %v6732_v35 }
 0xc6a   :  { %v6745_v40 = vmul.f32 0.5, %v6741_v21  ;;  %v6746_v2 = vmul.f32 0.5, %v6742_v61 }
 0xc6b   :  { %7355 = verf.f32 %v6749_v44  ;;  %v6743_v10 = vadd.f32 %v6739_v25, %v6693_v3  ;;  %v6744_v8 = vadd.f32 %v6740_v38, %v6694_v27 }
 0xc6c   :  { %7357 = verf.f32 %v6750_v36 }
 0xc6d   :  { %v6751_v5 = vmul.f32 0.70710677, %v6743_v10  ;;  %v6752_v55 = vmul.f32 0.70710677, %v6744_v8  ;;  %v6747_v11 = vmul.f32 0.5, %v6743_v10  ;;  %v6748_v14 = vmul.f32 0.5, %v6744_v8 }
 0xc6f   :  { %7359 = verf.f32 %v6751_v5 }
 0xc70   :  { %7361 = verf.f32 %v6752_v55 }
 0xc75   :  { %v7356_v9 = vpop.eup %7355 }
 0xc76   :  { %v7358_v63 = vpop.eup %7357  ;;  %v6757_v53 = vadd.f32 1.0, %v7356_v9 }
 0xc77   :  { %v6758_v4 = vadd.f32 1.0, %v7358_v63 }
 0xc78   :  { %v6761_v1 = vmul.f32 %v6757_v53, %v6745_v40 }
 0xc79   :  { %v7360_v23 = vpop.eup %7359  ;;  %v6762_v18 = vmul.f32 %v6758_v4, %v6746_v2 }
 0xc7a   :  { %v7362_v33 = vpop.eup %7361  ;;  %v6759_v13 = vadd.f32 1.0, %v7360_v23 }
 0xc7b   :  { %6775 = vmatprep.subr.mxu0 %v6762_v18  ;;  %v6760_v16 = vadd.f32 1.0, %v7362_v33 }
 0xc7c   :  { %6776 = vmatpush1.msra.mxu0 %v6761_v1  ;;  %v6763_v6 = vmul.f32 %v6759_v13, %v6747_v11 }
 0xc7d   :  { %7089 = vmatmul.mubr.msk.f32.vlgmr.msra.gmra.mrb[18].mxu0 %vm6771_vm0, %v6766_v42  ;;  %v6764_v26 = vmul.f32 %v6760_v16, %v6748_v14 }
 0xc7f   :  { %6846 = vmatprep.subr.mxu1 %v6764_v26 }
 0xc80   :  { %6847 = vmatpush1.msra.mxu1 %v6763_v6 }
 0xc81   :  { %7090 = vmatmul.mubr.msk.f32.vlgmr.msra.gmra.mrb[18].mxu1 %vm6771_vm0, %v6766_v42 }
 0xd50   :  { %v6841_v24 = vpop.f32.mrb[18].mxu0 }
 0xd51   :  { %v6842_v49 = vadd.f32 %v6841_v24, %v6769_v47  ;;  %v6843_v32 = vpop.f32.mrb[19].mxu0 }
 0xd52   :  { %v6844_v19 = vadd.f32 %v6843_v32, %v6769_v47 }
 0xd54   :  { %v6921_v15 = vcombine.low %v6842_v49, %v6844_v19  ;;  %v6912_v22 = vpop.f32.mrb[18].mxu1 }
 0xd55   :  { %v6913_v37 = vadd.f32 %v6912_v22, %v6769_v47  ;;  %v6914_v30 = vpop.f32.mrb[19].mxu1 }
 0xd56   :  { %v6925_v28 = vadd.f32 %v6921_v15, %v10819_v20  ;;  %v6915_v45 = vadd.f32 %v6914_v30, %v6769_v47 }
 0xd58   :  { %6927 = vst [vmem:[%s10820_s10] sm:$0xff] %v6925_v28  ;;  %v6922_v34 = vcombine.low %v6913_v37, %v6915_v45 }
 0xd5a   :  { %v6926_v41 = vadd.f32 %v6922_v34, %v10821_v51 }
 0xd5c   :  { %6928 = vst [vmem:[%s10820_s10 + $0x8] sm:$0xff] %v6926_v41 }

</bundles_post_ra>
